<compile_context>
chip_gen: v6e
topology: v6e:2x2x1
jax: 0.10.0
libtpu: 0.0.40
codegen_flags: <defaults>
</compile_context>

<pallas_src>
import functools
import math

import numpy as np
import jax
import jax.numpy as jnp
from jax import lax
from jax.experimental import pallas as pl
from jax.experimental.pallas import tpu as pltpu

# ---- hyper-parameters (RLTransformer.__init__ defaults) ----
D_EMBED = 50
N_HEAD = 10
HEAD_DIM = D_EMBED // N_HEAD          # 5
DIM_FF = 2048                         # nn.TransformerEncoderLayer default
NUM_ENC = 6
NUM_DEC = 6
NUM_ACTION = 7
A_PAD = 128                           # lane-dense padding for the 7-wide output
LN_EPS = 1e-5
NEG_INF = -1e30


# ---------------- in-kernel math helpers (traced inside kernels) ----------------
def _mm(a, b):
    # (M,K) @ (K,N) -> (M,N); bf16 inputs, f32 accumulation on the MXU.
    return lax.dot_general(a.astype(jnp.bfloat16), b.astype(jnp.bfloat16),
                           (((1,), (0,)), ((), ())),
                           preferred_element_type=jnp.float32)


def _mm_nt(a, b):
    # (M,K) @ (N,K)^T -> (M,N); keeps the rhs lane-dense (used for q@k^T and h@W2^T).
    return lax.dot_general(a.astype(jnp.bfloat16), b.astype(jnp.bfloat16),
                           (((1,), (1,)), ((), ())),
                           preferred_element_type=jnp.float32)


def _layer_norm(x, w, b):
    mu = jnp.mean(x, axis=-1, keepdims=True)
    xc = x - mu
    var = jnp.mean(xc * xc, axis=-1, keepdims=True)
    return xc * lax.rsqrt(var + LN_EPS) * w + b


def _mha(xq, xkv, wq, wk, wv, wo, bq, bk, bv, bo, sq, sk):
    """Multi-head attention on flattened activations.

    xq: (B*sq, D) f32, xkv: (B*sk, D) f32.
    wq/wk/wv/wo: (D, D) bf16 in x @ W^T form; bq/bk/bv/bo: (1, D) f32.
    Heads are handled with lane masks (exact zeros) so every matmul is 50-wide;
    batches are kept separate with a block-diagonal additive score bias.
    """
    mq, d = xq.shape
    mk = xkv.shape[0]
    nb = mq // sq
    scale = 1.0 / math.sqrt(HEAD_DIM)

    q = _mm(xq, wq) + bq
    k = _mm(xkv, wk) + bk
    v = _mm(xkv, wv) + bv

    # block-diagonal (per-sample) additive bias: 0 within a sample, -1e30 across
    rid = lax.broadcasted_iota(jnp.int32, (mq, mk), 0)
    cid = lax.broadcasted_iota(jnp.int32, (mq, mk), 1)
    same = None
    for b in range(nb):
        blk = ((rid >= b * sq) & (rid < (b + 1) * sq)
               & (cid >= b * sk) & (cid < (b + 1) * sk))
        same = blk if same is None else (same | blk)
    bias = jnp.where(same, 0.0, NEG_INF)

    lane = lax.broadcasted_iota(jnp.int32, (1, d), 1)
    ctx = jnp.zeros((mq, d), jnp.float32)
    for h in range(N_HEAD):
        hm = (lane >= h * HEAD_DIM) & (lane < (h + 1) * HEAD_DIM)
        qh = jnp.where(hm, q, 0.0)                  # zero non-head lanes -> exact per-head dot
        s = _mm_nt(qh, k) * scale + bias            # (mq, mk)
        s = s - jnp.max(s, axis=-1, keepdims=True)
        p = jnp.exp(s)
        p = p / jnp.sum(p, axis=-1, keepdims=True)
        vh = jnp.where(hm, v, 0.0)
        ctx = ctx + _mm(p, vh)                      # fills only this head's lanes
    return _mm(ctx, wo) + bo


# ---------------- Pallas kernel bodies ----------------
def _encoder_kernel(src_ref, aw_ref, w1_ref, b1_ref, w2_ref, vec_ref, mem_ref, *, seq):
    # grid axis = encoder layer.  mem_ref (output) is the resident activation.
    @pl.when(pl.program_id(0) == 0)
    def _():
        mem_ref[...] = src_ref[...]

    x = mem_ref[...]                                 # (B*S, D) f32
    vec = vec_ref[0]                                 # (9, D)  [bq,bk,bv,bo,b2,ln1w,ln1b,ln2w,ln2b]

    attn = _mha(x, x,
                aw_ref[0, 0], aw_ref[0, 1], aw_ref[0, 2], aw_ref[0, 3],
                vec[0:1], vec[1:2], vec[2:3], vec[3:4], seq, seq)
    x = _layer_norm(x + attn, vec[5:6], vec[6:7])

    h = jnp.maximum(_mm(x, w1_ref[0]) + b1_ref[0], 0.0)      # (M, 2048)
    ff = _mm_nt(h, w2_ref[0]) + vec[4:5]                      # lane-dense W2 (50, 2048)
    x = _layer_norm(x + ff, vec[7:8], vec[8:9])

    mem_ref[...] = x


def _decoder_kernel(tgt_ref, mem_ref, aw_ref, w1_ref, b1_ref, w2_ref, vec_ref,
                    wf_ref, bf_ref, out_ref, y_ref, *, s_tgt, s_src):
    # grid axis = decoder layer.  y_ref (VMEM scratch) is the resident activation;
    # the final 50->7 linear (decoder `norm`) is folded into the last layer.
    l = pl.program_id(0)

    @pl.when(l == 0)
    def _():
        y_ref[...] = tgt_ref[...]

    y = y_ref[...]                                   # (B*St, D)
    m = mem_ref[...]                                 # (B*Ss, D)
    vec = vec_ref[0]                                 # (15, D)

    sa = _mha(y, y,
              aw_ref[0, 0], aw_ref[0, 1], aw_ref[0, 2], aw_ref[0, 3],
              vec[0:1], vec[1:2], vec[2:3], vec[3:4], s_tgt, s_tgt)
    y = _layer_norm(y + sa, vec[9:10], vec[10:11])

    ca = _mha(y, m,
              aw_ref[0, 4], aw_ref[0, 5], aw_ref[0, 6], aw_ref[0, 7],
              vec[4:5], vec[5:6], vec[6:7], vec[7:8], s_tgt, s_src)
    y = _layer_norm(y + ca, vec[11:12], vec[12:13])

    h = jnp.maximum(_mm(y, w1_ref[0]) + b1_ref[0], 0.0)
    ff = _mm_nt(h, w2_ref[0]) + vec[8:9]
    y = _layer_norm(y + ff, vec[13:14], vec[14:15])

    y_ref[...] = y

    @pl.when(l == pl.num_programs(0) - 1)
    def _():
        out_ref[...] = _mm(y, wf_ref[...]) + bf_ref[...]      # (B*St, 128) lane-dense logits


# ---------------- pallas_call wrappers ----------------
def _encoder_apply(x, enc, seq):
    m, _ = x.shape
    n_layers = enc['attn_w'].shape[0]
    return pl.pallas_call(
        functools.partial(_encoder_kernel, seq=seq),
        out_shape=jax.ShapeDtypeStruct((m, D_EMBED), jnp.float32),
        grid=(n_layers,),
        in_specs=[
            pl.BlockSpec((m, D_EMBED), lambda l: (0, 0)),
            pl.BlockSpec((1, 4, D_EMBED, D_EMBED), lambda l: (l, 0, 0, 0)),
            pl.BlockSpec((1, D_EMBED, DIM_FF), lambda l: (l, 0, 0)),
            pl.BlockSpec((1, 1, DIM_FF), lambda l: (l, 0, 0)),
            pl.BlockSpec((1, D_EMBED, DIM_FF), lambda l: (l, 0, 0)),
            pl.BlockSpec((1, 9, D_EMBED), lambda l: (l, 0, 0)),
        ],
        out_specs=pl.BlockSpec((m, D_EMBED), lambda l: (0, 0)),
        compiler_params=pltpu.CompilerParams(dimension_semantics=("arbitrary",)),
    )(x, enc['attn_w'], enc['w1'], enc['b1'], enc['w2'], enc['vec'])


def _decoder_apply(y, memory, dec, fin, s_tgt, s_src):
    mt, _ = y.shape
    ms = memory.shape[0]
    n_layers = dec['attn_w'].shape[0]
    return pl.pallas_call(
        functools.partial(_decoder_kernel, s_tgt=s_tgt, s_src=s_src),
        out_shape=jax.ShapeDtypeStruct((mt, A_PAD), jnp.float32),
        grid=(n_layers,),
        in_specs=[
            pl.BlockSpec((mt, D_EMBED), lambda l: (0, 0)),
            pl.BlockSpec((ms, D_EMBED), lambda l: (0, 0)),
            pl.BlockSpec((1, 8, D_EMBED, D_EMBED), lambda l: (l, 0, 0, 0)),
            pl.BlockSpec((1, D_EMBED, DIM_FF), lambda l: (l, 0, 0)),
            pl.BlockSpec((1, 1, DIM_FF), lambda l: (l, 0, 0)),
            pl.BlockSpec((1, D_EMBED, DIM_FF), lambda l: (l, 0, 0)),
            pl.BlockSpec((1, 15, D_EMBED), lambda l: (l, 0, 0)),
            pl.BlockSpec((D_EMBED, A_PAD), lambda l: (0, 0)),
            pl.BlockSpec((1, A_PAD), lambda l: (0, 0)),
        ],
        out_specs=pl.BlockSpec((mt, A_PAD), lambda l: (0, 0)),
        scratch_shapes=[pltpu.VMEM((mt, D_EMBED), jnp.float32)],
        compiler_params=pltpu.CompilerParams(dimension_semantics=("arbitrary",)),
    )(y, memory, dec['attn_w'], dec['w1'], dec['b1'], dec['w2'], dec['vec'],
      fin['w'], fin['b'])


def rl_transformer_forward(src, tgt, params):
    """src: (S_src, B, D), tgt: (S_tgt, B, D)  ->  (S_tgt, B, NUM_ACTION)."""
    s_src, b, _ = src.shape
    s_tgt = tgt.shape[0]
    x = jnp.transpose(src, (1, 0, 2)).reshape(b * s_src, D_EMBED).astype(jnp.float32)
    y = jnp.transpose(tgt, (1, 0, 2)).reshape(b * s_tgt, D_EMBED).astype(jnp.float32)
    memory = _encoder_apply(x, params['enc'], s_src)
    logits = _decoder_apply(y, memory, params['dec'], params['final'], s_tgt, s_src)
    out = logits[:, :NUM_ACTION].reshape(b, s_tgt, NUM_ACTION)
    return jnp.transpose(out, (1, 0, 2))


# ---------------- deterministic parameter init (synthetic, packed layouts) ----------------
def _uniform(key, shape, bound):
    return jax.random.uniform(key, shape, jnp.float32, minval=-bound, maxval=bound)


def _init_attn(key):
    ks = jax.random.split(key, 8)
    bound = 1.0 / math.sqrt(D_EMBED)
    mats = [_uniform(ks[i], (D_EMBED, D_EMBED), bound) for i in range(4)]   # Wq,Wk,Wv,Wo (out,in)
    biases = [_uniform(ks[4 + i], (D_EMBED,), bound) for i in range(4)]
    aw = jnp.stack([jnp.transpose(m) for m in mats])                        # (4, D, D): x @ W^T
    ab = jnp.stack(biases)                                                  # (4, D)
    return aw, ab


def _init_ffn(key):
    ks = jax.random.split(key, 4)
    b1 = 1.0 / math.sqrt(D_EMBED)
    b2 = 1.0 / math.sqrt(DIM_FF)
    W1 = _uniform(ks[0], (DIM_FF, D_EMBED), b1)
    bb1 = _uniform(ks[1], (DIM_FF,), b1)
    W2 = _uniform(ks[2], (D_EMBED, DIM_FF), b2)
    bb2 = _uniform(ks[3], (D_EMBED,), b2)
    # w1: (D, FF) lane-dense (x @ w1); w2 kept (D, FF) lane-dense (used via h @ w2^T)
    return jnp.transpose(W1), bb1.reshape(1, DIM_FF), W2, bb2.reshape(1, D_EMBED)


def init_params(key):
    keys = jax.random.split(key, NUM_ENC + NUM_DEC + 1)
    ones = jnp.ones((1, D_EMBED), jnp.float32)
    zeros = jnp.zeros((1, D_EMBED), jnp.float32)

    enc_layers = []
    for i in range(NUM_ENC):
        ka, kf = jax.random.split(keys[i], 2)
        aw, ab = _init_attn(ka)
        w1, b1, w2, b2 = _init_ffn(kf)
        vec = jnp.concatenate([ab, b2, ones, zeros, ones, zeros], axis=0)   # (9, D)
        enc_layers.append(dict(attn_w=aw.astype(jnp.bfloat16),
                               w1=w1.astype(jnp.bfloat16), b1=b1,
                               w2=w2.astype(jnp.bfloat16), vec=vec))

    dec_layers = []
    for i in range(NUM_DEC):
        ka, kb, kf = jax.random.split(keys[NUM_ENC + i], 3)
        s_aw, s_ab = _init_attn(ka)
        c_aw, c_ab = _init_attn(kb)
        w1, b1, w2, b2 = _init_ffn(kf)
        vec = jnp.concatenate([s_ab, c_ab, b2,
                               ones, zeros, ones, zeros, ones, zeros], axis=0)  # (15, D)
        dec_layers.append(dict(attn_w=jnp.concatenate([s_aw, c_aw], 0).astype(jnp.bfloat16),
                               w1=w1.astype(jnp.bfloat16), b1=b1,
                               w2=w2.astype(jnp.bfloat16), vec=vec))

    def stack(layers):
        return {k: jnp.stack([lyr[k] for lyr in layers]) for k in layers[0]}

    kw, kb = jax.random.split(keys[-1], 2)
    bound = 1.0 / math.sqrt(D_EMBED)
    Wf = _uniform(kw, (NUM_ACTION, D_EMBED), bound)          # nn.Linear(50, 7)
    bf = _uniform(kb, (NUM_ACTION,), bound)
    wf = jnp.zeros((D_EMBED, A_PAD), jnp.float32).at[:, :NUM_ACTION].set(jnp.transpose(Wf))
    bfp = jnp.zeros((1, A_PAD), jnp.float32).at[:, :NUM_ACTION].set(bf)

    return dict(enc=stack(enc_layers), dec=stack(dec_layers),
                final=dict(w=wf.astype(jnp.bfloat16), b=bfp))


# ---------------- pure-JAX reference (same bf16-in / f32-accumulate math) ----------------
def _ref_mm(a, b):
    return jnp.einsum('...k,kn->...n', a.astype(jnp.bfloat16), b.astype(jnp.bfloat16),
                      preferred_element_type=jnp.float32)


def _ref_ln(x, w, b):
    mu = jnp.mean(x, axis=-1, keepdims=True)
    xc = x - mu
    var = jnp.mean(xc * xc, axis=-1, keepdims=True)
    return xc * lax.rsqrt(var + LN_EPS) * w + b


def _ref_attn(xq, xkv, aw, ab):
    q = _ref_mm(xq, aw[0]) + ab[0]
    k = _ref_mm(xkv, aw[1]) + ab[1]
    v = _ref_mm(xkv, aw[2]) + ab[2]
    b, sq, _ = q.shape
    sk = k.shape[1]
    qh = q.reshape(b, sq, N_HEAD, HEAD_DIM).astype(jnp.bfloat16)
    kh = k.reshape(b, sk, N_HEAD, HEAD_DIM).astype(jnp.bfloat16)
    vh = v.reshape(b, sk, N_HEAD, HEAD_DIM).astype(jnp.bfloat16)
    s = jnp.einsum('bqhd,bkhd->bhqk', qh, kh, preferred_element_type=jnp.float32)
    s = s * (1.0 / math.sqrt(HEAD_DIM))
    p = jax.nn.softmax(s, axis=-1).astype(jnp.bfloat16)
    ctx = jnp.einsum('bhqk,bkhd->bqhd', p, vh, preferred_element_type=jnp.float32)
    ctx = ctx.reshape(b, sq, D_EMBED)
    return _ref_mm(ctx, aw[3]) + ab[3]


def _ref_ffn(x, w1, b1, w2, b2):
    h = jax.nn.relu(_ref_mm(x, w1) + b1[0])
    return jnp.einsum('bsf,df->bsd', h.astype(jnp.bfloat16), w2.astype(jnp.bfloat16),
                      preferred_element_type=jnp.float32) + b2


def _ref_enc_layer(x, aw, w1, b1, w2, vec):
    a = _ref_attn(x, x, aw, vec[0:4])
    x = _ref_ln(x + a, vec[5], vec[6])
    f = _ref_ffn(x, w1, b1, w2, vec[4])
    return _ref_ln(x + f, vec[7], vec[8])


def _ref_dec_layer(y, m, aw, w1, b1, w2, vec):
    sa = _ref_attn(y, y, aw[0:4], vec[0:4])
    y = _ref_ln(y + sa, vec[9], vec[10])
    ca = _ref_attn(y, m, aw[4:8], vec[4:8])
    y = _ref_ln(y + ca, vec[11], vec[12])
    f = _ref_ffn(y, w1, b1, w2, vec[8])
    return _ref_ln(y + f, vec[13], vec[14])


def rl_transformer_forward_ref(src, tgt, params):
    x = jnp.transpose(src, (1, 0, 2)).astype(jnp.float32)
    enc = params['enc']
    for l in range(enc['attn_w'].shape[0]):
        x = _ref_enc_layer(x, enc['attn_w'][l], enc['w1'][l], enc['b1'][l],
                           enc['w2'][l], enc['vec'][l])
    y = jnp.transpose(tgt, (1, 0, 2)).astype(jnp.float32)
    dec = params['dec']
    for l in range(dec['attn_w'].shape[0]):
        y = _ref_dec_layer(y, x, dec['attn_w'][l], dec['w1'][l], dec['b1'][l],
                           dec['w2'][l], dec['vec'][l])
    logits = _ref_mm(y, params['final']['w']) + params['final']['b'][0]
    return jnp.transpose(logits[..., :NUM_ACTION], (1, 0, 2))


# TODO(synk): episode()/train()/eval()/predict() (Gym env interaction, action
# sampling, optimizer loop) are host-side RL control flow with no Pallas
# equivalent; only the nn.Module forward(src, tgt) is implemented here.

if __name__ == "__main__":
    key = jax.random.PRNGKey(0)
    k_src, k_tgt, k_par = jax.random.split(key, 3)

    B, S_SRC, S_TGT = 2, 8, 4
    # PyTorch nn.Transformer layout: (seq, batch, embed)
    src = jax.random.normal(k_src, (S_SRC, B, D_EMBED), jnp.float32)
    tgt = jax.random.normal(k_tgt, (S_TGT, B, D_EMBED), jnp.float32)
    params = init_params(k_par)

    fwd = jax.jit(rl_transformer_forward)
    out = jax.block_until_ready(fwd(src, tgt, params))

    assert out.shape == (S_TGT, B, NUM_ACTION)
    assert bool(jnp.all(jnp.isfinite(out)))

    ref = jax.block_until_ready(rl_transformer_forward_ref(src, tgt, params))
    np.testing.assert_allclose(np.asarray(out), np.asarray(ref), rtol=1e-2, atol=1e-2)

    print("KERNEL_OK")
</pallas_src>

<mosaic_0001>
module attributes {stable_mosaic.version = 11 : i64} {
  func.func @_decoder_kernel(%arg0: i32, %arg1: memref<8x50xf32, #tpu.memory_space<vmem>>, %arg2: memref<16x50xf32, #tpu.memory_space<vmem>>, %arg3: memref<1x8x50x50xbf16, #tpu.memory_space<vmem>>, %arg4: memref<1x50x2048xbf16, #tpu.memory_space<vmem>>, %arg5: memref<1x1x2048xf32, #tpu.memory_space<vmem>>, %arg6: memref<1x50x2048xbf16, #tpu.memory_space<vmem>>, %arg7: memref<1x15x50xf32, #tpu.memory_space<vmem>>, %arg8: memref<50x128xbf16, #tpu.memory_space<vmem>>, %arg9: memref<1x128xf32, #tpu.memory_space<vmem>>, %arg10: memref<8x128xf32, #tpu.memory_space<vmem>>, %arg11: memref<8x50xf32, #tpu.memory_space<vmem>>) attributes {dimension_semantics = [#tpu.dimension_semantics<arbitrary>], iteration_bounds = array<i64: 6>, scalar_prefetch = 0 : i64, scratch_operands = 1 : i64, tpu.core_type = #tpu.core_type<tc>, window_params = [{pipeline_mode = #tpu.pipeline_mode<synchronous>, transform_indices = @transform_0, window_bounds = array<i64: 8, 50>}, {pipeline_mode = #tpu.pipeline_mode<synchronous>, transform_indices = @transform_1, window_bounds = array<i64: 16, 50>}, {transform_indices = @transform_2, window_bounds = array<i64: 1, 8, 50, 50>}, {transform_indices = @transform_3, window_bounds = array<i64: 1, 50, 2048>}, {transform_indices = @transform_4, window_bounds = array<i64: 1, 1, 2048>}, {transform_indices = @transform_5, window_bounds = array<i64: 1, 50, 2048>}, {transform_indices = @transform_6, window_bounds = array<i64: 1, 15, 50>}, {pipeline_mode = #tpu.pipeline_mode<synchronous>, transform_indices = @transform_7, window_bounds = array<i64: 50, 128>}, {pipeline_mode = #tpu.pipeline_mode<synchronous>, transform_indices = @transform_8, window_bounds = array<i64: 1, 128>}, {pipeline_mode = #tpu.pipeline_mode<synchronous>, transform_indices = @transform_9, window_bounds = array<i64: 8, 128>}]} {
    %c0_i32 = arith.constant 0 : i32
    %0 = arith.cmpi eq, %arg0, %c0_i32 : i32
    %1 = arith.extui %0 : i1 to i32
    %c0_i32_0 = arith.constant 0 : i32
    %2 = arith.cmpi ne, %1, %c0_i32_0 : i32
    scf.if %2 {
      %c0_259 = arith.constant 0 : index
      %c0_260 = arith.constant 0 : index
      %853 = vector.load %arg1[%c0_259, %c0_260] : memref<8x50xf32, #tpu.memory_space<vmem>>, vector<8x50xf32>
      %c0_261 = arith.constant 0 : index
      %c0_262 = arith.constant 0 : index
      %854 = vector.load %arg11[%c0_261, %c0_262] : memref<8x50xf32, #tpu.memory_space<vmem>>, vector<8x50xf32>
      tpu.vector_store %arg11[%c0_261, %c0_262], %853 {strides = array<i32>} : memref<8x50xf32, #tpu.memory_space<vmem>>, vector<8x50xf32>,
    } else {
    }
    %c0 = arith.constant 0 : index
    %c0_1 = arith.constant 0 : index
    %3 = vector.load %arg11[%c0, %c0_1] : memref<8x50xf32, #tpu.memory_space<vmem>>, vector<8x50xf32>
    %c0_2 = arith.constant 0 : index
    %c0_3 = arith.constant 0 : index
    %4 = vector.load %arg2[%c0_2, %c0_3] : memref<16x50xf32, #tpu.memory_space<vmem>>, vector<16x50xf32>
    %c0_4 = arith.constant 0 : index
    %c0_5 = arith.constant 0 : index
    %c0_6 = arith.constant 0 : index
    %5 = vector.load %arg7[%c0_4, %c0_5, %c0_6] : memref<1x15x50xf32, #tpu.memory_space<vmem>>, vector<1x15x50xf32>
    %6 = vector.shape_cast %5 : vector<1x15x50xf32> to vector<15x50xf32>
    %c0_7 = arith.constant 0 : index
    %c0_8 = arith.constant 0 : index
    %c0_9 = arith.constant 0 : index
    %c0_10 = arith.constant 0 : index
    %7 = vector.load %arg3[%c0_7, %c0_8, %c0_9, %c0_10] : memref<1x8x50x50xbf16, #tpu.memory_space<vmem>>, vector<1x1x50x50xbf16>
    %8 = vector.shape_cast %7 : vector<1x1x50x50xbf16> to vector<50x50xbf16>
    %c0_11 = arith.constant 0 : index
    %c1 = arith.constant 1 : index
    %c0_12 = arith.constant 0 : index
    %c0_13 = arith.constant 0 : index
    %9 = vector.load %arg3[%c0_11, %c1, %c0_12, %c0_13] : memref<1x8x50x50xbf16, #tpu.memory_space<vmem>>, vector<1x1x50x50xbf16>
    %10 = vector.shape_cast %9 : vector<1x1x50x50xbf16> to vector<50x50xbf16>
    %c0_14 = arith.constant 0 : index
    %c2 = arith.constant 2 : index
    %c0_15 = arith.constant 0 : index
    %c0_16 = arith.constant 0 : index
    %11 = vector.load %arg3[%c0_14, %c2, %c0_15, %c0_16] : memref<1x8x50x50xbf16, #tpu.memory_space<vmem>>, vector<1x1x50x50xbf16>
    %12 = vector.shape_cast %11 : vector<1x1x50x50xbf16> to vector<50x50xbf16>
    %c0_17 = arith.constant 0 : index
    %c3 = arith.constant 3 : index
    %c0_18 = arith.constant 0 : index
    %c0_19 = arith.constant 0 : index
    %13 = vector.load %arg3[%c0_17, %c3, %c0_18, %c0_19] : memref<1x8x50x50xbf16, #tpu.memory_space<vmem>>, vector<1x1x50x50xbf16>
    %14 = vector.shape_cast %13 : vector<1x1x50x50xbf16> to vector<50x50xbf16>
    %15 = vector.extract_strided_slice %6 {offsets = [0, 0], sizes = [1, 50], strides = [1, 1]} : vector<15x50xf32> to vector<1x50xf32>
    %16 = vector.extract_strided_slice %6 {offsets = [1, 0], sizes = [1, 50], strides = [1, 1]} : vector<15x50xf32> to vector<1x50xf32>
    %17 = vector.extract_strided_slice %6 {offsets = [2, 0], sizes = [1, 50], strides = [1, 1]} : vector<15x50xf32> to vector<1x50xf32>
    %18 = vector.extract_strided_slice %6 {offsets = [3, 0], sizes = [1, 50], strides = [1, 1]} : vector<15x50xf32> to vector<1x50xf32>
    %19 = arith.truncf %3 : vector<8x50xf32> to vector<8x50xbf16>
    %cst = arith.constant dense<0.000000e+00> : vector<8x50xf32>
    %20 = tpu.matmul %19, %8, %cst {dimension_numbers = #tpu.dot_dimension_numbers<[1], [0], [0], [1], [0, 0, 1, 1], [], []>} : vector<8x50xbf16>, vector<50x50xbf16>, vector<8x50xf32> -> vector<8x50xf32>
    %21 = vector.broadcast %15 : vector<1x50xf32> to vector<8x50xf32>
    %22 = arith.addf %20, %21 : vector<8x50xf32>
    %23 = arith.truncf %3 : vector<8x50xf32> to vector<8x50xbf16>
    %cst_20 = arith.constant dense<0.000000e+00> : vector<8x50xf32>
    %24 = tpu.matmul %23, %10, %cst_20 {dimension_numbers = #tpu.dot_dimension_numbers<[1], [0], [0], [1], [0, 0, 1, 1], [], []>} : vector<8x50xbf16>, vector<50x50xbf16>, vector<8x50xf32> -> vector<8x50xf32>
    %25 = vector.broadcast %16 : vector<1x50xf32> to vector<8x50xf32>
    %26 = arith.addf %24, %25 : vector<8x50xf32>
    %27 = arith.truncf %3 : vector<8x50xf32> to vector<8x50xbf16>
    %cst_21 = arith.constant dense<0.000000e+00> : vector<8x50xf32>
    %28 = tpu.matmul %27, %12, %cst_21 {dimension_numbers = #tpu.dot_dimension_numbers<[1], [0], [0], [1], [0, 0, 1, 1], [], []>} : vector<8x50xbf16>, vector<50x50xbf16>, vector<8x50xf32> -> vector<8x50xf32>
    %29 = vector.broadcast %17 : vector<1x50xf32> to vector<8x50xf32>
    %30 = arith.addf %28, %29 : vector<8x50xf32>
    %31 = tpu.iota {dimensions = array<i32: 0>} : vector<8x8xi32>
    %32 = tpu.iota {dimensions = array<i32: 1>} : vector<8x8xi32>
    %c0_i32_22 = arith.constant 0 : i32
    %33 = vector.broadcast %c0_i32_22 : i32 to vector<8x8xi32>
    %34 = arith.cmpi sge, %31, %33 : vector<8x8xi32>
    %c4_i32 = arith.constant 4 : i32
    %35 = vector.broadcast %c4_i32 : i32 to vector<8x8xi32>
    %36 = arith.cmpi slt, %31, %35 : vector<8x8xi32>
    %37 = arith.andi %34, %36 : vector<8x8xi1>
    %c0_i32_23 = arith.constant 0 : i32
    %38 = vector.broadcast %c0_i32_23 : i32 to vector<8x8xi32>
    %39 = arith.cmpi sge, %32, %38 : vector<8x8xi32>
    %40 = arith.andi %37, %39 : vector<8x8xi1>
    %c4_i32_24 = arith.constant 4 : i32
    %41 = vector.broadcast %c4_i32_24 : i32 to vector<8x8xi32>
    %42 = arith.cmpi slt, %32, %41 : vector<8x8xi32>
    %43 = arith.andi %40, %42 : vector<8x8xi1>
    %c4_i32_25 = arith.constant 4 : i32
    %44 = vector.broadcast %c4_i32_25 : i32 to vector<8x8xi32>
    %45 = arith.cmpi sge, %31, %44 : vector<8x8xi32>
    %c8_i32 = arith.constant 8 : i32
    %46 = vector.broadcast %c8_i32 : i32 to vector<8x8xi32>
    %47 = arith.cmpi slt, %31, %46 : vector<8x8xi32>
    %48 = arith.andi %45, %47 : vector<8x8xi1>
    %c4_i32_26 = arith.constant 4 : i32
    %49 = vector.broadcast %c4_i32_26 : i32 to vector<8x8xi32>
    %50 = arith.cmpi sge, %32, %49 : vector<8x8xi32>
    %51 = arith.andi %48, %50 : vector<8x8xi1>
    %c8_i32_27 = arith.constant 8 : i32
    %52 = vector.broadcast %c8_i32_27 : i32 to vector<8x8xi32>
    %53 = arith.cmpi slt, %32, %52 : vector<8x8xi32>
    %54 = arith.andi %51, %53 : vector<8x8xi1>
    %55 = arith.ori %43, %54 : vector<8x8xi1>
    %cst_28 = arith.constant 0.000000e+00 : f32
    %cst_29 = arith.constant -1.000000e+30 : f32
    %56 = vector.broadcast %cst_28 : f32 to vector<8x8xf32>
    %57 = vector.broadcast %cst_29 : f32 to vector<8x8xf32>
    %58 = arith.select %55, %56, %57 : vector<8x8xi1>, vector<8x8xf32>
    %59 = tpu.iota {dimensions = array<i32: 1>} : vector<1x50xi32>
    %cst_30 = arith.constant 0.000000e+00 : f32
    %60 = vector.broadcast %cst_30 : f32 to vector<8x50xf32>
    %c0_i32_31 = arith.constant 0 : i32
    %61 = vector.broadcast %c0_i32_31 : i32 to vector<1x50xi32>
    %62 = arith.cmpi sge, %59, %61 : vector<1x50xi32>
    %c5_i32 = arith.constant 5 : i32
    %63 = vector.broadcast %c5_i32 : i32 to vector<1x50xi32>
    %64 = arith.cmpi slt, %59, %63 : vector<1x50xi32>
    %65 = arith.andi %62, %64 : vector<1x50xi1>
    %cst_32 = arith.constant 0.000000e+00 : f32
    %66 = vector.shape_cast %65 : vector<1x50xi1> to vector<1x50xi1>
    %67 = vector.broadcast %66 : vector<1x50xi1> to vector<8x50xi1>
    %68 = vector.broadcast %cst_32 : f32 to vector<8x50xf32>
    %69 = arith.select %67, %22, %68 : vector<8x50xi1>, vector<8x50xf32>
    %70 = arith.truncf %69 : vector<8x50xf32> to vector<8x50xbf16>
    %71 = arith.truncf %26 : vector<8x50xf32> to vector<8x50xbf16>
    %cst_33 = arith.constant dense<0.000000e+00> : vector<8x8xf32>
    %72 = tpu.matmul %70, %71, %cst_33 {dimension_numbers = #tpu.dot_dimension_numbers<[1], [1], [0], [0], [0, 0, 1, 0], [], []>} : vector<8x50xbf16>, vector<8x50xbf16>, vector<8x8xf32> -> vector<8x8xf32>
    %cst_34 = arith.constant 0.44721359 : f32
    %73 = vector.broadcast %cst_34 : f32 to vector<8x8xf32>
    %74 = arith.mulf %72, %73 : vector<8x8xf32>
    %75 = arith.addf %74, %58 : vector<8x8xf32>
    %cst_35 = arith.constant dense<0xFF800000> : vector<8xf32>
    %76 = vector.multi_reduction <maximumf>, %75, %cst_35 [1] : vector<8x8xf32> to vector<8xf32>
    %77 = vector.shape_cast %76 : vector<8xf32> to vector<8x1xf32>
    %78 = vector.broadcast %77 : vector<8x1xf32> to vector<8x8xf32>
    %79 = arith.subf %75, %78 : vector<8x8xf32>
    %80 = math.exp %79 : vector<8x8xf32>
    %cst_36 = arith.constant dense<0.000000e+00> : vector<8xf32>
    %81 = vector.multi_reduction <add>, %80, %cst_36 [1] : vector<8x8xf32> to vector<8xf32>
    %82 = vector.shape_cast %81 : vector<8xf32> to vector<8x1xf32>
    %83 = vector.broadcast %82 : vector<8x1xf32> to vector<8x8xf32>
    %84 = arith.divf %80, %83 : vector<8x8xf32>
    %cst_37 = arith.constant 0.000000e+00 : f32
    %85 = vector.shape_cast %65 : vector<1x50xi1> to vector<1x50xi1>
    %86 = vector.broadcast %85 : vector<1x50xi1> to vector<8x50xi1>
    %87 = vector.broadcast %cst_37 : f32 to vector<8x50xf32>
    %88 = arith.select %86, %30, %87 : vector<8x50xi1>, vector<8x50xf32>
    %89 = arith.truncf %84 : vector<8x8xf32> to vector<8x8xbf16>
    %90 = arith.truncf %88 : vector<8x50xf32> to vector<8x50xbf16>
    %cst_38 = arith.constant dense<0.000000e+00> : vector<8x50xf32>
    %91 = tpu.matmul %89, %90, %cst_38 {dimension_numbers = #tpu.dot_dimension_numbers<[1], [0], [0], [1], [0, 0, 1, 1], [], []>} : vector<8x8xbf16>, vector<8x50xbf16>, vector<8x50xf32> -> vector<8x50xf32>
    %92 = arith.addf %60, %91 : vector<8x50xf32>
    %c5_i32_39 = arith.constant 5 : i32
    %93 = vector.broadcast %c5_i32_39 : i32 to vector<1x50xi32>
    %94 = arith.cmpi sge, %59, %93 : vector<1x50xi32>
    %c10_i32 = arith.constant 10 : i32
    %95 = vector.broadcast %c10_i32 : i32 to vector<1x50xi32>
    %96 = arith.cmpi slt, %59, %95 : vector<1x50xi32>
    %97 = arith.andi %94, %96 : vector<1x50xi1>
    %cst_40 = arith.constant 0.000000e+00 : f32
    %98 = vector.shape_cast %97 : vector<1x50xi1> to vector<1x50xi1>
    %99 = vector.broadcast %98 : vector<1x50xi1> to vector<8x50xi1>
    %100 = vector.broadcast %cst_40 : f32 to vector<8x50xf32>
    %101 = arith.select %99, %22, %100 : vector<8x50xi1>, vector<8x50xf32>
    %102 = arith.truncf %101 : vector<8x50xf32> to vector<8x50xbf16>
    %103 = arith.truncf %26 : vector<8x50xf32> to vector<8x50xbf16>
    %cst_41 = arith.constant dense<0.000000e+00> : vector<8x8xf32>
    %104 = tpu.matmul %102, %103, %cst_41 {dimension_numbers = #tpu.dot_dimension_numbers<[1], [1], [0], [0], [0, 0, 1, 0], [], []>} : vector<8x50xbf16>, vector<8x50xbf16>, vector<8x8xf32> -> vector<8x8xf32>
    %cst_42 = arith.constant 0.44721359 : f32
    %105 = vector.broadcast %cst_42 : f32 to vector<8x8xf32>
    %106 = arith.mulf %104, %105 : vector<8x8xf32>
    %107 = arith.addf %106, %58 : vector<8x8xf32>
    %cst_43 = arith.constant dense<0xFF800000> : vector<8xf32>
    %108 = vector.multi_reduction <maximumf>, %107, %cst_43 [1] : vector<8x8xf32> to vector<8xf32>
    %109 = vector.shape_cast %108 : vector<8xf32> to vector<8x1xf32>
    %110 = vector.broadcast %109 : vector<8x1xf32> to vector<8x8xf32>
    %111 = arith.subf %107, %110 : vector<8x8xf32>
    %112 = math.exp %111 : vector<8x8xf32>
    %cst_44 = arith.constant dense<0.000000e+00> : vector<8xf32>
    %113 = vector.multi_reduction <add>, %112, %cst_44 [1] : vector<8x8xf32> to vector<8xf32>
    %114 = vector.shape_cast %113 : vector<8xf32> to vector<8x1xf32>
    %115 = vector.broadcast %114 : vector<8x1xf32> to vector<8x8xf32>
    %116 = arith.divf %112, %115 : vector<8x8xf32>
    %cst_45 = arith.constant 0.000000e+00 : f32
    %117 = vector.shape_cast %97 : vector<1x50xi1> to vector<1x50xi1>
    %118 = vector.broadcast %117 : vector<1x50xi1> to vector<8x50xi1>
    %119 = vector.broadcast %cst_45 : f32 to vector<8x50xf32>
    %120 = arith.select %118, %30, %119 : vector<8x50xi1>, vector<8x50xf32>
    %121 = arith.truncf %116 : vector<8x8xf32> to vector<8x8xbf16>
    %122 = arith.truncf %120 : vector<8x50xf32> to vector<8x50xbf16>
    %cst_46 = arith.constant dense<0.000000e+00> : vector<8x50xf32>
    %123 = tpu.matmul %121, %122, %cst_46 {dimension_numbers = #tpu.dot_dimension_numbers<[1], [0], [0], [1], [0, 0, 1, 1], [], []>} : vector<8x8xbf16>, vector<8x50xbf16>, vector<8x50xf32> -> vector<8x50xf32>
    %124 = arith.addf %92, %123 : vector<8x50xf32>
    %c10_i32_47 = arith.constant 10 : i32
    %125 = vector.broadcast %c10_i32_47 : i32 to vector<1x50xi32>
    %126 = arith.cmpi sge, %59, %125 : vector<1x50xi32>
    %c15_i32 = arith.constant 15 : i32
    %127 = vector.broadcast %c15_i32 : i32 to vector<1x50xi32>
    %128 = arith.cmpi slt, %59, %127 : vector<1x50xi32>
    %129 = arith.andi %126, %128 : vector<1x50xi1>
    %cst_48 = arith.constant 0.000000e+00 : f32
    %130 = vector.shape_cast %129 : vector<1x50xi1> to vector<1x50xi1>
    %131 = vector.broadcast %130 : vector<1x50xi1> to vector<8x50xi1>
    %132 = vector.broadcast %cst_48 : f32 to vector<8x50xf32>
    %133 = arith.select %131, %22, %132 : vector<8x50xi1>, vector<8x50xf32>
    %134 = arith.truncf %133 : vector<8x50xf32> to vector<8x50xbf16>
    %135 = arith.truncf %26 : vector<8x50xf32> to vector<8x50xbf16>
    %cst_49 = arith.constant dense<0.000000e+00> : vector<8x8xf32>
    %136 = tpu.matmul %134, %135, %cst_49 {dimension_numbers = #tpu.dot_dimension_numbers<[1], [1], [0], [0], [0, 0, 1, 0], [], []>} : vector<8x50xbf16>, vector<8x50xbf16>, vector<8x8xf32> -> vector<8x8xf32>
    %cst_50 = arith.constant 0.44721359 : f32
    %137 = vector.broadcast %cst_50 : f32 to vector<8x8xf32>
    %138 = arith.mulf %136, %137 : vector<8x8xf32>
    %139 = arith.addf %138, %58 : vector<8x8xf32>
    %cst_51 = arith.constant dense<0xFF800000> : vector<8xf32>
    %140 = vector.multi_reduction <maximumf>, %139, %cst_51 [1] : vector<8x8xf32> to vector<8xf32>
    %141 = vector.shape_cast %140 : vector<8xf32> to vector<8x1xf32>
    %142 = vector.broadcast %141 : vector<8x1xf32> to vector<8x8xf32>
    %143 = arith.subf %139, %142 : vector<8x8xf32>
    %144 = math.exp %143 : vector<8x8xf32>
    %cst_52 = arith.constant dense<0.000000e+00> : vector<8xf32>
    %145 = vector.multi_reduction <add>, %144, %cst_52 [1] : vector<8x8xf32> to vector<8xf32>
    %146 = vector.shape_cast %145 : vector<8xf32> to vector<8x1xf32>
    %147 = vector.broadcast %146 : vector<8x1xf32> to vector<8x8xf32>
    %148 = arith.divf %144, %147 : vector<8x8xf32>
    %cst_53 = arith.constant 0.000000e+00 : f32
    %149 = vector.shape_cast %129 : vector<1x50xi1> to vector<1x50xi1>
    %150 = vector.broadcast %149 : vector<1x50xi1> to vector<8x50xi1>
    %151 = vector.broadcast %cst_53 : f32 to vector<8x50xf32>
    %152 = arith.select %150, %30, %151 : vector<8x50xi1>, vector<8x50xf32>
    %153 = arith.truncf %148 : vector<8x8xf32> to vector<8x8xbf16>
    %154 = arith.truncf %152 : vector<8x50xf32> to vector<8x50xbf16>
    %cst_54 = arith.constant dense<0.000000e+00> : vector<8x50xf32>
    %155 = tpu.matmul %153, %154, %cst_54 {dimension_numbers = #tpu.dot_dimension_numbers<[1], [0], [0], [1], [0, 0, 1, 1], [], []>} : vector<8x8xbf16>, vector<8x50xbf16>, vector<8x50xf32> -> vector<8x50xf32>
    %156 = arith.addf %124, %155 : vector<8x50xf32>
    %c15_i32_55 = arith.constant 15 : i32
    %157 = vector.broadcast %c15_i32_55 : i32 to vector<1x50xi32>
    %158 = arith.cmpi sge, %59, %157 : vector<1x50xi32>
    %c20_i32 = arith.constant 20 : i32
    %159 = vector.broadcast %c20_i32 : i32 to vector<1x50xi32>
    %160 = arith.cmpi slt, %59, %159 : vector<1x50xi32>
    %161 = arith.andi %158, %160 : vector<1x50xi1>
    %cst_56 = arith.constant 0.000000e+00 : f32
    %162 = vector.shape_cast %161 : vector<1x50xi1> to vector<1x50xi1>
    %163 = vector.broadcast %162 : vector<1x50xi1> to vector<8x50xi1>
    %164 = vector.broadcast %cst_56 : f32 to vector<8x50xf32>
    %165 = arith.select %163, %22, %164 : vector<8x50xi1>, vector<8x50xf32>
    %166 = arith.truncf %165 : vector<8x50xf32> to vector<8x50xbf16>
    %167 = arith.truncf %26 : vector<8x50xf32> to vector<8x50xbf16>
    %cst_57 = arith.constant dense<0.000000e+00> : vector<8x8xf32>
    %168 = tpu.matmul %166, %167, %cst_57 {dimension_numbers = #tpu.dot_dimension_numbers<[1], [1], [0], [0], [0, 0, 1, 0], [], []>} : vector<8x50xbf16>, vector<8x50xbf16>, vector<8x8xf32> -> vector<8x8xf32>
    %cst_58 = arith.constant 0.44721359 : f32
    %169 = vector.broadcast %cst_58 : f32 to vector<8x8xf32>
    %170 = arith.mulf %168, %169 : vector<8x8xf32>
    %171 = arith.addf %170, %58 : vector<8x8xf32>
    %cst_59 = arith.constant dense<0xFF800000> : vector<8xf32>
    %172 = vector.multi_reduction <maximumf>, %171, %cst_59 [1] : vector<8x8xf32> to vector<8xf32>
    %173 = vector.shape_cast %172 : vector<8xf32> to vector<8x1xf32>
    %174 = vector.broadcast %173 : vector<8x1xf32> to vector<8x8xf32>
    %175 = arith.subf %171, %174 : vector<8x8xf32>
    %176 = math.exp %175 : vector<8x8xf32>
    %cst_60 = arith.constant dense<0.000000e+00> : vector<8xf32>
    %177 = vector.multi_reduction <add>, %176, %cst_60 [1] : vector<8x8xf32> to vector<8xf32>
    %178 = vector.shape_cast %177 : vector<8xf32> to vector<8x1xf32>
    %179 = vector.broadcast %178 : vector<8x1xf32> to vector<8x8xf32>
    %180 = arith.divf %176, %179 : vector<8x8xf32>
    %cst_61 = arith.constant 0.000000e+00 : f32
    %181 = vector.shape_cast %161 : vector<1x50xi1> to vector<1x50xi1>
    %182 = vector.broadcast %181 : vector<1x50xi1> to vector<8x50xi1>
    %183 = vector.broadcast %cst_61 : f32 to vector<8x50xf32>
    %184 = arith.select %182, %30, %183 : vector<8x50xi1>, vector<8x50xf32>
    %185 = arith.truncf %180 : vector<8x8xf32> to vector<8x8xbf16>
    %186 = arith.truncf %184 : vector<8x50xf32> to vector<8x50xbf16>
    %cst_62 = arith.constant dense<0.000000e+00> : vector<8x50xf32>
    %187 = tpu.matmul %185, %186, %cst_62 {dimension_numbers = #tpu.dot_dimension_numbers<[1], [0], [0], [1], [0, 0, 1, 1], [], []>} : vector<8x8xbf16>, vector<8x50xbf16>, vector<8x50xf32> -> vector<8x50xf32>
    %188 = arith.addf %156, %187 : vector<8x50xf32>
    %c20_i32_63 = arith.constant 20 : i32
    %189 = vector.broadcast %c20_i32_63 : i32 to vector<1x50xi32>
    %190 = arith.cmpi sge, %59, %189 : vector<1x50xi32>
    %c25_i32 = arith.constant 25 : i32
    %191 = vector.broadcast %c25_i32 : i32 to vector<1x50xi32>
    %192 = arith.cmpi slt, %59, %191 : vector<1x50xi32>
    %193 = arith.andi %190, %192 : vector<1x50xi1>
    %cst_64 = arith.constant 0.000000e+00 : f32
    %194 = vector.shape_cast %193 : vector<1x50xi1> to vector<1x50xi1>
    %195 = vector.broadcast %194 : vector<1x50xi1> to vector<8x50xi1>
    %196 = vector.broadcast %cst_64 : f32 to vector<8x50xf32>
    %197 = arith.select %195, %22, %196 : vector<8x50xi1>, vector<8x50xf32>
    %198 = arith.truncf %197 : vector<8x50xf32> to vector<8x50xbf16>
    %199 = arith.truncf %26 : vector<8x50xf32> to vector<8x50xbf16>
    %cst_65 = arith.constant dense<0.000000e+00> : vector<8x8xf32>
    %200 = tpu.matmul %198, %199, %cst_65 {dimension_numbers = #tpu.dot_dimension_numbers<[1], [1], [0], [0], [0, 0, 1, 0], [], []>} : vector<8x50xbf16>, vector<8x50xbf16>, vector<8x8xf32> -> vector<8x8xf32>
    %cst_66 = arith.constant 0.44721359 : f32
    %201 = vector.broadcast %cst_66 : f32 to vector<8x8xf32>
    %202 = arith.mulf %200, %201 : vector<8x8xf32>
    %203 = arith.addf %202, %58 : vector<8x8xf32>
    %cst_67 = arith.constant dense<0xFF800000> : vector<8xf32>
    %204 = vector.multi_reduction <maximumf>, %203, %cst_67 [1] : vector<8x8xf32> to vector<8xf32>
    %205 = vector.shape_cast %204 : vector<8xf32> to vector<8x1xf32>
    %206 = vector.broadcast %205 : vector<8x1xf32> to vector<8x8xf32>
    %207 = arith.subf %203, %206 : vector<8x8xf32>
    %208 = math.exp %207 : vector<8x8xf32>
    %cst_68 = arith.constant dense<0.000000e+00> : vector<8xf32>
    %209 = vector.multi_reduction <add>, %208, %cst_68 [1] : vector<8x8xf32> to vector<8xf32>
    %210 = vector.shape_cast %209 : vector<8xf32> to vector<8x1xf32>
    %211 = vector.broadcast %210 : vector<8x1xf32> to vector<8x8xf32>
    %212 = arith.divf %208, %211 : vector<8x8xf32>
    %cst_69 = arith.constant 0.000000e+00 : f32
    %213 = vector.shape_cast %193 : vector<1x50xi1> to vector<1x50xi1>
    %214 = vector.broadcast %213 : vector<1x50xi1> to vector<8x50xi1>
    %215 = vector.broadcast %cst_69 : f32 to vector<8x50xf32>
    %216 = arith.select %214, %30, %215 : vector<8x50xi1>, vector<8x50xf32>
    %217 = arith.truncf %212 : vector<8x8xf32> to vector<8x8xbf16>
    %218 = arith.truncf %216 : vector<8x50xf32> to vector<8x50xbf16>
    %cst_70 = arith.constant dense<0.000000e+00> : vector<8x50xf32>
    %219 = tpu.matmul %217, %218, %cst_70 {dimension_numbers = #tpu.dot_dimension_numbers<[1], [0], [0], [1], [0, 0, 1, 1], [], []>} : vector<8x8xbf16>, vector<8x50xbf16>, vector<8x50xf32> -> vector<8x50xf32>
    %220 = arith.addf %188, %219 : vector<8x50xf32>
    %c25_i32_71 = arith.constant 25 : i32
    %221 = vector.broadcast %c25_i32_71 : i32 to vector<1x50xi32>
    %222 = arith.cmpi sge, %59, %221 : vector<1x50xi32>
    %c30_i32 = arith.constant 30 : i32
    %223 = vector.broadcast %c30_i32 : i32 to vector<1x50xi32>
    %224 = arith.cmpi slt, %59, %223 : vector<1x50xi32>
    %225 = arith.andi %222, %224 : vector<1x50xi1>
    %cst_72 = arith.constant 0.000000e+00 : f32
    %226 = vector.shape_cast %225 : vector<1x50xi1> to vector<1x50xi1>
    %227 = vector.broadcast %226 : vector<1x50xi1> to vector<8x50xi1>
    %228 = vector.broadcast %cst_72 : f32 to vector<8x50xf32>
    %229 = arith.select %227, %22, %228 : vector<8x50xi1>, vector<8x50xf32>
    %230 = arith.truncf %229 : vector<8x50xf32> to vector<8x50xbf16>
    %231 = arith.truncf %26 : vector<8x50xf32> to vector<8x50xbf16>
    %cst_73 = arith.constant dense<0.000000e+00> : vector<8x8xf32>
    %232 = tpu.matmul %230, %231, %cst_73 {dimension_numbers = #tpu.dot_dimension_numbers<[1], [1], [0], [0], [0, 0, 1, 0], [], []>} : vector<8x50xbf16>, vector<8x50xbf16>, vector<8x8xf32> -> vector<8x8xf32>
    %cst_74 = arith.constant 0.44721359 : f32
    %233 = vector.broadcast %cst_74 : f32 to vector<8x8xf32>
    %234 = arith.mulf %232, %233 : vector<8x8xf32>
    %235 = arith.addf %234, %58 : vector<8x8xf32>
    %cst_75 = arith.constant dense<0xFF800000> : vector<8xf32>
    %236 = vector.multi_reduction <maximumf>, %235, %cst_75 [1] : vector<8x8xf32> to vector<8xf32>
    %237 = vector.shape_cast %236 : vector<8xf32> to vector<8x1xf32>
    %238 = vector.broadcast %237 : vector<8x1xf32> to vector<8x8xf32>
    %239 = arith.subf %235, %238 : vector<8x8xf32>
    %240 = math.exp %239 : vector<8x8xf32>
    %cst_76 = arith.constant dense<0.000000e+00> : vector<8xf32>
    %241 = vector.multi_reduction <add>, %240, %cst_76 [1] : vector<8x8xf32> to vector<8xf32>
    %242 = vector.shape_cast %241 : vector<8xf32> to vector<8x1xf32>
    %243 = vector.broadcast %242 : vector<8x1xf32> to vector<8x8xf32>
    %244 = arith.divf %240, %243 : vector<8x8xf32>
    %cst_77 = arith.constant 0.000000e+00 : f32
    %245 = vector.shape_cast %225 : vector<1x50xi1> to vector<1x50xi1>
    %246 = vector.broadcast %245 : vector<1x50xi1> to vector<8x50xi1>
    %247 = vector.broadcast %cst_77 : f32 to vector<8x50xf32>
    %248 = arith.select %246, %30, %247 : vector<8x50xi1>, vector<8x50xf32>
    %249 = arith.truncf %244 : vector<8x8xf32> to vector<8x8xbf16>
    %250 = arith.truncf %248 : vector<8x50xf32> to vector<8x50xbf16>
    %cst_78 = arith.constant dense<0.000000e+00> : vector<8x50xf32>
    %251 = tpu.matmul %249, %250, %cst_78 {dimension_numbers = #tpu.dot_dimension_numbers<[1], [0], [0], [1], [0, 0, 1, 1], [], []>} : vector<8x8xbf16>, vector<8x50xbf16>, vector<8x50xf32> -> vector<8x50xf32>
    %252 = arith.addf %220, %251 : vector<8x50xf32>
    %c30_i32_79 = arith.constant 30 : i32
    %253 = vector.broadcast %c30_i32_79 : i32 to vector<1x50xi32>
    %254 = arith.cmpi sge, %59, %253 : vector<1x50xi32>
    %c35_i32 = arith.constant 35 : i32
    %255 = vector.broadcast %c35_i32 : i32 to vector<1x50xi32>
    %256 = arith.cmpi slt, %59, %255 : vector<1x50xi32>
    %257 = arith.andi %254, %256 : vector<1x50xi1>
    %cst_80 = arith.constant 0.000000e+00 : f32
    %258 = vector.shape_cast %257 : vector<1x50xi1> to vector<1x50xi1>
    %259 = vector.broadcast %258 : vector<1x50xi1> to vector<8x50xi1>
    %260 = vector.broadcast %cst_80 : f32 to vector<8x50xf32>
    %261 = arith.select %259, %22, %260 : vector<8x50xi1>, vector<8x50xf32>
    %262 = arith.truncf %261 : vector<8x50xf32> to vector<8x50xbf16>
    %263 = arith.truncf %26 : vector<8x50xf32> to vector<8x50xbf16>
    %cst_81 = arith.constant dense<0.000000e+00> : vector<8x8xf32>
    %264 = tpu.matmul %262, %263, %cst_81 {dimension_numbers = #tpu.dot_dimension_numbers<[1], [1], [0], [0], [0, 0, 1, 0], [], []>} : vector<8x50xbf16>, vector<8x50xbf16>, vector<8x8xf32> -> vector<8x8xf32>
    %cst_82 = arith.constant 0.44721359 : f32
    %265 = vector.broadcast %cst_82 : f32 to vector<8x8xf32>
    %266 = arith.mulf %264, %265 : vector<8x8xf32>
    %267 = arith.addf %266, %58 : vector<8x8xf32>
    %cst_83 = arith.constant dense<0xFF800000> : vector<8xf32>
    %268 = vector.multi_reduction <maximumf>, %267, %cst_83 [1] : vector<8x8xf32> to vector<8xf32>
    %269 = vector.shape_cast %268 : vector<8xf32> to vector<8x1xf32>
    %270 = vector.broadcast %269 : vector<8x1xf32> to vector<8x8xf32>
    %271 = arith.subf %267, %270 : vector<8x8xf32>
    %272 = math.exp %271 : vector<8x8xf32>
    %cst_84 = arith.constant dense<0.000000e+00> : vector<8xf32>
    %273 = vector.multi_reduction <add>, %272, %cst_84 [1] : vector<8x8xf32> to vector<8xf32>
    %274 = vector.shape_cast %273 : vector<8xf32> to vector<8x1xf32>
    %275 = vector.broadcast %274 : vector<8x1xf32> to vector<8x8xf32>
    %276 = arith.divf %272, %275 : vector<8x8xf32>
    %cst_85 = arith.constant 0.000000e+00 : f32
    %277 = vector.shape_cast %257 : vector<1x50xi1> to vector<1x50xi1>
    %278 = vector.broadcast %277 : vector<1x50xi1> to vector<8x50xi1>
    %279 = vector.broadcast %cst_85 : f32 to vector<8x50xf32>
    %280 = arith.select %278, %30, %279 : vector<8x50xi1>, vector<8x50xf32>
    %281 = arith.truncf %276 : vector<8x8xf32> to vector<8x8xbf16>
    %282 = arith.truncf %280 : vector<8x50xf32> to vector<8x50xbf16>
    %cst_86 = arith.constant dense<0.000000e+00> : vector<8x50xf32>
    %283 = tpu.matmul %281, %282, %cst_86 {dimension_numbers = #tpu.dot_dimension_numbers<[1], [0], [0], [1], [0, 0, 1, 1], [], []>} : vector<8x8xbf16>, vector<8x50xbf16>, vector<8x50xf32> -> vector<8x50xf32>
    %284 = arith.addf %252, %283 : vector<8x50xf32>
    %c35_i32_87 = arith.constant 35 : i32
    %285 = vector.broadcast %c35_i32_87 : i32 to vector<1x50xi32>
    %286 = arith.cmpi sge, %59, %285 : vector<1x50xi32>
    %c40_i32 = arith.constant 40 : i32
    %287 = vector.broadcast %c40_i32 : i32 to vector<1x50xi32>
    %288 = arith.cmpi slt, %59, %287 : vector<1x50xi32>
    %289 = arith.andi %286, %288 : vector<1x50xi1>
    %cst_88 = arith.constant 0.000000e+00 : f32
    %290 = vector.shape_cast %289 : vector<1x50xi1> to vector<1x50xi1>
    %291 = vector.broadcast %290 : vector<1x50xi1> to vector<8x50xi1>
    %292 = vector.broadcast %cst_88 : f32 to vector<8x50xf32>
    %293 = arith.select %291, %22, %292 : vector<8x50xi1>, vector<8x50xf32>
    %294 = arith.truncf %293 : vector<8x50xf32> to vector<8x50xbf16>
    %295 = arith.truncf %26 : vector<8x50xf32> to vector<8x50xbf16>
    %cst_89 = arith.constant dense<0.000000e+00> : vector<8x8xf32>
    %296 = tpu.matmul %294, %295, %cst_89 {dimension_numbers = #tpu.dot_dimension_numbers<[1], [1], [0], [0], [0, 0, 1, 0], [], []>} : vector<8x50xbf16>, vector<8x50xbf16>, vector<8x8xf32> -> vector<8x8xf32>
    %cst_90 = arith.constant 0.44721359 : f32
    %297 = vector.broadcast %cst_90 : f32 to vector<8x8xf32>
    %298 = arith.mulf %296, %297 : vector<8x8xf32>
    %299 = arith.addf %298, %58 : vector<8x8xf32>
    %cst_91 = arith.constant dense<0xFF800000> : vector<8xf32>
    %300 = vector.multi_reduction <maximumf>, %299, %cst_91 [1] : vector<8x8xf32> to vector<8xf32>
    %301 = vector.shape_cast %300 : vector<8xf32> to vector<8x1xf32>
    %302 = vector.broadcast %301 : vector<8x1xf32> to vector<8x8xf32>
    %303 = arith.subf %299, %302 : vector<8x8xf32>
    %304 = math.exp %303 : vector<8x8xf32>
    %cst_92 = arith.constant dense<0.000000e+00> : vector<8xf32>
    %305 = vector.multi_reduction <add>, %304, %cst_92 [1] : vector<8x8xf32> to vector<8xf32>
    %306 = vector.shape_cast %305 : vector<8xf32> to vector<8x1xf32>
    %307 = vector.broadcast %306 : vector<8x1xf32> to vector<8x8xf32>
    %308 = arith.divf %304, %307 : vector<8x8xf32>
    %cst_93 = arith.constant 0.000000e+00 : f32
    %309 = vector.shape_cast %289 : vector<1x50xi1> to vector<1x50xi1>
    %310 = vector.broadcast %309 : vector<1x50xi1> to vector<8x50xi1>
    %311 = vector.broadcast %cst_93 : f32 to vector<8x50xf32>
    %312 = arith.select %310, %30, %311 : vector<8x50xi1>, vector<8x50xf32>
    %313 = arith.truncf %308 : vector<8x8xf32> to vector<8x8xbf16>
    %314 = arith.truncf %312 : vector<8x50xf32> to vector<8x50xbf16>
    %cst_94 = arith.constant dense<0.000000e+00> : vector<8x50xf32>
    %315 = tpu.matmul %313, %314, %cst_94 {dimension_numbers = #tpu.dot_dimension_numbers<[1], [0], [0], [1], [0, 0, 1, 1], [], []>} : vector<8x8xbf16>, vector<8x50xbf16>, vector<8x50xf32> -> vector<8x50xf32>
    %316 = arith.addf %284, %315 : vector<8x50xf32>
    %c40_i32_95 = arith.constant 40 : i32
    %317 = vector.broadcast %c40_i32_95 : i32 to vector<1x50xi32>
    %318 = arith.cmpi sge, %59, %317 : vector<1x50xi32>
    %c45_i32 = arith.constant 45 : i32
    %319 = vector.broadcast %c45_i32 : i32 to vector<1x50xi32>
    %320 = arith.cmpi slt, %59, %319 : vector<1x50xi32>
    %321 = arith.andi %318, %320 : vector<1x50xi1>
    %cst_96 = arith.constant 0.000000e+00 : f32
    %322 = vector.shape_cast %321 : vector<1x50xi1> to vector<1x50xi1>
    %323 = vector.broadcast %322 : vector<1x50xi1> to vector<8x50xi1>
    %324 = vector.broadcast %cst_96 : f32 to vector<8x50xf32>
    %325 = arith.select %323, %22, %324 : vector<8x50xi1>, vector<8x50xf32>
    %326 = arith.truncf %325 : vector<8x50xf32> to vector<8x50xbf16>
    %327 = arith.truncf %26 : vector<8x50xf32> to vector<8x50xbf16>
    %cst_97 = arith.constant dense<0.000000e+00> : vector<8x8xf32>
    %328 = tpu.matmul %326, %327, %cst_97 {dimension_numbers = #tpu.dot_dimension_numbers<[1], [1], [0], [0], [0, 0, 1, 0], [], []>} : vector<8x50xbf16>, vector<8x50xbf16>, vector<8x8xf32> -> vector<8x8xf32>
    %cst_98 = arith.constant 0.44721359 : f32
    %329 = vector.broadcast %cst_98 : f32 to vector<8x8xf32>
    %330 = arith.mulf %328, %329 : vector<8x8xf32>
    %331 = arith.addf %330, %58 : vector<8x8xf32>
    %cst_99 = arith.constant dense<0xFF800000> : vector<8xf32>
    %332 = vector.multi_reduction <maximumf>, %331, %cst_99 [1] : vector<8x8xf32> to vector<8xf32>
    %333 = vector.shape_cast %332 : vector<8xf32> to vector<8x1xf32>
    %334 = vector.broadcast %333 : vector<8x1xf32> to vector<8x8xf32>
    %335 = arith.subf %331, %334 : vector<8x8xf32>
    %336 = math.exp %335 : vector<8x8xf32>
    %cst_100 = arith.constant dense<0.000000e+00> : vector<8xf32>
    %337 = vector.multi_reduction <add>, %336, %cst_100 [1] : vector<8x8xf32> to vector<8xf32>
    %338 = vector.shape_cast %337 : vector<8xf32> to vector<8x1xf32>
    %339 = vector.broadcast %338 : vector<8x1xf32> to vector<8x8xf32>
    %340 = arith.divf %336, %339 : vector<8x8xf32>
    %cst_101 = arith.constant 0.000000e+00 : f32
    %341 = vector.shape_cast %321 : vector<1x50xi1> to vector<1x50xi1>
    %342 = vector.broadcast %341 : vector<1x50xi1> to vector<8x50xi1>
    %343 = vector.broadcast %cst_101 : f32 to vector<8x50xf32>
    %344 = arith.select %342, %30, %343 : vector<8x50xi1>, vector<8x50xf32>
    %345 = arith.truncf %340 : vector<8x8xf32> to vector<8x8xbf16>
    %346 = arith.truncf %344 : vector<8x50xf32> to vector<8x50xbf16>
    %cst_102 = arith.constant dense<0.000000e+00> : vector<8x50xf32>
    %347 = tpu.matmul %345, %346, %cst_102 {dimension_numbers = #tpu.dot_dimension_numbers<[1], [0], [0], [1], [0, 0, 1, 1], [], []>} : vector<8x8xbf16>, vector<8x50xbf16>, vector<8x50xf32> -> vector<8x50xf32>
    %348 = arith.addf %316, %347 : vector<8x50xf32>
    %c45_i32_103 = arith.constant 45 : i32
    %349 = vector.broadcast %c45_i32_103 : i32 to vector<1x50xi32>
    %350 = arith.cmpi sge, %59, %349 : vector<1x50xi32>
    %c50_i32 = arith.constant 50 : i32
    %351 = vector.broadcast %c50_i32 : i32 to vector<1x50xi32>
    %352 = arith.cmpi slt, %59, %351 : vector<1x50xi32>
    %353 = arith.andi %350, %352 : vector<1x50xi1>
    %cst_104 = arith.constant 0.000000e+00 : f32
    %354 = vector.shape_cast %353 : vector<1x50xi1> to vector<1x50xi1>
    %355 = vector.broadcast %354 : vector<1x50xi1> to vector<8x50xi1>
    %356 = vector.broadcast %cst_104 : f32 to vector<8x50xf32>
    %357 = arith.select %355, %22, %356 : vector<8x50xi1>, vector<8x50xf32>
    %358 = arith.truncf %357 : vector<8x50xf32> to vector<8x50xbf16>
    %359 = arith.truncf %26 : vector<8x50xf32> to vector<8x50xbf16>
    %cst_105 = arith.constant dense<0.000000e+00> : vector<8x8xf32>
    %360 = tpu.matmul %358, %359, %cst_105 {dimension_numbers = #tpu.dot_dimension_numbers<[1], [1], [0], [0], [0, 0, 1, 0], [], []>} : vector<8x50xbf16>, vector<8x50xbf16>, vector<8x8xf32> -> vector<8x8xf32>
    %cst_106 = arith.constant 0.44721359 : f32
    %361 = vector.broadcast %cst_106 : f32 to vector<8x8xf32>
    %362 = arith.mulf %360, %361 : vector<8x8xf32>
    %363 = arith.addf %362, %58 : vector<8x8xf32>
    %cst_107 = arith.constant dense<0xFF800000> : vector<8xf32>
    %364 = vector.multi_reduction <maximumf>, %363, %cst_107 [1] : vector<8x8xf32> to vector<8xf32>
    %365 = vector.shape_cast %364 : vector<8xf32> to vector<8x1xf32>
    %366 = vector.broadcast %365 : vector<8x1xf32> to vector<8x8xf32>
    %367 = arith.subf %363, %366 : vector<8x8xf32>
    %368 = math.exp %367 : vector<8x8xf32>
    %cst_108 = arith.constant dense<0.000000e+00> : vector<8xf32>
    %369 = vector.multi_reduction <add>, %368, %cst_108 [1] : vector<8x8xf32> to vector<8xf32>
    %370 = vector.shape_cast %369 : vector<8xf32> to vector<8x1xf32>
    %371 = vector.broadcast %370 : vector<8x1xf32> to vector<8x8xf32>
    %372 = arith.divf %368, %371 : vector<8x8xf32>
    %cst_109 = arith.constant 0.000000e+00 : f32
    %373 = vector.shape_cast %353 : vector<1x50xi1> to vector<1x50xi1>
    %374 = vector.broadcast %373 : vector<1x50xi1> to vector<8x50xi1>
    %375 = vector.broadcast %cst_109 : f32 to vector<8x50xf32>
    %376 = arith.select %374, %30, %375 : vector<8x50xi1>, vector<8x50xf32>
    %377 = arith.truncf %372 : vector<8x8xf32> to vector<8x8xbf16>
    %378 = arith.truncf %376 : vector<8x50xf32> to vector<8x50xbf16>
    %cst_110 = arith.constant dense<0.000000e+00> : vector<8x50xf32>
    %379 = tpu.matmul %377, %378, %cst_110 {dimension_numbers = #tpu.dot_dimension_numbers<[1], [0], [0], [1], [0, 0, 1, 1], [], []>} : vector<8x8xbf16>, vector<8x50xbf16>, vector<8x50xf32> -> vector<8x50xf32>
    %380 = arith.addf %348, %379 : vector<8x50xf32>
    %381 = arith.truncf %380 : vector<8x50xf32> to vector<8x50xbf16>
    %cst_111 = arith.constant dense<0.000000e+00> : vector<8x50xf32>
    %382 = tpu.matmul %381, %14, %cst_111 {dimension_numbers = #tpu.dot_dimension_numbers<[1], [0], [0], [1], [0, 0, 1, 1], [], []>} : vector<8x50xbf16>, vector<50x50xbf16>, vector<8x50xf32> -> vector<8x50xf32>
    %383 = vector.broadcast %18 : vector<1x50xf32> to vector<8x50xf32>
    %384 = arith.addf %382, %383 : vector<8x50xf32>
    %385 = arith.addf %3, %384 : vector<8x50xf32>
    %386 = vector.extract_strided_slice %6 {offsets = [9, 0], sizes = [1, 50], strides = [1, 1]} : vector<15x50xf32> to vector<1x50xf32>
    %387 = vector.extract_strided_slice %6 {offsets = [10, 0], sizes = [1, 50], strides = [1, 1]} : vector<15x50xf32> to vector<1x50xf32>
    %cst_112 = arith.constant dense<0.000000e+00> : vector<8xf32>
    %388 = vector.multi_reduction <add>, %385, %cst_112 [1] : vector<8x50xf32> to vector<8xf32>
    %389 = vector.shape_cast %388 : vector<8xf32> to vector<8x1xf32>
    %cst_113 = arith.constant 5.000000e+01 : f32
    %390 = vector.broadcast %cst_113 : f32 to vector<8x1xf32>
    %391 = arith.divf %389, %390 : vector<8x1xf32>
    %392 = vector.broadcast %391 : vector<8x1xf32> to vector<8x50xf32>
    %393 = arith.subf %385, %392 : vector<8x50xf32>
    %394 = arith.mulf %393, %393 : vector<8x50xf32>
    %cst_114 = arith.constant dense<0.000000e+00> : vector<8xf32>
    %395 = vector.multi_reduction <add>, %394, %cst_114 [1] : vector<8x50xf32> to vector<8xf32>
    %396 = vector.shape_cast %395 : vector<8xf32> to vector<8x1xf32>
    %cst_115 = arith.constant 5.000000e+01 : f32
    %397 = vector.broadcast %cst_115 : f32 to vector<8x1xf32>
    %398 = arith.divf %396, %397 : vector<8x1xf32>
    %cst_116 = arith.constant 9.99999974E-6 : f32
    %399 = vector.broadcast %cst_116 : f32 to vector<8x1xf32>
    %400 = arith.addf %398, %399 : vector<8x1xf32>
    %401 = math.rsqrt %400 : vector<8x1xf32>
    %402 = vector.broadcast %401 : vector<8x1xf32> to vector<8x50xf32>
    %403 = arith.mulf %393, %402 : vector<8x50xf32>
    %404 = vector.broadcast %386 : vector<1x50xf32> to vector<8x50xf32>
    %405 = arith.mulf %403, %404 : vector<8x50xf32>
    %406 = vector.broadcast %387 : vector<1x50xf32> to vector<8x50xf32>
    %407 = arith.addf %405, %406 : vector<8x50xf32>
    %c0_117 = arith.constant 0 : index
    %c4 = arith.constant 4 : index
    %c0_118 = arith.constant 0 : index
    %c0_119 = arith.constant 0 : index
    %408 = vector.load %arg3[%c0_117, %c4, %c0_118, %c0_119] : memref<1x8x50x50xbf16, #tpu.memory_space<vmem>>, vector<1x1x50x50xbf16>
    %409 = vector.shape_cast %408 : vector<1x1x50x50xbf16> to vector<50x50xbf16>
    %c0_120 = arith.constant 0 : index
    %c5 = arith.constant 5 : index
    %c0_121 = arith.constant 0 : index
    %c0_122 = arith.constant 0 : index
    %410 = vector.load %arg3[%c0_120, %c5, %c0_121, %c0_122] : memref<1x8x50x50xbf16, #tpu.memory_space<vmem>>, vector<1x1x50x50xbf16>
    %411 = vector.shape_cast %410 : vector<1x1x50x50xbf16> to vector<50x50xbf16>
    %c0_123 = arith.constant 0 : index
    %c6 = arith.constant 6 : index
    %c0_124 = arith.constant 0 : index
    %c0_125 = arith.constant 0 : index
    %412 = vector.load %arg3[%c0_123, %c6, %c0_124, %c0_125] : memref<1x8x50x50xbf16, #tpu.memory_space<vmem>>, vector<1x1x50x50xbf16>
    %413 = vector.shape_cast %412 : vector<1x1x50x50xbf16> to vector<50x50xbf16>
    %c0_126 = arith.constant 0 : index
    %c7 = arith.constant 7 : index
    %c0_127 = arith.constant 0 : index
    %c0_128 = arith.constant 0 : index
    %414 = vector.load %arg3[%c0_126, %c7, %c0_127, %c0_128] : memref<1x8x50x50xbf16, #tpu.memory_space<vmem>>, vector<1x1x50x50xbf16>
    %415 = vector.shape_cast %414 : vector<1x1x50x50xbf16> to vector<50x50xbf16>
    %416 = vector.extract_strided_slice %6 {offsets = [4, 0], sizes = [1, 50], strides = [1, 1]} : vector<15x50xf32> to vector<1x50xf32>
    %417 = vector.extract_strided_slice %6 {offsets = [5, 0], sizes = [1, 50], strides = [1, 1]} : vector<15x50xf32> to vector<1x50xf32>
    %418 = vector.extract_strided_slice %6 {offsets = [6, 0], sizes = [1, 50], strides = [1, 1]} : vector<15x50xf32> to vector<1x50xf32>
    %419 = vector.extract_strided_slice %6 {offsets = [7, 0], sizes = [1, 50], strides = [1, 1]} : vector<15x50xf32> to vector<1x50xf32>
    %420 = arith.truncf %407 : vector<8x50xf32> to vector<8x50xbf16>
    %cst_129 = arith.constant dense<0.000000e+00> : vector<8x50xf32>
    %421 = tpu.matmul %420, %409, %cst_129 {dimension_numbers = #tpu.dot_dimension_numbers<[1], [0], [0], [1], [0, 0, 1, 1], [], []>} : vector<8x50xbf16>, vector<50x50xbf16>, vector<8x50xf32> -> vector<8x50xf32>
    %422 = vector.broadcast %416 : vector<1x50xf32> to vector<8x50xf32>
    %423 = arith.addf %421, %422 : vector<8x50xf32>
    %424 = arith.truncf %4 : vector<16x50xf32> to vector<16x50xbf16>
    %cst_130 = arith.constant dense<0.000000e+00> : vector<16x50xf32>
    %425 = tpu.matmul %424, %411, %cst_130 {dimension_numbers = #tpu.dot_dimension_numbers<[1], [0], [0], [1], [0, 0, 1, 1], [], []>} : vector<16x50xbf16>, vector<50x50xbf16>, vector<16x50xf32> -> vector<16x50xf32>
    %426 = vector.broadcast %417 : vector<1x50xf32> to vector<16x50xf32>
    %427 = arith.addf %425, %426 : vector<16x50xf32>
    %428 = arith.truncf %4 : vector<16x50xf32> to vector<16x50xbf16>
    %cst_131 = arith.constant dense<0.000000e+00> : vector<16x50xf32>
    %429 = tpu.matmul %428, %413, %cst_131 {dimension_numbers = #tpu.dot_dimension_numbers<[1], [0], [0], [1], [0, 0, 1, 1], [], []>} : vector<16x50xbf16>, vector<50x50xbf16>, vector<16x50xf32> -> vector<16x50xf32>
    %430 = vector.broadcast %418 : vector<1x50xf32> to vector<16x50xf32>
    %431 = arith.addf %429, %430 : vector<16x50xf32>
    %432 = tpu.iota {dimensions = array<i32: 0>} : vector<8x16xi32>
    %433 = tpu.iota {dimensions = array<i32: 1>} : vector<8x16xi32>
    %c0_i32_132 = arith.constant 0 : i32
    %434 = vector.broadcast %c0_i32_132 : i32 to vector<8x16xi32>
    %435 = arith.cmpi sge, %432, %434 : vector<8x16xi32>
    %c4_i32_133 = arith.constant 4 : i32
    %436 = vector.broadcast %c4_i32_133 : i32 to vector<8x16xi32>
    %437 = arith.cmpi slt, %432, %436 : vector<8x16xi32>
    %438 = arith.andi %435, %437 : vector<8x16xi1>
    %c0_i32_134 = arith.constant 0 : i32
    %439 = vector.broadcast %c0_i32_134 : i32 to vector<8x16xi32>
    %440 = arith.cmpi sge, %433, %439 : vector<8x16xi32>
    %441 = arith.andi %438, %440 : vector<8x16xi1>
    %c8_i32_135 = arith.constant 8 : i32
    %442 = vector.broadcast %c8_i32_135 : i32 to vector<8x16xi32>
    %443 = arith.cmpi slt, %433, %442 : vector<8x16xi32>
    %444 = arith.andi %441, %443 : vector<8x16xi1>
    %c4_i32_136 = arith.constant 4 : i32
    %445 = vector.broadcast %c4_i32_136 : i32 to vector<8x16xi32>
    %446 = arith.cmpi sge, %432, %445 : vector<8x16xi32>
    %c8_i32_137 = arith.constant 8 : i32
    %447 = vector.broadcast %c8_i32_137 : i32 to vector<8x16xi32>
    %448 = arith.cmpi slt, %432, %447 : vector<8x16xi32>
    %449 = arith.andi %446, %448 : vector<8x16xi1>
    %c8_i32_138 = arith.constant 8 : i32
    %450 = vector.broadcast %c8_i32_138 : i32 to vector<8x16xi32>
    %451 = arith.cmpi sge, %433, %450 : vector<8x16xi32>
    %452 = arith.andi %449, %451 : vector<8x16xi1>
    %c16_i32 = arith.constant 16 : i32
    %453 = vector.broadcast %c16_i32 : i32 to vector<8x16xi32>
    %454 = arith.cmpi slt, %433, %453 : vector<8x16xi32>
    %455 = arith.andi %452, %454 : vector<8x16xi1>
    %456 = arith.ori %444, %455 : vector<8x16xi1>
    %cst_139 = arith.constant 0.000000e+00 : f32
    %cst_140 = arith.constant -1.000000e+30 : f32
    %457 = vector.broadcast %cst_139 : f32 to vector<8x16xf32>
    %458 = vector.broadcast %cst_140 : f32 to vector<8x16xf32>
    %459 = arith.select %456, %457, %458 : vector<8x16xi1>, vector<8x16xf32>
    %460 = tpu.iota {dimensions = array<i32: 1>} : vector<1x50xi32>
    %cst_141 = arith.constant 0.000000e+00 : f32
    %461 = vector.broadcast %cst_141 : f32 to vector<8x50xf32>
    %c0_i32_142 = arith.constant 0 : i32
    %462 = vector.broadcast %c0_i32_142 : i32 to vector<1x50xi32>
    %463 = arith.cmpi sge, %460, %462 : vector<1x50xi32>
    %c5_i32_143 = arith.constant 5 : i32
    %464 = vector.broadcast %c5_i32_143 : i32 to vector<1x50xi32>
    %465 = arith.cmpi slt, %460, %464 : vector<1x50xi32>
    %466 = arith.andi %463, %465 : vector<1x50xi1>
    %cst_144 = arith.constant 0.000000e+00 : f32
    %467 = vector.shape_cast %466 : vector<1x50xi1> to vector<1x50xi1>
    %468 = vector.broadcast %467 : vector<1x50xi1> to vector<8x50xi1>
    %469 = vector.broadcast %cst_144 : f32 to vector<8x50xf32>
    %470 = arith.select %468, %423, %469 : vector<8x50xi1>, vector<8x50xf32>
    %471 = arith.truncf %470 : vector<8x50xf32> to vector<8x50xbf16>
    %472 = arith.truncf %427 : vector<16x50xf32> to vector<16x50xbf16>
    %cst_145 = arith.constant dense<0.000000e+00> : vector<8x16xf32>
    %473 = tpu.matmul %471, %472, %cst_145 {dimension_numbers = #tpu.dot_dimension_numbers<[1], [1], [0], [0], [0, 0, 1, 0], [], []>} : vector<8x50xbf16>, vector<16x50xbf16>, vector<8x16xf32> -> vector<8x16xf32>
    %cst_146 = arith.constant 0.44721359 : f32
    %474 = vector.broadcast %cst_146 : f32 to vector<8x16xf32>
    %475 = arith.mulf %473, %474 : vector<8x16xf32>
    %476 = arith.addf %475, %459 : vector<8x16xf32>
    %cst_147 = arith.constant dense<0xFF800000> : vector<8xf32>
    %477 = vector.multi_reduction <maximumf>, %476, %cst_147 [1] : vector<8x16xf32> to vector<8xf32>
    %478 = vector.shape_cast %477 : vector<8xf32> to vector<8x1xf32>
    %479 = vector.broadcast %478 : vector<8x1xf32> to vector<8x16xf32>
    %480 = arith.subf %476, %479 : vector<8x16xf32>
    %481 = math.exp %480 : vector<8x16xf32>
    %cst_148 = arith.constant dense<0.000000e+00> : vector<8xf32>
    %482 = vector.multi_reduction <add>, %481, %cst_148 [1] : vector<8x16xf32> to vector<8xf32>
    %483 = vector.shape_cast %482 : vector<8xf32> to vector<8x1xf32>
    %484 = vector.broadcast %483 : vector<8x1xf32> to vector<8x16xf32>
    %485 = arith.divf %481, %484 : vector<8x16xf32>
    %cst_149 = arith.constant 0.000000e+00 : f32
    %486 = vector.shape_cast %466 : vector<1x50xi1> to vector<1x50xi1>
    %487 = vector.broadcast %486 : vector<1x50xi1> to vector<16x50xi1>
    %488 = vector.broadcast %cst_149 : f32 to vector<16x50xf32>
    %489 = arith.select %487, %431, %488 : vector<16x50xi1>, vector<16x50xf32>
    %490 = arith.truncf %485 : vector<8x16xf32> to vector<8x16xbf16>
    %491 = arith.truncf %489 : vector<16x50xf32> to vector<16x50xbf16>
    %cst_150 = arith.constant dense<0.000000e+00> : vector<8x50xf32>
    %492 = tpu.matmul %490, %491, %cst_150 {dimension_numbers = #tpu.dot_dimension_numbers<[1], [0], [0], [1], [0, 0, 1, 1], [], []>} : vector<8x16xbf16>, vector<16x50xbf16>, vector<8x50xf32> -> vector<8x50xf32>
    %493 = arith.addf %461, %492 : vector<8x50xf32>
    %c5_i32_151 = arith.constant 5 : i32
    %494 = vector.broadcast %c5_i32_151 : i32 to vector<1x50xi32>
    %495 = arith.cmpi sge, %460, %494 : vector<1x50xi32>
    %c10_i32_152 = arith.constant 10 : i32
    %496 = vector.broadcast %c10_i32_152 : i32 to vector<1x50xi32>
    %497 = arith.cmpi slt, %460, %496 : vector<1x50xi32>
    %498 = arith.andi %495, %497 : vector<1x50xi1>
    %cst_153 = arith.constant 0.000000e+00 : f32
    %499 = vector.shape_cast %498 : vector<1x50xi1> to vector<1x50xi1>
    %500 = vector.broadcast %499 : vector<1x50xi1> to vector<8x50xi1>
    %501 = vector.broadcast %cst_153 : f32 to vector<8x50xf32>
    %502 = arith.select %500, %423, %501 : vector<8x50xi1>, vector<8x50xf32>
    %503 = arith.truncf %502 : vector<8x50xf32> to vector<8x50xbf16>
    %504 = arith.truncf %427 : vector<16x50xf32> to vector<16x50xbf16>
    %cst_154 = arith.constant dense<0.000000e+00> : vector<8x16xf32>
    %505 = tpu.matmul %503, %504, %cst_154 {dimension_numbers = #tpu.dot_dimension_numbers<[1], [1], [0], [0], [0, 0, 1, 0], [], []>} : vector<8x50xbf16>, vector<16x50xbf16>, vector<8x16xf32> -> vector<8x16xf32>
    %cst_155 = arith.constant 0.44721359 : f32
    %506 = vector.broadcast %cst_155 : f32 to vector<8x16xf32>
    %507 = arith.mulf %505, %506 : vector<8x16xf32>
    %508 = arith.addf %507, %459 : vector<8x16xf32>
    %cst_156 = arith.constant dense<0xFF800000> : vector<8xf32>
    %509 = vector.multi_reduction <maximumf>, %508, %cst_156 [1] : vector<8x16xf32> to vector<8xf32>
    %510 = vector.shape_cast %509 : vector<8xf32> to vector<8x1xf32>
    %511 = vector.broadcast %510 : vector<8x1xf32> to vector<8x16xf32>
    %512 = arith.subf %508, %511 : vector<8x16xf32>
    %513 = math.exp %512 : vector<8x16xf32>
    %cst_157 = arith.constant dense<0.000000e+00> : vector<8xf32>
    %514 = vector.multi_reduction <add>, %513, %cst_157 [1] : vector<8x16xf32> to vector<8xf32>
    %515 = vector.shape_cast %514 : vector<8xf32> to vector<8x1xf32>
    %516 = vector.broadcast %515 : vector<8x1xf32> to vector<8x16xf32>
    %517 = arith.divf %513, %516 : vector<8x16xf32>
    %cst_158 = arith.constant 0.000000e+00 : f32
    %518 = vector.shape_cast %498 : vector<1x50xi1> to vector<1x50xi1>
    %519 = vector.broadcast %518 : vector<1x50xi1> to vector<16x50xi1>
    %520 = vector.broadcast %cst_158 : f32 to vector<16x50xf32>
    %521 = arith.select %519, %431, %520 : vector<16x50xi1>, vector<16x50xf32>
    %522 = arith.truncf %517 : vector<8x16xf32> to vector<8x16xbf16>
    %523 = arith.truncf %521 : vector<16x50xf32> to vector<16x50xbf16>
    %cst_159 = arith.constant dense<0.000000e+00> : vector<8x50xf32>
    %524 = tpu.matmul %522, %523, %cst_159 {dimension_numbers = #tpu.dot_dimension_numbers<[1], [0], [0], [1], [0, 0, 1, 1], [], []>} : vector<8x16xbf16>, vector<16x50xbf16>, vector<8x50xf32> -> vector<8x50xf32>
    %525 = arith.addf %493, %524 : vector<8x50xf32>
    %c10_i32_160 = arith.constant 10 : i32
    %526 = vector.broadcast %c10_i32_160 : i32 to vector<1x50xi32>
    %527 = arith.cmpi sge, %460, %526 : vector<1x50xi32>
    %c15_i32_161 = arith.constant 15 : i32
    %528 = vector.broadcast %c15_i32_161 : i32 to vector<1x50xi32>
    %529 = arith.cmpi slt, %460, %528 : vector<1x50xi32>
    %530 = arith.andi %527, %529 : vector<1x50xi1>
    %cst_162 = arith.constant 0.000000e+00 : f32
    %531 = vector.shape_cast %530 : vector<1x50xi1> to vector<1x50xi1>
    %532 = vector.broadcast %531 : vector<1x50xi1> to vector<8x50xi1>
    %533 = vector.broadcast %cst_162 : f32 to vector<8x50xf32>
    %534 = arith.select %532, %423, %533 : vector<8x50xi1>, vector<8x50xf32>
    %535 = arith.truncf %534 : vector<8x50xf32> to vector<8x50xbf16>
    %536 = arith.truncf %427 : vector<16x50xf32> to vector<16x50xbf16>
    %cst_163 = arith.constant dense<0.000000e+00> : vector<8x16xf32>
    %537 = tpu.matmul %535, %536, %cst_163 {dimension_numbers = #tpu.dot_dimension_numbers<[1], [1], [0], [0], [0, 0, 1, 0], [], []>} : vector<8x50xbf16>, vector<16x50xbf16>, vector<8x16xf32> -> vector<8x16xf32>
    %cst_164 = arith.constant 0.44721359 : f32
    %538 = vector.broadcast %cst_164 : f32 to vector<8x16xf32>
    %539 = arith.mulf %537, %538 : vector<8x16xf32>
    %540 = arith.addf %539, %459 : vector<8x16xf32>
    %cst_165 = arith.constant dense<0xFF800000> : vector<8xf32>
    %541 = vector.multi_reduction <maximumf>, %540, %cst_165 [1] : vector<8x16xf32> to vector<8xf32>
    %542 = vector.shape_cast %541 : vector<8xf32> to vector<8x1xf32>
    %543 = vector.broadcast %542 : vector<8x1xf32> to vector<8x16xf32>
    %544 = arith.subf %540, %543 : vector<8x16xf32>
    %545 = math.exp %544 : vector<8x16xf32>
    %cst_166 = arith.constant dense<0.000000e+00> : vector<8xf32>
    %546 = vector.multi_reduction <add>, %545, %cst_166 [1] : vector<8x16xf32> to vector<8xf32>
    %547 = vector.shape_cast %546 : vector<8xf32> to vector<8x1xf32>
    %548 = vector.broadcast %547 : vector<8x1xf32> to vector<8x16xf32>
    %549 = arith.divf %545, %548 : vector<8x16xf32>
    %cst_167 = arith.constant 0.000000e+00 : f32
    %550 = vector.shape_cast %530 : vector<1x50xi1> to vector<1x50xi1>
    %551 = vector.broadcast %550 : vector<1x50xi1> to vector<16x50xi1>
    %552 = vector.broadcast %cst_167 : f32 to vector<16x50xf32>
    %553 = arith.select %551, %431, %552 : vector<16x50xi1>, vector<16x50xf32>
    %554 = arith.truncf %549 : vector<8x16xf32> to vector<8x16xbf16>
    %555 = arith.truncf %553 : vector<16x50xf32> to vector<16x50xbf16>
    %cst_168 = arith.constant dense<0.000000e+00> : vector<8x50xf32>
    %556 = tpu.matmul %554, %555, %cst_168 {dimension_numbers = #tpu.dot_dimension_numbers<[1], [0], [0], [1], [0, 0, 1, 1], [], []>} : vector<8x16xbf16>, vector<16x50xbf16>, vector<8x50xf32> -> vector<8x50xf32>
    %557 = arith.addf %525, %556 : vector<8x50xf32>
    %c15_i32_169 = arith.constant 15 : i32
    %558 = vector.broadcast %c15_i32_169 : i32 to vector<1x50xi32>
    %559 = arith.cmpi sge, %460, %558 : vector<1x50xi32>
    %c20_i32_170 = arith.constant 20 : i32
    %560 = vector.broadcast %c20_i32_170 : i32 to vector<1x50xi32>
    %561 = arith.cmpi slt, %460, %560 : vector<1x50xi32>
    %562 = arith.andi %559, %561 : vector<1x50xi1>
    %cst_171 = arith.constant 0.000000e+00 : f32
    %563 = vector.shape_cast %562 : vector<1x50xi1> to vector<1x50xi1>
    %564 = vector.broadcast %563 : vector<1x50xi1> to vector<8x50xi1>
    %565 = vector.broadcast %cst_171 : f32 to vector<8x50xf32>
    %566 = arith.select %564, %423, %565 : vector<8x50xi1>, vector<8x50xf32>
    %567 = arith.truncf %566 : vector<8x50xf32> to vector<8x50xbf16>
    %568 = arith.truncf %427 : vector<16x50xf32> to vector<16x50xbf16>
    %cst_172 = arith.constant dense<0.000000e+00> : vector<8x16xf32>
    %569 = tpu.matmul %567, %568, %cst_172 {dimension_numbers = #tpu.dot_dimension_numbers<[1], [1], [0], [0], [0, 0, 1, 0], [], []>} : vector<8x50xbf16>, vector<16x50xbf16>, vector<8x16xf32> -> vector<8x16xf32>
    %cst_173 = arith.constant 0.44721359 : f32
    %570 = vector.broadcast %cst_173 : f32 to vector<8x16xf32>
    %571 = arith.mulf %569, %570 : vector<8x16xf32>
    %572 = arith.addf %571, %459 : vector<8x16xf32>
    %cst_174 = arith.constant dense<0xFF800000> : vector<8xf32>
    %573 = vector.multi_reduction <maximumf>, %572, %cst_174 [1] : vector<8x16xf32> to vector<8xf32>
    %574 = vector.shape_cast %573 : vector<8xf32> to vector<8x1xf32>
    %575 = vector.broadcast %574 : vector<8x1xf32> to vector<8x16xf32>
    %576 = arith.subf %572, %575 : vector<8x16xf32>
    %577 = math.exp %576 : vector<8x16xf32>
    %cst_175 = arith.constant dense<0.000000e+00> : vector<8xf32>
    %578 = vector.multi_reduction <add>, %577, %cst_175 [1] : vector<8x16xf32> to vector<8xf32>
    %579 = vector.shape_cast %578 : vector<8xf32> to vector<8x1xf32>
    %580 = vector.broadcast %579 : vector<8x1xf32> to vector<8x16xf32>
    %581 = arith.divf %577, %580 : vector<8x16xf32>
    %cst_176 = arith.constant 0.000000e+00 : f32
    %582 = vector.shape_cast %562 : vector<1x50xi1> to vector<1x50xi1>
    %583 = vector.broadcast %582 : vector<1x50xi1> to vector<16x50xi1>
    %584 = vector.broadcast %cst_176 : f32 to vector<16x50xf32>
    %585 = arith.select %583, %431, %584 : vector<16x50xi1>, vector<16x50xf32>
    %586 = arith.truncf %581 : vector<8x16xf32> to vector<8x16xbf16>
    %587 = arith.truncf %585 : vector<16x50xf32> to vector<16x50xbf16>
    %cst_177 = arith.constant dense<0.000000e+00> : vector<8x50xf32>
    %588 = tpu.matmul %586, %587, %cst_177 {dimension_numbers = #tpu.dot_dimension_numbers<[1], [0], [0], [1], [0, 0, 1, 1], [], []>} : vector<8x16xbf16>, vector<16x50xbf16>, vector<8x50xf32> -> vector<8x50xf32>
    %589 = arith.addf %557, %588 : vector<8x50xf32>
    %c20_i32_178 = arith.constant 20 : i32
    %590 = vector.broadcast %c20_i32_178 : i32 to vector<1x50xi32>
    %591 = arith.cmpi sge, %460, %590 : vector<1x50xi32>
    %c25_i32_179 = arith.constant 25 : i32
    %592 = vector.broadcast %c25_i32_179 : i32 to vector<1x50xi32>
    %593 = arith.cmpi slt, %460, %592 : vector<1x50xi32>
    %594 = arith.andi %591, %593 : vector<1x50xi1>
    %cst_180 = arith.constant 0.000000e+00 : f32
    %595 = vector.shape_cast %594 : vector<1x50xi1> to vector<1x50xi1>
    %596 = vector.broadcast %595 : vector<1x50xi1> to vector<8x50xi1>
    %597 = vector.broadcast %cst_180 : f32 to vector<8x50xf32>
    %598 = arith.select %596, %423, %597 : vector<8x50xi1>, vector<8x50xf32>
    %599 = arith.truncf %598 : vector<8x50xf32> to vector<8x50xbf16>
    %600 = arith.truncf %427 : vector<16x50xf32> to vector<16x50xbf16>
    %cst_181 = arith.constant dense<0.000000e+00> : vector<8x16xf32>
    %601 = tpu.matmul %599, %600, %cst_181 {dimension_numbers = #tpu.dot_dimension_numbers<[1], [1], [0], [0], [0, 0, 1, 0], [], []>} : vector<8x50xbf16>, vector<16x50xbf16>, vector<8x16xf32> -> vector<8x16xf32>
    %cst_182 = arith.constant 0.44721359 : f32
    %602 = vector.broadcast %cst_182 : f32 to vector<8x16xf32>
    %603 = arith.mulf %601, %602 : vector<8x16xf32>
    %604 = arith.addf %603, %459 : vector<8x16xf32>
    %cst_183 = arith.constant dense<0xFF800000> : vector<8xf32>
    %605 = vector.multi_reduction <maximumf>, %604, %cst_183 [1] : vector<8x16xf32> to vector<8xf32>
    %606 = vector.shape_cast %605 : vector<8xf32> to vector<8x1xf32>
    %607 = vector.broadcast %606 : vector<8x1xf32> to vector<8x16xf32>
    %608 = arith.subf %604, %607 : vector<8x16xf32>
    %609 = math.exp %608 : vector<8x16xf32>
    %cst_184 = arith.constant dense<0.000000e+00> : vector<8xf32>
    %610 = vector.multi_reduction <add>, %609, %cst_184 [1] : vector<8x16xf32> to vector<8xf32>
    %611 = vector.shape_cast %610 : vector<8xf32> to vector<8x1xf32>
    %612 = vector.broadcast %611 : vector<8x1xf32> to vector<8x16xf32>
    %613 = arith.divf %609, %612 : vector<8x16xf32>
    %cst_185 = arith.constant 0.000000e+00 : f32
    %614 = vector.shape_cast %594 : vector<1x50xi1> to vector<1x50xi1>
    %615 = vector.broadcast %614 : vector<1x50xi1> to vector<16x50xi1>
    %616 = vector.broadcast %cst_185 : f32 to vector<16x50xf32>
    %617 = arith.select %615, %431, %616 : vector<16x50xi1>, vector<16x50xf32>
    %618 = arith.truncf %613 : vector<8x16xf32> to vector<8x16xbf16>
    %619 = arith.truncf %617 : vector<16x50xf32> to vector<16x50xbf16>
    %cst_186 = arith.constant dense<0.000000e+00> : vector<8x50xf32>
    %620 = tpu.matmul %618, %619, %cst_186 {dimension_numbers = #tpu.dot_dimension_numbers<[1], [0], [0], [1], [0, 0, 1, 1], [], []>} : vector<8x16xbf16>, vector<16x50xbf16>, vector<8x50xf32> -> vector<8x50xf32>
    %621 = arith.addf %589, %620 : vector<8x50xf32>
    %c25_i32_187 = arith.constant 25 : i32
    %622 = vector.broadcast %c25_i32_187 : i32 to vector<1x50xi32>
    %623 = arith.cmpi sge, %460, %622 : vector<1x50xi32>
    %c30_i32_188 = arith.constant 30 : i32
    %624 = vector.broadcast %c30_i32_188 : i32 to vector<1x50xi32>
    %625 = arith.cmpi slt, %460, %624 : vector<1x50xi32>
    %626 = arith.andi %623, %625 : vector<1x50xi1>
    %cst_189 = arith.constant 0.000000e+00 : f32
    %627 = vector.shape_cast %626 : vector<1x50xi1> to vector<1x50xi1>
    %628 = vector.broadcast %627 : vector<1x50xi1> to vector<8x50xi1>
    %629 = vector.broadcast %cst_189 : f32 to vector<8x50xf32>
    %630 = arith.select %628, %423, %629 : vector<8x50xi1>, vector<8x50xf32>
    %631 = arith.truncf %630 : vector<8x50xf32> to vector<8x50xbf16>
    %632 = arith.truncf %427 : vector<16x50xf32> to vector<16x50xbf16>
    %cst_190 = arith.constant dense<0.000000e+00> : vector<8x16xf32>
    %633 = tpu.matmul %631, %632, %cst_190 {dimension_numbers = #tpu.dot_dimension_numbers<[1], [1], [0], [0], [0, 0, 1, 0], [], []>} : vector<8x50xbf16>, vector<16x50xbf16>, vector<8x16xf32> -> vector<8x16xf32>
    %cst_191 = arith.constant 0.44721359 : f32
    %634 = vector.broadcast %cst_191 : f32 to vector<8x16xf32>
    %635 = arith.mulf %633, %634 : vector<8x16xf32>
    %636 = arith.addf %635, %459 : vector<8x16xf32>
    %cst_192 = arith.constant dense<0xFF800000> : vector<8xf32>
    %637 = vector.multi_reduction <maximumf>, %636, %cst_192 [1] : vector<8x16xf32> to vector<8xf32>
    %638 = vector.shape_cast %637 : vector<8xf32> to vector<8x1xf32>
    %639 = vector.broadcast %638 : vector<8x1xf32> to vector<8x16xf32>
    %640 = arith.subf %636, %639 : vector<8x16xf32>
    %641 = math.exp %640 : vector<8x16xf32>
    %cst_193 = arith.constant dense<0.000000e+00> : vector<8xf32>
    %642 = vector.multi_reduction <add>, %641, %cst_193 [1] : vector<8x16xf32> to vector<8xf32>
    %643 = vector.shape_cast %642 : vector<8xf32> to vector<8x1xf32>
    %644 = vector.broadcast %643 : vector<8x1xf32> to vector<8x16xf32>
    %645 = arith.divf %641, %644 : vector<8x16xf32>
    %cst_194 = arith.constant 0.000000e+00 : f32
    %646 = vector.shape_cast %626 : vector<1x50xi1> to vector<1x50xi1>
    %647 = vector.broadcast %646 : vector<1x50xi1> to vector<16x50xi1>
    %648 = vector.broadcast %cst_194 : f32 to vector<16x50xf32>
    %649 = arith.select %647, %431, %648 : vector<16x50xi1>, vector<16x50xf32>
    %650 = arith.truncf %645 : vector<8x16xf32> to vector<8x16xbf16>
    %651 = arith.truncf %649 : vector<16x50xf32> to vector<16x50xbf16>
    %cst_195 = arith.constant dense<0.000000e+00> : vector<8x50xf32>
    %652 = tpu.matmul %650, %651, %cst_195 {dimension_numbers = #tpu.dot_dimension_numbers<[1], [0], [0], [1], [0, 0, 1, 1], [], []>} : vector<8x16xbf16>, vector<16x50xbf16>, vector<8x50xf32> -> vector<8x50xf32>
    %653 = arith.addf %621, %652 : vector<8x50xf32>
    %c30_i32_196 = arith.constant 30 : i32
    %654 = vector.broadcast %c30_i32_196 : i32 to vector<1x50xi32>
    %655 = arith.cmpi sge, %460, %654 : vector<1x50xi32>
    %c35_i32_197 = arith.constant 35 : i32
    %656 = vector.broadcast %c35_i32_197 : i32 to vector<1x50xi32>
    %657 = arith.cmpi slt, %460, %656 : vector<1x50xi32>
    %658 = arith.andi %655, %657 : vector<1x50xi1>
    %cst_198 = arith.constant 0.000000e+00 : f32
    %659 = vector.shape_cast %658 : vector<1x50xi1> to vector<1x50xi1>
    %660 = vector.broadcast %659 : vector<1x50xi1> to vector<8x50xi1>
    %661 = vector.broadcast %cst_198 : f32 to vector<8x50xf32>
    %662 = arith.select %660, %423, %661 : vector<8x50xi1>, vector<8x50xf32>
    %663 = arith.truncf %662 : vector<8x50xf32> to vector<8x50xbf16>
    %664 = arith.truncf %427 : vector<16x50xf32> to vector<16x50xbf16>
    %cst_199 = arith.constant dense<0.000000e+00> : vector<8x16xf32>
    %665 = tpu.matmul %663, %664, %cst_199 {dimension_numbers = #tpu.dot_dimension_numbers<[1], [1], [0], [0], [0, 0, 1, 0], [], []>} : vector<8x50xbf16>, vector<16x50xbf16>, vector<8x16xf32> -> vector<8x16xf32>
    %cst_200 = arith.constant 0.44721359 : f32
    %666 = vector.broadcast %cst_200 : f32 to vector<8x16xf32>
    %667 = arith.mulf %665, %666 : vector<8x16xf32>
    %668 = arith.addf %667, %459 : vector<8x16xf32>
    %cst_201 = arith.constant dense<0xFF800000> : vector<8xf32>
    %669 = vector.multi_reduction <maximumf>, %668, %cst_201 [1] : vector<8x16xf32> to vector<8xf32>
    %670 = vector.shape_cast %669 : vector<8xf32> to vector<8x1xf32>
    %671 = vector.broadcast %670 : vector<8x1xf32> to vector<8x16xf32>
    %672 = arith.subf %668, %671 : vector<8x16xf32>
    %673 = math.exp %672 : vector<8x16xf32>
    %cst_202 = arith.constant dense<0.000000e+00> : vector<8xf32>
    %674 = vector.multi_reduction <add>, %673, %cst_202 [1] : vector<8x16xf32> to vector<8xf32>
    %675 = vector.shape_cast %674 : vector<8xf32> to vector<8x1xf32>
    %676 = vector.broadcast %675 : vector<8x1xf32> to vector<8x16xf32>
    %677 = arith.divf %673, %676 : vector<8x16xf32>
    %cst_203 = arith.constant 0.000000e+00 : f32
    %678 = vector.shape_cast %658 : vector<1x50xi1> to vector<1x50xi1>
    %679 = vector.broadcast %678 : vector<1x50xi1> to vector<16x50xi1>
    %680 = vector.broadcast %cst_203 : f32 to vector<16x50xf32>
    %681 = arith.select %679, %431, %680 : vector<16x50xi1>, vector<16x50xf32>
    %682 = arith.truncf %677 : vector<8x16xf32> to vector<8x16xbf16>
    %683 = arith.truncf %681 : vector<16x50xf32> to vector<16x50xbf16>
    %cst_204 = arith.constant dense<0.000000e+00> : vector<8x50xf32>
    %684 = tpu.matmul %682, %683, %cst_204 {dimension_numbers = #tpu.dot_dimension_numbers<[1], [0], [0], [1], [0, 0, 1, 1], [], []>} : vector<8x16xbf16>, vector<16x50xbf16>, vector<8x50xf32> -> vector<8x50xf32>
    %685 = arith.addf %653, %684 : vector<8x50xf32>
    %c35_i32_205 = arith.constant 35 : i32
    %686 = vector.broadcast %c35_i32_205 : i32 to vector<1x50xi32>
    %687 = arith.cmpi sge, %460, %686 : vector<1x50xi32>
    %c40_i32_206 = arith.constant 40 : i32
    %688 = vector.broadcast %c40_i32_206 : i32 to vector<1x50xi32>
    %689 = arith.cmpi slt, %460, %688 : vector<1x50xi32>
    %690 = arith.andi %687, %689 : vector<1x50xi1>
    %cst_207 = arith.constant 0.000000e+00 : f32
    %691 = vector.shape_cast %690 : vector<1x50xi1> to vector<1x50xi1>
    %692 = vector.broadcast %691 : vector<1x50xi1> to vector<8x50xi1>
    %693 = vector.broadcast %cst_207 : f32 to vector<8x50xf32>
    %694 = arith.select %692, %423, %693 : vector<8x50xi1>, vector<8x50xf32>
    %695 = arith.truncf %694 : vector<8x50xf32> to vector<8x50xbf16>
    %696 = arith.truncf %427 : vector<16x50xf32> to vector<16x50xbf16>
    %cst_208 = arith.constant dense<0.000000e+00> : vector<8x16xf32>
    %697 = tpu.matmul %695, %696, %cst_208 {dimension_numbers = #tpu.dot_dimension_numbers<[1], [1], [0], [0], [0, 0, 1, 0], [], []>} : vector<8x50xbf16>, vector<16x50xbf16>, vector<8x16xf32> -> vector<8x16xf32>
    %cst_209 = arith.constant 0.44721359 : f32
    %698 = vector.broadcast %cst_209 : f32 to vector<8x16xf32>
    %699 = arith.mulf %697, %698 : vector<8x16xf32>
    %700 = arith.addf %699, %459 : vector<8x16xf32>
    %cst_210 = arith.constant dense<0xFF800000> : vector<8xf32>
    %701 = vector.multi_reduction <maximumf>, %700, %cst_210 [1] : vector<8x16xf32> to vector<8xf32>
    %702 = vector.shape_cast %701 : vector<8xf32> to vector<8x1xf32>
    %703 = vector.broadcast %702 : vector<8x1xf32> to vector<8x16xf32>
    %704 = arith.subf %700, %703 : vector<8x16xf32>
    %705 = math.exp %704 : vector<8x16xf32>
    %cst_211 = arith.constant dense<0.000000e+00> : vector<8xf32>
    %706 = vector.multi_reduction <add>, %705, %cst_211 [1] : vector<8x16xf32> to vector<8xf32>
    %707 = vector.shape_cast %706 : vector<8xf32> to vector<8x1xf32>
    %708 = vector.broadcast %707 : vector<8x1xf32> to vector<8x16xf32>
    %709 = arith.divf %705, %708 : vector<8x16xf32>
    %cst_212 = arith.constant 0.000000e+00 : f32
    %710 = vector.shape_cast %690 : vector<1x50xi1> to vector<1x50xi1>
    %711 = vector.broadcast %710 : vector<1x50xi1> to vector<16x50xi1>
    %712 = vector.broadcast %cst_212 : f32 to vector<16x50xf32>
    %713 = arith.select %711, %431, %712 : vector<16x50xi1>, vector<16x50xf32>
    %714 = arith.truncf %709 : vector<8x16xf32> to vector<8x16xbf16>
    %715 = arith.truncf %713 : vector<16x50xf32> to vector<16x50xbf16>
    %cst_213 = arith.constant dense<0.000000e+00> : vector<8x50xf32>
    %716 = tpu.matmul %714, %715, %cst_213 {dimension_numbers = #tpu.dot_dimension_numbers<[1], [0], [0], [1], [0, 0, 1, 1], [], []>} : vector<8x16xbf16>, vector<16x50xbf16>, vector<8x50xf32> -> vector<8x50xf32>
    %717 = arith.addf %685, %716 : vector<8x50xf32>
    %c40_i32_214 = arith.constant 40 : i32
    %718 = vector.broadcast %c40_i32_214 : i32 to vector<1x50xi32>
    %719 = arith.cmpi sge, %460, %718 : vector<1x50xi32>
    %c45_i32_215 = arith.constant 45 : i32
    %720 = vector.broadcast %c45_i32_215 : i32 to vector<1x50xi32>
    %721 = arith.cmpi slt, %460, %720 : vector<1x50xi32>
    %722 = arith.andi %719, %721 : vector<1x50xi1>
    %cst_216 = arith.constant 0.000000e+00 : f32
    %723 = vector.shape_cast %722 : vector<1x50xi1> to vector<1x50xi1>
    %724 = vector.broadcast %723 : vector<1x50xi1> to vector<8x50xi1>
    %725 = vector.broadcast %cst_216 : f32 to vector<8x50xf32>
    %726 = arith.select %724, %423, %725 : vector<8x50xi1>, vector<8x50xf32>
    %727 = arith.truncf %726 : vector<8x50xf32> to vector<8x50xbf16>
    %728 = arith.truncf %427 : vector<16x50xf32> to vector<16x50xbf16>
    %cst_217 = arith.constant dense<0.000000e+00> : vector<8x16xf32>
    %729 = tpu.matmul %727, %728, %cst_217 {dimension_numbers = #tpu.dot_dimension_numbers<[1], [1], [0], [0], [0, 0, 1, 0], [], []>} : vector<8x50xbf16>, vector<16x50xbf16>, vector<8x16xf32> -> vector<8x16xf32>
    %cst_218 = arith.constant 0.44721359 : f32
    %730 = vector.broadcast %cst_218 : f32 to vector<8x16xf32>
    %731 = arith.mulf %729, %730 : vector<8x16xf32>
    %732 = arith.addf %731, %459 : vector<8x16xf32>
    %cst_219 = arith.constant dense<0xFF800000> : vector<8xf32>
    %733 = vector.multi_reduction <maximumf>, %732, %cst_219 [1] : vector<8x16xf32> to vector<8xf32>
    %734 = vector.shape_cast %733 : vector<8xf32> to vector<8x1xf32>
    %735 = vector.broadcast %734 : vector<8x1xf32> to vector<8x16xf32>
    %736 = arith.subf %732, %735 : vector<8x16xf32>
    %737 = math.exp %736 : vector<8x16xf32>
    %cst_220 = arith.constant dense<0.000000e+00> : vector<8xf32>
    %738 = vector.multi_reduction <add>, %737, %cst_220 [1] : vector<8x16xf32> to vector<8xf32>
    %739 = vector.shape_cast %738 : vector<8xf32> to vector<8x1xf32>
    %740 = vector.broadcast %739 : vector<8x1xf32> to vector<8x16xf32>
    %741 = arith.divf %737, %740 : vector<8x16xf32>
    %cst_221 = arith.constant 0.000000e+00 : f32
    %742 = vector.shape_cast %722 : vector<1x50xi1> to vector<1x50xi1>
    %743 = vector.broadcast %742 : vector<1x50xi1> to vector<16x50xi1>
    %744 = vector.broadcast %cst_221 : f32 to vector<16x50xf32>
    %745 = arith.select %743, %431, %744 : vector<16x50xi1>, vector<16x50xf32>
    %746 = arith.truncf %741 : vector<8x16xf32> to vector<8x16xbf16>
    %747 = arith.truncf %745 : vector<16x50xf32> to vector<16x50xbf16>
    %cst_222 = arith.constant dense<0.000000e+00> : vector<8x50xf32>
    %748 = tpu.matmul %746, %747, %cst_222 {dimension_numbers = #tpu.dot_dimension_numbers<[1], [0], [0], [1], [0, 0, 1, 1], [], []>} : vector<8x16xbf16>, vector<16x50xbf16>, vector<8x50xf32> -> vector<8x50xf32>
    %749 = arith.addf %717, %748 : vector<8x50xf32>
    %c45_i32_223 = arith.constant 45 : i32
    %750 = vector.broadcast %c45_i32_223 : i32 to vector<1x50xi32>
    %751 = arith.cmpi sge, %460, %750 : vector<1x50xi32>
    %c50_i32_224 = arith.constant 50 : i32
    %752 = vector.broadcast %c50_i32_224 : i32 to vector<1x50xi32>
    %753 = arith.cmpi slt, %460, %752 : vector<1x50xi32>
    %754 = arith.andi %751, %753 : vector<1x50xi1>
    %cst_225 = arith.constant 0.000000e+00 : f32
    %755 = vector.shape_cast %754 : vector<1x50xi1> to vector<1x50xi1>
    %756 = vector.broadcast %755 : vector<1x50xi1> to vector<8x50xi1>
    %757 = vector.broadcast %cst_225 : f32 to vector<8x50xf32>
    %758 = arith.select %756, %423, %757 : vector<8x50xi1>, vector<8x50xf32>
    %759 = arith.truncf %758 : vector<8x50xf32> to vector<8x50xbf16>
    %760 = arith.truncf %427 : vector<16x50xf32> to vector<16x50xbf16>
    %cst_226 = arith.constant dense<0.000000e+00> : vector<8x16xf32>
    %761 = tpu.matmul %759, %760, %cst_226 {dimension_numbers = #tpu.dot_dimension_numbers<[1], [1], [0], [0], [0, 0, 1, 0], [], []>} : vector<8x50xbf16>, vector<16x50xbf16>, vector<8x16xf32> -> vector<8x16xf32>
    %cst_227 = arith.constant 0.44721359 : f32
    %762 = vector.broadcast %cst_227 : f32 to vector<8x16xf32>
    %763 = arith.mulf %761, %762 : vector<8x16xf32>
    %764 = arith.addf %763, %459 : vector<8x16xf32>
    %cst_228 = arith.constant dense<0xFF800000> : vector<8xf32>
    %765 = vector.multi_reduction <maximumf>, %764, %cst_228 [1] : vector<8x16xf32> to vector<8xf32>
    %766 = vector.shape_cast %765 : vector<8xf32> to vector<8x1xf32>
    %767 = vector.broadcast %766 : vector<8x1xf32> to vector<8x16xf32>
    %768 = arith.subf %764, %767 : vector<8x16xf32>
    %769 = math.exp %768 : vector<8x16xf32>
    %cst_229 = arith.constant dense<0.000000e+00> : vector<8xf32>
    %770 = vector.multi_reduction <add>, %769, %cst_229 [1] : vector<8x16xf32> to vector<8xf32>
    %771 = vector.shape_cast %770 : vector<8xf32> to vector<8x1xf32>
    %772 = vector.broadcast %771 : vector<8x1xf32> to vector<8x16xf32>
    %773 = arith.divf %769, %772 : vector<8x16xf32>
    %cst_230 = arith.constant 0.000000e+00 : f32
    %774 = vector.shape_cast %754 : vector<1x50xi1> to vector<1x50xi1>
    %775 = vector.broadcast %774 : vector<1x50xi1> to vector<16x50xi1>
    %776 = vector.broadcast %cst_230 : f32 to vector<16x50xf32>
    %777 = arith.select %775, %431, %776 : vector<16x50xi1>, vector<16x50xf32>
    %778 = arith.truncf %773 : vector<8x16xf32> to vector<8x16xbf16>
    %779 = arith.truncf %777 : vector<16x50xf32> to vector<16x50xbf16>
    %cst_231 = arith.constant dense<0.000000e+00> : vector<8x50xf32>
    %780 = tpu.matmul %778, %779, %cst_231 {dimension_numbers = #tpu.dot_dimension_numbers<[1], [0], [0], [1], [0, 0, 1, 1], [], []>} : vector<8x16xbf16>, vector<16x50xbf16>, vector<8x50xf32> -> vector<8x50xf32>
    %781 = arith.addf %749, %780 : vector<8x50xf32>
    %782 = arith.truncf %781 : vector<8x50xf32> to vector<8x50xbf16>
    %cst_232 = arith.constant dense<0.000000e+00> : vector<8x50xf32>
    %783 = tpu.matmul %782, %415, %cst_232 {dimension_numbers = #tpu.dot_dimension_numbers<[1], [0], [0], [1], [0, 0, 1, 1], [], []>} : vector<8x50xbf16>, vector<50x50xbf16>, vector<8x50xf32> -> vector<8x50xf32>
    %784 = vector.broadcast %419 : vector<1x50xf32> to vector<8x50xf32>
    %785 = arith.addf %783, %784 : vector<8x50xf32>
    %786 = arith.addf %407, %785 : vector<8x50xf32>
    %787 = vector.extract_strided_slice %6 {offsets = [11, 0], sizes = [1, 50], strides = [1, 1]} : vector<15x50xf32> to vector<1x50xf32>
    %788 = vector.extract_strided_slice %6 {offsets = [12, 0], sizes = [1, 50], strides = [1, 1]} : vector<15x50xf32> to vector<1x50xf32>
    %cst_233 = arith.constant dense<0.000000e+00> : vector<8xf32>
    %789 = vector.multi_reduction <add>, %786, %cst_233 [1] : vector<8x50xf32> to vector<8xf32>
    %790 = vector.shape_cast %789 : vector<8xf32> to vector<8x1xf32>
    %cst_234 = arith.constant 5.000000e+01 : f32
    %791 = vector.broadcast %cst_234 : f32 to vector<8x1xf32>
    %792 = arith.divf %790, %791 : vector<8x1xf32>
    %793 = vector.broadcast %792 : vector<8x1xf32> to vector<8x50xf32>
    %794 = arith.subf %786, %793 : vector<8x50xf32>
    %795 = arith.mulf %794, %794 : vector<8x50xf32>
    %cst_235 = arith.constant dense<0.000000e+00> : vector<8xf32>
    %796 = vector.multi_reduction <add>, %795, %cst_235 [1] : vector<8x50xf32> to vector<8xf32>
    %797 = vector.shape_cast %796 : vector<8xf32> to vector<8x1xf32>
    %cst_236 = arith.constant 5.000000e+01 : f32
    %798 = vector.broadcast %cst_236 : f32 to vector<8x1xf32>
    %799 = arith.divf %797, %798 : vector<8x1xf32>
    %cst_237 = arith.constant 9.99999974E-6 : f32
    %800 = vector.broadcast %cst_237 : f32 to vector<8x1xf32>
    %801 = arith.addf %799, %800 : vector<8x1xf32>
    %802 = math.rsqrt %801 : vector<8x1xf32>
    %803 = vector.broadcast %802 : vector<8x1xf32> to vector<8x50xf32>
    %804 = arith.mulf %794, %803 : vector<8x50xf32>
    %805 = vector.broadcast %787 : vector<1x50xf32> to vector<8x50xf32>
    %806 = arith.mulf %804, %805 : vector<8x50xf32>
    %807 = vector.broadcast %788 : vector<1x50xf32> to vector<8x50xf32>
    %808 = arith.addf %806, %807 : vector<8x50xf32>
    %c0_238 = arith.constant 0 : index
    %c0_239 = arith.constant 0 : index
    %c0_240 = arith.constant 0 : index
    %809 = vector.load %arg4[%c0_238, %c0_239, %c0_240] : memref<1x50x2048xbf16, #tpu.memory_space<vmem>>, vector<1x50x2048xbf16>
    %810 = vector.shape_cast %809 : vector<1x50x2048xbf16> to vector<50x2048xbf16>
    %811 = arith.truncf %808 : vector<8x50xf32> to vector<8x50xbf16>
    %cst_241 = arith.constant dense<0.000000e+00> : vector<8x2048xf32>
    %812 = tpu.matmul %811, %810, %cst_241 {dimension_numbers = #tpu.dot_dimension_numbers<[1], [0], [0], [1], [0, 0, 1, 1], [], []>} : vector<8x50xbf16>, vector<50x2048xbf16>, vector<8x2048xf32> -> vector<8x2048xf32>
    %c0_242 = arith.constant 0 : index
    %c0_243 = arith.constant 0 : index
    %c0_244 = arith.constant 0 : index
    %813 = vector.load %arg5[%c0_242, %c0_243, %c0_244] : memref<1x1x2048xf32, #tpu.memory_space<vmem>>, vector<1x1x2048xf32>
    %814 = vector.shape_cast %813 : vector<1x1x2048xf32> to vector<1x2048xf32>
    %815 = vector.broadcast %814 : vector<1x2048xf32> to vector<8x2048xf32>
    %816 = arith.addf %812, %815 : vector<8x2048xf32>
    %cst_245 = arith.constant 0.000000e+00 : f32
    %817 = vector.broadcast %cst_245 : f32 to vector<8x2048xf32>
    %818 = arith.maximumf %816, %817 : vector<8x2048xf32>
    %c0_246 = arith.constant 0 : index
    %c0_247 = arith.constant 0 : index
    %c0_248 = arith.constant 0 : index
    %819 = vector.load %arg6[%c0_246, %c0_247, %c0_248] : memref<1x50x2048xbf16, #tpu.memory_space<vmem>>, vector<1x50x2048xbf16>
    %820 = vector.shape_cast %819 : vector<1x50x2048xbf16> to vector<50x2048xbf16>
    %821 = arith.truncf %818 : vector<8x2048xf32> to vector<8x2048xbf16>
    %cst_249 = arith.constant dense<0.000000e+00> : vector<8x50xf32>
    %822 = tpu.matmul %821, %820, %cst_249 {dimension_numbers = #tpu.dot_dimension_numbers<[1], [1], [0], [0], [0, 0, 1, 0], [], []>} : vector<8x2048xbf16>, vector<50x2048xbf16>, vector<8x50xf32> -> vector<8x50xf32>
    %823 = vector.extract_strided_slice %6 {offsets = [8, 0], sizes = [1, 50], strides = [1, 1]} : vector<15x50xf32> to vector<1x50xf32>
    %824 = vector.broadcast %823 : vector<1x50xf32> to vector<8x50xf32>
    %825 = arith.addf %822, %824 : vector<8x50xf32>
    %826 = arith.addf %808, %825 : vector<8x50xf32>
    %827 = vector.extract_strided_slice %6 {offsets = [13, 0], sizes = [1, 50], strides = [1, 1]} : vector<15x50xf32> to vector<1x50xf32>
    %828 = vector.extract_strided_slice %6 {offsets = [14, 0], sizes = [1, 50], strides = [1, 1]} : vector<15x50xf32> to vector<1x50xf32>
    %cst_250 = arith.constant dense<0.000000e+00> : vector<8xf32>
    %829 = vector.multi_reduction <add>, %826, %cst_250 [1] : vector<8x50xf32> to vector<8xf32>
    %830 = vector.shape_cast %829 : vector<8xf32> to vector<8x1xf32>
    %cst_251 = arith.constant 5.000000e+01 : f32
    %831 = vector.broadcast %cst_251 : f32 to vector<8x1xf32>
    %832 = arith.divf %830, %831 : vector<8x1xf32>
    %833 = vector.broadcast %832 : vector<8x1xf32> to vector<8x50xf32>
    %834 = arith.subf %826, %833 : vector<8x50xf32>
    %835 = arith.mulf %834, %834 : vector<8x50xf32>
    %cst_252 = arith.constant dense<0.000000e+00> : vector<8xf32>
    %836 = vector.multi_reduction <add>, %835, %cst_252 [1] : vector<8x50xf32> to vector<8xf32>
    %837 = vector.shape_cast %836 : vector<8xf32> to vector<8x1xf32>
    %cst_253 = arith.constant 5.000000e+01 : f32
    %838 = vector.broadcast %cst_253 : f32 to vector<8x1xf32>
    %839 = arith.divf %837, %838 : vector<8x1xf32>
    %cst_254 = arith.constant 9.99999974E-6 : f32
    %840 = vector.broadcast %cst_254 : f32 to vector<8x1xf32>
    %841 = arith.addf %839, %840 : vector<8x1xf32>
    %842 = math.rsqrt %841 : vector<8x1xf32>
    %843 = vector.broadcast %842 : vector<8x1xf32> to vector<8x50xf32>
    %844 = arith.mulf %834, %843 : vector<8x50xf32>
    %845 = vector.broadcast %827 : vector<1x50xf32> to vector<8x50xf32>
    %846 = arith.mulf %844, %845 : vector<8x50xf32>
    %847 = vector.broadcast %828 : vector<1x50xf32> to vector<8x50xf32>
    %848 = arith.addf %846, %847 : vector<8x50xf32>
    %c0_255 = arith.constant 0 : index
    %c0_256 = arith.constant 0 : index
    %849 = vector.load %arg11[%c0_255, %c0_256] : memref<8x50xf32, #tpu.memory_space<vmem>>, vector<8x50xf32>
    tpu.vector_store %arg11[%c0_255, %c0_256], %848 {strides = array<i32>} : memref<8x50xf32, #tpu.memory_space<vmem>>, vector<8x50xf32>,
    %c5_i32_257 = arith.constant 5 : i32
    %850 = arith.cmpi eq, %arg0, %c5_i32_257 : i32
    %851 = arith.extui %850 : i1 to i32
    %c0_i32_258 = arith.constant 0 : i32
    %852 = arith.cmpi ne, %851, %c0_i32_258 : i32
    scf.if %852 {
      %c0_259 = arith.constant 0 : index
      %c0_260 = arith.constant 0 : index
      %853 = vector.load %arg8[%c0_259, %c0_260] : memref<50x128xbf16, #tpu.memory_space<vmem>>, vector<50x128xbf16>
      %854 = arith.truncf %848 : vector<8x50xf32> to vector<8x50xbf16>
      %cst_261 = arith.constant dense<0.000000e+00> : vector<8x128xf32>
      %855 = tpu.matmul %854, %853, %cst_261 {dimension_numbers = #tpu.dot_dimension_numbers<[1], [0], [0], [1], [0, 0, 1, 1], [], []>} : vector<8x50xbf16>, vector<50x128xbf16>, vector<8x128xf32> -> vector<8x128xf32>
      %c0_262 = arith.constant 0 : index
      %c0_263 = arith.constant 0 : index
      %856 = vector.load %arg9[%c0_262, %c0_263] : memref<1x128xf32, #tpu.memory_space<vmem>>, vector<1x128xf32>
      %857 = vector.broadcast %856 : vector<1x128xf32> to vector<8x128xf32>
      %858 = arith.addf %855, %857 : vector<8x128xf32>
      %c0_264 = arith.constant 0 : index
      %c0_265 = arith.constant 0 : index
      %859 = vector.load %arg10[%c0_264, %c0_265] : memref<8x128xf32, #tpu.memory_space<vmem>>, vector<8x128xf32>
      tpu.vector_store %arg10[%c0_264, %c0_265], %858 {strides = array<i32>} : memref<8x128xf32, #tpu.memory_space<vmem>>, vector<8x128xf32>,
    } else {
    }
    return
  }
  func.func @transform_0(%arg0: i32) -> (i32, i32) {
    %c0_i32 = arith.constant 0 : i32
    %c0_i32_0 = arith.constant 0 : i32
    %c0_i32_1 = arith.constant 0 : i32
    return %c0_i32, %c0_i32_0 : i32, i32
  }
  func.func @transform_1(%arg0: i32) -> (i32, i32) {
    %c0_i32 = arith.constant 0 : i32
    %c0_i32_0 = arith.constant 0 : i32
    %c0_i32_1 = arith.constant 0 : i32
    return %c0_i32, %c0_i32_0 : i32, i32
  }
  func.func @transform_2(%arg0: i32) -> (i32, i32, i32, i32) {
    %c0_i32 = arith.constant 0 : i32
    %c0_i32_0 = arith.constant 0 : i32
    %c0_i32_1 = arith.constant 0 : i32
    %c0_i32_2 = arith.constant 0 : i32
    return %arg0, %c0_i32, %c0_i32_0, %c0_i32_1 : i32, i32, i32, i32
  }
  func.func @transform_3(%arg0: i32) -> (i32, i32, i32) {
    %c0_i32 = arith.constant 0 : i32
    %c0_i32_0 = arith.constant 0 : i32
    %c0_i32_1 = arith.constant 0 : i32
    return %arg0, %c0_i32, %c0_i32_0 : i32, i32, i32
  }
  func.func @transform_4(%arg0: i32) -> (i32, i32, i32) {
    %c0_i32 = arith.constant 0 : i32
    %c0_i32_0 = arith.constant 0 : i32
    %c0_i32_1 = arith.constant 0 : i32
    return %arg0, %c0_i32, %c0_i32_0 : i32, i32, i32
  }
  func.func @transform_5(%arg0: i32) -> (i32, i32, i32) {
    %c0_i32 = arith.constant 0 : i32
    %c0_i32_0 = arith.constant 0 : i32
    %c0_i32_1 = arith.constant 0 : i32
    return %arg0, %c0_i32, %c0_i32_0 : i32, i32, i32
  }
  func.func @transform_6(%arg0: i32) -> (i32, i32, i32) {
    %c0_i32 = arith.constant 0 : i32
    %c0_i32_0 = arith.constant 0 : i32
    %c0_i32_1 = arith.constant 0 : i32
    return %arg0, %c0_i32, %c0_i32_0 : i32, i32, i32
  }
  func.func @transform_7(%arg0: i32) -> (i32, i32) {
    %c0_i32 = arith.constant 0 : i32
    %c0_i32_0 = arith.constant 0 : i32
    %c0_i32_1 = arith.constant 0 : i32
    return %c0_i32, %c0_i32_0 : i32, i32
  }
  func.func @transform_8(%arg0: i32) -> (i32, i32) {
    %c0_i32 = arith.constant 0 : i32
    %c0_i32_0 = arith.constant 0 : i32
    %c0_i32_1 = arith.constant 0 : i32
    return %c0_i32, %c0_i32_0 : i32, i32
  }
  func.func @transform_9(%arg0: i32) -> (i32, i32) {
    %c0_i32 = arith.constant 0 : i32
    %c0_i32_0 = arith.constant 0 : i32
    %c0_i32_1 = arith.constant 0 : i32
    return %c0_i32, %c0_i32_0 : i32, i32
  }
}

module attributes {stable_mosaic.version = 11 : i64} {
  func.func @_encoder_kernel(%arg0: i32, %arg1: memref<16x50xf32, #tpu.memory_space<vmem>>, %arg2: memref<1x4x50x50xbf16, #tpu.memory_space<vmem>>, %arg3: memref<1x50x2048xbf16, #tpu.memory_space<vmem>>, %arg4: memref<1x1x2048xf32, #tpu.memory_space<vmem>>, %arg5: memref<1x50x2048xbf16, #tpu.memory_space<vmem>>, %arg6: memref<1x9x50xf32, #tpu.memory_space<vmem>>, %arg7: memref<16x50xf32, #tpu.memory_space<vmem>>) attributes {dimension_semantics = [#tpu.dimension_semantics<arbitrary>], iteration_bounds = array<i64: 6>, scalar_prefetch = 0 : i64, scratch_operands = 0 : i64, tpu.core_type = #tpu.core_type<tc>, window_params = [{pipeline_mode = #tpu.pipeline_mode<synchronous>, transform_indices = @transform_0, window_bounds = array<i64: 16, 50>}, {transform_indices = @transform_1, window_bounds = array<i64: 1, 4, 50, 50>}, {transform_indices = @transform_2, window_bounds = array<i64: 1, 50, 2048>}, {transform_indices = @transform_3, window_bounds = array<i64: 1, 1, 2048>}, {transform_indices = @transform_4, window_bounds = array<i64: 1, 50, 2048>}, {transform_indices = @transform_5, window_bounds = array<i64: 1, 9, 50>}, {pipeline_mode = #tpu.pipeline_mode<synchronous>, transform_indices = @transform_6, window_bounds = array<i64: 16, 50>}]} {
    %c0_i32 = arith.constant 0 : i32
    %0 = arith.cmpi eq, %arg0, %c0_i32 : i32
    %1 = arith.extui %0 : i1 to i32
    %c0_i32_0 = arith.constant 0 : i32
    %2 = arith.cmpi ne, %1, %c0_i32_0 : i32
    scf.if %2 {
      %c0_134 = arith.constant 0 : index
      %c0_135 = arith.constant 0 : index
      %448 = vector.load %arg1[%c0_134, %c0_135] : memref<16x50xf32, #tpu.memory_space<vmem>>, vector<16x50xf32>
      %c0_136 = arith.constant 0 : index
      %c0_137 = arith.constant 0 : index
      %449 = vector.load %arg7[%c0_136, %c0_137] : memref<16x50xf32, #tpu.memory_space<vmem>>, vector<16x50xf32>
      tpu.vector_store %arg7[%c0_136, %c0_137], %448 {strides = array<i32>} : memref<16x50xf32, #tpu.memory_space<vmem>>, vector<16x50xf32>,
    } else {
    }
    %c0 = arith.constant 0 : index
    %c0_1 = arith.constant 0 : index
    %3 = vector.load %arg7[%c0, %c0_1] : memref<16x50xf32, #tpu.memory_space<vmem>>, vector<16x50xf32>
    %c0_2 = arith.constant 0 : index
    %c0_3 = arith.constant 0 : index
    %c0_4 = arith.constant 0 : index
    %4 = vector.load %arg6[%c0_2, %c0_3, %c0_4] : memref<1x9x50xf32, #tpu.memory_space<vmem>>, vector<1x9x50xf32>
    %5 = vector.shape_cast %4 : vector<1x9x50xf32> to vector<9x50xf32>
    %c0_5 = arith.constant 0 : index
    %c0_6 = arith.constant 0 : index
    %c0_7 = arith.constant 0 : index
    %c0_8 = arith.constant 0 : index
    %6 = vector.load %arg2[%c0_5, %c0_6, %c0_7, %c0_8] : memref<1x4x50x50xbf16, #tpu.memory_space<vmem>>, vector<1x1x50x50xbf16>
    %7 = vector.shape_cast %6 : vector<1x1x50x50xbf16> to vector<50x50xbf16>
    %c0_9 = arith.constant 0 : index
    %c1 = arith.constant 1 : index
    %c0_10 = arith.constant 0 : index
    %c0_11 = arith.constant 0 : index
    %8 = vector.load %arg2[%c0_9, %c1, %c0_10, %c0_11] : memref<1x4x50x50xbf16, #tpu.memory_space<vmem>>, vector<1x1x50x50xbf16>
    %9 = vector.shape_cast %8 : vector<1x1x50x50xbf16> to vector<50x50xbf16>
    %c0_12 = arith.constant 0 : index
    %c2 = arith.constant 2 : index
    %c0_13 = arith.constant 0 : index
    %c0_14 = arith.constant 0 : index
    %10 = vector.load %arg2[%c0_12, %c2, %c0_13, %c0_14] : memref<1x4x50x50xbf16, #tpu.memory_space<vmem>>, vector<1x1x50x50xbf16>
    %11 = vector.shape_cast %10 : vector<1x1x50x50xbf16> to vector<50x50xbf16>
    %c0_15 = arith.constant 0 : index
    %c3 = arith.constant 3 : index
    %c0_16 = arith.constant 0 : index
    %c0_17 = arith.constant 0 : index
    %12 = vector.load %arg2[%c0_15, %c3, %c0_16, %c0_17] : memref<1x4x50x50xbf16, #tpu.memory_space<vmem>>, vector<1x1x50x50xbf16>
    %13 = vector.shape_cast %12 : vector<1x1x50x50xbf16> to vector<50x50xbf16>
    %14 = vector.extract_strided_slice %5 {offsets = [0, 0], sizes = [1, 50], strides = [1, 1]} : vector<9x50xf32> to vector<1x50xf32>
    %15 = vector.extract_strided_slice %5 {offsets = [1, 0], sizes = [1, 50], strides = [1, 1]} : vector<9x50xf32> to vector<1x50xf32>
    %16 = vector.extract_strided_slice %5 {offsets = [2, 0], sizes = [1, 50], strides = [1, 1]} : vector<9x50xf32> to vector<1x50xf32>
    %17 = vector.extract_strided_slice %5 {offsets = [3, 0], sizes = [1, 50], strides = [1, 1]} : vector<9x50xf32> to vector<1x50xf32>
    %18 = arith.truncf %3 : vector<16x50xf32> to vector<16x50xbf16>
    %cst = arith.constant dense<0.000000e+00> : vector<16x50xf32>
    %19 = tpu.matmul %18, %7, %cst {dimension_numbers = #tpu.dot_dimension_numbers<[1], [0], [0], [1], [0, 0, 1, 1], [], []>} : vector<16x50xbf16>, vector<50x50xbf16>, vector<16x50xf32> -> vector<16x50xf32>
    %20 = vector.broadcast %14 : vector<1x50xf32> to vector<16x50xf32>
    %21 = arith.addf %19, %20 : vector<16x50xf32>
    %22 = arith.truncf %3 : vector<16x50xf32> to vector<16x50xbf16>
    %cst_18 = arith.constant dense<0.000000e+00> : vector<16x50xf32>
    %23 = tpu.matmul %22, %9, %cst_18 {dimension_numbers = #tpu.dot_dimension_numbers<[1], [0], [0], [1], [0, 0, 1, 1], [], []>} : vector<16x50xbf16>, vector<50x50xbf16>, vector<16x50xf32> -> vector<16x50xf32>
    %24 = vector.broadcast %15 : vector<1x50xf32> to vector<16x50xf32>
    %25 = arith.addf %23, %24 : vector<16x50xf32>
    %26 = arith.truncf %3 : vector<16x50xf32> to vector<16x50xbf16>
    %cst_19 = arith.constant dense<0.000000e+00> : vector<16x50xf32>
    %27 = tpu.matmul %26, %11, %cst_19 {dimension_numbers = #tpu.dot_dimension_numbers<[1], [0], [0], [1], [0, 0, 1, 1], [], []>} : vector<16x50xbf16>, vector<50x50xbf16>, vector<16x50xf32> -> vector<16x50xf32>
    %28 = vector.broadcast %16 : vector<1x50xf32> to vector<16x50xf32>
    %29 = arith.addf %27, %28 : vector<16x50xf32>
    %30 = tpu.iota {dimensions = array<i32: 0>} : vector<16x16xi32>
    %31 = tpu.iota {dimensions = array<i32: 1>} : vector<16x16xi32>
    %c0_i32_20 = arith.constant 0 : i32
    %32 = vector.broadcast %c0_i32_20 : i32 to vector<16x16xi32>
    %33 = arith.cmpi sge, %30, %32 : vector<16x16xi32>
    %c8_i32 = arith.constant 8 : i32
    %34 = vector.broadcast %c8_i32 : i32 to vector<16x16xi32>
    %35 = arith.cmpi slt, %30, %34 : vector<16x16xi32>
    %36 = arith.andi %33, %35 : vector<16x16xi1>
    %c0_i32_21 = arith.constant 0 : i32
    %37 = vector.broadcast %c0_i32_21 : i32 to vector<16x16xi32>
    %38 = arith.cmpi sge, %31, %37 : vector<16x16xi32>
    %39 = arith.andi %36, %38 : vector<16x16xi1>
    %c8_i32_22 = arith.constant 8 : i32
    %40 = vector.broadcast %c8_i32_22 : i32 to vector<16x16xi32>
    %41 = arith.cmpi slt, %31, %40 : vector<16x16xi32>
    %42 = arith.andi %39, %41 : vector<16x16xi1>
    %c8_i32_23 = arith.constant 8 : i32
    %43 = vector.broadcast %c8_i32_23 : i32 to vector<16x16xi32>
    %44 = arith.cmpi sge, %30, %43 : vector<16x16xi32>
    %c16_i32 = arith.constant 16 : i32
    %45 = vector.broadcast %c16_i32 : i32 to vector<16x16xi32>
    %46 = arith.cmpi slt, %30, %45 : vector<16x16xi32>
    %47 = arith.andi %44, %46 : vector<16x16xi1>
    %c8_i32_24 = arith.constant 8 : i32
    %48 = vector.broadcast %c8_i32_24 : i32 to vector<16x16xi32>
    %49 = arith.cmpi sge, %31, %48 : vector<16x16xi32>
    %50 = arith.andi %47, %49 : vector<16x16xi1>
    %c16_i32_25 = arith.constant 16 : i32
    %51 = vector.broadcast %c16_i32_25 : i32 to vector<16x16xi32>
    %52 = arith.cmpi slt, %31, %51 : vector<16x16xi32>
    %53 = arith.andi %50, %52 : vector<16x16xi1>
    %54 = arith.ori %42, %53 : vector<16x16xi1>
    %cst_26 = arith.constant 0.000000e+00 : f32
    %cst_27 = arith.constant -1.000000e+30 : f32
    %55 = vector.broadcast %cst_26 : f32 to vector<16x16xf32>
    %56 = vector.broadcast %cst_27 : f32 to vector<16x16xf32>
    %57 = arith.select %54, %55, %56 : vector<16x16xi1>, vector<16x16xf32>
    %58 = tpu.iota {dimensions = array<i32: 1>} : vector<1x50xi32>
    %cst_28 = arith.constant 0.000000e+00 : f32
    %59 = vector.broadcast %cst_28 : f32 to vector<16x50xf32>
    %c0_i32_29 = arith.constant 0 : i32
    %60 = vector.broadcast %c0_i32_29 : i32 to vector<1x50xi32>
    %61 = arith.cmpi sge, %58, %60 : vector<1x50xi32>
    %c5_i32 = arith.constant 5 : i32
    %62 = vector.broadcast %c5_i32 : i32 to vector<1x50xi32>
    %63 = arith.cmpi slt, %58, %62 : vector<1x50xi32>
    %64 = arith.andi %61, %63 : vector<1x50xi1>
    %cst_30 = arith.constant 0.000000e+00 : f32
    %65 = vector.shape_cast %64 : vector<1x50xi1> to vector<1x50xi1>
    %66 = vector.broadcast %65 : vector<1x50xi1> to vector<16x50xi1>
    %67 = vector.broadcast %cst_30 : f32 to vector<16x50xf32>
    %68 = arith.select %66, %21, %67 : vector<16x50xi1>, vector<16x50xf32>
    %69 = arith.truncf %68 : vector<16x50xf32> to vector<16x50xbf16>
    %70 = arith.truncf %25 : vector<16x50xf32> to vector<16x50xbf16>
    %cst_31 = arith.constant dense<0.000000e+00> : vector<16x16xf32>
    %71 = tpu.matmul %69, %70, %cst_31 {dimension_numbers = #tpu.dot_dimension_numbers<[1], [1], [0], [0], [0, 0, 1, 0], [], []>} : vector<16x50xbf16>, vector<16x50xbf16>, vector<16x16xf32> -> vector<16x16xf32>
    %cst_32 = arith.constant 0.44721359 : f32
    %72 = vector.broadcast %cst_32 : f32 to vector<16x16xf32>
    %73 = arith.mulf %71, %72 : vector<16x16xf32>
    %74 = arith.addf %73, %57 : vector<16x16xf32>
    %cst_33 = arith.constant dense<0xFF800000> : vector<16xf32>
    %75 = vector.multi_reduction <maximumf>, %74, %cst_33 [1] : vector<16x16xf32> to vector<16xf32>
    %76 = vector.shape_cast %75 : vector<16xf32> to vector<16x1xf32>
    %77 = vector.broadcast %76 : vector<16x1xf32> to vector<16x16xf32>
    %78 = arith.subf %74, %77 : vector<16x16xf32>
    %79 = math.exp %78 : vector<16x16xf32>
    %cst_34 = arith.constant dense<0.000000e+00> : vector<16xf32>
    %80 = vector.multi_reduction <add>, %79, %cst_34 [1] : vector<16x16xf32> to vector<16xf32>
    %81 = vector.shape_cast %80 : vector<16xf32> to vector<16x1xf32>
    %82 = vector.broadcast %81 : vector<16x1xf32> to vector<16x16xf32>
    %83 = arith.divf %79, %82 : vector<16x16xf32>
    %cst_35 = arith.constant 0.000000e+00 : f32
    %84 = vector.shape_cast %64 : vector<1x50xi1> to vector<1x50xi1>
    %85 = vector.broadcast %84 : vector<1x50xi1> to vector<16x50xi1>
    %86 = vector.broadcast %cst_35 : f32 to vector<16x50xf32>
    %87 = arith.select %85, %29, %86 : vector<16x50xi1>, vector<16x50xf32>
    %88 = arith.truncf %83 : vector<16x16xf32> to vector<16x16xbf16>
    %89 = arith.truncf %87 : vector<16x50xf32> to vector<16x50xbf16>
    %cst_36 = arith.constant dense<0.000000e+00> : vector<16x50xf32>
    %90 = tpu.matmul %88, %89, %cst_36 {dimension_numbers = #tpu.dot_dimension_numbers<[1], [0], [0], [1], [0, 0, 1, 1], [], []>} : vector<16x16xbf16>, vector<16x50xbf16>, vector<16x50xf32> -> vector<16x50xf32>
    %91 = arith.addf %59, %90 : vector<16x50xf32>
    %c5_i32_37 = arith.constant 5 : i32
    %92 = vector.broadcast %c5_i32_37 : i32 to vector<1x50xi32>
    %93 = arith.cmpi sge, %58, %92 : vector<1x50xi32>
    %c10_i32 = arith.constant 10 : i32
    %94 = vector.broadcast %c10_i32 : i32 to vector<1x50xi32>
    %95 = arith.cmpi slt, %58, %94 : vector<1x50xi32>
    %96 = arith.andi %93, %95 : vector<1x50xi1>
    %cst_38 = arith.constant 0.000000e+00 : f32
    %97 = vector.shape_cast %96 : vector<1x50xi1> to vector<1x50xi1>
    %98 = vector.broadcast %97 : vector<1x50xi1> to vector<16x50xi1>
    %99 = vector.broadcast %cst_38 : f32 to vector<16x50xf32>
    %100 = arith.select %98, %21, %99 : vector<16x50xi1>, vector<16x50xf32>
    %101 = arith.truncf %100 : vector<16x50xf32> to vector<16x50xbf16>
    %102 = arith.truncf %25 : vector<16x50xf32> to vector<16x50xbf16>
    %cst_39 = arith.constant dense<0.000000e+00> : vector<16x16xf32>
    %103 = tpu.matmul %101, %102, %cst_39 {dimension_numbers = #tpu.dot_dimension_numbers<[1], [1], [0], [0], [0, 0, 1, 0], [], []>} : vector<16x50xbf16>, vector<16x50xbf16>, vector<16x16xf32> -> vector<16x16xf32>
    %cst_40 = arith.constant 0.44721359 : f32
    %104 = vector.broadcast %cst_40 : f32 to vector<16x16xf32>
    %105 = arith.mulf %103, %104 : vector<16x16xf32>
    %106 = arith.addf %105, %57 : vector<16x16xf32>
    %cst_41 = arith.constant dense<0xFF800000> : vector<16xf32>
    %107 = vector.multi_reduction <maximumf>, %106, %cst_41 [1] : vector<16x16xf32> to vector<16xf32>
    %108 = vector.shape_cast %107 : vector<16xf32> to vector<16x1xf32>
    %109 = vector.broadcast %108 : vector<16x1xf32> to vector<16x16xf32>
    %110 = arith.subf %106, %109 : vector<16x16xf32>
    %111 = math.exp %110 : vector<16x16xf32>
    %cst_42 = arith.constant dense<0.000000e+00> : vector<16xf32>
    %112 = vector.multi_reduction <add>, %111, %cst_42 [1] : vector<16x16xf32> to vector<16xf32>
    %113 = vector.shape_cast %112 : vector<16xf32> to vector<16x1xf32>
    %114 = vector.broadcast %113 : vector<16x1xf32> to vector<16x16xf32>
    %115 = arith.divf %111, %114 : vector<16x16xf32>
    %cst_43 = arith.constant 0.000000e+00 : f32
    %116 = vector.shape_cast %96 : vector<1x50xi1> to vector<1x50xi1>
    %117 = vector.broadcast %116 : vector<1x50xi1> to vector<16x50xi1>
    %118 = vector.broadcast %cst_43 : f32 to vector<16x50xf32>
    %119 = arith.select %117, %29, %118 : vector<16x50xi1>, vector<16x50xf32>
    %120 = arith.truncf %115 : vector<16x16xf32> to vector<16x16xbf16>
    %121 = arith.truncf %119 : vector<16x50xf32> to vector<16x50xbf16>
    %cst_44 = arith.constant dense<0.000000e+00> : vector<16x50xf32>
    %122 = tpu.matmul %120, %121, %cst_44 {dimension_numbers = #tpu.dot_dimension_numbers<[1], [0], [0], [1], [0, 0, 1, 1], [], []>} : vector<16x16xbf16>, vector<16x50xbf16>, vector<16x50xf32> -> vector<16x50xf32>
    %123 = arith.addf %91, %122 : vector<16x50xf32>
    %c10_i32_45 = arith.constant 10 : i32
    %124 = vector.broadcast %c10_i32_45 : i32 to vector<1x50xi32>
    %125 = arith.cmpi sge, %58, %124 : vector<1x50xi32>
    %c15_i32 = arith.constant 15 : i32
    %126 = vector.broadcast %c15_i32 : i32 to vector<1x50xi32>
    %127 = arith.cmpi slt, %58, %126 : vector<1x50xi32>
    %128 = arith.andi %125, %127 : vector<1x50xi1>
    %cst_46 = arith.constant 0.000000e+00 : f32
    %129 = vector.shape_cast %128 : vector<1x50xi1> to vector<1x50xi1>
    %130 = vector.broadcast %129 : vector<1x50xi1> to vector<16x50xi1>
    %131 = vector.broadcast %cst_46 : f32 to vector<16x50xf32>
    %132 = arith.select %130, %21, %131 : vector<16x50xi1>, vector<16x50xf32>
    %133 = arith.truncf %132 : vector<16x50xf32> to vector<16x50xbf16>
    %134 = arith.truncf %25 : vector<16x50xf32> to vector<16x50xbf16>
    %cst_47 = arith.constant dense<0.000000e+00> : vector<16x16xf32>
    %135 = tpu.matmul %133, %134, %cst_47 {dimension_numbers = #tpu.dot_dimension_numbers<[1], [1], [0], [0], [0, 0, 1, 0], [], []>} : vector<16x50xbf16>, vector<16x50xbf16>, vector<16x16xf32> -> vector<16x16xf32>
    %cst_48 = arith.constant 0.44721359 : f32
    %136 = vector.broadcast %cst_48 : f32 to vector<16x16xf32>
    %137 = arith.mulf %135, %136 : vector<16x16xf32>
    %138 = arith.addf %137, %57 : vector<16x16xf32>
    %cst_49 = arith.constant dense<0xFF800000> : vector<16xf32>
    %139 = vector.multi_reduction <maximumf>, %138, %cst_49 [1] : vector<16x16xf32> to vector<16xf32>
    %140 = vector.shape_cast %139 : vector<16xf32> to vector<16x1xf32>
    %141 = vector.broadcast %140 : vector<16x1xf32> to vector<16x16xf32>
    %142 = arith.subf %138, %141 : vector<16x16xf32>
    %143 = math.exp %142 : vector<16x16xf32>
    %cst_50 = arith.constant dense<0.000000e+00> : vector<16xf32>
    %144 = vector.multi_reduction <add>, %143, %cst_50 [1] : vector<16x16xf32> to vector<16xf32>
    %145 = vector.shape_cast %144 : vector<16xf32> to vector<16x1xf32>
    %146 = vector.broadcast %145 : vector<16x1xf32> to vector<16x16xf32>
    %147 = arith.divf %143, %146 : vector<16x16xf32>
    %cst_51 = arith.constant 0.000000e+00 : f32
    %148 = vector.shape_cast %128 : vector<1x50xi1> to vector<1x50xi1>
    %149 = vector.broadcast %148 : vector<1x50xi1> to vector<16x50xi1>
    %150 = vector.broadcast %cst_51 : f32 to vector<16x50xf32>
    %151 = arith.select %149, %29, %150 : vector<16x50xi1>, vector<16x50xf32>
    %152 = arith.truncf %147 : vector<16x16xf32> to vector<16x16xbf16>
    %153 = arith.truncf %151 : vector<16x50xf32> to vector<16x50xbf16>
    %cst_52 = arith.constant dense<0.000000e+00> : vector<16x50xf32>
    %154 = tpu.matmul %152, %153, %cst_52 {dimension_numbers = #tpu.dot_dimension_numbers<[1], [0], [0], [1], [0, 0, 1, 1], [], []>} : vector<16x16xbf16>, vector<16x50xbf16>, vector<16x50xf32> -> vector<16x50xf32>
    %155 = arith.addf %123, %154 : vector<16x50xf32>
    %c15_i32_53 = arith.constant 15 : i32
    %156 = vector.broadcast %c15_i32_53 : i32 to vector<1x50xi32>
    %157 = arith.cmpi sge, %58, %156 : vector<1x50xi32>
    %c20_i32 = arith.constant 20 : i32
    %158 = vector.broadcast %c20_i32 : i32 to vector<1x50xi32>
    %159 = arith.cmpi slt, %58, %158 : vector<1x50xi32>
    %160 = arith.andi %157, %159 : vector<1x50xi1>
    %cst_54 = arith.constant 0.000000e+00 : f32
    %161 = vector.shape_cast %160 : vector<1x50xi1> to vector<1x50xi1>
    %162 = vector.broadcast %161 : vector<1x50xi1> to vector<16x50xi1>
    %163 = vector.broadcast %cst_54 : f32 to vector<16x50xf32>
    %164 = arith.select %162, %21, %163 : vector<16x50xi1>, vector<16x50xf32>
    %165 = arith.truncf %164 : vector<16x50xf32> to vector<16x50xbf16>
    %166 = arith.truncf %25 : vector<16x50xf32> to vector<16x50xbf16>
    %cst_55 = arith.constant dense<0.000000e+00> : vector<16x16xf32>
    %167 = tpu.matmul %165, %166, %cst_55 {dimension_numbers = #tpu.dot_dimension_numbers<[1], [1], [0], [0], [0, 0, 1, 0], [], []>} : vector<16x50xbf16>, vector<16x50xbf16>, vector<16x16xf32> -> vector<16x16xf32>
    %cst_56 = arith.constant 0.44721359 : f32
    %168 = vector.broadcast %cst_56 : f32 to vector<16x16xf32>
    %169 = arith.mulf %167, %168 : vector<16x16xf32>
    %170 = arith.addf %169, %57 : vector<16x16xf32>
    %cst_57 = arith.constant dense<0xFF800000> : vector<16xf32>
    %171 = vector.multi_reduction <maximumf>, %170, %cst_57 [1] : vector<16x16xf32> to vector<16xf32>
    %172 = vector.shape_cast %171 : vector<16xf32> to vector<16x1xf32>
    %173 = vector.broadcast %172 : vector<16x1xf32> to vector<16x16xf32>
    %174 = arith.subf %170, %173 : vector<16x16xf32>
    %175 = math.exp %174 : vector<16x16xf32>
    %cst_58 = arith.constant dense<0.000000e+00> : vector<16xf32>
    %176 = vector.multi_reduction <add>, %175, %cst_58 [1] : vector<16x16xf32> to vector<16xf32>
    %177 = vector.shape_cast %176 : vector<16xf32> to vector<16x1xf32>
    %178 = vector.broadcast %177 : vector<16x1xf32> to vector<16x16xf32>
    %179 = arith.divf %175, %178 : vector<16x16xf32>
    %cst_59 = arith.constant 0.000000e+00 : f32
    %180 = vector.shape_cast %160 : vector<1x50xi1> to vector<1x50xi1>
    %181 = vector.broadcast %180 : vector<1x50xi1> to vector<16x50xi1>
    %182 = vector.broadcast %cst_59 : f32 to vector<16x50xf32>
    %183 = arith.select %181, %29, %182 : vector<16x50xi1>, vector<16x50xf32>
    %184 = arith.truncf %179 : vector<16x16xf32> to vector<16x16xbf16>
    %185 = arith.truncf %183 : vector<16x50xf32> to vector<16x50xbf16>
    %cst_60 = arith.constant dense<0.000000e+00> : vector<16x50xf32>
    %186 = tpu.matmul %184, %185, %cst_60 {dimension_numbers = #tpu.dot_dimension_numbers<[1], [0], [0], [1], [0, 0, 1, 1], [], []>} : vector<16x16xbf16>, vector<16x50xbf16>, vector<16x50xf32> -> vector<16x50xf32>
    %187 = arith.addf %155, %186 : vector<16x50xf32>
    %c20_i32_61 = arith.constant 20 : i32
    %188 = vector.broadcast %c20_i32_61 : i32 to vector<1x50xi32>
    %189 = arith.cmpi sge, %58, %188 : vector<1x50xi32>
    %c25_i32 = arith.constant 25 : i32
    %190 = vector.broadcast %c25_i32 : i32 to vector<1x50xi32>
    %191 = arith.cmpi slt, %58, %190 : vector<1x50xi32>
    %192 = arith.andi %189, %191 : vector<1x50xi1>
    %cst_62 = arith.constant 0.000000e+00 : f32
    %193 = vector.shape_cast %192 : vector<1x50xi1> to vector<1x50xi1>
    %194 = vector.broadcast %193 : vector<1x50xi1> to vector<16x50xi1>
    %195 = vector.broadcast %cst_62 : f32 to vector<16x50xf32>
    %196 = arith.select %194, %21, %195 : vector<16x50xi1>, vector<16x50xf32>
    %197 = arith.truncf %196 : vector<16x50xf32> to vector<16x50xbf16>
    %198 = arith.truncf %25 : vector<16x50xf32> to vector<16x50xbf16>
    %cst_63 = arith.constant dense<0.000000e+00> : vector<16x16xf32>
    %199 = tpu.matmul %197, %198, %cst_63 {dimension_numbers = #tpu.dot_dimension_numbers<[1], [1], [0], [0], [0, 0, 1, 0], [], []>} : vector<16x50xbf16>, vector<16x50xbf16>, vector<16x16xf32> -> vector<16x16xf32>
    %cst_64 = arith.constant 0.44721359 : f32
    %200 = vector.broadcast %cst_64 : f32 to vector<16x16xf32>
    %201 = arith.mulf %199, %200 : vector<16x16xf32>
    %202 = arith.addf %201, %57 : vector<16x16xf32>
    %cst_65 = arith.constant dense<0xFF800000> : vector<16xf32>
    %203 = vector.multi_reduction <maximumf>, %202, %cst_65 [1] : vector<16x16xf32> to vector<16xf32>
    %204 = vector.shape_cast %203 : vector<16xf32> to vector<16x1xf32>
    %205 = vector.broadcast %204 : vector<16x1xf32> to vector<16x16xf32>
    %206 = arith.subf %202, %205 : vector<16x16xf32>
    %207 = math.exp %206 : vector<16x16xf32>
    %cst_66 = arith.constant dense<0.000000e+00> : vector<16xf32>
    %208 = vector.multi_reduction <add>, %207, %cst_66 [1] : vector<16x16xf32> to vector<16xf32>
    %209 = vector.shape_cast %208 : vector<16xf32> to vector<16x1xf32>
    %210 = vector.broadcast %209 : vector<16x1xf32> to vector<16x16xf32>
    %211 = arith.divf %207, %210 : vector<16x16xf32>
    %cst_67 = arith.constant 0.000000e+00 : f32
    %212 = vector.shape_cast %192 : vector<1x50xi1> to vector<1x50xi1>
    %213 = vector.broadcast %212 : vector<1x50xi1> to vector<16x50xi1>
    %214 = vector.broadcast %cst_67 : f32 to vector<16x50xf32>
    %215 = arith.select %213, %29, %214 : vector<16x50xi1>, vector<16x50xf32>
    %216 = arith.truncf %211 : vector<16x16xf32> to vector<16x16xbf16>
    %217 = arith.truncf %215 : vector<16x50xf32> to vector<16x50xbf16>
    %cst_68 = arith.constant dense<0.000000e+00> : vector<16x50xf32>
    %218 = tpu.matmul %216, %217, %cst_68 {dimension_numbers = #tpu.dot_dimension_numbers<[1], [0], [0], [1], [0, 0, 1, 1], [], []>} : vector<16x16xbf16>, vector<16x50xbf16>, vector<16x50xf32> -> vector<16x50xf32>
    %219 = arith.addf %187, %218 : vector<16x50xf32>
    %c25_i32_69 = arith.constant 25 : i32
    %220 = vector.broadcast %c25_i32_69 : i32 to vector<1x50xi32>
    %221 = arith.cmpi sge, %58, %220 : vector<1x50xi32>
    %c30_i32 = arith.constant 30 : i32
    %222 = vector.broadcast %c30_i32 : i32 to vector<1x50xi32>
    %223 = arith.cmpi slt, %58, %222 : vector<1x50xi32>
    %224 = arith.andi %221, %223 : vector<1x50xi1>
    %cst_70 = arith.constant 0.000000e+00 : f32
    %225 = vector.shape_cast %224 : vector<1x50xi1> to vector<1x50xi1>
    %226 = vector.broadcast %225 : vector<1x50xi1> to vector<16x50xi1>
    %227 = vector.broadcast %cst_70 : f32 to vector<16x50xf32>
    %228 = arith.select %226, %21, %227 : vector<16x50xi1>, vector<16x50xf32>
    %229 = arith.truncf %228 : vector<16x50xf32> to vector<16x50xbf16>
    %230 = arith.truncf %25 : vector<16x50xf32> to vector<16x50xbf16>
    %cst_71 = arith.constant dense<0.000000e+00> : vector<16x16xf32>
    %231 = tpu.matmul %229, %230, %cst_71 {dimension_numbers = #tpu.dot_dimension_numbers<[1], [1], [0], [0], [0, 0, 1, 0], [], []>} : vector<16x50xbf16>, vector<16x50xbf16>, vector<16x16xf32> -> vector<16x16xf32>
    %cst_72 = arith.constant 0.44721359 : f32
    %232 = vector.broadcast %cst_72 : f32 to vector<16x16xf32>
    %233 = arith.mulf %231, %232 : vector<16x16xf32>
    %234 = arith.addf %233, %57 : vector<16x16xf32>
    %cst_73 = arith.constant dense<0xFF800000> : vector<16xf32>
    %235 = vector.multi_reduction <maximumf>, %234, %cst_73 [1] : vector<16x16xf32> to vector<16xf32>
    %236 = vector.shape_cast %235 : vector<16xf32> to vector<16x1xf32>
    %237 = vector.broadcast %236 : vector<16x1xf32> to vector<16x16xf32>
    %238 = arith.subf %234, %237 : vector<16x16xf32>
    %239 = math.exp %238 : vector<16x16xf32>
    %cst_74 = arith.constant dense<0.000000e+00> : vector<16xf32>
    %240 = vector.multi_reduction <add>, %239, %cst_74 [1] : vector<16x16xf32> to vector<16xf32>
    %241 = vector.shape_cast %240 : vector<16xf32> to vector<16x1xf32>
    %242 = vector.broadcast %241 : vector<16x1xf32> to vector<16x16xf32>
    %243 = arith.divf %239, %242 : vector<16x16xf32>
    %cst_75 = arith.constant 0.000000e+00 : f32
    %244 = vector.shape_cast %224 : vector<1x50xi1> to vector<1x50xi1>
    %245 = vector.broadcast %244 : vector<1x50xi1> to vector<16x50xi1>
    %246 = vector.broadcast %cst_75 : f32 to vector<16x50xf32>
    %247 = arith.select %245, %29, %246 : vector<16x50xi1>, vector<16x50xf32>
    %248 = arith.truncf %243 : vector<16x16xf32> to vector<16x16xbf16>
    %249 = arith.truncf %247 : vector<16x50xf32> to vector<16x50xbf16>
    %cst_76 = arith.constant dense<0.000000e+00> : vector<16x50xf32>
    %250 = tpu.matmul %248, %249, %cst_76 {dimension_numbers = #tpu.dot_dimension_numbers<[1], [0], [0], [1], [0, 0, 1, 1], [], []>} : vector<16x16xbf16>, vector<16x50xbf16>, vector<16x50xf32> -> vector<16x50xf32>
    %251 = arith.addf %219, %250 : vector<16x50xf32>
    %c30_i32_77 = arith.constant 30 : i32
    %252 = vector.broadcast %c30_i32_77 : i32 to vector<1x50xi32>
    %253 = arith.cmpi sge, %58, %252 : vector<1x50xi32>
    %c35_i32 = arith.constant 35 : i32
    %254 = vector.broadcast %c35_i32 : i32 to vector<1x50xi32>
    %255 = arith.cmpi slt, %58, %254 : vector<1x50xi32>
    %256 = arith.andi %253, %255 : vector<1x50xi1>
    %cst_78 = arith.constant 0.000000e+00 : f32
    %257 = vector.shape_cast %256 : vector<1x50xi1> to vector<1x50xi1>
    %258 = vector.broadcast %257 : vector<1x50xi1> to vector<16x50xi1>
    %259 = vector.broadcast %cst_78 : f32 to vector<16x50xf32>
    %260 = arith.select %258, %21, %259 : vector<16x50xi1>, vector<16x50xf32>
    %261 = arith.truncf %260 : vector<16x50xf32> to vector<16x50xbf16>
    %262 = arith.truncf %25 : vector<16x50xf32> to vector<16x50xbf16>
    %cst_79 = arith.constant dense<0.000000e+00> : vector<16x16xf32>
    %263 = tpu.matmul %261, %262, %cst_79 {dimension_numbers = #tpu.dot_dimension_numbers<[1], [1], [0], [0], [0, 0, 1, 0], [], []>} : vector<16x50xbf16>, vector<16x50xbf16>, vector<16x16xf32> -> vector<16x16xf32>
    %cst_80 = arith.constant 0.44721359 : f32
    %264 = vector.broadcast %cst_80 : f32 to vector<16x16xf32>
    %265 = arith.mulf %263, %264 : vector<16x16xf32>
    %266 = arith.addf %265, %57 : vector<16x16xf32>
    %cst_81 = arith.constant dense<0xFF800000> : vector<16xf32>
    %267 = vector.multi_reduction <maximumf>, %266, %cst_81 [1] : vector<16x16xf32> to vector<16xf32>
    %268 = vector.shape_cast %267 : vector<16xf32> to vector<16x1xf32>
    %269 = vector.broadcast %268 : vector<16x1xf32> to vector<16x16xf32>
    %270 = arith.subf %266, %269 : vector<16x16xf32>
    %271 = math.exp %270 : vector<16x16xf32>
    %cst_82 = arith.constant dense<0.000000e+00> : vector<16xf32>
    %272 = vector.multi_reduction <add>, %271, %cst_82 [1] : vector<16x16xf32> to vector<16xf32>
    %273 = vector.shape_cast %272 : vector<16xf32> to vector<16x1xf32>
    %274 = vector.broadcast %273 : vector<16x1xf32> to vector<16x16xf32>
    %275 = arith.divf %271, %274 : vector<16x16xf32>
    %cst_83 = arith.constant 0.000000e+00 : f32
    %276 = vector.shape_cast %256 : vector<1x50xi1> to vector<1x50xi1>
    %277 = vector.broadcast %276 : vector<1x50xi1> to vector<16x50xi1>
    %278 = vector.broadcast %cst_83 : f32 to vector<16x50xf32>
    %279 = arith.select %277, %29, %278 : vector<16x50xi1>, vector<16x50xf32>
    %280 = arith.truncf %275 : vector<16x16xf32> to vector<16x16xbf16>
    %281 = arith.truncf %279 : vector<16x50xf32> to vector<16x50xbf16>
    %cst_84 = arith.constant dense<0.000000e+00> : vector<16x50xf32>
    %282 = tpu.matmul %280, %281, %cst_84 {dimension_numbers = #tpu.dot_dimension_numbers<[1], [0], [0], [1], [0, 0, 1, 1], [], []>} : vector<16x16xbf16>, vector<16x50xbf16>, vector<16x50xf32> -> vector<16x50xf32>
    %283 = arith.addf %251, %282 : vector<16x50xf32>
    %c35_i32_85 = arith.constant 35 : i32
    %284 = vector.broadcast %c35_i32_85 : i32 to vector<1x50xi32>
    %285 = arith.cmpi sge, %58, %284 : vector<1x50xi32>
    %c40_i32 = arith.constant 40 : i32
    %286 = vector.broadcast %c40_i32 : i32 to vector<1x50xi32>
    %287 = arith.cmpi slt, %58, %286 : vector<1x50xi32>
    %288 = arith.andi %285, %287 : vector<1x50xi1>
    %cst_86 = arith.constant 0.000000e+00 : f32
    %289 = vector.shape_cast %288 : vector<1x50xi1> to vector<1x50xi1>
    %290 = vector.broadcast %289 : vector<1x50xi1> to vector<16x50xi1>
    %291 = vector.broadcast %cst_86 : f32 to vector<16x50xf32>
    %292 = arith.select %290, %21, %291 : vector<16x50xi1>, vector<16x50xf32>
    %293 = arith.truncf %292 : vector<16x50xf32> to vector<16x50xbf16>
    %294 = arith.truncf %25 : vector<16x50xf32> to vector<16x50xbf16>
    %cst_87 = arith.constant dense<0.000000e+00> : vector<16x16xf32>
    %295 = tpu.matmul %293, %294, %cst_87 {dimension_numbers = #tpu.dot_dimension_numbers<[1], [1], [0], [0], [0, 0, 1, 0], [], []>} : vector<16x50xbf16>, vector<16x50xbf16>, vector<16x16xf32> -> vector<16x16xf32>
    %cst_88 = arith.constant 0.44721359 : f32
    %296 = vector.broadcast %cst_88 : f32 to vector<16x16xf32>
    %297 = arith.mulf %295, %296 : vector<16x16xf32>
    %298 = arith.addf %297, %57 : vector<16x16xf32>
    %cst_89 = arith.constant dense<0xFF800000> : vector<16xf32>
    %299 = vector.multi_reduction <maximumf>, %298, %cst_89 [1] : vector<16x16xf32> to vector<16xf32>
    %300 = vector.shape_cast %299 : vector<16xf32> to vector<16x1xf32>
    %301 = vector.broadcast %300 : vector<16x1xf32> to vector<16x16xf32>
    %302 = arith.subf %298, %301 : vector<16x16xf32>
    %303 = math.exp %302 : vector<16x16xf32>
    %cst_90 = arith.constant dense<0.000000e+00> : vector<16xf32>
    %304 = vector.multi_reduction <add>, %303, %cst_90 [1] : vector<16x16xf32> to vector<16xf32>
    %305 = vector.shape_cast %304 : vector<16xf32> to vector<16x1xf32>
    %306 = vector.broadcast %305 : vector<16x1xf32> to vector<16x16xf32>
    %307 = arith.divf %303, %306 : vector<16x16xf32>
    %cst_91 = arith.constant 0.000000e+00 : f32
    %308 = vector.shape_cast %288 : vector<1x50xi1> to vector<1x50xi1>
    %309 = vector.broadcast %308 : vector<1x50xi1> to vector<16x50xi1>
    %310 = vector.broadcast %cst_91 : f32 to vector<16x50xf32>
    %311 = arith.select %309, %29, %310 : vector<16x50xi1>, vector<16x50xf32>
    %312 = arith.truncf %307 : vector<16x16xf32> to vector<16x16xbf16>
    %313 = arith.truncf %311 : vector<16x50xf32> to vector<16x50xbf16>
    %cst_92 = arith.constant dense<0.000000e+00> : vector<16x50xf32>
    %314 = tpu.matmul %312, %313, %cst_92 {dimension_numbers = #tpu.dot_dimension_numbers<[1], [0], [0], [1], [0, 0, 1, 1], [], []>} : vector<16x16xbf16>, vector<16x50xbf16>, vector<16x50xf32> -> vector<16x50xf32>
    %315 = arith.addf %283, %314 : vector<16x50xf32>
    %c40_i32_93 = arith.constant 40 : i32
    %316 = vector.broadcast %c40_i32_93 : i32 to vector<1x50xi32>
    %317 = arith.cmpi sge, %58, %316 : vector<1x50xi32>
    %c45_i32 = arith.constant 45 : i32
    %318 = vector.broadcast %c45_i32 : i32 to vector<1x50xi32>
    %319 = arith.cmpi slt, %58, %318 : vector<1x50xi32>
    %320 = arith.andi %317, %319 : vector<1x50xi1>
    %cst_94 = arith.constant 0.000000e+00 : f32
    %321 = vector.shape_cast %320 : vector<1x50xi1> to vector<1x50xi1>
    %322 = vector.broadcast %321 : vector<1x50xi1> to vector<16x50xi1>
    %323 = vector.broadcast %cst_94 : f32 to vector<16x50xf32>
    %324 = arith.select %322, %21, %323 : vector<16x50xi1>, vector<16x50xf32>
    %325 = arith.truncf %324 : vector<16x50xf32> to vector<16x50xbf16>
    %326 = arith.truncf %25 : vector<16x50xf32> to vector<16x50xbf16>
    %cst_95 = arith.constant dense<0.000000e+00> : vector<16x16xf32>
    %327 = tpu.matmul %325, %326, %cst_95 {dimension_numbers = #tpu.dot_dimension_numbers<[1], [1], [0], [0], [0, 0, 1, 0], [], []>} : vector<16x50xbf16>, vector<16x50xbf16>, vector<16x16xf32> -> vector<16x16xf32>
    %cst_96 = arith.constant 0.44721359 : f32
    %328 = vector.broadcast %cst_96 : f32 to vector<16x16xf32>
    %329 = arith.mulf %327, %328 : vector<16x16xf32>
    %330 = arith.addf %329, %57 : vector<16x16xf32>
    %cst_97 = arith.constant dense<0xFF800000> : vector<16xf32>
    %331 = vector.multi_reduction <maximumf>, %330, %cst_97 [1] : vector<16x16xf32> to vector<16xf32>
    %332 = vector.shape_cast %331 : vector<16xf32> to vector<16x1xf32>
    %333 = vector.broadcast %332 : vector<16x1xf32> to vector<16x16xf32>
    %334 = arith.subf %330, %333 : vector<16x16xf32>
    %335 = math.exp %334 : vector<16x16xf32>
    %cst_98 = arith.constant dense<0.000000e+00> : vector<16xf32>
    %336 = vector.multi_reduction <add>, %335, %cst_98 [1] : vector<16x16xf32> to vector<16xf32>
    %337 = vector.shape_cast %336 : vector<16xf32> to vector<16x1xf32>
    %338 = vector.broadcast %337 : vector<16x1xf32> to vector<16x16xf32>
    %339 = arith.divf %335, %338 : vector<16x16xf32>
    %cst_99 = arith.constant 0.000000e+00 : f32
    %340 = vector.shape_cast %320 : vector<1x50xi1> to vector<1x50xi1>
    %341 = vector.broadcast %340 : vector<1x50xi1> to vector<16x50xi1>
    %342 = vector.broadcast %cst_99 : f32 to vector<16x50xf32>
    %343 = arith.select %341, %29, %342 : vector<16x50xi1>, vector<16x50xf32>
    %344 = arith.truncf %339 : vector<16x16xf32> to vector<16x16xbf16>
    %345 = arith.truncf %343 : vector<16x50xf32> to vector<16x50xbf16>
    %cst_100 = arith.constant dense<0.000000e+00> : vector<16x50xf32>
    %346 = tpu.matmul %344, %345, %cst_100 {dimension_numbers = #tpu.dot_dimension_numbers<[1], [0], [0], [1], [0, 0, 1, 1], [], []>} : vector<16x16xbf16>, vector<16x50xbf16>, vector<16x50xf32> -> vector<16x50xf32>
    %347 = arith.addf %315, %346 : vector<16x50xf32>
    %c45_i32_101 = arith.constant 45 : i32
    %348 = vector.broadcast %c45_i32_101 : i32 to vector<1x50xi32>
    %349 = arith.cmpi sge, %58, %348 : vector<1x50xi32>
    %c50_i32 = arith.constant 50 : i32
    %350 = vector.broadcast %c50_i32 : i32 to vector<1x50xi32>
    %351 = arith.cmpi slt, %58, %350 : vector<1x50xi32>
    %352 = arith.andi %349, %351 : vector<1x50xi1>
    %cst_102 = arith.constant 0.000000e+00 : f32
    %353 = vector.shape_cast %352 : vector<1x50xi1> to vector<1x50xi1>
    %354 = vector.broadcast %353 : vector<1x50xi1> to vector<16x50xi1>
    %355 = vector.broadcast %cst_102 : f32 to vector<16x50xf32>
    %356 = arith.select %354, %21, %355 : vector<16x50xi1>, vector<16x50xf32>
    %357 = arith.truncf %356 : vector<16x50xf32> to vector<16x50xbf16>
    %358 = arith.truncf %25 : vector<16x50xf32> to vector<16x50xbf16>
    %cst_103 = arith.constant dense<0.000000e+00> : vector<16x16xf32>
    %359 = tpu.matmul %357, %358, %cst_103 {dimension_numbers = #tpu.dot_dimension_numbers<[1], [1], [0], [0], [0, 0, 1, 0], [], []>} : vector<16x50xbf16>, vector<16x50xbf16>, vector<16x16xf32> -> vector<16x16xf32>
    %cst_104 = arith.constant 0.44721359 : f32
    %360 = vector.broadcast %cst_104 : f32 to vector<16x16xf32>
    %361 = arith.mulf %359, %360 : vector<16x16xf32>
    %362 = arith.addf %361, %57 : vector<16x16xf32>
    %cst_105 = arith.constant dense<0xFF800000> : vector<16xf32>
    %363 = vector.multi_reduction <maximumf>, %362, %cst_105 [1] : vector<16x16xf32> to vector<16xf32>
    %364 = vector.shape_cast %363 : vector<16xf32> to vector<16x1xf32>
    %365 = vector.broadcast %364 : vector<16x1xf32> to vector<16x16xf32>
    %366 = arith.subf %362, %365 : vector<16x16xf32>
    %367 = math.exp %366 : vector<16x16xf32>
    %cst_106 = arith.constant dense<0.000000e+00> : vector<16xf32>
    %368 = vector.multi_reduction <add>, %367, %cst_106 [1] : vector<16x16xf32> to vector<16xf32>
    %369 = vector.shape_cast %368 : vector<16xf32> to vector<16x1xf32>
    %370 = vector.broadcast %369 : vector<16x1xf32> to vector<16x16xf32>
    %371 = arith.divf %367, %370 : vector<16x16xf32>
    %cst_107 = arith.constant 0.000000e+00 : f32
    %372 = vector.shape_cast %352 : vector<1x50xi1> to vector<1x50xi1>
    %373 = vector.broadcast %372 : vector<1x50xi1> to vector<16x50xi1>
    %374 = vector.broadcast %cst_107 : f32 to vector<16x50xf32>
    %375 = arith.select %373, %29, %374 : vector<16x50xi1>, vector<16x50xf32>
    %376 = arith.truncf %371 : vector<16x16xf32> to vector<16x16xbf16>
    %377 = arith.truncf %375 : vector<16x50xf32> to vector<16x50xbf16>
    %cst_108 = arith.constant dense<0.000000e+00> : vector<16x50xf32>
    %378 = tpu.matmul %376, %377, %cst_108 {dimension_numbers = #tpu.dot_dimension_numbers<[1], [0], [0], [1], [0, 0, 1, 1], [], []>} : vector<16x16xbf16>, vector<16x50xbf16>, vector<16x50xf32> -> vector<16x50xf32>
    %379 = arith.addf %347, %378 : vector<16x50xf32>
    %380 = arith.truncf %379 : vector<16x50xf32> to vector<16x50xbf16>
    %cst_109 = arith.constant dense<0.000000e+00> : vector<16x50xf32>
    %381 = tpu.matmul %380, %13, %cst_109 {dimension_numbers = #tpu.dot_dimension_numbers<[1], [0], [0], [1], [0, 0, 1, 1], [], []>} : vector<16x50xbf16>, vector<50x50xbf16>, vector<16x50xf32> -> vector<16x50xf32>
    %382 = vector.broadcast %17 : vector<1x50xf32> to vector<16x50xf32>
    %383 = arith.addf %381, %382 : vector<16x50xf32>
    %384 = arith.addf %3, %383 : vector<16x50xf32>
    %385 = vector.extract_strided_slice %5 {offsets = [5, 0], sizes = [1, 50], strides = [1, 1]} : vector<9x50xf32> to vector<1x50xf32>
    %386 = vector.extract_strided_slice %5 {offsets = [6, 0], sizes = [1, 50], strides = [1, 1]} : vector<9x50xf32> to vector<1x50xf32>
    %cst_110 = arith.constant dense<0.000000e+00> : vector<16xf32>
    %387 = vector.multi_reduction <add>, %384, %cst_110 [1] : vector<16x50xf32> to vector<16xf32>
    %388 = vector.shape_cast %387 : vector<16xf32> to vector<16x1xf32>
    %cst_111 = arith.constant 5.000000e+01 : f32
    %389 = vector.broadcast %cst_111 : f32 to vector<16x1xf32>
    %390 = arith.divf %388, %389 : vector<16x1xf32>
    %391 = vector.broadcast %390 : vector<16x1xf32> to vector<16x50xf32>
    %392 = arith.subf %384, %391 : vector<16x50xf32>
    %393 = arith.mulf %392, %392 : vector<16x50xf32>
    %cst_112 = arith.constant dense<0.000000e+00> : vector<16xf32>
    %394 = vector.multi_reduction <add>, %393, %cst_112 [1] : vector<16x50xf32> to vector<16xf32>
    %395 = vector.shape_cast %394 : vector<16xf32> to vector<16x1xf32>
    %cst_113 = arith.constant 5.000000e+01 : f32
    %396 = vector.broadcast %cst_113 : f32 to vector<16x1xf32>
    %397 = arith.divf %395, %396 : vector<16x1xf32>
    %cst_114 = arith.constant 9.99999974E-6 : f32
    %398 = vector.broadcast %cst_114 : f32 to vector<16x1xf32>
    %399 = arith.addf %397, %398 : vector<16x1xf32>
    %400 = math.rsqrt %399 : vector<16x1xf32>
    %401 = vector.broadcast %400 : vector<16x1xf32> to vector<16x50xf32>
    %402 = arith.mulf %392, %401 : vector<16x50xf32>
    %403 = vector.broadcast %385 : vector<1x50xf32> to vector<16x50xf32>
    %404 = arith.mulf %402, %403 : vector<16x50xf32>
    %405 = vector.broadcast %386 : vector<1x50xf32> to vector<16x50xf32>
    %406 = arith.addf %404, %405 : vector<16x50xf32>
    %c0_115 = arith.constant 0 : index
    %c0_116 = arith.constant 0 : index
    %c0_117 = arith.constant 0 : index
    %407 = vector.load %arg3[%c0_115, %c0_116, %c0_117] : memref<1x50x2048xbf16, #tpu.memory_space<vmem>>, vector<1x50x2048xbf16>
    %408 = vector.shape_cast %407 : vector<1x50x2048xbf16> to vector<50x2048xbf16>
    %409 = arith.truncf %406 : vector<16x50xf32> to vector<16x50xbf16>
    %cst_118 = arith.constant dense<0.000000e+00> : vector<16x2048xf32>
    %410 = tpu.matmul %409, %408, %cst_118 {dimension_numbers = #tpu.dot_dimension_numbers<[1], [0], [0], [1], [0, 0, 1, 1], [], []>} : vector<16x50xbf16>, vector<50x2048xbf16>, vector<16x2048xf32> -> vector<16x2048xf32>
    %c0_119 = arith.constant 0 : index
    %c0_120 = arith.constant 0 : index
    %c0_121 = arith.constant 0 : index
    %411 = vector.load %arg4[%c0_119, %c0_120, %c0_121] : memref<1x1x2048xf32, #tpu.memory_space<vmem>>, vector<1x1x2048xf32>
    %412 = vector.shape_cast %411 : vector<1x1x2048xf32> to vector<1x2048xf32>
    %413 = vector.broadcast %412 : vector<1x2048xf32> to vector<16x2048xf32>
    %414 = arith.addf %410, %413 : vector<16x2048xf32>
    %cst_122 = arith.constant 0.000000e+00 : f32
    %415 = vector.broadcast %cst_122 : f32 to vector<16x2048xf32>
    %416 = arith.maximumf %414, %415 : vector<16x2048xf32>
    %c0_123 = arith.constant 0 : index
    %c0_124 = arith.constant 0 : index
    %c0_125 = arith.constant 0 : index
    %417 = vector.load %arg5[%c0_123, %c0_124, %c0_125] : memref<1x50x2048xbf16, #tpu.memory_space<vmem>>, vector<1x50x2048xbf16>
    %418 = vector.shape_cast %417 : vector<1x50x2048xbf16> to vector<50x2048xbf16>
    %419 = arith.truncf %416 : vector<16x2048xf32> to vector<16x2048xbf16>
    %cst_126 = arith.constant dense<0.000000e+00> : vector<16x50xf32>
    %420 = tpu.matmul %419, %418, %cst_126 {dimension_numbers = #tpu.dot_dimension_numbers<[1], [1], [0], [0], [0, 0, 1, 0], [], []>} : vector<16x2048xbf16>, vector<50x2048xbf16>, vector<16x50xf32> -> vector<16x50xf32>
    %421 = vector.extract_strided_slice %5 {offsets = [4, 0], sizes = [1, 50], strides = [1, 1]} : vector<9x50xf32> to vector<1x50xf32>
    %422 = vector.broadcast %421 : vector<1x50xf32> to vector<16x50xf32>
    %423 = arith.addf %420, %422 : vector<16x50xf32>
    %424 = arith.addf %406, %423 : vector<16x50xf32>
    %425 = vector.extract_strided_slice %5 {offsets = [7, 0], sizes = [1, 50], strides = [1, 1]} : vector<9x50xf32> to vector<1x50xf32>
    %426 = vector.extract_strided_slice %5 {offsets = [8, 0], sizes = [1, 50], strides = [1, 1]} : vector<9x50xf32> to vector<1x50xf32>
    %cst_127 = arith.constant dense<0.000000e+00> : vector<16xf32>
    %427 = vector.multi_reduction <add>, %424, %cst_127 [1] : vector<16x50xf32> to vector<16xf32>
    %428 = vector.shape_cast %427 : vector<16xf32> to vector<16x1xf32>
    %cst_128 = arith.constant 5.000000e+01 : f32
    %429 = vector.broadcast %cst_128 : f32 to vector<16x1xf32>
    %430 = arith.divf %428, %429 : vector<16x1xf32>
    %431 = vector.broadcast %430 : vector<16x1xf32> to vector<16x50xf32>
    %432 = arith.subf %424, %431 : vector<16x50xf32>
    %433 = arith.mulf %432, %432 : vector<16x50xf32>
    %cst_129 = arith.constant dense<0.000000e+00> : vector<16xf32>
    %434 = vector.multi_reduction <add>, %433, %cst_129 [1] : vector<16x50xf32> to vector<16xf32>
    %435 = vector.shape_cast %434 : vector<16xf32> to vector<16x1xf32>
    %cst_130 = arith.constant 5.000000e+01 : f32
    %436 = vector.broadcast %cst_130 : f32 to vector<16x1xf32>
    %437 = arith.divf %435, %436 : vector<16x1xf32>
    %cst_131 = arith.constant 9.99999974E-6 : f32
    %438 = vector.broadcast %cst_131 : f32 to vector<16x1xf32>
    %439 = arith.addf %437, %438 : vector<16x1xf32>
    %440 = math.rsqrt %439 : vector<16x1xf32>
    %441 = vector.broadcast %440 : vector<16x1xf32> to vector<16x50xf32>
    %442 = arith.mulf %432, %441 : vector<16x50xf32>
    %443 = vector.broadcast %425 : vector<1x50xf32> to vector<16x50xf32>
    %444 = arith.mulf %442, %443 : vector<16x50xf32>
    %445 = vector.broadcast %426 : vector<1x50xf32> to vector<16x50xf32>
    %446 = arith.addf %444, %445 : vector<16x50xf32>
    %c0_132 = arith.constant 0 : index
    %c0_133 = arith.constant 0 : index
    %447 = vector.load %arg7[%c0_132, %c0_133] : memref<16x50xf32, #tpu.memory_space<vmem>>, vector<16x50xf32>
    tpu.vector_store %arg7[%c0_132, %c0_133], %446 {strides = array<i32>} : memref<16x50xf32, #tpu.memory_space<vmem>>, vector<16x50xf32>,
    return
  }
  func.func @transform_0(%arg0: i32) -> (i32, i32) {
    %c0_i32 = arith.constant 0 : i32
    %c0_i32_0 = arith.constant 0 : i32
    %c0_i32_1 = arith.constant 0 : i32
    return %c0_i32, %c0_i32_0 : i32, i32
  }
  func.func @transform_1(%arg0: i32) -> (i32, i32, i32, i32) {
    %c0_i32 = arith.constant 0 : i32
    %c0_i32_0 = arith.constant 0 : i32
    %c0_i32_1 = arith.constant 0 : i32
    %c0_i32_2 = arith.constant 0 : i32
    return %arg0, %c0_i32, %c0_i32_0, %c0_i32_1 : i32, i32, i32, i32
  }
  func.func @transform_2(%arg0: i32) -> (i32, i32, i32) {
    %c0_i32 = arith.constant 0 : i32
    %c0_i32_0 = arith.constant 0 : i32
    %c0_i32_1 = arith.constant 0 : i32
    return %arg0, %c0_i32, %c0_i32_0 : i32, i32, i32
  }
  func.func @transform_3(%arg0: i32) -> (i32, i32, i32) {
    %c0_i32 = arith.constant 0 : i32
    %c0_i32_0 = arith.constant 0 : i32
    %c0_i32_1 = arith.constant 0 : i32
    return %arg0, %c0_i32, %c0_i32_0 : i32, i32, i32
  }
  func.func @transform_4(%arg0: i32) -> (i32, i32, i32) {
    %c0_i32 = arith.constant 0 : i32
    %c0_i32_0 = arith.constant 0 : i32
    %c0_i32_1 = arith.constant 0 : i32
    return %arg0, %c0_i32, %c0_i32_0 : i32, i32, i32
  }
  func.func @transform_5(%arg0: i32) -> (i32, i32, i32) {
    %c0_i32 = arith.constant 0 : i32
    %c0_i32_0 = arith.constant 0 : i32
    %c0_i32_1 = arith.constant 0 : i32
    return %arg0, %c0_i32, %c0_i32_0 : i32, i32, i32
  }
  func.func @transform_6(%arg0: i32) -> (i32, i32) {
    %c0_i32 = arith.constant 0 : i32
    %c0_i32_0 = arith.constant 0 : i32
    %c0_i32_1 = arith.constant 0 : i32
    return %c0_i32, %c0_i32_0 : i32, i32
  }
}

</mosaic_0001>

<bundles_post_ra>
// kernel: rl_transformer_forward.2
= control target key start
LH: loop header
LB: loop body
LE: loop exit
PB: predicated region body
PF: predicated region fallthrough
CT: control target
= control target key end

     0   :  { %s5667_s0 = inlined_call_operand.vmem [shape: f32[16,50], index: 0, kind: input, shape index: {}]   ;;  %s5668_s1 = inlined_call_operand.vmem [shape: bf16[6,4,50,50], index: 1, kind: input, shape index: {}]   ;;  %s5669_s2 = inlined_call_operand.hbm [shape: bf16[6,50,2048], index: 2, kind: input, shape index: {}]   ;;  %s5670_s3 = inlined_call_operand.hbm [shape: f32[6,1,2048], index: 3, kind: input, shape index: {}]   ;;  %s5671_s4 = inlined_call_operand.hbm [shape: bf16[6,50,2048], index: 4, kind: input, shape index: {}]   ;;  %s5672_s5 = inlined_call_operand.vmem [shape: f32[6,9,50], index: 5, kind: input, shape index: {}]   ;;  %s5673_s6 = inlined_call_operand.vmem [shape: f32[16,50], index: 6, kind: output, shape index: {}]  }
   0x1   :  { %5677 = sst [smem:[#allocation9_spill]] %s5670_s3 }
   0x2   :  { %11 = vsyncpa [#allocation3], 0 }
   0x3   :  { %13 = vsyncpa [#allocation3 + $0x1], 0 }
   0x4   :  { %14 = vsyncpa [#allocation5], 0 }
   0x5   :  { %16 = vsyncpa [#allocation5 + $0x1], 0  ;;  %s4604_s21 = smov 0   ;;  %s4606_s22 = smov 0  }
   0x6   :  { %s4608_s23 = smov 0   ;;  %s4610_s24 = smov 0  }
   0x7 LB: > { %s4623_s25 = sadd.s32 4294967295, %s4558_s24   ;;  %s4626_s26 = sadd.s32 1, %s4558_s24   ;;  %s4558_s24 = sphi %s4610_s24, %s5742_s24   ;;  %s4554_s23 = sphi %s4608_s23, %s5741_s23   ;;  %s4550_s22 = sphi %s4606_s22, %s5740_s22   ;;  %s4546_s21 = sphi %s4604_s21, %s5739_s21  }
   0x8   : > { %s73_s27 = ssub.s32 %s4558_s24, %s4626_s26  ;;  %s76_s28 = sadd.s32 1, %s4554_s23 }
   0x9   : > { %p74_p0 = scmp.eq.s32.totalorder %s73_s27, 0  ;;  %p83_p1 = scmp.ne.s32.totalorder %s4554_s23, %s4550_s22 }
   0xa   : > { %p84_p2 = scmp.eq.s32.totalorder %s4558_s24, 0  ;;  %p89_p3 = scmp.ne.s32.totalorder %s4550_s22, %s4546_s21 }
   0xb   : > { %s4636_s29 = scalar_select %p74_p0, %s4554_s23, %s76_s28  }
   0xc   : > { %p85_p4 = por %p84_p2, %p83_p1  ;;  %p90_p5 = scmp.eq.s32.totalorder %s4623_s25, 0 }
   0xd   : > { %p4257_p6 = scmp.lt.s32.totalorder %s4558_s24, 6  ;;  %s4645_s7 = sand.u32 1, %s4554_s23  }
   0xe   : > { %p4640_p7 = por %p90_p5, %p89_p3  ;;  %s4235_s8 = smul.u32 448, %s4645_s7 }
   0xf   : > { %p4648_p8 = pnand %p4257_p6, %p85_p4  ;;  %s244_s10 = sand.u32 1, %s4558_s24  }
  0x10   : > { %s5678_s30 = scalar_select %p4640_p7, 1, 0 }
  0x11   : > { %s3757_s11 = sshll.u32 %s4645_s7, 4  ;;  %s4005_s12 = sshll.u32 %s4558_s24, 8 }
  0x12   : > { %s5680_s3 = sld [smem:[#allocation9_spill]]  ;;  %s248_s16 = scalar_lea.vmem [#allocation4], %s3757_s11 }
  0x13   : > { %s256_s17 = sshll.u32 %s248_s16, 4  ;;  %s4660_s18 = scalar_lea.sflag [#allocation5], %s244_s10  ;;  %s257_s17 = int_to_ptr.vmem [resolvable:$true] %s256_s17 }
  0x14   : > { %p4666_p10 = pneg %p4648_p8 }
  0x18   : > { %s4658_s15 = scalar_lea.hbm %s5680_s3, %s4005_s12  ;;  %s4441_s28 = scalar_lea.hbm %s5680_s3, 1536 }
  0x19   : > { %s4436_s19 = scalar_lea.hbm %s4658_s15, 256  ;;  %p4442_p13 = scmp.lt.s32.totalorder %s4658_s15, %s5680_s3 }
  0x1a   : > { %p4437_p9 = scmp.ne.s32.totalorder %s4658_s15, %s4436_s19  ;;  %p4443_p0 = scmp.lt.s32.totalorder %s4441_s28, %s4436_s19 }
  0x1c   : > { %p4439_p11 = pnand %p4666_p10, %p4437_p9  ;;  %p4444_p1 = por %p4443_p0, %p4442_p13 }
  0x1e   : > { %p4440_p12 = pneg %p4439_p11 }
  0x20   : > { %p4445_p2 = pnand %p4444_p1, %p4440_p12 }
  0x22   : > { %4448 = shalt.err (!%p4445_p2)
}
  0x23   : > { %s4449_s10 = scalar_lea.vmem %s257_s17, 256  ;;  %s4560_s13 = smov [#allocation4]  }
  0x24   : > { %p4450_p3 = scmp.ne.s32.totalorder %s257_s17, %s4449_s10  ;;  %s4454_s14 = sshll.u32 %s4560_s13, 4  ;;  %s4455_s14 = int_to_ptr.vmem [resolvable:$false] %s4454_s14 }
  0x25   : > { %s4456_s16 = scalar_lea.vmem %s4455_s14, 512  ;;  %p4457_p6 = scmp.lt.s32.totalorder %s257_s17, %s4455_s14 }
  0x26   : > { %p4452_p4 = pnand %p4450_p3, %p4666_p10  ;;  %p4458_p9 = scmp.lt.s32.totalorder %s4456_s16, %s4449_s10 }
  0x28   : > { %p4453_p5 = pneg %p4452_p4  ;;  %p4459_p11 = por %p4458_p9, %p4457_p6 }
  0x2a   : > { %p4460_p7 = pnand %p4459_p11, %p4453_p5 }
  0x2c   : > { %4463 = shalt.err (!%p4460_p7)
}
  0x2d   : > { %4253 = dma.hbm_to_vmem [thread:$0]  (!%p4648_p8), %s4658_s15, 256, %s257_s17, %s4660_s18  }
  0x2e   : > { %s267_s19 = scalar_lea.vmem [#allocation6], %s4235_s8  ;;  %p3761_p12 = scmp.ge.s32.totalorder %s4558_s24, 1 }
  0x2f   : > { %s274_s21 = sshll.u32 %s267_s19, 4  ;;  %p290_p13 = scmp.lt.s32.totalorder %s4558_s24, 7  ;;  %s4688_s21 = int_to_ptr.vmem [resolvable:$true] %s274_s21 }
  0x30   : > { %s4236_s28 = smul.u32 7168, %s4558_s24  ;;  %s227_s11 = scalar_lea.vmem [#allocation2], %s4235_s8 }
  0x31   : > { %p4691_p7 = pnand %p3761_p12, %p290_p13  ;;  %s234_s12 = sshll.u32 %s227_s11, 4  ;;  %s4703_s12 = int_to_ptr.vmem [resolvable:$true] %s234_s12 }
  0x32   : > { %s4701_s15 = scalar_lea.hbm %s5669_s2, %s4236_s28  ;;  %s4708_s16 = scalar_lea.hbm %s5671_s4, %s4236_s28 }
  0x33   : > { %s5682_s27 = scalar_select %p4691_p7, 1, 0 }
  0x34   : > { %s224_s19 = scalar_lea.sflag [#allocation3], %s4645_s7  ;;  %s4464_s24 = scalar_lea.hbm %s4701_s15, 7168 }
  0x35   : > { %p4465_p0 = scmp.ne.s32.totalorder %s4701_s15, %s4464_s24  ;;  %s4469_s10 = scalar_lea.hbm %s5669_s2, 43008 }
  0x36   : > { %p4470_p3 = scmp.lt.s32.totalorder %s4701_s15, %s5669_s2  ;;  %p4471_p4 = scmp.lt.s32.totalorder %s4469_s10, %s4464_s24 }
  0x37   : > { %p4467_p1 = pnand %p4465_p0, %p4666_p10 }
  0x38   : > { %p4472_p5 = por %p4471_p4, %p4470_p3 }
  0x39   : > { %p4468_p2 = pneg %p4467_p1 }
  0x3b   : > { %p4473_p6 = pnand %p4472_p5, %p4468_p2 }
  0x3d   : > { %4476 = shalt.err (!%p4473_p6)
}
  0x3e   : > { %s4477_s28 = scalar_lea.vmem %s4703_s12, 7168  ;;  %s4561_s17 = smov [#allocation2]  }
  0x3f   : > { %p4478_p9 = scmp.ne.s32.totalorder %s4703_s12, %s4477_s28  ;;  %s4482_s14 = sshll.u32 %s4561_s17, 4  ;;  %s4483_s14 = int_to_ptr.vmem [resolvable:$false] %s4482_s14 }
  0x40   : > { %s4484_s8 = scalar_lea.vmem %s4483_s14, 14336  ;;  %p4485_p13 = scmp.lt.s32.totalorder %s4703_s12, %s4483_s14 }
  0x41   : > { %p4480_p11 = pnand %p4478_p9, %p4666_p10  ;;  %p4486_p0 = scmp.lt.s32.totalorder %s4484_s8, %s4477_s28 }
  0x43   : > { %p4481_p12 = pneg %p4480_p11  ;;  %p4487_p1 = por %p4486_p0, %p4485_p13 }
  0x45   : > { %p4488_p7 = pnand %p4487_p1, %p4481_p12 }
  0x47   : > { %4491 = shalt.err (!%p4488_p7)
}
  0x48   : > { %s4562_s3 = smov 1024   ;;  %s4563_s24 = smov 64  }
  0x49   : > { %4250 = dma.hbm_to_vmem [thread:$0]  (!%p4648_p8), %s4701_s15, 7168, %s4703_s12, %s224_s19, %s4562_s3, %s4562_s3, %s4563_s24  }
  0x4a   : > { %s4492_s11 = scalar_lea.hbm %s4708_s16, 7168  ;;  %s4497_s28 = scalar_lea.hbm %s5671_s4, 43008 }
  0x4b   : > { %p4493_p2 = scmp.ne.s32.totalorder %s4708_s16, %s4492_s11  ;;  %p4498_p4 = scmp.lt.s32.totalorder %s4708_s16, %s5671_s4 }
  0x4c   : > { %p4499_p5 = scmp.lt.s32.totalorder %s4497_s28, %s4492_s11 }
  0x4d   : > { %p4495_p7 = pnand %p4493_p2, %p4666_p10 }
  0x4e   : > { %p4500_p6 = por %p4499_p5, %p4498_p4 }
  0x4f   : > { %p4496_p3 = pneg %p4495_p7 }
  0x51   : > { %p4501_p9 = pnand %p4500_p6, %p4496_p3 }
  0x53   : > { %4504 = shalt.err (!%p4501_p9)
}
  0x54   : > { %s4505_s7 = scalar_lea.vmem %s4688_s21, 7168  ;;  %s4564_s12 = smov [#allocation6]  }
  0x55   : > { %p4506_p11 = scmp.ne.s32.totalorder %s4688_s21, %s4505_s7  ;;  %s4510_s15 = sshll.u32 %s4564_s12, 4  ;;  %s4511_s15 = int_to_ptr.vmem [resolvable:$false] %s4510_s15 }
  0x56   : > { %s4512_s19 = scalar_lea.vmem %s4511_s15, 14336  ;;  %p4513_p0 = scmp.lt.s32.totalorder %s4688_s21, %s4511_s15 }
  0x57   : > { %p4508_p12 = pnand %p4506_p11, %p4666_p10  ;;  %p4514_p1 = scmp.lt.s32.totalorder %s4512_s19, %s4505_s7 }
  0x59   : > { %p4509_p13 = pneg %p4508_p12  ;;  %p4515_p2 = por %p4514_p1, %p4513_p0 }
  0x5b   : > { %p4516_p7 = pnand %p4515_p2, %p4509_p13 }
  0x5d   : > { %4519 = shalt.err (!%p4516_p7)
}
  0x5e   : > { %4256 = dma.hbm_to_vmem [thread:$0]  (!%p4648_p8), %s4708_s16, 7168, %s4688_s21, %s4660_s18, %s4562_s3, %s4562_s3, %s4563_s24  }
  0x5f   : > { %p5683_p10 = scmp.ne.s32.totalorder %s5682_s27, 0 }
  0x60   : > { %s296_s20 = sand.u32 (!%p5683_p10), 1, %s4550_s22   ;;  %p5684_p3 = scmp.ne.s32.totalorder (!%p5683_p10), %s5678_s30, 0 }
  0x61   : > { %294 = sbr.rel (%p5683_p10) target bundleno = 2464 (0x9a0), region = 44  ;;  %s297_s11 = scalar_lea.sflag (!%p5683_p10), [#allocation3], %s296_s20 }
  0x62   : > { %s4239_s8 = smul.u32 (!%p5683_p10), 448, %s296_s20 }
  0x64   : > { %s4763_s10 = scalar_lea.vmem (!%p5683_p10), [#allocation2], %s4239_s8 }
  0x66   : > { %4537 = dma.done.wait (%p5684_p3), %s297_s11, 7168  }
  0x67   : > { %4539 = vsyncadd (%p5684_p3), %s297_s11, 4294960128  ;;  %s305_s9 = sand.u32 1, %s4623_s25   ;;  %s3762_s13 = sshll.u32 %s296_s20, 4 }
  0x68   : > { %s306_s18 = scalar_lea.sflag [#allocation5], %s305_s9  ;;  %s4770_s21 = scalar_lea.vmem [#allocation4], %s3762_s13 }
  0x69   : > { %4541 = dma.done.wait (%p5684_p3), %s306_s18, 7424  }
  0x6a   : > { %4543 = vsyncadd (%p5684_p3), %s306_s18, 4294959872  ;;  %p362_p8 = scmp.lt.s32.totalorder %s4623_s25, 5  ;;  %s4788_s15 = scalar_lea.vmem [#allocation6], %s4239_s8 }
  0x6b   : > { %p3766_p4 = scmp.ne.s32.totalorder %s4623_s25, 0 }
  0x6c   : > { %s363_s27 = scalar_select %p362_p8, %s4623_s25, 5 }
  0x6d   : > { %376 = sbr.rel (%p3766_p4) target bundleno = 116 (0x74), region = 60 }
  0x6e   : > { %s4240_s16 = smul.u32 112, %s363_s27  ;;  %s4006_s3 = sshll.u32 %s363_s27, 4 }
  0x6f   : > { %s4781_s17 = scalar_lea.vmem %s5672_s5, %s4006_s3 }
  0x70   : > { %s4786_s12 = scalar_lea.vmem %s5668_s1, %s4240_s16 }
  0x72   : > { %v377_v0 = vld [vmem:[%s5667_s0] sm:$0xff]  ;;  %vm379_vm0 = vcmask 408576   ;;  %v378_v1 = vld [vmem:[%s5667_s0 + $0x8] sm:$0xff] }
  0x73   : > { %380 = vst.msk [vmem:[%s5673_s6] sm:$0xff] %vm379_vm0, %v377_v0  ;;  %381 = vst.msk [vmem:[%s5673_s6 + $0x8] sm:$0xff] %vm379_vm0, %v378_v1 }
  0x74 PF: > { %vm5676_vm1 = vcmask 1040384   ;;  %v4565_v2 = vmov 0.0   ;;  %v4296_v3 = vld [vmem:[%s4786_s12 + $0x34] ss:$0 sps:$4 sm:$0x11]   ;;  %v4298_v5 = vld [vmem:[%s4786_s12 + $0x2c] sm:$0xff]   ;;  %v418_v21 = vlaneseq }
  0x75   : > { %4079 = vmatprep.subr.bf16.mxu1 %v4565_v2  ;;  %4067 = vmatprep.subr.bf16.mxu0 %v4565_v2  ;;  %v4297_v4 = vld [vmem:[%s4786_s12 + $0x18] ss:$0 sps:$4 sm:$0x11]   ;;  %v518_v6 = vsel %vm5676_vm1, %v4296_v3, 0  ;;  %vm4566_vm2 = vmmov 0   ;;  %v4299_v8 = vld [vmem:[%s4786_s12 + $0x10] sm:$0xff]  }
  0x76   : > { %v449_v7 = vsel %vm5676_vm1, %v4297_v4, 0  ;;  %4087 = vmatprep.mubr.msk.bf16.mxu1 %vm4566_vm2, %v4565_v2  ;;  %4075 = vmatprep.mubr.msk.bf16.mxu0 %vm4566_vm2, %v4565_v2  ;;  %v4300_v9 = vld [vmem:[%s4786_s12 + $0x24] sm:$0xff]   ;;  %v4302_v11 = vld [vmem:[%s4786_s12 + $0x1c] sm:$0xff]   ;;  %v4304_v15 = vld [vmem:[%s4786_s12 + $0x50] ss:$0 sps:$4 sm:$0x11]  }
  0x77   : > { %4080 = vmatpush3.bf16.msra.mxu1 %v518_v6  ;;  %4068 = vmatpush3.bf16.msra.mxu0 %v449_v7  ;;  %v4301_v10 = vld [vmem:[%s4786_s12 + $0x8] sm:$0xff]   ;;  %v4303_v12 = vld [vmem:[%s4786_s12] sm:$0xff]   ;;  %vm5675_vm3 = vcmask 408576   ;;  %v587_v17 = vsel %vm5676_vm1, %v4304_v15, 0  ;;  %v4307_v20 = vld [vmem:[%s4786_s12 + $0x38] sm:$0xff]   ;;  %v4851_v22 = vshrl.u32 %v418_v21, 7 }
  0x78   : > { %4081 = vmatprep.subr.bf16.mxu1 %v4565_v2  ;;  %4069 = vmatprep.subr.bf16.mxu0 %v4565_v2  ;;  %v4305_v18 = vld [vmem:[%s4786_s12 + $0x48] sm:$0xff]   ;;  %v4306_v19 = vld [vmem:[%s4786_s12 + $0x40] sm:$0xff]   ;;  %v4864_v29 = vand.u32 127, %v418_v21 }
  0x79   : > { %v4854_v23 = vsub.s32 1, %v4851_v22  ;;  %v4857_v24 = vld [vmem:[%s4781_s17] sm:$0xff]  ;;  %v4860_v26 = vsub.s32 0, %v4851_v22  ;;  %v4308_v15 = vld [vmem:[%s4786_s12 + $0x6c] ss:$0 sps:$4 sm:$0x11]  }
  0x7a   : > { %v382_v13 = vld [vmem:[%s5673_s6] sm:$0xff]  ;;  %v383_v14 = vld [vmem:[%s5673_s6 + $0x8] sm:$0xff]  ;;  %vm919_vm4 = vcmp.ge.s32.totalorder %v4864_v29, 10  ;;  %vm920_vm5 = vcmp.lt.s32.totalorder %v4864_v29, 15  ;;  %vm663_vm6 = vcmp.lt.s32.totalorder %v4864_v29, 5  ;;  %vm749_vm8 = vcmp.ge.s32.totalorder %v4864_v29, 5 }
  0x7b   : > { %4082 = vmatpush3.bf16.msra.mxu1 %v4298_v5  ;;  %4070 = vmatpush3.bf16.msra.mxu0 %v4299_v8  ;;  %v417_v16 = vpack.c.bf16 %v383_v14, %v382_v13  ;;  %v495_v28 = vrot.slane %v4857_v24, %v4854_v23  ;;  %v421_v32 = vrot.slane %v4857_v24, %v4860_v26  ;;  %vm4878_vm7 = vmand %vm919_vm4, %vm920_vm5  ;;  %vm750_vm9 = vcmp.lt.s32.totalorder %v4864_v29, 10 }
  0x7c   : > { %4083 = vmatprep.subr.bf16.mxu1 %v4565_v2  ;;  %4071 = vmatprep.subr.bf16.mxu0 %v4565_v2  ;;  %vm1047_vm10 = vcmp.ge.s32.totalorder %v4864_v29, 15  ;;  %vm1048_vm11 = vcmp.lt.s32.totalorder %v4864_v29, 20  ;;  %vm4902_vm12 = vmand %vm749_vm8, %vm750_vm9  ;;  %vm1175_vm14 = vcmp.ge.s32.totalorder %v4864_v29, 20  ;;  %vm1176_vm15 = vcmp.lt.s32.totalorder %v4864_v29, 25 }
  0x7d   : > { %vm4908_vm13 = vmand %vm1047_vm10, %vm1048_vm11  ;;  %vm1303_vm4 = vcmp.ge.s32.totalorder %v4864_v29, 25  ;;  %vm1304_vm5 = vcmp.lt.s32.totalorder %v4864_v29, 30  ;;  %vm1431_vm9 = vcmp.ge.s32.totalorder %v4864_v29, 30  ;;  %vm1432_vm10 = vcmp.lt.s32.totalorder %v4864_v29, 35 }
  0x7e   : > { %vm4936_vm0 = vmand %vm1175_vm14, %vm1176_vm15  ;;  %vm1559_vm14 = vcmp.ge.s32.totalorder %v4864_v29, 35  ;;  %vm1560_vm15 = vcmp.lt.s32.totalorder %v4864_v29, 40 }
  0x7f   : > { %4084 = vmatpush3.bf16.msra.mxu1 %v4300_v9  ;;  %4072 = vmatpush3.bf16.msra.mxu0 %v4301_v10  ;;  %vm4955_vm8 = vmand %vm1303_vm4, %vm1304_vm5  ;;  %vm1687_vm5 = vcmp.ge.s32.totalorder %v4864_v29, 40 }
  0x80   : > { %4085 = vmatprep.subr.bf16.mxu1 %v4565_v2  ;;  %4073 = vmatprep.subr.bf16.mxu0 %v4565_v2  ;;  %vm4972_vm11 = vmand %vm1431_vm9, %vm1432_vm10  ;;  %vm1688_vm9 = vcmp.lt.s32.totalorder %v4864_v29, 45 }
  0x81   : > { %vm4989_vm4 = vmand %vm1559_vm14, %vm1560_vm15  ;;  %vm1815_vm14 = vcmp.ge.s32.totalorder %v4864_v29, 45  ;;  %vm1816_vm15 = vcmp.lt.s32.totalorder %v4864_v29, 50 }
  0x82   : > { %vm5006_vm10 = vmand %vm1687_vm5, %vm1688_vm9 }
  0x83   : > { %4086 = vmatpush3.bf16.msra.mxu1 %v4302_v11  ;;  %4074 = vmatpush3.bf16.msra.mxu0 %v4303_v12  ;;  %vm5023_vm5 = vmand %vm1815_vm14, %vm1816_vm15  ;;  %vm644_vm14 = vcmp.lt.s32.totalorder %v4864_v29, 8  ;;  %vm653_vm15 = vcmp.ge.s32.totalorder %v4864_v29, 8 }
  0x84   : > { %4091 = vmatprep.subr.bf16.mxu0 %v4565_v2  ;;  %4103 = vmatprep.subr.bf16.mxu1 %v4565_v2  ;;  %vm3805_vm9 = vmpackc.low %vm4902_vm12, %vm4902_vm12 }
  0x86   : > { %4088 = vmatmul.mubr.msk.bf16.vlgmr.msra.gmra.mxu1 %vm5675_vm3, %v417_v16  ;;  %4076 = vmatmul.mubr.msk.bf16.vlgmr.msra.gmra.mxu0 %vm5675_vm3, %v417_v16 }
  0x87   : > { %4092 = vmatpush3.bf16.msra.mxu0 %v587_v17  ;;  %4099 = vmatprep.mubr.msk.bf16.mxu0 %vm4566_vm2, %v4565_v2 }
  0x88   : > { %4093 = vmatprep.subr.bf16.mxu0 %v4565_v2  ;;  %4105 = vmatprep.mubr.msk.bf16.mxu1 %vm4566_vm2, %v4565_v2 }
  0x8b   : > { %4094 = vmatpush3.bf16.msra.mxu0 %v4305_v18 }
  0x8c   : > { %4095 = vmatprep.subr.bf16.mxu0 %v4565_v2 }
  0x8f   : > { %4096 = vmatpush3.bf16.msra.mxu0 %v4306_v19 }
  0x90   : > { %4097 = vmatprep.subr.bf16.mxu0 %v4565_v2 }
  0x93   : > { %4098 = vmatpush3.bf16.msra.mxu0 %v4307_v20 }
  0x94   : > { %4127 = vmatprep.subr.bf16.mxu0 %v4565_v2 }
  0x96   : > { %4100 = vmatmul.mubr.msk.bf16.vlgmr.msra.gmra.mxu0 %vm5675_vm3, %v417_v16 }
  0x97   : > { %4129 = vmatprep.mubr.msk.bf16.mxu0 %vm4566_vm2, %v4565_v2 }
 0x146   : > { %v554_v25 = vpop.f32.mrf.mxu1  ;;  %v485_v27 = vpop.f32.mrf.mxu0 }
 0x147   : > { %v555_v35 = vadd.f32 %v554_v25, %v495_v28  ;;  %v4870_v40 = vadd.f32 %v485_v27, %v421_v32  ;;  %v5041_v27 = vsub.s32 2, %v4851_v22 }
 0x148   : > { %v4089_v30 = vpop.f32.mrf.mxu1  ;;  %v4077_v31 = vpop.f32.mrf.mxu0 }
 0x149   : > { %v667_v44 = vsel %vm663_vm6, %v4870_v40, 0.0  ;;  %v924_v46 = vsel %vm4878_vm7, %v4870_v40, 0.0  ;;  %v754_v52 = vsel %vm4902_vm12, %v4870_v40, 0.0  ;;  %v1052_v54 = vsel %vm4908_vm13, %v4870_v40, 0.0 }
 0x14a   : > { %v557_v33 = vpop.f32.mrf.mxu1  ;;  %v488_v34 = vpop.f32.mrf.mxu0  ;;  %v1180_v59 = vsel %vm4936_vm0, %v4870_v40, 0.0  ;;  %v1308_v63 = vsel %vm4955_vm8, %v4870_v40, 0.0  ;;  %v1436_v4 = vsel %vm4972_vm11, %v4870_v40, 0.0  ;;  %v1564_v8 = vsel %vm4989_vm4, %v4870_v40, 0.0 }
 0x14b   : > { %v558_v36 = vadd.f32 %v557_v33, %v495_v28  ;;  %v4872_v41 = vadd.f32 %v488_v34, %v421_v32  ;;  %v1692_v12 = vsel %vm5006_vm10, %v4870_v40, 0.0  ;;  %v1820_v16 = vsel %vm5023_vm5, %v4870_v40, 0.0 }
 0x14c   : > { %v4090_v37 = vpop.f32.mrf.mxu1  ;;  %v4078_v38 = vpop.f32.mrf.mxu0  ;;  %v564_v28 = vrot.slane %v4857_v24, %v5041_v27  ;;  %v4567_v34 = vmov -1e+30  }
 0x14d   : > { %v670_v39 = vpack.c.bf16 %v558_v36, %v555_v35  ;;  %v668_v45 = vsel %vm663_vm6, %v4872_v41, 0.0  ;;  %v925_v47 = vsel %vm4878_vm7, %v4872_v41, 0.0  ;;  %v755_v53 = vsel %vm4902_vm12, %v4872_v41, 0.0 }
 0x14e   : > { %v669_v48 = vpack.c.bf16 %v668_v45, %v667_v44  ;;  %v926_v49 = vpack.c.bf16 %v925_v47, %v924_v46  ;;  %v1053_v55 = vsel %vm4908_vm13, %v4872_v41, 0.0  ;;  %v756_v56 = vpack.c.bf16 %v755_v53, %v754_v52 }
 0x14f   : > { %v4875_v42 = vsel %vm5675_vm3, %v670_v39, 0  ;;  %v1054_v57 = vpack.c.bf16 %v1053_v55, %v1052_v54  ;;  %v1181_v60 = vsel %vm4936_vm0, %v4872_v41, 0.0  ;;  %v1309_v0 = vsel %vm4955_vm8, %v4872_v41, 0.0 }
 0x150   : > { %4104 = vmatpush3.bf16.xpose.msra.mxu1 %v4875_v42  ;;  %4128 = vmatpush3.bf16.xpose.msra.mxu0 %v4875_v42  ;;  %v1182_v61 = vpack.c.bf16 %v1181_v60, %v1180_v59  ;;  %v1310_v1 = vpack.c.bf16 %v1309_v0, %v1308_v63  ;;  %v1437_v5 = vsel %vm4972_vm11, %v4872_v41, 0.0  ;;  %v1565_v9 = vsel %vm4989_vm4, %v4872_v41, 0.0 }
 0x151   : > { %4109 = vmatprep.subr.bf16.mxu1 %v4565_v2  ;;  %4139 = vmatprep.subr.bf16.mxu0 %v4565_v2  ;;  %v1438_v6 = vpack.c.bf16 %v1437_v5, %v1436_v4  ;;  %v1566_v10 = vpack.c.bf16 %v1565_v9, %v1564_v8  ;;  %v1693_v13 = vsel %vm5006_vm10, %v4872_v41, 0.0  ;;  %v1821_v17 = vsel %vm5023_vm5, %v4872_v41, 0.0 }
 0x152   : > { %v1694_v14 = vpack.c.bf16 %v1693_v13, %v1692_v12  ;;  %v1822_v18 = vpack.c.bf16 %v1821_v17, %v1820_v16  ;;  %v5055_v35 = vsel %vm644_vm14, 0.0, %v4567_v34  ;;  %vm722_vm12 = vcmask 130048  }
 0x156   : > { %v623_v19 = vpop.f32.mrf.mxu0 }
 0x157   : > { %4106 = vmatmul.mubr.msk.bf16.vlgmr.msra.gmra.mxu1 %vm5675_vm3, %v669_v48  ;;  %4130 = vmatmul.mubr.msk.bf16.vlgmr.msra.gmra.mxu0 %vm5675_vm3, %v926_v49  ;;  %v624_v30 = vadd.f32 %v623_v19, %v564_v28 }
 0x158   : > { %4110 = vmatpush3.bf16.xpose.msra.mxu1 %v4875_v42  ;;  %4140 = vmatpush3.bf16.xpose.msra.mxu0 %v4875_v42  ;;  %v4101_v20 = vpop.f32.mrf.mxu0 }
 0x159   : > { %4111 = vmatprep.mubr.msk.bf16.mxu1 %vm4566_vm2, %v4565_v2  ;;  %4141 = vmatprep.mubr.msk.bf16.mxu0 %vm4566_vm2, %v4565_v2 }
 0x15a   : > { %4151 = vmatprep.subr.bf16.mxu0 %v4565_v2  ;;  %4115 = vmatprep.subr.bf16.mxu1 %v4565_v2  ;;  %v626_v21 = vpop.f32.mrf.mxu0 }
 0x15b   : > { %v627_v31 = vadd.f32 %v626_v21, %v564_v28 }
 0x15c   : > { %v4102_v25 = vpop.f32.mrf.mxu0 }
 0x15d   : > { %v5045_v32 = vpack.c.bf16 %v627_v31, %v624_v30 }
 0x15f   : > { %4112 = vmatmul.mubr.msk.bf16.vlgmr.msra.gmra.mxu1 %vm5675_vm3, %v756_v56  ;;  %4142 = vmatmul.mubr.msk.bf16.vlgmr.msra.gmra.mxu0 %vm5675_vm3, %v1054_v57 }
 0x160   : > { %4152 = vmatpush3.bf16.xpose.msra.mxu0 %v4875_v42  ;;  %4153 = vmatprep.mubr.msk.bf16.mxu0 %vm4566_vm2, %v4565_v2 }
 0x161   : > { %4163 = vmatprep.subr.bf16.mxu0 %v4565_v2  ;;  %4117 = vmatprep.mubr.msk.bf16.mxu1 %vm4566_vm2, %v4565_v2 }
 0x162   : > { %4116 = vmatpush3.bf16.msk.msra.mxu1 %vm3805_vm9, %v5045_v32 }
 0x163   : > { %4121 = vmatprep.subr.bf16.mxu1 %v4565_v2 }
 0x167   : > { %4154 = vmatmul.mubr.msk.bf16.vlgmr.msra.gmra.mxu0 %vm5675_vm3, %v1182_v61 }
 0x168   : > { %4164 = vmatpush3.bf16.xpose.msra.mxu0 %v4875_v42  ;;  %4165 = vmatprep.mubr.msk.bf16.mxu0 %vm4566_vm2, %v4565_v2 }
 0x169   : > { %4175 = vmatprep.subr.bf16.mxu0 %v4565_v2 }
 0x16f   : > { %4166 = vmatmul.mubr.msk.bf16.vlgmr.msra.gmra.mxu0 %vm5675_vm3, %v1310_v1 }
 0x170   : > { %4176 = vmatpush3.bf16.xpose.msra.mxu0 %v4875_v42  ;;  %4177 = vmatprep.mubr.msk.bf16.mxu0 %vm4566_vm2, %v4565_v2 }
 0x171   : > { %4187 = vmatprep.subr.bf16.mxu0 %v4565_v2 }
 0x177   : > { %4178 = vmatmul.mubr.msk.bf16.vlgmr.msra.gmra.mxu0 %vm5675_vm3, %v1438_v6 }
 0x178   : > { %4188 = vmatpush3.bf16.xpose.msra.mxu0 %v4875_v42  ;;  %4189 = vmatprep.mubr.msk.bf16.mxu0 %vm4566_vm2, %v4565_v2 }
 0x179   : > { %4199 = vmatprep.subr.bf16.mxu0 %v4565_v2 }
 0x17f   : > { %4190 = vmatmul.mubr.msk.bf16.vlgmr.msra.gmra.mxu0 %vm5675_vm3, %v1566_v10 }
 0x180   : > { %4200 = vmatpush3.bf16.xpose.msra.mxu0 %v4875_v42  ;;  %4201 = vmatprep.mubr.msk.bf16.mxu0 %vm4566_vm2, %v4565_v2 }
 0x181   : > { %4211 = vmatprep.subr.bf16.mxu0 %v4565_v2 }
 0x187   : > { %4202 = vmatmul.mubr.msk.bf16.vlgmr.msra.gmra.mxu0 %vm5675_vm3, %v1694_v14 }
 0x188   : > { %4212 = vmatpush3.bf16.xpose.msra.mxu0 %v4875_v42  ;;  %4213 = vmatprep.mubr.msk.bf16.mxu0 %vm4566_vm2, %v4565_v2 }
 0x189   : > { %4223 = vmatprep.subr.bf16.mxu0 %v4565_v2 }
 0x18f   : > { %4214 = vmatmul.mubr.msk.bf16.vlgmr.msra.gmra.mxu0 %vm5675_vm3, %v1822_v18  ;;  %vm656_vm3 = vcmp.lt.s32.totalorder %v4864_v29, 16 }
 0x190   : > { %4231 = vmatprep.mubr.msk.bf16.mxu0 %vm4566_vm2, %v4565_v2  ;;  %vm658_vm1 = vmand %vm653_vm15, %vm656_vm3 }
 0x191   : > { %v5060_v42 = vsel %vm658_vm1, 0.0, %v4567_v34  ;;  %vm3809_vm1 = vmpackc.low %vm663_vm6, %vm663_vm6 }
 0x192   : > { %vm3814_vm3 = vmpackc.low %vm4878_vm7, %vm4878_vm7 }
 0x193   : > { %vm3819_vm6 = vmpackc.low %vm4908_vm13, %vm4908_vm13 }
 0x194   : > { %vm3824_vm7 = vmpackc.low %vm4936_vm0, %vm4936_vm0 }
 0x195   : > { %vm3829_vm13 = vmpackc.low %vm4955_vm8, %vm4955_vm8 }
 0x196   : > { %vm3834_vm0 = vmpackc.low %vm4972_vm11, %vm4972_vm11 }
 0x197   : > { %vm3839_vm8 = vmpackc.low %vm4989_vm4, %vm4989_vm4 }
 0x198   : > { %vm3844_vm11 = vmpackc.low %vm5006_vm10, %vm5006_vm10  ;;  %vm5703_vm10 = vcmask 1040384  }
 0x199   : > { %vm3849_vm4 = vmpackc.low %vm5023_vm5, %vm5023_vm5 }
 0x217   : > { %v711_v33 = vpop.f32.mrf.mxu1  ;;  %v964_v24 = vpop.f32.mrf.mxu0 }
 0x218   : > { %v718_v36 = vmul.f32 0.4472136, %v711_v33  ;;  %v971_v60 = vmul.f32 0.4472136, %v964_v24 }
 0x219   : > { %v4107_v37 = vpop.f32.mrf.mxu1  ;;  %v4131_v38 = vpop.f32.mrf.mxu0 }
 0x21a   : > { %v5058_v39 = vadd.f32 %v718_v36, %v5055_v35  ;;  %v5090_v17 = vadd.f32 %v971_v60, %v5055_v35 }
 0x21b   : > { %v714_v40 = vpop.f32.mrf.mxu1  ;;  %v967_v41 = vpop.f32.mrf.mxu0 }
 0x21c   : > { %v719_v44 = vmul.f32 0.4472136, %v714_v40  ;;  %v972_v45 = vmul.f32 0.4472136, %v967_v41  ;;  %v723_v46 = vsel %vm722_vm12, %v5058_v39, -inf  ;;  %v975_v25 = vsel %vm722_vm12, %v5090_v17, -inf }
 0x21d   : > { %724 = vmax.xlane.f32.xlu1 %v723_v46  ;;  %v4108_v47 = vpop.f32.mrf.mxu1  ;;  %v4132_v48 = vpop.f32.mrf.mxu0 }
 0x21e   : > { %v5065_v49 = vadd.f32 %v719_v44, %v5060_v42  ;;  %v5070_v55 = vadd.f32 %v972_v45, %v5060_v42 }
 0x21f   : > { %v794_v50 = vpop.f32.mrf.mxu1  ;;  %v1092_v52 = vpop.f32.mrf.mxu0 }
 0x220   : > { %v801_v53 = vmul.f32 0.4472136, %v794_v50  ;;  %v726_v54 = vsel %vm722_vm12, %v5065_v49, -inf  ;;  %v978_v5 = vsel %vm722_vm12, %v5070_v55, -inf  ;;  %v1099_v13 = vmul.f32 0.4472136, %v1092_v52 }
 0x221   : > { %727 = vmax.xlane.f32.xlu1 %v726_v54  ;;  %v4113_v56 = vpop.f32.mrf.mxu1  ;;  %v4143_v57 = vpop.f32.mrf.mxu0 }
 0x222   : > { %v5073_v59 = vadd.f32 %v801_v53, %v5055_v35  ;;  %v5095_v28 = vadd.f32 %v1099_v13, %v5055_v35 }
 0x223   : > { %v797_v61 = vpop.f32.mrf.mxu1  ;;  %v1095_v63 = vpop.f32.mrf.mxu0 }
 0x224   : > { %v802_v0 = vmul.f32 0.4472136, %v797_v61  ;;  %v1100_v1 = vmul.f32 0.4472136, %v1095_v63  ;;  %v805_v4 = vsel %vm722_vm12, %v5073_v59, -inf  ;;  %v1103_v34 = vsel %vm722_vm12, %v5095_v28, -inf }
 0x225   : > { %806 = vmax.xlane.f32.xlu0 %v805_v4  ;;  %v4114_v6 = vpop.f32.mrf.mxu1  ;;  %979 = vmax.xlane.f32.xlu1 %v978_v5  ;;  %v4144_v8 = vpop.f32.mrf.mxu0 }
 0x226   : > { %v5080_v9 = vadd.f32 %v802_v0, %v5060_v42  ;;  %v5083_v10 = vadd.f32 %v1100_v1, %v5060_v42 }
 0x227   : > { %v1220_v12 = vpop.f32.mrf.mxu0 }
 0x228   : > { %v808_v14 = vsel %vm722_vm12, %v5080_v9, -inf  ;;  %v1106_v16 = vsel %vm722_vm12, %v5083_v10, -inf  ;;  %v1227_v20 = vmul.f32 0.4472136, %v1220_v12 }
 0x229   : > { %809 = vmax.xlane.f32.xlu0 %v808_v14  ;;  %1107 = vmax.xlane.f32.xlu1 %v1106_v16  ;;  %v4155_v18 = vpop.f32.mrf.mxu0 }
 0x22a   : > { %v5105_v37 = vadd.f32 %v1227_v20, %v5055_v35 }
 0x22b   : > { %v1223_v19 = vpop.f32.mrf.mxu0 }
 0x22c   : > { %v1228_v21 = vmul.f32 0.4472136, %v1223_v19  ;;  %v1231_v44 = vsel %vm722_vm12, %v5105_v37, -inf }
 0x22d   : > { %976 = vmax.xlane.f32.xlu0 %v975_v25  ;;  %v4156_v30 = vpop.f32.mrf.mxu0 }
 0x22e   : > { %v5098_v31 = vadd.f32 %v1228_v21, %v5060_v42 }
 0x22f   : > { %v1348_v33 = vpop.f32.mrf.mxu0 }
 0x230   : > { %v1355_v24 = vmul.f32 0.4472136, %v1348_v33  ;;  %v1234_v36 = vsel %vm722_vm12, %v5098_v31, -inf }
 0x231   : > { %1104 = vmax.xlane.f32.xlu0 %v1103_v34  ;;  %1235 = vmax.xlane.f32.xlu1 %v1234_v36  ;;  %v4167_v38 = vpop.f32.mrf.mxu0 }
 0x232   : > { %v5110_v45 = vadd.f32 %v1355_v24, %v5055_v35 }
 0x233   : > { %v1351_v40 = vpop.f32.mrf.mxu0 }
 0x234   : > { %v1356_v41 = vmul.f32 0.4472136, %v1351_v40  ;;  %v1359_v52 = vsel %vm722_vm12, %v5110_v45, -inf }
 0x235   : > { %1232 = vmax.xlane.f32.xlu0 %v1231_v44  ;;  %v4168_v46 = vpop.f32.mrf.mxu0 }
 0x236   : > { %v5113_v47 = vadd.f32 %v1356_v41, %v5060_v42 }
 0x237   : > { %v1476_v48 = vpop.f32.mrf.mxu0 }
 0x238   : > { %v1483_v50 = vmul.f32 0.4472136, %v1476_v48  ;;  %v1362_v53 = vsel %vm722_vm12, %v5113_v47, -inf }
 0x239   : > { %1360 = vmax.xlane.f32.xlu0 %v1359_v52  ;;  %1363 = vmax.xlane.f32.xlu1 %v1362_v53  ;;  %v4179_v54 = vpop.f32.mrf.mxu0 }
 0x23a   : > { %v5120_v56 = vadd.f32 %v1483_v50, %v5055_v35 }
 0x23b   : > { %v1479_v57 = vpop.f32.mrf.mxu0 }
 0x23c   : > { %v1484_v60 = vmul.f32 0.4472136, %v1479_v57  ;;  %v1487_v61 = vsel %vm722_vm12, %v5120_v56, -inf }
 0x23d   : > { %1488 = vmax.xlane.f32.xlu0 %v1487_v61  ;;  %v4180_v63 = vpop.f32.mrf.mxu0 }
 0x23e   : > { %v5125_v0 = vadd.f32 %v1484_v60, %v5060_v42 }
 0x23f   : > { %v1604_v1 = vpop.f32.mrf.mxu0 }
 0x240   : > { %v1611_v4 = vmul.f32 0.4472136, %v1604_v1  ;;  %v1490_v5 = vsel %vm722_vm12, %v5125_v0, -inf }
 0x241   : > { %1491 = vmax.xlane.f32.xlu1 %v1490_v5  ;;  %v4191_v6 = vpop.f32.mrf.mxu0 }
 0x242   : > { %v5130_v8 = vadd.f32 %v1611_v4, %v5055_v35 }
 0x243   : > { %v1607_v12 = vpop.f32.mrf.mxu0 }
 0x244   : > { %v1612_v13 = vmul.f32 0.4472136, %v1607_v12  ;;  %v1615_v14 = vsel %vm722_vm12, %v5130_v8, -inf }
 0x245   : > { %1616 = vmax.xlane.f32.xlu0 %v1615_v14  ;;  %v4192_v16 = vpop.f32.mrf.mxu0 }
 0x246   : > { %v5135_v18 = vadd.f32 %v1612_v13, %v5060_v42 }
 0x247   : > { %v1732_v19 = vpop.f32.mrf.mxu0 }
 0x248   : > { %v1739_v20 = vmul.f32 0.4472136, %v1732_v19  ;;  %v1618_v21 = vsel %vm722_vm12, %v5135_v18, -inf }
 0x249   : > { %1619 = vmax.xlane.f32.xlu1 %v1618_v21  ;;  %v4203_v25 = vpop.f32.mrf.mxu0 }
 0x24a   : > { %v5140_v30 = vadd.f32 %v1739_v20, %v5055_v35 }
 0x24b   : > { %v1735_v33 = vpop.f32.mrf.mxu0 }
 0x24c   : > { %v1740_v24 = vmul.f32 0.4472136, %v1735_v33  ;;  %v1743_v34 = vsel %vm722_vm12, %v5140_v30, -inf }
 0x24d   : > { %1744 = vmax.xlane.f32.xlu0 %v1743_v34  ;;  %v4204_v36 = vpop.f32.mrf.mxu0 }
 0x24e   : > { %v5145_v38 = vadd.f32 %v1740_v24, %v5060_v42 }
 0x24f   : > { %v1860_v40 = vpop.f32.mrf.mxu0 }
 0x250   : > { %v1867_v41 = vmul.f32 0.4472136, %v1860_v40  ;;  %v1746_v44 = vsel %vm722_vm12, %v5145_v38, -inf }
 0x251   : > { %1747 = vmax.xlane.f32.xlu1 %v1746_v44  ;;  %v4215_v46 = vpop.f32.mrf.mxu0 }
 0x252   : > { %v5150_v48 = vadd.f32 %v1867_v41, %v5055_v35 }
 0x253   : > { %v1863_v50 = vpop.f32.mrf.mxu0 }
 0x254   : > { %v1868_v52 = vmul.f32 0.4472136, %v1863_v50  ;;  %v1871_v53 = vsel %vm722_vm12, %v5150_v48, -inf }
 0x255   : > { %1872 = vmax.xlane.f32.xlu0 %v1871_v53  ;;  %v4216_v54 = vpop.f32.mrf.mxu0 }
 0x256   : > { %v5155_v57 = vadd.f32 %v1868_v52, %v5060_v42 }
 0x258   : > { %v1874_v60 = vsel %vm722_vm12, %v5155_v57, -inf }
 0x259   : > { %1875 = vmax.xlane.f32.xlu1 %v1874_v60 }
 0x2a6   : > { %v725_v61 = vpop.xlane.xlu1 %724 }
 0x2a7   : > { %v729_v1 = vsub.f32 %v5058_v39, %v725_v61 }
 0x2a9   : > { %v731_v5 = vmul.f32 1.442695, %v729_v1 }
 0x2aa   : > { %v728_v63 = vpop.xlane.xlu1 %727 }
 0x2ab   : > { %v730_v12 = vsub.f32 %v5065_v49, %v728_v63 }
 0x2ad   : > { %v733_v16 = vmul.f32 1.442695, %v730_v12 }
 0x2ae   : > { %v807_v35 = vpop.xlane.xlu0 %806  ;;  %v980_v6 = vpop.xlane.xlu1 %979 }
 0x2af   : > { %v811_v4 = vsub.f32 %v5073_v59, %v807_v35  ;;  %v982_v19 = vsub.f32 %v5070_v55, %v980_v6 }
 0x2b1   : > { %v813_v13 = vmul.f32 1.442695, %v811_v4  ;;  %v985_v59 = vmul.f32 1.442695, %v982_v19 }
 0x2b2   : > { %v810_v14 = vpop.xlane.xlu0 %809  ;;  %v1108_v21 = vpop.xlane.xlu1 %1107 }
 0x2b3   : > { %4344 = vpow2.f32 %v813_v13  ;;  %v812_v42 = vsub.f32 %v5080_v9, %v810_v14  ;;  %v1110_v33 = vsub.f32 %v5083_v10, %v1108_v21 }
 0x2b4   : > { %4346 = vpow2.f32 %v731_v5 }
 0x2b5   : > { %v815_v20 = vmul.f32 1.442695, %v812_v42  ;;  %v1113_v36 = vmul.f32 1.442695, %v1110_v33 }
 0x2b6   : > { %v977_v25 = vpop.xlane.xlu0 %976 }
 0x2b7   : > { %4348 = vpow2.f32 %v815_v20  ;;  %v981_v39 = vsub.f32 %v5090_v17, %v977_v25 }
 0x2b8   : > { %4350 = vpow2.f32 %v733_v16 }
 0x2b9   : > { %v983_v49 = vmul.f32 1.442695, %v981_v39 }
 0x2ba   : > { %v1105_v24 = vpop.xlane.xlu0 %1104  ;;  %v1236_v34 = vpop.xlane.xlu1 %1235 }
 0x2bb   : > { %4352 = vpow2.f32 %v983_v49  ;;  %v1109_v9 = vsub.f32 %v5095_v28, %v1105_v24  ;;  %v1238_v55 = vsub.f32 %v5098_v31, %v1236_v34 }
 0x2bc   : > { %4354 = vpow2.f32 %v985_v59 }
 0x2bd   : > { %v1111_v40 = vmul.f32 1.442695, %v1109_v9  ;;  %v1241_v10 = vmul.f32 1.442695, %v1238_v55 }
 0x2be   : > { %v1233_v41 = vpop.xlane.xlu0 %1232 }
 0x2bf   : > { %4356 = vpow2.f32 %v1111_v40  ;;  %v1237_v44 = vsub.f32 %v5105_v37, %v1233_v41 }
 0x2c0   : > { %v5169_v17 = vpop.eup %4344  ;;  %4358 = vpow2.f32 %v1113_v36 }
 0x2c1   : > { %v5171_v46 = vpop.eup %4346  ;;  %v1239_v50 = vmul.f32 1.442695, %v1237_v44  ;;  %v817_v52 = vsel %vm722_vm12, %v5169_v17, 0.0 }
 0x2c2   : > { %v1361_v28 = vpop.xlane.xlu0 %1360  ;;  %v1364_v53 = vpop.xlane.xlu1 %1363  ;;  %818 = vadd.xlane.f32.xlu0 %v817_v52  ;;  %v735_v37 = vsel %vm722_vm12, %v5171_v46, 0.0 }
 0x2c3   : > { %4360 = vpow2.f32 %v1239_v50  ;;  %v1365_v31 = vsub.f32 %v5110_v45, %v1361_v28  ;;  %v1366_v54 = vsub.f32 %v5113_v47, %v1364_v53 }
 0x2c4   : > { %v5177_v60 = vpop.eup %4348  ;;  %4362 = vpow2.f32 %v1241_v10 }
 0x2c5   : > { %v1367_v61 = vmul.f32 1.442695, %v1365_v31  ;;  %v1369_v63 = vmul.f32 1.442695, %v1366_v54  ;;  %v820_v1 = vsel %vm722_vm12, %v5177_v60, 0.0  ;;  %v5183_v35 = vpop.eup %4350 }
 0x2c6   : > { %v1489_v4 = vpop.xlane.xlu0 %1488  ;;  %736 = vadd.xlane.f32.xlu0 %v735_v37  ;;  %821 = vadd.xlane.f32.xlu1 %v820_v1  ;;  %v738_v12 = vsel %vm722_vm12, %v5183_v35, 0.0 }
 0x2c7   : > { %4364 = vpow2.f32 %v1367_v61  ;;  %v1493_v45 = vsub.f32 %v5120_v56, %v1489_v4 }
 0x2c8   : > { %v5186_v47 = vpop.eup %4352  ;;  %4366 = vpow2.f32 %v1369_v63 }
 0x2c9   : > { %v1495_v5 = vmul.f32 1.442695, %v1493_v45  ;;  %v987_v6 = vsel %vm722_vm12, %v5186_v47, 0.0  ;;  %v5192_v13 = vpop.eup %4354 }
 0x2ca   : > { %v1492_v14 = vpop.xlane.xlu1 %1491  ;;  %988 = vadd.xlane.f32.xlu0 %v987_v6  ;;  %739 = vadd.xlane.f32.xlu1 %v738_v12  ;;  %v990_v20 = vsel %vm722_vm12, %v5192_v13, 0.0 }
 0x2cb   : > { %4368 = vpow2.f32 %v1495_v5  ;;  %v1494_v42 = vsub.f32 %v5125_v0, %v1492_v14 }
 0x2cc   : > { %v5195_v16 = vpop.eup %4356 }
 0x2cd   : > { %v1497_v56 = vmul.f32 1.442695, %v1494_v42  ;;  %v1115_v19 = vsel %vm722_vm12, %v5195_v16, 0.0  ;;  %v5201_v21 = vpop.eup %4358 }
 0x2ce   : > { %v1617_v25 = vpop.xlane.xlu0 %1616  ;;  %1116 = vadd.xlane.f32.xlu0 %v1115_v19  ;;  %991 = vadd.xlane.f32.xlu1 %v990_v20  ;;  %v1118_v49 = vsel %vm722_vm12, %v5201_v21, 0.0 }
 0x2cf   : > { %4370 = vpow2.f32 %v1497_v56  ;;  %v1621_v39 = vsub.f32 %v5130_v8, %v1617_v25 }
 0x2d0   : > { %v5204_v59 = vpop.eup %4360 }
 0x2d1   : > { %v1623_v0 = vmul.f32 1.442695, %v1621_v39  ;;  %v1243_v33 = vsel %vm722_vm12, %v5204_v59, 0.0  ;;  %v5210_v24 = vpop.eup %4362 }
 0x2d2   : > { %v1620_v34 = vpop.xlane.xlu1 %1619  ;;  %1244 = vadd.xlane.f32.xlu0 %v1243_v33  ;;  %1119 = vadd.xlane.f32.xlu1 %v1118_v49  ;;  %v1246_v55 = vsel %vm722_vm12, %v5210_v24, 0.0 }
 0x2d3   : > { %4372 = vpow2.f32 %v1623_v0  ;;  %v1622_v9 = vsub.f32 %v5135_v18, %v1620_v34 }
 0x2d4   : > { %v5213_v36 = vpop.eup %4364 }
 0x2d5   : > { %v1625_v8 = vmul.f32 1.442695, %v1622_v9  ;;  %v1371_v40 = vsel %vm722_vm12, %v5213_v36, 0.0  ;;  %v5219_v41 = vpop.eup %4366 }
 0x2d6   : > { %v1745_v44 = vpop.xlane.xlu0 %1744  ;;  %1372 = vadd.xlane.f32.xlu0 %v1371_v40  ;;  %1247 = vadd.xlane.f32.xlu1 %v1246_v55  ;;  %v1374_v28 = vsel %vm722_vm12, %v5219_v41, 0.0 }
 0x2d7   : > { %4374 = vpow2.f32 %v1625_v8  ;;  %v1749_v10 = vsub.f32 %v5140_v30, %v1745_v44 }
 0x2d8   : > { %v5222_v50 = vpop.eup %4368 }
 0x2d9   : > { %v1751_v18 = vmul.f32 1.442695, %v1749_v10  ;;  %v1499_v52 = vsel %vm722_vm12, %v5222_v50, 0.0 }
 0x2da   : > { %v1748_v53 = vpop.xlane.xlu1 %1747  ;;  %1500 = vadd.xlane.f32.xlu0 %v1499_v52  ;;  %1375 = vadd.xlane.f32.xlu1 %v1374_v28 }
 0x2db   : > { %4376 = vpow2.f32 %v1751_v18  ;;  %v1750_v31 = vsub.f32 %v5145_v38, %v1748_v53 }
 0x2dc   : > { %v5229_v54 = vpop.eup %4370 }
 0x2dd   : > { %v1753_v37 = vmul.f32 1.442695, %v1750_v31  ;;  %v1502_v30 = vsel %vm722_vm12, %v5229_v54, 0.0 }
 0x2de   : > { %v1873_v61 = vpop.xlane.xlu0 %1872  ;;  %1503 = vadd.xlane.f32.xlu1 %v1502_v30 }
 0x2df   : > { %4378 = vpow2.f32 %v1753_v37  ;;  %v1877_v63 = vsub.f32 %v5150_v48, %v1873_v61 }
 0x2e0   : > { %v5234_v1 = vpop.eup %4372 }
 0x2e1   : > { %v1879_v4 = vmul.f32 1.442695, %v1877_v63  ;;  %v1627_v45 = vsel %vm722_vm12, %v5234_v1, 0.0 }
 0x2e2   : > { %1628 = vadd.xlane.f32.xlu0 %v1627_v45  ;;  %v1876_v5 = vpop.xlane.xlu1 %1875 }
 0x2e3   : > { %4380 = vpow2.f32 %v1879_v4  ;;  %v1878_v38 = vsub.f32 %v5155_v57, %v1876_v5 }
 0x2e4   : > { %v5239_v6 = vpop.eup %4374 }
 0x2e5   : > { %v1881_v12 = vmul.f32 1.442695, %v1878_v38  ;;  %v1630_v14 = vsel %vm722_vm12, %v5239_v6, 0.0 }
 0x2e6   : > { %1631 = vadd.xlane.f32.xlu1 %v1630_v14 }
 0x2e7   : > { %4382 = vpow2.f32 %v1881_v12 }
 0x2e8   : > { %v5243_v48 = vpop.eup %4376 }
 0x2e9   : > { %v1755_v42 = vsel %vm722_vm12, %v5243_v48, 0.0 }
 0x2ea   : > { %1756 = vadd.xlane.f32.xlu0 %v1755_v42 }
 0x2ec   : > { %v5247_v56 = vpop.eup %4378 }
 0x2ed   : > { %v1758_v19 = vsel %vm722_vm12, %v5247_v56, 0.0 }
 0x2ee   : > { %1759 = vadd.xlane.f32.xlu1 %v1758_v19 }
 0x2f0   : > { %v5251_v57 = vpop.eup %4380 }
 0x2f1   : > { %v1883_v20 = vsel %vm722_vm12, %v5251_v57, 0.0 }
 0x2f2   : > { %1884 = vadd.xlane.f32.xlu0 %v1883_v20 }
 0x2f4   : > { %v5255_v25 = vpop.eup %4382 }
 0x2f5   : > { %v1886_v39 = vsel %vm722_vm12, %v5255_v25, 0.0 }
 0x2f6   : > { %1887 = vadd.xlane.f32.xlu1 %v1886_v39 }
 0x34b   : > { %v819_v0 = vpop.xlane.xlu0 %818 }
 0x34c   : > { %4384 = vrcp.f32 %v819_v0 }
 0x34f   : > { %v822_v33 = vpop.xlane.xlu1 %821  ;;  %v737_v34 = vpop.xlane.xlu0 %736 }
 0x350   : > { %4386 = vrcp.f32 %v822_v33 }
 0x353   : > { %v740_v49 = vpop.xlane.xlu1 %739  ;;  %v989_v40 = vpop.xlane.xlu0 %988 }
 0x354   : > { %4388 = vrcp.f32 %v740_v49 }
 0x355   : > { %4390 = vrcp.f32 %v737_v34 }
 0x357   : > { %v992_v9 = vpop.xlane.xlu1 %991  ;;  %v1117_v31 = vpop.xlane.xlu0 %1116 }
 0x358   : > { %4392 = vrcp.f32 %v992_v9 }
 0x359   : > { %v4385_v8 = vpop.eup %4384  ;;  %4394 = vrcp.f32 %v989_v40 }
 0x35a   : > { %v824_v44 = vmul.f32 %v4385_v8, %v5169_v17 }
 0x35b   : > { %v1120_v28 = vpop.xlane.xlu1 %1119  ;;  %v1245_v63 = vpop.xlane.xlu0 %1244 }
 0x35c   : > { %4396 = vrcp.f32 %v1120_v28 }
 0x35d   : > { %v4387_v55 = vpop.eup %4386  ;;  %4398 = vrcp.f32 %v1117_v31 }
 0x35e   : > { %v826_v10 = vmul.f32 %v4387_v55, %v5177_v60 }
 0x35f   : > { %v1248_v30 = vpop.xlane.xlu1 %1247  ;;  %v1373_v38 = vpop.xlane.xlu0 %1372 }
 0x360   : > { %v829_v18 = vpack.c.bf16 %v826_v10, %v824_v44  ;;  %4400 = vrcp.f32 %v1248_v30 }
 0x361   : > { %v4389_v52 = vpop.eup %4388  ;;  %4402 = vrcp.f32 %v1245_v63 }
 0x362   : > { %4118 = vmatmul.mubr.msk.bf16.vlgmr.msra.gmra.mxu1 %vm722_vm12, %v829_v18  ;;  %v4391_v53 = vpop.eup %4390  ;;  %v744_v17 = vmul.f32 %v4389_v52, %v5183_v35 }
 0x363   : > { %4122 = vmatpush3.bf16.msk.msra.mxu1 %vm3809_vm1, %v5045_v32  ;;  %4123 = vmatprep.mubr.msk.bf16.mxu1 %vm4566_vm2, %v4565_v2  ;;  %v742_v29 = vmul.f32 %v4391_v53, %v5171_v46  ;;  %v1376_v45 = vpop.xlane.xlu1 %1375  ;;  %v1501_v19 = vpop.xlane.xlu0 %1500  ;;  %vm5710_vm1 = vmmov %vm5703_vm10 }
 0x364   : > { %4133 = vmatprep.subr.bf16.mxu1 %v4565_v2  ;;  %4404 = vrcp.f32 %v1376_v45 }
 0x365   : > { %v747_v60 = vpack.c.bf16 %v744_v17, %v742_v29  ;;  %v4393_v37 = vpop.eup %4392  ;;  %4406 = vrcp.f32 %v1373_v38  ;;  %v1973_v17 = vsel %vm5703_vm10, %v4308_v15, 0  ;;  %v4309_v29 = vld [vmem:[%s4786_s12 + $0x64] sm:$0xff]  }
 0x366   : > { %v4395_v61 = vpop.eup %4394  ;;  %v996_v46 = vmul.f32 %v4393_v37, %v5192_v13  ;;  %4224 = vmatpush3.bf16.msra.mxu0 %v1973_v17 }
 0x367   : > { %v994_v43 = vmul.f32 %v4395_v61, %v5186_v47  ;;  %v1504_v14 = vpop.xlane.xlu1 %1503  ;;  %4225 = vmatprep.subr.bf16.mxu0 %v4565_v2 }
 0x368   : > { %4408 = vrcp.f32 %v1504_v14 }
 0x369   : > { %v999_v35 = vpack.c.bf16 %v996_v46, %v994_v43  ;;  %v4397_v4 = vpop.eup %4396  ;;  %4410 = vrcp.f32 %v1501_v19 }
 0x36a   : > { %4124 = vmatmul.mubr.msk.bf16.vlgmr.msra.gmra.mxu1 %vm722_vm12, %v747_v60  ;;  %v4399_v5 = vpop.eup %4398  ;;  %v1124_v47 = vmul.f32 %v4397_v4, %v5201_v21  ;;  %4226 = vmatpush3.bf16.msra.mxu0 %v4309_v29 }
 0x36b   : > { %4134 = vmatpush3.bf16.msk.msra.mxu1 %vm3814_vm3, %v5045_v32  ;;  %4135 = vmatprep.mubr.msk.bf16.mxu1 %vm4566_vm2, %v4565_v2  ;;  %v1122_v51 = vmul.f32 %v4399_v5, %v5195_v16  ;;  %v1629_v33 = vpop.xlane.xlu0 %1628  ;;  %vm5711_vm3 = vmmov %vm5710_vm1 }
 0x36c   : > { %4145 = vmatprep.subr.bf16.mxu1 %v4565_v2  ;;  %4227 = vmatprep.subr.bf16.mxu0 %v4565_v2 }
 0x36d   : > { %v1127_v13 = vpack.c.bf16 %v1124_v47, %v1122_v51  ;;  %v4401_v12 = vpop.eup %4400 }
 0x36e   : > { %v4403_v42 = vpop.eup %4402  ;;  %v1252_v16 = vmul.f32 %v4401_v12, %v5210_v24 }
 0x36f   : > { %v1250_v58 = vmul.f32 %v4403_v42, %v5204_v59  ;;  %v1632_v39 = vpop.xlane.xlu1 %1631 }
 0x370   : > { %4412 = vrcp.f32 %v1632_v39 }
 0x371   : > { %v1255_v21 = vpack.c.bf16 %v1252_v16, %v1250_v58  ;;  %v4405_v20 = vpop.eup %4404  ;;  %4414 = vrcp.f32 %v1629_v33 }
 0x372   : > { %4136 = vmatmul.mubr.msk.bf16.vlgmr.msra.gmra.mxu1 %vm722_vm12, %v999_v35  ;;  %v4407_v0 = vpop.eup %4406  ;;  %v1380_v59 = vmul.f32 %v4405_v20, %v5219_v41 }
 0x373   : > { %4146 = vmatpush3.bf16.msk.msra.mxu1 %vm3819_vm6, %v5045_v32  ;;  %4147 = vmatprep.mubr.msk.bf16.mxu1 %vm4566_vm2, %v4565_v2  ;;  %v1378_v62 = vmul.f32 %v4407_v0, %v5213_v36  ;;  %v1757_v8 = vpop.xlane.xlu0 %1756  ;;  %vm5712_vm6 = vmmov %vm5710_vm1 }
 0x374   : > { %4157 = vmatprep.subr.bf16.mxu1 %v4565_v2 }
 0x375   : > { %v1383_v24 = vpack.c.bf16 %v1380_v59, %v1378_v62  ;;  %v4409_v49 = vpop.eup %4408 }
 0x376   : > { %v4411_v9 = vpop.eup %4410  ;;  %v1508_v36 = vmul.f32 %v4409_v49, %v5229_v54 }
 0x377   : > { %v1760_v34 = vpop.xlane.xlu1 %1759  ;;  %v1506_v3 = vmul.f32 %v4411_v9, %v5222_v50 }
 0x378   : > { %4416 = vrcp.f32 %v1760_v34 }
 0x379   : > { %4418 = vrcp.f32 %v1757_v8  ;;  %v1511_v41 = vpack.c.bf16 %v1508_v36, %v1506_v3 }
 0x37a   : > { %4148 = vmatmul.mubr.msk.bf16.vlgmr.msra.gmra.mxu1 %vm722_vm12, %v1127_v13 }
 0x37b   : > { %4158 = vmatpush3.bf16.msk.msra.mxu1 %vm3824_vm7, %v5045_v32  ;;  %4159 = vmatprep.mubr.msk.bf16.mxu1 %vm4566_vm2, %v4565_v2  ;;  %v1885_v10 = vpop.xlane.xlu0 %1884  ;;  %vm5713_vm7 = vmmov %vm5710_vm1 }
 0x37c   : > { %4169 = vmatprep.subr.bf16.mxu1 %v4565_v2 }
 0x37d   : > { %v4413_v40 = vpop.eup %4412 }
 0x37e   : > { %v4415_v44 = vpop.eup %4414  ;;  %v1636_v50 = vmul.f32 %v4413_v40, %v5239_v6 }
 0x37f   : > { %v1888_v55 = vpop.xlane.xlu1 %1887  ;;  %v1634_v7 = vmul.f32 %v4415_v44, %v5234_v1 }
 0x380   : > { %4420 = vrcp.f32 %v1888_v55 }
 0x381   : > { %4422 = vrcp.f32 %v1885_v10  ;;  %v1639_v54 = vpack.c.bf16 %v1636_v50, %v1634_v7 }
 0x382   : > { %4160 = vmatmul.mubr.msk.bf16.vlgmr.msra.gmra.mxu1 %vm722_vm12, %v1255_v21 }
 0x383   : > { %4170 = vmatpush3.bf16.msk.msra.mxu1 %vm3829_vm13, %v5045_v32  ;;  %4171 = vmatprep.mubr.msk.bf16.mxu1 %vm4566_vm2, %v4565_v2  ;;  %vm5714_vm13 = vmmov %vm5710_vm1 }
 0x384   : > { %4181 = vmatprep.subr.bf16.mxu1 %v4565_v2 }
 0x385   : > { %v4417_v18 = vpop.eup %4416 }
 0x386   : > { %v4419_v52 = vpop.eup %4418  ;;  %v1764_v6 = vmul.f32 %v4417_v18, %v5247_v56 }
 0x387   : > { %v1762_v1 = vmul.f32 %v4419_v52, %v5243_v48 }
 0x389   : > { %v1767_v11 = vpack.c.bf16 %v1764_v6, %v1762_v1 }
 0x38a   : > { %4172 = vmatmul.mubr.msk.bf16.vlgmr.msra.gmra.mxu1 %vm722_vm12, %v1383_v24 }
 0x38b   : > { %4182 = vmatpush3.bf16.msk.msra.mxu1 %vm3834_vm0, %v5045_v32  ;;  %4183 = vmatprep.mubr.msk.bf16.mxu1 %vm4566_vm2, %v4565_v2  ;;  %vm5715_vm0 = vmmov %vm5710_vm1 }
 0x38c   : > { %4193 = vmatprep.subr.bf16.mxu1 %v4565_v2 }
 0x38d   : > { %v4421_v28 = vpop.eup %4420 }
 0x38e   : > { %v4423_v53 = vpop.eup %4422  ;;  %v1892_v56 = vmul.f32 %v4421_v28, %v5255_v25  ;;  %v4311_v25 = vld [vmem:[%s4786_s12 + $0x54] sm:$0xff]  }
 0x38f   : > { %v1890_v48 = vmul.f32 %v4423_v53, %v5251_v57 }
 0x391   : > { %v1895_v31 = vpack.c.bf16 %v1892_v56, %v1890_v48 }
 0x392   : > { %4184 = vmatmul.mubr.msk.bf16.vlgmr.msra.gmra.mxu1 %vm722_vm12, %v1511_v41 }
 0x393   : > { %4194 = vmatpush3.bf16.msk.msra.mxu1 %vm3839_vm8, %v5045_v32  ;;  %4195 = vmatprep.mubr.msk.bf16.mxu1 %vm4566_vm2, %v4565_v2  ;;  %vm5716_vm8 = vmmov %vm5715_vm0 }
 0x394   : > { %4205 = vmatprep.subr.bf16.mxu1 %v4565_v2 }
 0x39a   : > { %4196 = vmatmul.mubr.msk.bf16.vlgmr.msra.gmra.mxu1 %vm722_vm12, %v1639_v54 }
 0x39b   : > { %4206 = vmatpush3.bf16.msk.msra.mxu1 %vm3844_vm11, %v5045_v32  ;;  %4207 = vmatprep.mubr.msk.bf16.mxu1 %vm4566_vm2, %v4565_v2 }
 0x39c   : > { %4217 = vmatprep.subr.bf16.mxu1 %v4565_v2 }
 0x3a2   : > { %4208 = vmatmul.mubr.msk.bf16.vlgmr.msra.gmra.mxu1 %vm722_vm12, %v1767_v11 }
 0x3a3   : > { %4218 = vmatpush3.bf16.msk.msra.mxu1 %vm3849_vm4, %v5045_v32  ;;  %4219 = vmatprep.mubr.msk.bf16.mxu1 %vm4566_vm2, %v4565_v2  ;;  %v4310_v32 = vld [vmem:[%s4786_s12 + $0x5c] sm:$0xff]   ;;  %vm5704_vm2 = vcmask 408576  }
 0x3a4   : > { %4228 = vmatpush3.bf16.msra.mxu0 %v4310_v32  ;;  %vm5705_vm5 = vmmov %vm5704_vm2 }
 0x3a5   : > { %4229 = vmatprep.subr.bf16.mxu0 %v4565_v2  ;;  %vm5706_vm9 = vmmov %vm5704_vm2 }
 0x3a6   : > { %vm5707_vm14 = vmmov %vm5704_vm2 }
 0x3a7   : > { %vm5708_vm15 = vmmov %vm5704_vm2 }
 0x3a8   : > { %4230 = vmatpush3.bf16.msra.mxu0 %v4311_v25  ;;  %v5361_v25 = vsub.s32 3, %v4851_v22  ;;  %vm5717_vm11 = vmmov %vm5704_vm2 }
 0x3a9   : > { %vm5718_vm4 = vmmov %vm5704_vm2 }
 0x3aa   : > { %4220 = vmatmul.mubr.msk.bf16.vlgmr.msra.gmra.mxu1 %vm722_vm12, %v1895_v31  ;;  %vm5709_vm12 = vmmov %vm5703_vm10 }
 0x3ab   : > { %vm5719_vm10 = vmmov %vm5715_vm0 }
 0x422   : > { %v868_v57 = vpop.f32.mrf.mxu1 }
 0x424   : > { %v4119_v60 = vpop.f32.mrf.mxu1 }
 0x426   : > { %v871_v37 = vpop.f32.mrf.mxu1 }
 0x428   : > { %v4120_v30 = vpop.f32.mrf.mxu1 }
 0x42a   : > { %v912_v61 = vpop.f32.mrf.mxu1 }
 0x42b   : > { %v913_v49 = vadd.f32 %v912_v61, %v868_v57  ;;  %v5364_v57 = vld [vmem:[%s4781_s17] sm:$0xff] }
 0x42c   : > { %v4125_v63 = vpop.f32.mrf.mxu1  ;;  %v1947_v60 = vrot.slane %v5364_v57, %v5361_v25 }
 0x42d   : > { %v4433_v63 = vld [vmem:[%s5673_s6] sm:$0xff] }
 0x42e   : > { %v915_v46 = vpop.f32.mrf.mxu1 }
 0x42f   : > { %v916_v34 = vadd.f32 %v915_v46, %v871_v37 }
 0x430   : > { %v4126_v43 = vpop.f32.mrf.mxu1 }
 0x432   : > { %v1038_v35 = vpop.f32.mrf.mxu1 }
 0x433   : > { %v1045_v8 = vadd.f32 %v1038_v35, %v913_v49 }
 0x434   : > { %v4137_v4 = vpop.f32.mrf.mxu1 }
 0x436   : > { %v1041_v45 = vpop.f32.mrf.mxu1 }
 0x437   : > { %v1046_v36 = vadd.f32 %v1041_v45, %v916_v34  ;;  %v2089_v34 = vld [vmem:[%s4763_s10 + $0x100] sm:$0xff] }
 0x438   : > { %v4138_v5 = vpop.f32.mrf.mxu1 }
 0x439   : > { %v4434_v5 = vld [vmem:[%s5673_s6 + $0x8] sm:$0xff] }
 0x43a   : > { %v1166_v38 = vpop.f32.mrf.mxu1 }
 0x43b   : > { %v1173_v41 = vadd.f32 %v1166_v38, %v1045_v8  ;;  %v2090_v8 = vld [vmem:[%s4763_s10 + $0x108] sm:$0xff] }
 0x43c   : > { %v4149_v47 = vpop.f32.mrf.mxu1 }
 0x43e   : > { %v1169_v51 = vpop.f32.mrf.mxu1 }
 0x43f   : > { %v1174_v40 = vadd.f32 %v1169_v51, %v1046_v36 }
 0x440   : > { %v4150_v13 = vpop.f32.mrf.mxu1 }
 0x442   : > { %v1294_v12 = vpop.f32.mrf.mxu1 }
 0x443   : > { %v1301_v44 = vadd.f32 %v1294_v12, %v1173_v41 }
 0x444   : > { %v4161_v2 = vpop.f32.mrf.mxu1 }
 0x446   : > { %v1297_v14 = vpop.f32.mrf.mxu1 }
 0x447   : > { %v1302_v10 = vadd.f32 %v1297_v14, %v1174_v40 }
 0x448   : > { %v4162_v42 = vpop.f32.mrf.mxu1 }
 0x44a   : > { %v1422_v19 = vpop.f32.mrf.mxu1 }
 0x44b   : > { %v1429_v7 = vadd.f32 %v1422_v19, %v1301_v44  ;;  %v2073_v44 = vld [vmem:[%s4763_s10 + $0x80] sm:$0xff] }
 0x44c   : > { %v4173_v16 = vpop.f32.mrf.mxu1 }
 0x44e   : > { %v1425_v58 = vpop.f32.mrf.mxu1 }
 0x44f   : > { %v1430_v54 = vadd.f32 %v1425_v58, %v1302_v10  ;;  %v2081_v10 = vld [vmem:[%s4763_s10 + $0xc0] sm:$0xff] }
 0x450   : > { %v4174_v21 = vpop.f32.mrf.mxu1 }
 0x452   : > { %v1550_v20 = vpop.f32.mrf.mxu1 }
 0x453   : > { %v1557_v52 = vadd.f32 %v1550_v20, %v1429_v7  ;;  %v2105_v20 = vld [vmem:[%s4763_s10 + $0x180] sm:$0x11]  ;;  %v3875_v7 = vcombine.high %v2073_v44, %v2081_v10 }
 0x454   : > { %v4185_v39 = vpop.f32.mrf.mxu1 }
 0x455   : > { %v2106_v39 = vld [vmem:[%s4763_s10 + $0x188] sm:$0x11] }
 0x456   : > { %v1553_v0 = vpop.f32.mrf.mxu1 }
 0x457   : > { %v1558_v6 = vadd.f32 %v1553_v0, %v1430_v54  ;;  %v3907_v0 = vcombine.high %v2105_v20, %v2105_v20  ;;  %v2082_v54 = vld [vmem:[%s4763_s10 + $0xc8] sm:$0xff] }
 0x458   : > { %v4186_v33 = vpop.f32.mrf.mxu1 }
 0x459   : > { %v3909_v33 = vcombine.high %v2106_v39, %v2106_v39  ;;  %3922 = vmatprep.subr.msk.bf16.mxu1 %vm5709_vm12, %v3907_v0  ;;  %v2100_v0 = vld [vmem:[%s4763_s10 + $0x158] sm:$0xff]  ;;  %vm5725_vm12 = vmmov %vm5715_vm0 }
 0x45a   : > { %v1678_v59 = vpop.f32.mrf.mxu1 }
 0x45b   : > { %v1685_v11 = vadd.f32 %v1678_v59, %v1557_v52  ;;  %v3906_v59 = vcombine.low %v2105_v20, %v2105_v20  ;;  %3924 = vmatprep.subr.msk.bf16.mxu0 %vm5710_vm1, %v3909_v33  ;;  %v2099_v20 = vld [vmem:[%s4763_s10 + $0x150] sm:$0xff]  ;;  %vm5726_vm1 = vmmov %vm5715_vm0 }
 0x45c   : > { %v4197_v62 = vpop.f32.mrf.mxu1 }
 0x45d   : > { %v3908_v62 = vcombine.low %v2106_v39, %v2106_v39  ;;  %v2092_v39 = vld [vmem:[%s4763_s10 + $0x118] sm:$0xff] }
 0x45e   : > { %v1681_v24 = vpop.f32.mrf.mxu1 }
 0x45f   : > { %v1686_v28 = vadd.f32 %v1681_v24, %v1558_v6  ;;  %v2482_v24 = vsel %vm5711_vm3, %v3906_v59, 0  ;;  %v2488_v49 = vsel %vm5712_vm6, %v3908_v62, 0  ;;  %vm5727_vm3 = vmmov %vm5715_vm0 }
 0x460   : > { %v4198_v9 = vpop.f32.mrf.mxu1  ;;  %2538 = vmatpush1.bf16.msra.mxu1 %v2482_v24  ;;  %v3897_v24 = vcombine.high %v2092_v39, %v2100_v0  ;;  %vm5728_vm6 = vmmov %vm5715_vm0 }
 0x461   : > { %v2097_v9 = vld [vmem:[%s4763_s10 + $0x140] sm:$0xff] }
 0x462   : > { %v1806_v3 = vpop.f32.mrf.mxu1  ;;  %v3891_v36 = vcombine.high %v2089_v34, %v2097_v9  ;;  %v3890_v41 = vcombine.low %v2089_v34, %v2097_v9  ;;  %v2083_v34 = vld [vmem:[%s4763_s10 + $0xd0] sm:$0xff]  ;;  %v2076_v9 = vld [vmem:[%s4763_s10 + $0x98] sm:$0xff] }
 0x463   : > { %v1813_v56 = vadd.f32 %v1806_v3, %v1685_v11  ;;  %v2098_v3 = vld [vmem:[%s4763_s10 + $0x148] sm:$0xff]  ;;  %v2065_v11 = vld [vmem:[%s4763_s10 + $0x40] sm:$0xff] }
 0x464   : > { %v4209_v55 = vpop.f32.mrf.mxu1  ;;  %v3892_v40 = vcombine.low %v2090_v8, %v2098_v3  ;;  %2539 = vmatprep.subr.bf16.mxu1 %v3891_v36 }
 0x465   : > { %v3893_v55 = vcombine.high %v2090_v8, %v2098_v3  ;;  %2540 = vmatpush1.bf16.msra.mxu1 %v3890_v41  ;;  %v2084_v8 = vld [vmem:[%s4763_s10 + $0xd8] sm:$0xff]  ;;  %v3896_v3 = vcombine.low %v2092_v39, %v2100_v0  ;;  %v2111_v0 = vld [vmem:[%s4763_s10 + $0x1b0] sm:$0x11] }
 0x466   : > { %v1809_v50 = vpop.f32.mrf.mxu1  ;;  %2541 = vmatprep.subr.bf16.mxu1 %v3875_v7 }
 0x467   : > { %v1814_v48 = vadd.f32 %v1809_v50, %v1686_v28  ;;  %v2074_v50 = vld [vmem:[%s4763_s10 + $0x88] sm:$0xff] }
 0x468   : > { %v4210_v18 = vpop.f32.mrf.mxu1  ;;  %v3876_v52 = vcombine.low %v2074_v50, %v2082_v54  ;;  %v3877_v6 = vcombine.high %v2074_v50, %v2082_v54  ;;  %v2058_v28 = vld [vmem:[%s4763_s10 + $0x8] sm:$0xff]  ;;  %v2068_v50 = vld [vmem:[%s4763_s10 + $0x58] sm:$0xff]  ;;  %v3880_v54 = vcombine.low %v2076_v9, %v2084_v8 }
 0x469   : > { %v3874_v18 = vcombine.low %v2073_v44, %v2081_v10  ;;  %v2067_v44 = vld [vmem:[%s4763_s10 + $0x50] sm:$0xff]  ;;  %v2060_v10 = vld [vmem:[%s4763_s10 + $0x18] sm:$0xff] }
 0x46a   : > { %v1934_v1 = vpop.f32.mrf.mxu1 }
 0x46b   : > { %v1941_v15 = vadd.f32 %v1934_v1, %v1813_v56  ;;  %2542 = vmatpush1.bf16.msra.mxu1 %v3874_v18  ;;  %v2057_v1 = vld [vmem:[%s4763_s10] sm:$0xff]  ;;  %v2066_v56 = vld [vmem:[%s4763_s10 + $0x48] sm:$0xff] }
 0x46c   : > { %v4221_v53 = vpop.f32.mrf.mxu1 }
 0x46d   : > { %v3859_v53 = vcombine.high %v2057_v1, %v2065_v11 }
 0x46e   : > { %v1937_v31 = vpop.f32.mrf.mxu1 }
 0x46f   : > { %v1942_v17 = vadd.f32 %v1937_v31, %v1814_v48  ;;  %v3858_v48 = vcombine.low %v2057_v1, %v2065_v11  ;;  %v3860_v31 = vcombine.low %v2058_v28, %v2066_v56  ;;  %2543 = vmatprep.subr.bf16.mxu1 %v3859_v53  ;;  %v2110_v1 = vld [vmem:[%s4763_s10 + $0x1a8] sm:$0x11] }
 0x470   : > { %v4222_v29 = vpop.f32.mrf.mxu1 }
 0x471   : > { %v1943_v32 = vpack.c.bf16 %v1942_v17, %v1941_v15  ;;  %v3861_v15 = vcombine.high %v2058_v28, %v2066_v56  ;;  %2544 = vmatpush1.bf16.msra.mxu1 %v3858_v48  ;;  %v2107_v17 = vld [vmem:[%s4763_s10 + $0x190] sm:$0x11]  ;;  %v2108_v29 = vld [vmem:[%s4763_s10 + $0x198] sm:$0x11]  ;;  %v3864_v28 = vcombine.low %v2060_v10, %v2068_v50  ;;  %v3917_v56 = vcombine.high %v2110_v1, %v2110_v1 }
 0x473   : > { %4232 = vmatmul.mubr.msk.bf16.vlgmr.msra.gmra.mxu0 %vm5704_vm2, %v1943_v32  ;;  %v3911_v32 = vcombine.high %v2107_v17, %v2107_v17  ;;  %vm5720_vm2 = vmmov %vm5715_vm0 }
 0x474   : > { %2581 = vmatpush1.bf16.msra.mxu0 %v2488_v49  ;;  %v2075_v49 = vld [vmem:[%s4763_s10 + $0x90] sm:$0xff] }
 0x475   : > { %2582 = vmatprep.subr.bf16.mxu0 %v3893_v55  ;;  %3926 = vmatprep.subr.msk.bf16.mxu1 %vm5713_vm7, %v3911_v32  ;;  %v3879_v41 = vcombine.high %v2075_v49, %v2083_v34  ;;  %v2059_v55 = vld [vmem:[%s4763_s10 + $0x10] sm:$0xff]  ;;  %v3878_v7 = vcombine.low %v2075_v49, %v2083_v34  ;;  %v2102_v32 = vld [vmem:[%s4763_s10 + $0x168] sm:$0xff]  ;;  %v3918_v34 = vcombine.low %v2111_v0, %v2111_v0  ;;  %vm5729_vm7 = vmmov %vm5718_vm4 }
 0x476   : > { %v3863_v18 = vcombine.high %v2059_v55, %v2067_v44  ;;  %v3862_v11 = vcombine.low %v2059_v55, %v2067_v44 }
 0x478   : > { %2583 = vmatpush1.bf16.msra.mxu0 %v3892_v40  ;;  %v3881_v40 = vcombine.high %v2076_v9, %v2084_v8  ;;  %v2095_v8 = vld [vmem:[%s4763_s10 + $0x130] sm:$0xff] }
 0x479   : > { %2584 = vmatprep.subr.bf16.mxu0 %v3877_v6  ;;  %v2109_v6 = vld [vmem:[%s4763_s10 + $0x1a0] sm:$0x11] }
 0x47a   : > { %v3915_v53 = vcombine.high %v2109_v6, %v2109_v6  ;;  %v3914_v48 = vcombine.low %v2109_v6, %v2109_v6 }
 0x47c   : > { %2585 = vmatpush1.bf16.msra.mxu0 %v3876_v52  ;;  %v3865_v52 = vcombine.high %v2060_v10, %v2068_v50  ;;  %v2079_v50 = vld [vmem:[%s4763_s10 + $0xb0] sm:$0xff] }
 0x47d   : > { %2586 = vmatprep.subr.bf16.mxu0 %v3861_v15  ;;  %v2093_v15 = vld [vmem:[%s4763_s10 + $0x120] sm:$0xff] }
 0x480   : > { %2587 = vmatpush1.bf16.msra.mxu0 %v3860_v31  ;;  %v3916_v31 = vcombine.low %v2110_v1, %v2110_v1 }
 0x533   : > { %v2009_v37 = vpop.f32.mrf.mxu0 }
 0x534   : > { %v2010_v30 = vadd.f32 %v2009_v37, %v1947_v60  ;;  %v4568_v37 = vmov 0  }
 0x535   : > { %v4233_v61 = vpop.f32.mrf.mxu0  ;;  %2561 = vmatprep.mubr.bf16.mxu1 %v4568_v37  ;;  %2604 = vmatprep.mubr.bf16.mxu0 %v4568_v37 }
 0x536   : > { %v2016_v46 = vadd.f32 %v4433_v63, %v2010_v30 }
 0x537   : > { %v2012_v43 = vpop.f32.mrf.mxu0 }
 0x538   : > { %v2013_v35 = vadd.f32 %v2012_v43, %v1947_v60  ;;  %v2018_v4 = vsel %vm5705_vm5, %v2016_v46, 0.0  ;;  %v3913_v60 = vcombine.high %v2108_v29, %v2108_v29  ;;  %vm5721_vm5 = vmmov %vm5715_vm0 }
 0x539   : > { %2019 = vadd.xlane.f32.xlu0 %v2018_v4  ;;  %v4234_v45 = vpop.f32.mrf.mxu0  ;;  %v5411_v4 = vsub.s32 5, %v4851_v22 }
 0x53a   : > { %v2017_v38 = vadd.f32 %v4434_v5, %v2013_v35  ;;  %3928 = vmatprep.subr.msk.bf16.mxu0 %vm5714_vm13, %v3913_v60  ;;  %v2506_v60 = vsel %vm5721_vm5, %v3914_v48, 0  ;;  %vm5730_vm13 = vmmov %vm5718_vm4  ;;  %v2072_v48 = vld [vmem:[%s4763_s10 + $0x78] sm:$0xff] }
 0x53b   : > { %v2048_v5 = vrot.slane %v5364_v57, %v5411_v4 }
 0x53c   : > { %v2021_v47 = vsel %vm5706_vm9, %v2017_v38, 0.0  ;;  %vm5722_vm9 = vmmov %vm5715_vm0 }
 0x53d   : > { %2022 = vadd.xlane.f32.xlu1 %v2021_v47 }
 0x5c2   : > { %v2020_v51 = vpop.xlane.xlu0 %2019 }
 0x5c3   : > { %v2025_v13 = vmul.f32 0.02, %v2020_v51 }
 0x5c5   : > { %v5376_v12 = vsub.f32 %v2016_v46, %v2025_v13 }
 0x5c6   : > { %v2023_v2 = vpop.xlane.xlu1 %2022 }
 0x5c7   : > { %v2026_v14 = vmul.f32 0.02, %v2023_v2  ;;  %v2029_v42 = vmul.f32 %v5376_v12, %v5376_v12 }
 0x5c9   : > { %v5380_v19 = vsub.f32 %v2017_v38, %v2026_v14  ;;  %v2031_v16 = vsel %vm5707_vm14, %v2029_v42, 0.0  ;;  %v5416_v38 = vsub.s32 6, %v4851_v22  ;;  %v3910_v42 = vcombine.low %v2107_v17, %v2107_v17  ;;  %v2101_v17 = vld [vmem:[%s4763_s10 + $0x160] sm:$0xff]  ;;  %vm5723_vm14 = vmmov %vm5718_vm4 }
 0x5ca   : > { %2032 = vadd.xlane.f32.xlu0 %v2031_v16 }
 0x5cb   : > { %v2030_v58 = vmul.f32 %v5380_v19, %v5380_v19  ;;  %v2054_v13 = vrot.slane %v5364_v57, %v5416_v38  ;;  %v2494_v57 = vsel %vm5715_vm0, %v3910_v42, 0  ;;  %v2062_v42 = vld [vmem:[%s4763_s10 + $0x28] sm:$0xff]  ;;  %vm5731_vm0 = vmmov %vm5718_vm4 }
 0x5cc   : > { %vm5737_vm5 = vmmov %vm5731_vm0 }
 0x5cd   : > { %v2034_v21 = vsel %vm5708_vm15, %v2030_v58, 0.0  ;;  %v3912_v58 = vcombine.low %v2108_v29, %v2108_v29  ;;  %v2094_v29 = vld [vmem:[%s4763_s10 + $0x128] sm:$0xff]  ;;  %vm5724_vm15 = vmmov %vm5718_vm4 }
 0x5ce   : > { %2035 = vadd.xlane.f32.xlu1 %v2034_v21  ;;  %v2091_v21 = vld [vmem:[%s4763_s10 + $0x110] sm:$0xff] }
 0x5cf   : > { %v3895_v62 = vcombine.high %v2091_v21, %v2099_v20  ;;  %v3894_v36 = vcombine.low %v2091_v21, %v2099_v20 }
 0x653   : > { %v2033_v30 = vpop.xlane.xlu0 %2032 }
 0x654   : > { %v2037_v61 = vmul.f32 0.02, %v2033_v30  ;;  %v2512_v30 = vsel %vm5722_vm9, %v3916_v31, 0  ;;  %vm5738_vm9 = vmmov %vm5731_vm0 }
 0x656   : > { %v2039_v63 = vadd.f32 1e-05, %v2037_v61  ;;  %v3899_v61 = vcombine.high %v2093_v15, %v2101_v17 }
 0x657   : > { %v2036_v46 = vpop.xlane.xlu1 %2035 }
 0x658   : > { %4424 = vrsqrt.f32 %v2039_v63  ;;  %v2038_v43 = vmul.f32 0.02, %v2036_v46  ;;  %v3901_v63 = vcombine.high %v2094_v29, %v2102_v32  ;;  %v2077_v46 = vld [vmem:[%s4763_s10 + $0xa0] sm:$0xff] }
 0x65a   : > { %v2040_v35 = vadd.f32 1e-05, %v2038_v43  ;;  %v2085_v43 = vld [vmem:[%s4763_s10 + $0xe0] sm:$0xff] }
 0x65c   : > { %4426 = vrsqrt.f32 %v2040_v35  ;;  %v2078_v35 = vld [vmem:[%s4763_s10 + $0xa8] sm:$0xff] }
 0x665   : > { %v4425_v45 = vpop.eup %4424 }
 0x666   : > { %v2043_v47 = vmul.f32 %v4425_v45, %v5376_v12  ;;  %v2086_v45 = vld [vmem:[%s4763_s10 + $0xe8] sm:$0xff] }
 0x667   : > { %v3884_v21 = vcombine.low %v2078_v35, %v2086_v45 }
 0x668   : > { %v2049_v2 = vmul.f32 %v2048_v5, %v2043_v47  ;;  %v3900_v47 = vcombine.low %v2094_v29, %v2102_v32  ;;  %v2953_v32 = vld [vmem:[%s4788_s15 + $0x180] sm:$0x11] }
 0x669   : > { %v4427_v51 = vpop.eup %4426 }
 0x66a   : > { %v2044_v14 = vmul.f32 %v4427_v51, %v5380_v19  ;;  %v5426_v33 = vadd.f32 %v2054_v13, %v2049_v2  ;;  %v2500_v19 = vsel %vm5716_vm8, %v3912_v58, 0  ;;  %v3883_v51 = vcombine.high %v2077_v46, %v2085_v43  ;;  %v2061_v2 = vld [vmem:[%s4763_s10 + $0x20] sm:$0xff]  ;;  %vm5732_vm8 = vmmov %vm5731_vm0 }
 0x66b   : > { %v3882_v58 = vcombine.low %v2077_v46, %v2085_v43  ;;  %v2937_v46 = vld [vmem:[%s4788_s15 + $0x100] sm:$0xff] }
 0x66c   : > { %v2050_v16 = vmul.f32 %v2048_v5, %v2044_v14  ;;  %v3898_v5 = vcombine.low %v2093_v15, %v2101_v17  ;;  %v2069_v14 = vld [vmem:[%s4763_s10 + $0x60] sm:$0xff] }
 0x66d   : > { %v3867_v20 = vcombine.high %v2061_v2, %v2069_v14  ;;  %v2945_v43 = vld [vmem:[%s4788_s15 + $0x140] sm:$0xff] }
 0x66e   : > { %v5428_v12 = vadd.f32 %v2054_v13, %v2050_v16  ;;  %v3885_v13 = vcombine.high %v2078_v35, %v2086_v45  ;;  %v2070_v16 = vld [vmem:[%s4763_s10 + $0x68] sm:$0xff] }
 0x66f   : > { %v3869_v39 = vcombine.high %v2062_v42, %v2070_v16  ;;  %v2938_v35 = vld [vmem:[%s4788_s15 + $0x108] sm:$0xff] }
 0x670   : > { %v5433_v59 = vpack.c.bf16 %v5428_v12, %v5426_v33  ;;  %v2946_v45 = vld [vmem:[%s4788_s15 + $0x148] sm:$0xff] }
 0x672   : > { %3923 = vmatmul.mubr.msk.bf16.vlgmr.msra.gmra.mxu1 %vm5717_vm11, %v5433_v59  ;;  %3925 = vmatmul.mubr.msk.bf16.vlgmr.msra.gmra.mxu0 %vm5718_vm4, %v5433_v59  ;;  %vm5733_vm11 = vmmov %vm5731_vm0 }
 0x673   : > { %2624 = vmatpush1.bf16.msra.mxu1 %v2494_v57  ;;  %2667 = vmatpush1.bf16.msra.mxu0 %v2500_v19  ;;  %v2112_v57 = vld [vmem:[%s4763_s10 + $0x1b8] sm:$0x11]  ;;  %v3866_v19 = vcombine.low %v2061_v2, %v2069_v14  ;;  %v2921_v2 = vld [vmem:[%s4788_s15 + $0x80] sm:$0xff]  ;;  %vm5734_vm4 = vmmov %vm5731_vm0 }
 0x674   : > { %2625 = vmatprep.subr.bf16.mxu1 %v3895_v62  ;;  %2668 = vmatprep.subr.bf16.mxu0 %v3897_v24  ;;  %v3868_v62 = vcombine.low %v2062_v42, %v2070_v16  ;;  %v3919_v24 = vcombine.high %v2111_v0, %v2111_v0  ;;  %v3921_v49 = vcombine.high %v2112_v57, %v2112_v57  ;;  %v2929_v14 = vld [vmem:[%s4788_s15 + $0xc0] sm:$0xff]  ;;  %v2922_v42 = vld [vmem:[%s4788_s15 + $0x88] sm:$0xff] }
 0x675   : > { %2647 = vmatprep.mubr.bf16.mxu1 %v4568_v37  ;;  %2690 = vmatprep.mubr.bf16.mxu0 %v4568_v37  ;;  %v3920_v9 = vcombine.low %v2112_v57, %v2112_v57  ;;  %v2930_v16 = vld [vmem:[%s4788_s15 + $0xc8] sm:$0xff]  ;;  %v2905_v57 = vld [vmem:[%s4788_s15] sm:$0xff] }
 0x676   : > { %v3956_v0 = vcombine.low %v2922_v42, %v2930_v16 }
 0x677   : > { %2626 = vmatpush1.bf16.msra.mxu1 %v3894_v36  ;;  %2669 = vmatpush1.bf16.msra.mxu0 %v3896_v3  ;;  %v2103_v36 = vld [vmem:[%s4763_s10 + $0x170] sm:$0xff]  ;;  %v2096_v3 = vld [vmem:[%s4763_s10 + $0x138] sm:$0xff]  ;;  %v2524_v55 = vsel %vm5728_vm6, %v3920_v9, 0 }
 0x678   : > { %2627 = vmatprep.subr.bf16.mxu1 %v3879_v41  ;;  %2670 = vmatprep.subr.bf16.mxu0 %v3881_v40  ;;  %v2104_v41 = vld [vmem:[%s4763_s10 + $0x178] sm:$0xff]  ;;  %v2518_v40 = vsel %vm5727_vm3, %v3918_v34, 0  ;;  %v3903_v44 = vcombine.high %v2095_v8, %v2103_v36 }
 0x679   : > { %v3905_v10 = vcombine.high %v2096_v3, %v2104_v41  ;;  %v3904_v6 = vcombine.low %v2096_v3, %v2104_v41  ;;  %v2956_v3 = vld [vmem:[%s4788_s15 + $0x198] sm:$0x11] }
 0x67b   : > { %2628 = vmatpush1.bf16.msra.mxu1 %v3878_v7  ;;  %2671 = vmatpush1.bf16.msra.mxu0 %v3880_v54  ;;  %v2087_v7 = vld [vmem:[%s4763_s10 + $0xf0] sm:$0xff]  ;;  %v2080_v54 = vld [vmem:[%s4763_s10 + $0xb8] sm:$0xff] }
 0x67c   : > { %2629 = vmatprep.subr.bf16.mxu1 %v3863_v18  ;;  %2672 = vmatprep.subr.bf16.mxu0 %v3865_v52  ;;  %v2088_v18 = vld [vmem:[%s4763_s10 + $0xf8] sm:$0xff]  ;;  %v3902_v52 = vcombine.low %v2095_v8, %v2103_v36  ;;  %v3887_v1 = vcombine.high %v2079_v50, %v2087_v7  ;;  %v3886_v31 = vcombine.low %v2079_v50, %v2087_v7  ;;  %v2955_v36 = vld [vmem:[%s4788_s15 + $0x190] sm:$0x11] }
 0x67d   : > { %v3888_v15 = vcombine.low %v2080_v54, %v2088_v18  ;;  %v3991_v41 = vcombine.high %v2955_v36, %v2955_v36 }
 0x67f   : > { %2630 = vmatpush1.bf16.msra.mxu1 %v3862_v11  ;;  %2673 = vmatpush1.bf16.msra.mxu0 %v3864_v28  ;;  %v3889_v11 = vcombine.high %v2080_v54, %v2088_v18  ;;  %v2063_v28 = vld [vmem:[%s4763_s10 + $0x30] sm:$0xff] }
 0x680   : > { %3930 = vmatprep.subr.msk.bf16.mxu1 %vm5719_vm10, %v3915_v53  ;;  %3932 = vmatprep.subr.msk.bf16.mxu0 %vm5720_vm2, %v3917_v56  ;;  %v2071_v53 = vld [vmem:[%s4763_s10 + $0x70] sm:$0xff]  ;;  %v2064_v56 = vld [vmem:[%s4763_s10 + $0x38] sm:$0xff]  ;;  %vm5735_vm10 = vmmov %vm5731_vm0 }
 0x681   : > { %v3871_v17 = vcombine.high %v2063_v28, %v2071_v53  ;;  %v3873_v29 = vcombine.high %v2064_v56, %v2072_v48  ;;  %vm5736_vm2 = vmmov %vm5731_vm0 }
 0x682   : > { %3927 = vmatmul.mubr.msk.bf16.vlgmr.msra.gmra.mxu1 %vm5723_vm14, %v5433_v59  ;;  %3929 = vmatmul.mubr.msk.bf16.vlgmr.msra.gmra.mxu0 %vm5724_vm15, %v5433_v59 }
 0x683   : > { %2710 = vmatpush1.bf16.msra.mxu1 %v2506_v60  ;;  %2753 = vmatpush1.bf16.msra.mxu0 %v2512_v30  ;;  %v2954_v60 = vld [vmem:[%s4788_s15 + $0x188] sm:$0x11]  ;;  %v3870_v30 = vcombine.low %v2063_v28, %v2071_v53 }
 0x684   : > { %2711 = vmatprep.subr.bf16.mxu1 %v3899_v61  ;;  %2754 = vmatprep.subr.bf16.mxu0 %v3901_v63  ;;  %v3872_v61 = vcombine.low %v2064_v56, %v2072_v48  ;;  %v3989_v63 = vcombine.high %v2954_v60, %v2954_v60 }
 0x685   : > { %2733 = vmatprep.mubr.bf16.mxu1 %v4568_v37  ;;  %2776 = vmatprep.mubr.bf16.mxu0 %v4568_v37 }
 0x687   : > { %2712 = vmatpush1.bf16.msra.mxu1 %v3898_v5  ;;  %2755 = vmatpush1.bf16.msra.mxu0 %v3900_v47  ;;  %v3986_v5 = vcombine.low %v2953_v32, %v2953_v32  ;;  %v3988_v47 = vcombine.low %v2954_v60, %v2954_v60 }
 0x688   : > { %2713 = vmatprep.subr.bf16.mxu1 %v3883_v51  ;;  %2756 = vmatprep.subr.bf16.mxu0 %v3885_v13  ;;  %v3971_v51 = vcombine.high %v2937_v46, %v2945_v43  ;;  %v3973_v13 = vcombine.high %v2938_v35, %v2946_v45 }
 0x68b   : > { %2714 = vmatpush1.bf16.msra.mxu1 %v3882_v58  ;;  %2757 = vmatpush1.bf16.msra.mxu0 %v3884_v21  ;;  %v3970_v58 = vcombine.low %v2937_v46, %v2945_v43  ;;  %v3972_v21 = vcombine.low %v2938_v35, %v2946_v45 }
 0x68c   : > { %2715 = vmatprep.subr.bf16.mxu1 %v3867_v20  ;;  %2758 = vmatprep.subr.bf16.mxu0 %v3869_v39  ;;  %v3955_v20 = vcombine.high %v2921_v2, %v2929_v14  ;;  %v3957_v39 = vcombine.high %v2922_v42, %v2930_v16  ;;  %v3990_v42 = vcombine.low %v2955_v36, %v2955_v36 }
 0x68d   : > { %v3992_v16 = vcombine.low %v2956_v3, %v2956_v3 }
 0x68f   : > { %2716 = vmatpush1.bf16.msra.mxu1 %v3866_v19  ;;  %2759 = vmatpush1.bf16.msra.mxu0 %v3868_v62  ;;  %v2913_v19 = vld [vmem:[%s4788_s15 + $0x40] sm:$0xff]  ;;  %v2906_v62 = vld [vmem:[%s4788_s15 + $0x8] sm:$0xff] }
 0x690   : > { %3934 = vmatprep.subr.msk.bf16.mxu1 %vm5725_vm12, %v3919_v24  ;;  %3936 = vmatprep.subr.msk.bf16.mxu0 %vm5726_vm1, %v3921_v49  ;;  %v3939_v24 = vcombine.high %v2905_v57, %v2913_v19  ;;  %v2914_v49 = vld [vmem:[%s4788_s15 + $0x48] sm:$0xff]  ;;  %v3938_v34 = vcombine.low %v2905_v57, %v2913_v19  ;;  %v2923_v19 = vld [vmem:[%s4788_s15 + $0x90] sm:$0xff] }
 0x691   : > { %v3940_v9 = vcombine.low %v2906_v62, %v2914_v49  ;;  %v3941_v8 = vcombine.high %v2906_v62, %v2914_v49  ;;  %v2931_v49 = vld [vmem:[%s4788_s15 + $0xd0] sm:$0xff] }
 0x692   : > { %3931 = vmatmul.mubr.msk.bf16.vlgmr.msra.gmra.mxu1 %vm5729_vm7, %v5433_v59  ;;  %3933 = vmatmul.mubr.msk.bf16.vlgmr.msra.gmra.mxu0 %vm5730_vm13, %v5433_v59 }
 0x693   : > { %2796 = vmatpush1.bf16.msra.mxu1 %v2518_v40  ;;  %2839 = vmatpush1.bf16.msra.mxu0 %v2524_v55  ;;  %v3993_v40 = vcombine.high %v2956_v3, %v2956_v3  ;;  %v5519_v55 = vld [vmem:[%s4770_s21] sm:$0xff] }
 0x694   : > { %2797 = vmatprep.subr.bf16.mxu1 %v3903_v44  ;;  %2840 = vmatprep.subr.bf16.mxu0 %v3905_v10  ;;  %v2125_v50 = vrot.slane %v5519_v55, %v4854_v23  ;;  %v2133_v7 = vrot.slane %v5519_v55, %v5361_v25  ;;  %v2121_v54 = vrot.slane %v5519_v55, %v4860_v26 }
 0x695   : > { %2819 = vmatprep.mubr.bf16.mxu1 %v4568_v37  ;;  %2862 = vmatprep.mubr.bf16.mxu0 %v4568_v37  ;;  %v3987_v37 = vcombine.high %v2953_v32, %v2953_v32  ;;  %v2129_v18 = vrot.slane %v5519_v55, %v5041_v27  ;;  %v2141_v62 = vrot.slane %v5519_v55, %v5411_v4 }
 0x697   : > { %2798 = vmatpush1.bf16.msra.mxu1 %v3902_v52  ;;  %2841 = vmatpush1.bf16.msra.mxu0 %v3904_v6 }
 0x698   : > { %2799 = vmatprep.subr.bf16.mxu1 %v3887_v1  ;;  %2842 = vmatprep.subr.bf16.mxu0 %v3889_v11 }
 0x69b   : > { %2800 = vmatpush1.bf16.msra.mxu1 %v3886_v31  ;;  %2843 = vmatpush1.bf16.msra.mxu0 %v3888_v15 }
 0x69c   : > { %2801 = vmatprep.subr.bf16.mxu1 %v3871_v17  ;;  %2844 = vmatprep.subr.bf16.mxu0 %v3873_v29 }
 0x69f   : > { %2802 = vmatpush1.bf16.msra.mxu1 %v3870_v30  ;;  %2845 = vmatpush1.bf16.msra.mxu0 %v3872_v61 }
 0x6a0   : > { %3285 = vmatprep.subr.bf16.mxu1 %v3987_v37  ;;  %3326 = vmatprep.subr.bf16.mxu0 %v3989_v63  ;;  %v2939_v37 = vld [vmem:[%s4788_s15 + $0x110] sm:$0xff] }
 0x6a1   : > { %v2947_v63 = vld [vmem:[%s4788_s15 + $0x150] sm:$0xff] }
 0x6a2   : > { %3935 = vmatmul.mubr.msk.bf16.vlgmr.msra.gmra.mxu1 %vm5731_vm0, %v5433_v59  ;;  %3937 = vmatmul.mubr.msk.bf16.vlgmr.msra.gmra.mxu0 %vm5732_vm8, %v5433_v59  ;;  %v3954_v59 = vcombine.low %v2921_v2, %v2929_v14  ;;  %v3974_v3 = vcombine.low %v2939_v37, %v2947_v63 }
 0x6a3   : > { %3286 = vmatpush1.bf16.xpose.msra.mxu1 %v3986_v5  ;;  %3327 = vmatpush1.bf16.xpose.msra.mxu0 %v3988_v47  ;;  %v2940_v5 = vld [vmem:[%s4788_s15 + $0x118] sm:$0xff] }
 0x6a4   : > { %3287 = vmatprep.subr.bf16.mxu1 %v3971_v51  ;;  %3328 = vmatprep.subr.bf16.mxu0 %v3973_v13  ;;  %v2948_v47 = vld [vmem:[%s4788_s15 + $0x158] sm:$0xff] }
 0x6ab   : > { %3288 = vmatpush1.bf16.xpose.msra.mxu1 %v3970_v58  ;;  %3329 = vmatpush1.bf16.xpose.msra.mxu0 %v3972_v21 }
 0x6ac   : > { %3289 = vmatprep.subr.bf16.mxu1 %v3955_v20  ;;  %3330 = vmatprep.subr.bf16.mxu0 %v3957_v39  ;;  %v3975_v20 = vcombine.high %v2939_v37, %v2947_v63  ;;  %v3977_v39 = vcombine.high %v2940_v5, %v2948_v47  ;;  %v5553_v63 = vsub.s32 4, %v4851_v22 }
 0x6b3   : > { %3290 = vmatpush1.bf16.xpose.msra.mxu1 %v3954_v59  ;;  %3331 = vmatpush1.bf16.xpose.msra.mxu0 %v3956_v0  ;;  %v5534_v59 = vsub.s32 7, %v4851_v22 }
 0x6b4   : > { %3291 = vmatprep.subr.bf16.mxu1 %v3939_v24  ;;  %3332 = vmatprep.subr.bf16.mxu0 %v3941_v8 }
 0x6b5   : > { %v2149_v24 = vrot.slane %v5519_v55, %v5534_v59 }
 0x6bb   : > { %3292 = vmatpush1.bf16.xpose.msra.mxu1 %v3938_v34  ;;  %3333 = vmatpush1.bf16.xpose.msra.mxu0 %v3940_v9  ;;  %v2924_v34 = vld [vmem:[%s4788_s15 + $0x98] sm:$0xff] }
 0x6bc   : > { %3367 = vmatprep.subr.bf16.mxu1 %v3991_v41  ;;  %3408 = vmatprep.subr.bf16.mxu0 %v3993_v40  ;;  %v2932_v9 = vld [vmem:[%s4788_s15 + $0xd8] sm:$0xff]  ;;  %v3976_v41 = vcombine.low %v2940_v5, %v2948_v47  ;;  %v2137_v5 = vrot.slane %v5519_v55, %v5553_v63  ;;  %v2145_v47 = vrot.slane %v5519_v55, %v5416_v38 }
 0x732   : > { %v2563_v44 = vpop.f32.mrf.mxu1  ;;  %v2606_v10 = vpop.f32.mrf.mxu0 }
 0x733   : > { %v2564_v31 = vadd.f32 %v2563_v44, %v2121_v54  ;;  %v2607_v15 = vadd.f32 %v2606_v10, %v2129_v18  ;;  %v3959_v10 = vcombine.high %v2923_v19, %v2931_v49 }
 0x734   : > { %v2565_v52 = vpop.f32.mrf.mxu1  ;;  %v2608_v6 = vpop.f32.mrf.mxu0 }
 0x735   : > { %v2566_v28 = vadd.f32 %v2565_v52, %v2125_v50  ;;  %v2609_v53 = vadd.f32 %v2608_v6, %v2133_v7  ;;  %v2873_v51 = vmax.f32 %v2564_v31, 0.0  ;;  %v2875_v13 = vmax.f32 %v2607_v15, 0.0  ;;  %v2908_v15 = vld [vmem:[%s4788_s15 + $0x18] sm:$0xff] }
 0x736   : > { %v2567_v1 = vpop.f32.mrf.mxu1  ;;  %v2610_v11 = vpop.f32.mrf.mxu0 }
 0x737   : > { %v2568_v56 = vadd.f32 %v2567_v1, %v2121_v54  ;;  %v2611_v48 = vadd.f32 %v2610_v11, %v2129_v18  ;;  %v2874_v46 = vmax.f32 %v2566_v28, 0.0  ;;  %v2876_v43 = vmax.f32 %v2609_v53, 0.0  ;;  %v2907_v11 = vld [vmem:[%s4788_s15 + $0x10] sm:$0xff] }
 0x738   : > { %v2569_v17 = vpop.f32.mrf.mxu1  ;;  %v2612_v29 = vpop.f32.mrf.mxu0  ;;  %v2915_v28 = vld [vmem:[%s4788_s15 + $0x50] sm:$0xff] }
 0x739   : > { %v2570_v32 = vadd.f32 %v2569_v17, %v2125_v50  ;;  %v2613_v60 = vadd.f32 %v2612_v29, %v2133_v7  ;;  %v2889_v30 = vmax.f32 %v2568_v56, 0.0  ;;  %v2891_v61 = vmax.f32 %v2611_v48, 0.0  ;;  %v2916_v17 = vld [vmem:[%s4788_s15 + $0x58] sm:$0xff] }
 0x73a   : > { %v3961_v50 = vcombine.high %v2924_v34, %v2932_v9  ;;  %v3945_v37 = vcombine.high %v2908_v15, %v2916_v17 }
 0x73b   : > { %v2890_v35 = vmax.f32 %v2570_v32, 0.0  ;;  %v2892_v45 = vmax.f32 %v2613_v60, 0.0  ;;  %v2961_v58 = vpack.c.bf16 %v2889_v30, %v2873_v51  ;;  %v2963_v21 = vpack.c.bf16 %v2891_v61, %v2875_v13  ;;  %v5566_v51 = vld [vmem:[%s4770_s21 + $0x8] sm:$0xff] }
 0x73c   : > { %v3958_v60 = vcombine.low %v2923_v19, %v2931_v49  ;;  %v3960_v30 = vcombine.low %v2924_v34, %v2932_v9  ;;  %v3943_v61 = vcombine.high %v2907_v11, %v2915_v28 }
 0x73d   : > { %v2962_v2 = vpack.c.bf16 %v2890_v35, %v2874_v46  ;;  %v2964_v14 = vpack.c.bf16 %v2892_v45, %v2876_v43  ;;  %v2957_v35 = vld [vmem:[%s4788_s15 + $0x1a0] sm:$0x11]  ;;  %v2958_v45 = vld [vmem:[%s4788_s15 + $0x1a8] sm:$0x11] }
 0x73e   : > { %v3995_v19 = vcombine.high %v2957_v35, %v2957_v35  ;;  %v3997_v55 = vcombine.high %v2958_v45, %v2958_v45 }
 0x73f   : > { %3309 = vmatprep.mubr.bf16.mxu1 %v2962_v2  ;;  %3350 = vmatprep.mubr.bf16.mxu0 %v2964_v14  ;;  %v2157_v2 = vrot.slane %v5566_v51, %v4854_v23  ;;  %v2165_v14 = vrot.slane %v5566_v51, %v5361_v25 }
 0x740   : > { %3310 = vmatmul.mubr.bf16.vlgmr.msra.gmra.mxu1 %v2961_v58  ;;  %3351 = vmatmul.mubr.bf16.vlgmr.msra.gmra.mxu0 %v2963_v21 }
 0x741   : > { %3368 = vmatpush1.bf16.xpose.msra.mxu1 %v3990_v42  ;;  %3409 = vmatpush1.bf16.xpose.msra.mxu0 %v3992_v16  ;;  %v3942_v42 = vcombine.low %v2907_v11, %v2915_v28  ;;  %v3944_v16 = vcombine.low %v2908_v15, %v2916_v17  ;;  %v3996_v11 = vcombine.low %v2958_v45, %v2958_v45  ;;  %v2933_v15 = vld [vmem:[%s4788_s15 + $0xe0] sm:$0xff]  ;;  %v2926_v17 = vld [vmem:[%s4788_s15 + $0xa8] sm:$0xff] }
 0x742   : > { %v5536_v0 = vpop.f32.mrf.mxu1  ;;  %v5538_v57 = vpop.f32.mrf.mxu0  ;;  %3369 = vmatprep.subr.bf16.mxu1 %v3975_v20  ;;  %3410 = vmatprep.subr.bf16.mxu0 %v3977_v39  ;;  %v2909_v45 = vld [vmem:[%s4788_s15 + $0x20] sm:$0xff] }
 0x744   : > { %v2651_v8 = vpop.f32.mrf.mxu1  ;;  %v2694_v36 = vpop.f32.mrf.mxu0 }
 0x745   : > { %v2652_v7 = vadd.f32 %v2651_v8, %v2141_v62  ;;  %v2695_v54 = vadd.f32 %v2694_v36, %v2149_v24 }
 0x746   : > { %v2653_v40 = vpop.f32.mrf.mxu1  ;;  %v2696_v44 = vpop.f32.mrf.mxu0 }
 0x747   : > { %v2878_v53 = vmax.f32 %v2652_v7, 0.0  ;;  %v2880_v56 = vmax.f32 %v2695_v54, 0.0  ;;  %v2654_v58 = vadd.f32 %v2653_v40, %v2137_v5  ;;  %v2697_v21 = vadd.f32 %v2696_v44, %v2145_v47  ;;  %v2941_v40 = vld [vmem:[%s4788_s15 + $0x120] sm:$0xff]  ;;  %v2950_v7 = vld [vmem:[%s4788_s15 + $0x168] sm:$0xff] }
 0x748   : > { %v2655_v18 = vpop.f32.mrf.mxu1  ;;  %v2698_v52 = vpop.f32.mrf.mxu0 }
 0x749   : > { %v2656_v6 = vadd.f32 %v2655_v18, %v2141_v62  ;;  %v2699_v1 = vadd.f32 %v2698_v52, %v2149_v24  ;;  %3370 = vmatpush1.bf16.xpose.msra.mxu1 %v3974_v3  ;;  %3411 = vmatpush1.bf16.xpose.msra.mxu0 %v3976_v41  ;;  %v2650_v62 = vadd.f32 %v5536_v0, %v2137_v5  ;;  %v2893_v8 = vmax.f32 %v2654_v58, 0.0  ;;  %v2917_v5 = vld [vmem:[%s4788_s15 + $0x60] sm:$0xff] }
 0x74a   : > { %3371 = vmatprep.subr.bf16.mxu1 %v3959_v10  ;;  %3412 = vmatprep.subr.bf16.mxu0 %v3961_v50  ;;  %v2693_v24 = vadd.f32 %v5538_v57, %v2145_v47  ;;  %v2895_v36 = vmax.f32 %v2697_v21, 0.0  ;;  %v2949_v10 = vld [vmem:[%s4788_s15 + $0x160] sm:$0xff]  ;;  %v2942_v50 = vld [vmem:[%s4788_s15 + $0x128] sm:$0xff]  ;;  %v3994_v18 = vcombine.low %v2957_v35, %v2957_v35 }
 0x74b   : > { %v2894_v48 = vmax.f32 %v2656_v6, 0.0  ;;  %v2896_v31 = vmax.f32 %v2699_v1, 0.0  ;;  %v2877_v0 = vmax.f32 %v2650_v62, 0.0  ;;  %v2910_v47 = vld [vmem:[%s4788_s15 + $0x28] sm:$0xff]  ;;  %v2153_v62 = vrot.slane %v5566_v51, %v4860_v26 }
 0x74c   : > { %v2879_v44 = vmax.f32 %v2693_v24, 0.0  ;;  %v2960_v24 = vld [vmem:[%s4788_s15 + $0x1b8] sm:$0x11] }
 0x74d   : > { %v2966_v29 = vpack.c.bf16 %v2894_v48, %v2878_v53  ;;  %v2968_v32 = vpack.c.bf16 %v2896_v31, %v2880_v56  ;;  %v2965_v52 = vpack.c.bf16 %v2893_v8, %v2877_v0  ;;  %v3979_v53 = vcombine.high %v2941_v40, %v2949_v10  ;;  %v2925_v31 = vld [vmem:[%s4788_s15 + $0xa0] sm:$0xff] }
 0x74e   : > { %v2967_v6 = vpack.c.bf16 %v2895_v36, %v2879_v44  ;;  %v3981_v56 = vcombine.high %v2942_v50, %v2950_v7  ;;  %v4001_v26 = vcombine.high %v2960_v24, %v2960_v24 }
 0x74f   : > { %3391 = vmatprep.mubr.bf16.mxu1 %v2966_v29  ;;  %3432 = vmatprep.mubr.bf16.mxu0 %v2968_v32  ;;  %v2934_v29 = vld [vmem:[%s4788_s15 + $0xe8] sm:$0xff]  ;;  %v3978_v32 = vcombine.low %v2941_v40, %v2949_v10  ;;  %v2181_v40 = vrot.slane %v5566_v51, %v5534_v59 }
 0x751   : > { %3372 = vmatpush1.bf16.xpose.msra.mxu1 %v3958_v60  ;;  %3413 = vmatpush1.bf16.xpose.msra.mxu0 %v3960_v30  ;;  %v3980_v60 = vcombine.low %v2942_v50, %v2950_v7  ;;  %v3963_v30 = vcombine.high %v2925_v31, %v2933_v15 }
 0x752   : > { %v5555_v46 = vpop.f32.mrf.mxu1  ;;  %v5557_v43 = vpop.f32.mrf.mxu0  ;;  %3373 = vmatprep.subr.bf16.mxu1 %v3943_v61  ;;  %3414 = vmatprep.subr.bf16.mxu0 %v3945_v37  ;;  %v3965_v61 = vcombine.high %v2926_v17, %v2934_v29 }
 0x754   : > { %v2737_v22 = vpop.f32.mrf.mxu1  ;;  %v2780_v13 = vpop.f32.mrf.mxu0 }
 0x755   : > { %v2738_v34 = vadd.f32 %v2737_v22, %v2157_v2  ;;  %v2781_v3 = vadd.f32 %v2780_v13, %v2165_v14  ;;  %v2918_v22 = vld [vmem:[%s4788_s15 + $0x68] sm:$0xff] }
 0x756   : > { %v5572_v20 = vpop.f32.mrf.mxu1  ;;  %v5574_v39 = vpop.f32.mrf.mxu0  ;;  %v3949_v58 = vcombine.high %v2910_v47, %v2918_v22  ;;  %v3948_v36 = vcombine.low %v2910_v47, %v2918_v22 }
 0x757   : > { %v2882_v54 = vmax.f32 %v2738_v34, 0.0  ;;  %v2884_v1 = vmax.f32 %v2781_v3, 0.0  ;;  %v3946_v34 = vcombine.low %v2909_v45, %v2917_v5 }
 0x758   : > { %v2741_v49 = vpop.f32.mrf.mxu1  ;;  %v2784_v23 = vpop.f32.mrf.mxu0 }
 0x759   : > { %v2742_v25 = vadd.f32 %v2741_v49, %v2157_v2  ;;  %v2785_v9 = vadd.f32 %v2784_v23, %v2165_v14  ;;  %3374 = vmatpush1.bf16.xpose.msra.mxu1 %v3942_v42  ;;  %3415 = vmatpush1.bf16.xpose.msra.mxu0 %v3944_v16  ;;  %v3962_v2 = vcombine.low %v2925_v31, %v2933_v15 }
 0x75a   : > { %3449 = vmatprep.subr.bf16.mxu1 %v3995_v19  ;;  %3490 = vmatprep.subr.bf16.mxu0 %v3997_v55  ;;  %v3964_v42 = vcombine.low %v2926_v17, %v2934_v29  ;;  %v3947_v16 = vcombine.high %v2909_v45, %v2917_v5  ;;  %v2959_v55 = vld [vmem:[%s4788_s15 + $0x1b0] sm:$0x11]  ;;  %v2161_v49 = vrot.slane %v5566_v51, %v5041_v27 }
 0x75b   : > { %v2898_v41 = vmax.f32 %v2742_v25, 0.0  ;;  %v2900_v57 = vmax.f32 %v2785_v9, 0.0  ;;  %v2740_v25 = vadd.f32 %v5572_v20, %v2153_v62  ;;  %v2173_v9 = vrot.slane %v5566_v51, %v5411_v4 }
 0x75c   : > { %v3999_v3 = vcombine.high %v2959_v55, %v2959_v55  ;;  %v2736_v27 = vadd.f32 %v5555_v46, %v2153_v62  ;;  %v2779_v44 = vadd.f32 %v5557_v43, %v2161_v49  ;;  %v2952_v43 = vld [vmem:[%s4788_s15 + $0x178] sm:$0xff] }
 0x75d   : > { %v2970_v28 = vpack.c.bf16 %v2898_v41, %v2882_v54  ;;  %v2972_v48 = vpack.c.bf16 %v2900_v57, %v2884_v1  ;;  %v2783_v41 = vadd.f32 %v5574_v39, %v2161_v49  ;;  %v2897_v4 = vmax.f32 %v2740_v25, 0.0  ;;  %v2943_v54 = vld [vmem:[%s4788_s15 + $0x130] sm:$0xff]  ;;  %v2944_v1 = vld [vmem:[%s4788_s15 + $0x138] sm:$0xff] }
 0x75e   : > { %v2881_v50 = vmax.f32 %v2736_v27, 0.0  ;;  %v3985_v17 = vcombine.high %v2944_v1, %v2952_v43  ;;  %v3984_v5 = vcombine.low %v2944_v1, %v2952_v43  ;;  %v2177_v49 = vrot.slane %v5566_v51, %v5416_v38  ;;  %v5633_v38 = vld [vmem:[%s4781_s17] sm:$0xff] }
 0x75f   : > { %v2899_v39 = vmax.f32 %v2783_v41, 0.0 }
 0x760   : > { %3392 = vmatmul.mubr.bf16.vlgmr.msra.gmra.mxu1 %v2965_v52  ;;  %3433 = vmatmul.mubr.bf16.vlgmr.msra.gmra.mxu0 %v2967_v6  ;;  %v2883_v52 = vmax.f32 %v2779_v44, 0.0  ;;  %v3998_v6 = vcombine.low %v2959_v55, %v2959_v55 }
 0x761   : > { %3450 = vmatpush1.bf16.xpose.msra.mxu1 %v3994_v18  ;;  %3473 = vmatprep.mubr.bf16.mxu1 %v2970_v28  ;;  %v2951_v18 = vld [vmem:[%s4788_s15 + $0x170] sm:$0xff] }
 0x762   : > { %3491 = vmatpush1.bf16.xpose.msra.mxu0 %v3996_v11  ;;  %3514 = vmatprep.mubr.bf16.mxu0 %v2972_v48  ;;  %v5586_v37 = vpop.f32.mrf.mxu1  ;;  %v5588_v35 = vpop.f32.mrf.mxu0  ;;  %v2969_v11 = vpack.c.bf16 %v2897_v4, %v2881_v50  ;;  %v3983_v31 = vcombine.high %v2943_v54, %v2951_v18  ;;  %v3982_v45 = vcombine.low %v2943_v54, %v2951_v18 }
 0x763   : > { %3451 = vmatprep.subr.bf16.mxu1 %v3979_v53  ;;  %3492 = vmatprep.subr.bf16.mxu0 %v3981_v56  ;;  %v4000_v53 = vcombine.low %v2960_v24, %v2960_v24  ;;  %v2971_v56 = vpack.c.bf16 %v2899_v39, %v2883_v52  ;;  %v2169_v24 = vrot.slane %v5566_v51, %v5553_v63 }
 0x764   : > { %v2823_v13 = vpop.f32.mrf.mxu1  ;;  %v2866_v14 = vpop.f32.mrf.mxu0  ;;  %v2980_v51 = vrot.slane %v5633_v38, %v5553_v63 }
 0x765   : > { %v2824_v57 = vadd.f32 %v2823_v13, %v2173_v9  ;;  %v2867_v10 = vadd.f32 %v2866_v14, %v2181_v40  ;;  %v2911_v13 = vld [vmem:[%s4788_s15 + $0x30] sm:$0xff]  ;;  %v2912_v14 = vld [vmem:[%s4788_s15 + $0x38] sm:$0xff] }
 0x766   : > { %v5594_v21 = vpop.f32.mrf.mxu1  ;;  %v5596_v19 = vpop.f32.mrf.mxu0 }
 0x767   : > { %v2886_v28 = vmax.f32 %v2824_v57, 0.0  ;;  %v2888_v48 = vmax.f32 %v2867_v10, 0.0 }
 0x768   : > { %v2827_v23 = vpop.f32.mrf.mxu1  ;;  %v2870_v8 = vpop.f32.mrf.mxu0 }
 0x769   : > { %3452 = vmatpush1.bf16.xpose.msra.mxu1 %v3978_v32  ;;  %v2828_v0 = vadd.f32 %v2827_v23, %v2173_v9  ;;  %v2871_v20 = vadd.f32 %v2870_v8, %v2181_v40  ;;  %v2927_v32 = vld [vmem:[%s4788_s15 + $0xb0] sm:$0xff]  ;;  %v2869_v9 = vadd.f32 %v5596_v19, %v2177_v49  ;;  %v2822_v8 = vadd.f32 %v5586_v37, %v2169_v24 }
 0x76a   : > { %3493 = vmatpush1.bf16.xpose.msra.mxu0 %v3980_v60  ;;  %3453 = vmatprep.subr.bf16.mxu1 %v3963_v30  ;;  %v2935_v60 = vld [vmem:[%s4788_s15 + $0xf0] sm:$0xff]  ;;  %v2928_v30 = vld [vmem:[%s4788_s15 + $0xb8] sm:$0xff] }
 0x76b   : > { %3494 = vmatprep.subr.bf16.mxu0 %v3965_v61  ;;  %v2902_v7 = vmax.f32 %v2828_v0, 0.0  ;;  %v2904_v46 = vmax.f32 %v2871_v20, 0.0  ;;  %v2936_v61 = vld [vmem:[%s4788_s15 + $0xf8] sm:$0xff]  ;;  %v3967_v47 = vcombine.high %v2927_v32, %v2935_v60  ;;  %v2903_v41 = vmax.f32 %v2869_v9, 0.0 }
 0x76c   : > { %v3969_v22 = vcombine.high %v2928_v30, %v2936_v61  ;;  %v2885_v40 = vmax.f32 %v2822_v8, 0.0 }
 0x76d   : > { %v2974_v15 = vpack.c.bf16 %v2902_v7, %v2886_v28  ;;  %v2976_v29 = vpack.c.bf16 %v2904_v46, %v2888_v48 }
 0x771   : > { %3454 = vmatpush1.bf16.xpose.msra.mxu1 %v3962_v2  ;;  %v2919_v2 = vld [vmem:[%s4788_s15 + $0x70] sm:$0xff] }
 0x772   : > { %3495 = vmatpush1.bf16.xpose.msra.mxu0 %v3964_v42  ;;  %3455 = vmatprep.subr.bf16.mxu1 %v3947_v16  ;;  %v2920_v42 = vld [vmem:[%s4788_s15 + $0x78] sm:$0xff]  ;;  %v3966_v16 = vcombine.low %v2927_v32, %v2935_v60  ;;  %v3951_v55 = vcombine.high %v2911_v13, %v2919_v2  ;;  %v3950_v23 = vcombine.low %v2911_v13, %v2919_v2 }
 0x773   : > { %3496 = vmatprep.subr.bf16.mxu0 %v3949_v58  ;;  %v3968_v58 = vcombine.low %v2928_v30, %v2936_v61  ;;  %v3953_v62 = vcombine.high %v2912_v14, %v2920_v42  ;;  %v3952_v25 = vcombine.low %v2912_v14, %v2920_v42 }
 0x779   : > { %3456 = vmatpush1.bf16.xpose.msra.mxu1 %v3946_v34  ;;  %v2826_v34 = vadd.f32 %v5594_v21, %v2169_v24 }
 0x77a   : > { %3497 = vmatpush1.bf16.xpose.msra.mxu0 %v3948_v36  ;;  %3531 = vmatprep.subr.bf16.mxu1 %v3999_v3  ;;  %v2865_v36 = vadd.f32 %v5588_v35, %v2177_v49 }
 0x77b   : > { %3572 = vmatprep.subr.bf16.mxu0 %v4001_v26  ;;  %v2901_v3 = vmax.f32 %v2826_v34, 0.0 }
 0x77c   : > { %v2887_v26 = vmax.f32 %v2865_v36, 0.0 }
 0x77d   : > { %v2973_v27 = vpack.c.bf16 %v2901_v3, %v2885_v40 }
 0x77e   : > { %v2975_v0 = vpack.c.bf16 %v2903_v41, %v2887_v26 }
 0x780   : > { %3474 = vmatmul.mubr.bf16.vlgmr.msra.gmra.mxu1 %v2969_v11 }
 0x781   : > { %3515 = vmatmul.mubr.bf16.vlgmr.msra.gmra.mxu0 %v2971_v56  ;;  %3532 = vmatpush1.bf16.xpose.msra.mxu1 %v3998_v6 }
 0x782   : > { %3555 = vmatprep.mubr.bf16.mxu1 %v2974_v15  ;;  %3573 = vmatpush1.bf16.xpose.msra.mxu0 %v4000_v53 }
 0x783   : > { %3596 = vmatprep.mubr.bf16.mxu0 %v2976_v29  ;;  %3533 = vmatprep.subr.bf16.mxu1 %v3983_v31 }
 0x784   : > { %3574 = vmatprep.subr.bf16.mxu0 %v3985_v17 }
 0x789   : > { %3534 = vmatpush1.bf16.xpose.msra.mxu1 %v3982_v45 }
 0x78a   : > { %3575 = vmatpush1.bf16.xpose.msra.mxu0 %v3984_v5  ;;  %3535 = vmatprep.subr.bf16.mxu1 %v3967_v47 }
 0x78b   : > { %3576 = vmatprep.subr.bf16.mxu0 %v3969_v22 }
 0x791   : > { %3536 = vmatpush1.bf16.xpose.msra.mxu1 %v3966_v16 }
 0x792   : > { %3577 = vmatpush1.bf16.xpose.msra.mxu0 %v3968_v58  ;;  %3537 = vmatprep.subr.bf16.mxu1 %v3951_v55 }
 0x793   : > { %3578 = vmatprep.subr.bf16.mxu0 %v3953_v62 }
 0x799   : > { %3538 = vmatpush1.bf16.xpose.msra.mxu1 %v3950_v23 }
 0x79a   : > { %3579 = vmatpush1.bf16.xpose.msra.mxu0 %v3952_v25 }
 0x7a0   : > { %3556 = vmatmul.mubr.bf16.vlgmr.msra.gmra.mxu1 %v2973_v27 }
 0x7a1   : > { %3597 = vmatmul.mubr.bf16.vlgmr.msra.gmra.mxu0 %v2975_v0 }
 0x800   : > { %v3311_v21 = vpop.f32.mrf.mxu1  ;;  %v3352_v19 = vpop.f32.mrf.mxu0 }
 0x801   : > { %v3312_v37 = vadd.f32 %v3311_v21, %v2980_v51 }
 0x802   : > { %v3313_v44 = vpop.f32.mrf.mxu1  ;;  %v3354_v35 = vpop.f32.mrf.mxu0 }
 0x803   : > { %v3353_v20 = vadd.f32 %v3352_v19, %v3312_v37 }
 0x804   : > { %v3314_v4 = vpop.f32.mrf.mxu1  ;;  %v3355_v57 = vpop.f32.mrf.mxu0 }
 0x805   : > { %v3315_v39 = vadd.f32 %v3314_v4, %v2980_v51  ;;  %v3636_v4 = vrot.slane %v5633_v38, %v5534_v59 }
 0x806   : > { %v3316_v10 = vpop.f32.mrf.mxu1  ;;  %v3357_v50 = vpop.f32.mrf.mxu0 }
 0x807   : > { %v3356_v7 = vadd.f32 %v3355_v57, %v3315_v39  ;;  %v4002_v10 = vld [vmem:[%s4781_s17 + $0x8] ss:$0 sm:$0xff] }
 0x820   : > { %v3393_v54 = vpop.f32.mrf.mxu1  ;;  %v3434_v18 = vpop.f32.mrf.mxu0 }
 0x821   : > { %v3394_v29 = vadd.f32 %v3393_v54, %v3353_v20 }
 0x822   : > { %v3395_v52 = vpop.f32.mrf.mxu1  ;;  %v3436_v46 = vpop.f32.mrf.mxu0 }
 0x823   : > { %v3435_v32 = vadd.f32 %v3434_v18, %v3394_v29 }
 0x824   : > { %v3396_v6 = vpop.f32.mrf.mxu1  ;;  %v3437_v1 = vpop.f32.mrf.mxu0 }
 0x825   : > { %v3397_v60 = vadd.f32 %v3396_v6, %v3356_v7 }
 0x826   : > { %v3398_v43 = vpop.f32.mrf.mxu1  ;;  %v3439_v63 = vpop.f32.mrf.mxu0 }
 0x827   : > { %v3438_v61 = vadd.f32 %v3437_v1, %v3397_v60 }
 0x840   : > { %v3475_v11 = vpop.f32.mrf.mxu1 }
 0x841   : > { %v3516_v28 = vpop.f32.mrf.mxu0  ;;  %v3476_v30 = vadd.f32 %v3475_v11, %v3435_v32 }
 0x842   : > { %v3477_v53 = vpop.f32.mrf.mxu1 }
 0x843   : > { %v3518_v56 = vpop.f32.mrf.mxu0  ;;  %v3517_v45 = vadd.f32 %v3516_v28, %v3476_v30 }
 0x844   : > { %v3478_v48 = vpop.f32.mrf.mxu1 }
 0x845   : > { %v3519_v31 = vpop.f32.mrf.mxu0  ;;  %v3479_v5 = vadd.f32 %v3478_v48, %v3438_v61 }
 0x846   : > { %v3480_v15 = vpop.f32.mrf.mxu1 }
 0x847   : > { %v3521_v17 = vpop.f32.mrf.mxu0  ;;  %v3520_v14 = vadd.f32 %v3519_v31, %v3479_v5 }
 0x860   : > { %v3557_v47 = vpop.f32.mrf.mxu1 }
 0x861   : > { %v3558_v22 = vadd.f32 %v3557_v47, %v3517_v45  ;;  %v3598_v13 = vpop.f32.mrf.mxu0 }
 0x862   : > { %v3559_v2 = vpop.f32.mrf.mxu1 }
 0x863   : > { %v3599_v42 = vadd.f32 %v3598_v13, %v3558_v22  ;;  %v3600_v16 = vpop.f32.mrf.mxu0 }
 0x864   : > { %v3560_v58 = vpop.f32.mrf.mxu1 }
 0x865   : > { %v3561_v55 = vadd.f32 %v3560_v58, %v3520_v14  ;;  %v3601_v62 = vpop.f32.mrf.mxu0  ;;  %v3605_v24 = vadd.f32 %v3599_v42, %v5426_v33 }
 0x866   : > { %v3562_v49 = vpop.f32.mrf.mxu1 }
 0x867   : > { %v3602_v23 = vadd.f32 %v3601_v62, %v3561_v55  ;;  %v3603_v34 = vpop.f32.mrf.mxu0  ;;  %v3607_v25 = vsel %vm5733_vm11, %v3605_v24, 0.0 }
 0x868   : > { %3608 = vadd.xlane.f32.xlu0 %v3607_v25 }
 0x869   : > { %v3606_v9 = vadd.f32 %v3602_v23, %v5428_v12 }
 0x86b   : > { %v3610_v8 = vsel %vm5734_vm4, %v3606_v9, 0.0 }
 0x86c   : > { %3611 = vadd.xlane.f32.xlu1 %v3610_v8 }
 0x8f1   : > { %v3609_v36 = vpop.xlane.xlu0 %3608 }
 0x8f2   : > { %v3613_v3 = vmul.f32 0.02, %v3609_v36 }
 0x8f4   : > { %v3615_v41 = vsub.f32 %v3605_v24, %v3613_v3 }
 0x8f5   : > { %v3612_v40 = vpop.xlane.xlu1 %3611 }
 0x8f6   : > { %v3614_v26 = vmul.f32 0.02, %v3612_v40  ;;  %v3617_v27 = vmul.f32 %v3615_v41, %v3615_v41 }
 0x8f8   : > { %v3616_v0 = vsub.f32 %v3606_v9, %v3614_v26  ;;  %v3619_v33 = vsel %vm5735_vm10, %v3617_v27, 0.0 }
 0x8f9   : > { %3620 = vadd.xlane.f32.xlu0 %v3619_v33 }
 0x8fa   : > { %v3618_v51 = vmul.f32 %v3616_v0, %v3616_v0 }
 0x8fc   : > { %v3622_v21 = vsel %vm5736_vm2, %v3618_v51, 0.0 }
 0x8fd   : > { %3623 = vadd.xlane.f32.xlu1 %v3622_v21 }
 0x982   : > { %v3621_v19 = vpop.xlane.xlu0 %3620 }
 0x983   : > { %v3625_v12 = vmul.f32 0.02, %v3621_v19 }
 0x985   : > { %v3627_v37 = vadd.f32 1e-05, %v3625_v12 }
 0x986   : > { %v3624_v44 = vpop.xlane.xlu1 %3623 }
 0x987   : > { %4428 = vrsqrt.f32 %v3627_v37  ;;  %v3626_v35 = vmul.f32 0.02, %v3624_v44 }
 0x989   : > { %v3628_v20 = vadd.f32 1e-05, %v3626_v35 }
 0x98b   : > { %4430 = vrsqrt.f32 %v3628_v20 }
 0x994   : > { %v4429_v57 = vpop.eup %4428 }
 0x995   : > { %v3631_v39 = vmul.f32 %v4429_v57, %v3615_v41 }
 0x997   : > { %v3637_v50 = vmul.f32 %v3636_v4, %v3631_v39 }
 0x998   : > { %v4431_v7 = vpop.eup %4430 }
 0x999   : > { %v3643_v54 = vadd.f32 %v4002_v10, %v3637_v50  ;;  %v3632_v18 = vmul.f32 %v4431_v7, %v3616_v0 }
 0x99b   : > { %3645 = vst.msk [vmem:[%s5673_s6] sm:$0xff] %vm5737_vm5, %v3643_v54  ;;  %v3638_v52 = vmul.f32 %v3636_v4, %v3632_v18 }
 0x99d   : > { %v3644_v46 = vadd.f32 %v4002_v10, %v3638_v52 }
 0x99f   : > { %3646 = vst.msk [vmem:[%s5673_s6 + $0x8] sm:$0xff] %vm5738_vm9, %v3644_v46 }
 0x9a0 PF: > { %p19_p5 = scmp.ge.s32.totalorder %s4626_s26, 8   ;;  %s5739_s21 = smov %s4550_s22 }
 0x9a1   : > { %s5740_s22 = smov %s4554_s23  ;;  %s5741_s23 = smov %s4636_s29 }
 0x9a2   : > { %s5742_s24 = smov %s4626_s26  ;;  %21 = sbr.rel (!%p19_p5) target bundleno = 7 (0x7), region = 117 }
 0x9a7   :  { %3658 = vsyncpa [#allocation3], 1 }
 0x9a8   :  { %3660 = vsyncpa [#allocation3 + $0x1], 1 }
 0x9a9   :  { %3661 = vsyncpa [#allocation5], 1 }
 0x9aa   :  { %3663 = vsyncpa [#allocation5 + $0x1], 1 }

// kernel: rl_transformer_forward.3
= control target key start
LH: loop header
LB: loop body
LE: loop exit
PB: predicated region body
PF: predicated region fallthrough
CT: control target
= control target key end

     0   :  { %s6041_s30 = smov 0   ;;  %s7107_s0 = inlined_call_operand.vmem [shape: f32[8,50], index: 0, kind: input, shape index: {}]   ;;  %s7108_s1 = inlined_call_operand.vmem [shape: f32[16,50], index: 1, kind: input, shape index: {}]   ;;  %s7109_s2 = inlined_call_operand.vmem [shape: bf16[6,8,50,50], index: 2, kind: input, shape index: {}]   ;;  %s7110_s3 = inlined_call_operand.vmem [shape: bf16[6,50,2048], index: 3, kind: input, shape index: {}]   ;;  %s7111_s4 = inlined_call_operand.vmem [shape: f32[6,1,2048], index: 4, kind: input, shape index: {}]   ;;  %s7112_s5 = inlined_call_operand.vmem [shape: bf16[6,50,2048], index: 5, kind: input, shape index: {}]   ;;  %s7113_s6 = inlined_call_operand.vmem [shape: f32[6,15,50], index: 6, kind: input, shape index: {}]   ;;  %s7114_s7 = inlined_call_operand.vmem [shape: bf16[50,128], index: 7, kind: input, shape index: {}]   ;;  %s7115_s8 = inlined_call_operand.vmem [shape: f32[1,128], index: 8, kind: input, shape index: {}]   ;;  %s7116_s9 = inlined_call_operand.vmem [shape: f32[8,128], index: 9, kind: output, shape index: {}]  }
   0x1 LB: > { %s6047_s10 = sadd.s32 4294967295, %s5983_s30   ;;  %p5010_p0 = scmp.ge.s32.totalorder %s5983_s30, 1  ;;  %s5983_s30 = sphi %s6041_s30, %s19_s30  }
   0x2   : > { %p321_p1 = scmp.lt.s32.totalorder %s5983_s30, 7 }
   0x4   : > { %p322_p2 = pnand %p5010_p0, %p321_p1 }
   0x5   : > { %p371_p3 = scmp.lt.s32.totalorder (!%p322_p2), %s6047_s10, 5  ;;  %p5017_p4 = scmp.ne.s32.totalorder (!%p322_p2), %s6047_s10, 0 }
   0x6   : > { %325 = sbr.rel (%p322_p2) target bundleno = 4547 (0x11c3), region = 56 }
   0xb   : > { %s372_s11 = scalar_select %p371_p3, %s6047_s10, 5 }
   0xc   : > { %399 = sbr.rel (%p5017_p4) target bundleno = 19 (0x13), region = 60 }
   0xd   : > { %s5804_s12 = smul.u32 224, %s372_s11  ;;  %s5013_s13 = sshll.u32 %s372_s11, 4 }
   0xe   : > { %s5805_s14 = smul.u32 448, %s372_s11  ;;  %s6056_s17 = scalar_lea.vmem %s7111_s4, %s5013_s13 }
   0xf   : > { %s6061_s20 = scalar_lea.vmem %s7109_s2, %s5804_s12  ;;  %s6066_s23 = scalar_lea.vmem %s7113_s6, %s5013_s13 }
  0x10   : > { %s6071_s26 = scalar_lea.vmem %s7110_s3, %s5805_s14  ;;  %s6076_s29 = scalar_lea.vmem %s7112_s5, %s5805_s14 }
  0x11   : > { %v400_v0 = vld [vmem:[%s7107_s0] sm:$0xff]  ;;  %vm401_vm0 = vcmask 408576  }
  0x12   : > { %402 = vst.msk [vmem:[#allocation2] sm:$0xff] %vm401_vm0, %v400_v0 }
  0x13 PF: > { %vm7119_vm1 = vcmask 1040384   ;;  %v5985_v1 = vmov 0.0   ;;  %v5820_v2 = vld [vmem:[%s6061_s20 + $0x34] ss:$0 sps:$4 sm:$0x11]   ;;  %v5822_v4 = vld [vmem:[%s6061_s20 + $0x2c] sm:$0xff]   ;;  %v440_v19 = vlaneseq }
  0x14   : > { %5468 = vmatprep.subr.bf16.mxu1 %v5985_v1  ;;  %5456 = vmatprep.subr.bf16.mxu0 %v5985_v1  ;;  %v5821_v3 = vld [vmem:[%s6061_s20 + $0x18] ss:$0 sps:$4 sm:$0x11]   ;;  %v539_v5 = vsel %vm7119_vm1, %v5820_v2, 0  ;;  %vm7120_vm2 = vmmov 0   ;;  %v5823_v7 = vld [vmem:[%s6061_s20 + $0x10] sm:$0xff]  }
  0x15   : > { %v471_v6 = vsel %vm7119_vm1, %v5821_v3, 0  ;;  %5476 = vmatprep.mubr.msk.bf16.mxu1 %vm7120_vm2, %v5985_v1  ;;  %5464 = vmatprep.mubr.msk.bf16.mxu0 %vm7120_vm2, %v5985_v1  ;;  %v5824_v8 = vld [vmem:[%s6061_s20 + $0x24] sm:$0xff]   ;;  %v5828_v10 = vld [vmem:[%s6061_s20 + $0x50] ss:$0 sps:$4 sm:$0x11]   ;;  %v5826_v11 = vld [vmem:[%s6061_s20 + $0x1c] sm:$0xff]  }
  0x16   : > { %5469 = vmatpush3.bf16.msra.mxu1 %v539_v5  ;;  %5457 = vmatpush3.bf16.msra.mxu0 %v471_v6  ;;  %v5825_v9 = vld [vmem:[%s6061_s20 + $0x8] sm:$0xff]   ;;  %v5827_v12 = vld [vmem:[%s6061_s20] sm:$0xff]   ;;  %vm7118_vm3 = vcmask 408576   ;;  %v607_v14 = vsel %vm7119_vm1, %v5828_v10, 0  ;;  %v5831_v18 = vld [vmem:[%s6061_s20 + $0x38] sm:$0xff]   ;;  %v6124_v20 = vshrl.u32 %v440_v19, 7 }
  0x17   : > { %5470 = vmatprep.subr.bf16.mxu1 %v5985_v1  ;;  %5458 = vmatprep.subr.bf16.mxu0 %v5985_v1  ;;  %v5829_v16 = vld [vmem:[%s6061_s20 + $0x48] sm:$0xff]   ;;  %v5830_v17 = vld [vmem:[%s6061_s20 + $0x40] sm:$0xff]   ;;  %v6135_v24 = vand.u32 127, %v440_v19  ;;  %v7140_v59 = vmov 0  ;;  %v7142_v62 = vmov 0  ;;  %v7144_v2 = vmov 0 }
  0x18   : > { %v6127_v21 = vsub.s32 1, %v6124_v20  ;;  %v6130_v22 = vld [vmem:[%s6066_s23] sm:$0xff]  ;;  %v6133_v23 = vsub.s32 0, %v6124_v20  ;;  %p5321_p5 = scmp.ne.s32.totalorder %s6047_s10, 5 }
  0x19   : > { %v403_v13 = vld [vmem:[#allocation2] sm:$0xff]  ;;  %vm898_vm4 = vcmp.ge.s32.totalorder %v6135_v24, 10  ;;  %vm899_vm5 = vcmp.lt.s32.totalorder %v6135_v24, 15  ;;  %vm7117_vm6 = vcmp.lt.s32.totalorder %v6135_v24, 5  ;;  %vm739_vm8 = vcmp.ge.s32.totalorder %v6135_v24, 5 }
  0x1a   : > { %5471 = vmatpush3.bf16.msra.mxu1 %v5822_v4  ;;  %5459 = vmatpush3.bf16.msra.mxu0 %v5823_v7  ;;  %v439_v15 = vpack.c.bf16 %v403_v13, %v403_v13  ;;  %v516_v25 = vrot.slane %v6130_v22, %v6127_v21  ;;  %v443_v26 = vrot.slane %v6130_v22, %v6133_v23  ;;  %vm6146_vm7 = vmand %vm898_vm4, %vm899_vm5  ;;  %vm740_vm9 = vcmp.lt.s32.totalorder %v6135_v24, 10 }
  0x1b   : > { %5472 = vmatprep.subr.bf16.mxu1 %v5985_v1  ;;  %5460 = vmatprep.subr.bf16.mxu0 %v5985_v1  ;;  %vm1011_vm10 = vcmp.ge.s32.totalorder %v6135_v24, 15  ;;  %vm1012_vm11 = vcmp.lt.s32.totalorder %v6135_v24, 20  ;;  %vm6167_vm12 = vmand %vm739_vm8, %vm740_vm9  ;;  %vm1124_vm14 = vcmp.ge.s32.totalorder %v6135_v24, 20  ;;  %vm1125_vm15 = vcmp.lt.s32.totalorder %v6135_v24, 25 }
  0x1c   : > { %vm6173_vm13 = vmand %vm1011_vm10, %vm1012_vm11  ;;  %vm1237_vm4 = vcmp.ge.s32.totalorder %v6135_v24, 25  ;;  %vm1238_vm5 = vcmp.lt.s32.totalorder %v6135_v24, 30  ;;  %vm1350_vm9 = vcmp.ge.s32.totalorder %v6135_v24, 30  ;;  %vm1351_vm10 = vcmp.lt.s32.totalorder %v6135_v24, 35 }
  0x1d   : > { %vm6195_vm0 = vmand %vm1124_vm14, %vm1125_vm15  ;;  %vm1463_vm14 = vcmp.ge.s32.totalorder %v6135_v24, 35  ;;  %vm1464_vm15 = vcmp.lt.s32.totalorder %v6135_v24, 40 }
  0x1e   : > { %5473 = vmatpush3.bf16.msra.mxu1 %v5824_v8  ;;  %5461 = vmatpush3.bf16.msra.mxu0 %v5825_v9  ;;  %vm6211_vm8 = vmand %vm1237_vm4, %vm1238_vm5  ;;  %vm1576_vm5 = vcmp.ge.s32.totalorder %v6135_v24, 40  ;;  %v6282_v9 = vsub.s32 2, %v6124_v20 }
  0x1f   : > { %5474 = vmatprep.subr.bf16.mxu1 %v5985_v1  ;;  %5462 = vmatprep.subr.bf16.mxu0 %v5985_v1  ;;  %vm6225_vm11 = vmand %vm1350_vm9, %vm1351_vm10  ;;  %vm1577_vm9 = vcmp.lt.s32.totalorder %v6135_v24, 45 }
  0x20   : > { %vm6239_vm4 = vmand %vm1463_vm14, %vm1464_vm15  ;;  %vm1689_vm14 = vcmp.ge.s32.totalorder %v6135_v24, 45  ;;  %vm1690_vm15 = vcmp.lt.s32.totalorder %v6135_v24, 50  ;;  %v584_v10 = vrot.slane %v6130_v22, %v6282_v9 }
  0x21   : > { %v7141_v59 = vsel %vm6239_vm4, 4294967295, %v7140_v59  ;;  %vm6253_vm10 = vmand %vm1576_vm5, %vm1577_vm9  ;;  %vm808_vm9 = vcmask 1043456  }
  0x22   : > { %5475 = vmatpush3.bf16.msra.mxu1 %v5826_v11  ;;  %5463 = vmatpush3.bf16.msra.mxu0 %v5827_v12  ;;  %v7143_v62 = vsel %vm6253_vm10, 4294967295, %v7142_v62  ;;  %vm6267_vm5 = vmand %vm1689_vm14, %vm1690_vm15  ;;  %vm660_vm14 = vcmp.ge.s32.totalorder %v6124_v20, 4  ;;  %vm663_vm15 = vcmp.ge.s32.totalorder %v6135_v24, 4 }
  0x23   : > { %5480 = vmatprep.subr.bf16.mxu0 %v5985_v1  ;;  %5492 = vmatprep.subr.bf16.mxu1 %v5985_v1  ;;  %v7145_v2 = vsel %vm6267_vm5, 4294967295, %v7144_v2  ;;  %vm664_vm1 = vmand %vm660_vm14, %vm663_vm15 }
  0x25   : > { %5477 = vmatmul.mubr.msk.bf16.vlgmr.msra.gmra.mxu1 %vm7118_vm3, %v439_v15  ;;  %5465 = vmatmul.mubr.msk.bf16.vlgmr.msra.gmra.mxu0 %vm7118_vm3, %v439_v15 }
  0x26   : > { %5481 = vmatpush3.bf16.msra.mxu0 %v607_v14  ;;  %5488 = vmatprep.mubr.msk.bf16.mxu0 %vm7120_vm2, %v5985_v1 }
  0x27   : > { %5482 = vmatprep.subr.bf16.mxu0 %v5985_v1  ;;  %5494 = vmatprep.mubr.msk.bf16.mxu1 %vm7120_vm2, %v5985_v1 }
  0x2a   : > { %5483 = vmatpush3.bf16.msra.mxu0 %v5829_v16 }
  0x2b   : > { %5484 = vmatprep.subr.bf16.mxu0 %v5985_v1 }
  0x2e   : > { %5485 = vmatpush3.bf16.msra.mxu0 %v5830_v17 }
  0x2f   : > { %5486 = vmatprep.subr.bf16.mxu0 %v5985_v1 }
  0x32   : > { %5487 = vmatpush3.bf16.msra.mxu0 %v5831_v18 }
  0x33   : > { %5516 = vmatprep.subr.bf16.mxu0 %v5985_v1 }
  0x35   : > { %5489 = vmatmul.mubr.msk.bf16.vlgmr.msra.gmra.mxu0 %vm7118_vm3, %v439_v15 }
  0x36   : > { %5518 = vmatprep.mubr.msk.bf16.mxu0 %vm7120_vm2, %v5985_v1 }
  0xe5   : > { %v575_v27 = vpop.f32.mrf.mxu1  ;;  %v507_v28 = vpop.f32.mrf.mxu0 }
  0xe6   : > { %v576_v29 = vadd.f32 %v575_v27, %v516_v25  ;;  %v6143_v30 = vadd.f32 %v507_v28, %v443_v26 }
  0xe7   : > { %v5478_v31 = vpop.f32.mrf.mxu1  ;;  %v5466_v32 = vpop.f32.mrf.mxu0 }
  0xe8   : > { %v675_v33 = vpack.c.bf16 %v576_v29, %v576_v29  ;;  %v673_v40 = vsel %vm7117_vm6, %v6143_v30, 0.0  ;;  %v903_v41 = vsel %vm6146_vm7, %v6143_v30, 0.0  ;;  %v744_v46 = vsel %vm6167_vm12, %v6143_v30, 0.0 }
  0xe9   : > { %v578_v35 = vpop.f32.mrf.mxu1  ;;  %v510_v36 = vpop.f32.mrf.mxu0  ;;  %v674_v42 = vpack.c.bf16 %v673_v40, %v673_v40  ;;  %v904_v43 = vpack.c.bf16 %v903_v41, %v903_v41  ;;  %v1016_v47 = vsel %vm6173_vm13, %v6143_v30, 0.0  ;;  %v745_v48 = vpack.c.bf16 %v744_v46, %v744_v46 }
  0xea   : > { %v6151_v37 = vsel %vm7118_vm3, %v675_v33, 0  ;;  %v1017_v49 = vpack.c.bf16 %v1016_v47, %v1016_v47  ;;  %v1129_v51 = vsel %vm6195_vm0, %v6143_v30, 0.0  ;;  %v1242_v54 = vsel %vm6211_vm8, %v6143_v30, 0.0 }
  0xeb   : > { %v5479_v38 = vpop.f32.mrf.mxu1  ;;  %5493 = vmatpush3.bf16.xpose.msra.mxu1 %v6151_v37  ;;  %5517 = vmatpush3.bf16.xpose.msra.mxu0 %v6151_v37  ;;  %v5467_v39 = vpop.f32.mrf.mxu0  ;;  %v1130_v52 = vpack.c.bf16 %v1129_v51, %v1129_v51  ;;  %v1243_v55 = vpack.c.bf16 %v1242_v54, %v1242_v54  ;;  %v1355_v57 = vsel %vm6225_vm11, %v6143_v30, 0.0  ;;  %v1468_v60 = vsel %vm6239_vm4, %v6143_v30, 0.0 }
  0xec   : > { %5498 = vmatprep.subr.bf16.mxu1 %v5985_v1  ;;  %5528 = vmatprep.subr.bf16.mxu0 %v5985_v1  ;;  %v1356_v58 = vpack.c.bf16 %v1355_v57, %v1355_v57  ;;  %v1469_v61 = vpack.c.bf16 %v1468_v60, %v1468_v60  ;;  %v1581_v63 = vsel %vm6253_vm10, %v6143_v30, 0.0  ;;  %v1694_v3 = vsel %vm6267_vm5, %v6143_v30, 0.0 }
  0xed   : > { %v1582_v0 = vpack.c.bf16 %v1581_v63, %v1581_v63  ;;  %v1695_v4 = vpack.c.bf16 %v1694_v3, %v1694_v3  ;;  %v5987_v54 = vmov -1e+30  }
  0xf2   : > { %5495 = vmatmul.mubr.msk.bf16.vlgmr.msra.gmra.mxu1 %vm7118_vm3, %v674_v42  ;;  %5519 = vmatmul.mubr.msk.bf16.vlgmr.msra.gmra.mxu0 %vm7118_vm3, %v904_v43 }
  0xf3   : > { %5499 = vmatpush3.bf16.xpose.msra.mxu1 %v6151_v37  ;;  %5529 = vmatpush3.bf16.xpose.msra.mxu0 %v6151_v37 }
  0xf4   : > { %5500 = vmatprep.mubr.msk.bf16.mxu1 %vm7120_vm2, %v5985_v1  ;;  %5530 = vmatprep.mubr.msk.bf16.mxu0 %vm7120_vm2, %v5985_v1 }
  0xf5   : > { %5540 = vmatprep.subr.bf16.mxu0 %v5985_v1  ;;  %5504 = vmatprep.subr.bf16.mxu1 %v5985_v1  ;;  %v643_v5 = vpop.f32.mrf.mxu0 }
  0xf6   : > { %v644_v11 = vadd.f32 %v643_v5, %v584_v10 }
  0xf7   : > { %v5490_v6 = vpop.f32.mrf.mxu0 }
  0xf8   : > { %v802_v12 = vsel %vm6167_vm12, %v644_v11, 0.0  ;;  %v736_v14 = vsel %vm7117_vm6, %v644_v11, 0.0  ;;  %v961_v15 = vsel %vm6146_vm7, %v644_v11, 0.0  ;;  %v1074_v16 = vsel %vm6173_vm13, %v644_v11, 0.0 }
  0xf9   : > { %v646_v7 = vpop.f32.mrf.mxu0  ;;  %v804_v13 = vpack.c.bf16 %v802_v12, %v802_v12  ;;  %v738_v17 = vpack.c.bf16 %v736_v14, %v736_v14  ;;  %v963_v18 = vpack.c.bf16 %v961_v15, %v961_v15  ;;  %v1076_v19 = vpack.c.bf16 %v1074_v16, %v1074_v16 }
  0xfa   : > { %5501 = vmatmul.mubr.msk.bf16.vlgmr.msra.gmra.mxu1 %vm7118_vm3, %v745_v48  ;;  %5531 = vmatmul.mubr.msk.bf16.vlgmr.msra.gmra.mxu0 %vm7118_vm3, %v1017_v49  ;;  %v1187_v26 = vsel %vm6195_vm0, %v644_v11, 0.0  ;;  %v1300_v27 = vsel %vm6211_vm8, %v644_v11, 0.0  ;;  %v1413_v28 = vsel %vm6225_vm11, %v644_v11, 0.0  ;;  %v1526_v36 = vsel %vm6239_vm4, %v644_v11, 0.0 }
  0xfb   : > { %5541 = vmatpush3.bf16.xpose.msra.mxu0 %v6151_v37  ;;  %5542 = vmatprep.mubr.msk.bf16.mxu0 %vm7120_vm2, %v5985_v1  ;;  %v5491_v8 = vpop.f32.mrf.mxu0  ;;  %v810_v25 = vsel %vm808_vm9, %v804_v13, 0  ;;  %v6302_v29 = vsel %vm808_vm9, %v738_v17, 0  ;;  %v6305_v30 = vsel %vm808_vm9, %v963_v18, 0  ;;  %v6308_v31 = vsel %vm808_vm9, %v1076_v19, 0 }
  0xfc   : > { %5552 = vmatprep.subr.bf16.mxu0 %v5985_v1  ;;  %5506 = vmatprep.mubr.msk.bf16.mxu1 %vm7120_vm2, %v5985_v1  ;;  %v1189_v32 = vpack.c.bf16 %v1187_v26, %v1187_v26  ;;  %v1302_v33 = vpack.c.bf16 %v1300_v27, %v1300_v27  ;;  %v1415_v35 = vpack.c.bf16 %v1413_v28, %v1413_v28  ;;  %v1752_v41 = vsel %vm6267_vm5, %v644_v11, 0.0 }
  0xfd   : > { %5505 = vmatpush3.bf16.msra.mxu1 %v810_v25  ;;  %v1528_v39 = vpack.c.bf16 %v1526_v36, %v1526_v36  ;;  %v1754_v46 = vpack.c.bf16 %v1752_v41, %v1752_v41  ;;  %vm654_vm6 = vcmp.lt.s32.totalorder %v6124_v20, 4  ;;  %vm724_vm4 = vcmask 64512  }
  0xfe   : > { %5510 = vmatprep.subr.bf16.mxu1 %v5985_v1  ;;  %v6316_v38 = vsel %vm808_vm9, %v1189_v32, 0  ;;  %v6321_v42 = vsel %vm808_vm9, %v1302_v33, 0  ;;  %v6324_v43 = vsel %vm808_vm9, %v1415_v35, 0 }
  0xff   : > { %v6327_v47 = vsel %vm808_vm9, %v1528_v39, 0  ;;  %v6333_v49 = vsel %vm808_vm9, %v1754_v46, 0 }
 0x102   : > { %5543 = vmatmul.mubr.msk.bf16.vlgmr.msra.gmra.mxu0 %vm7118_vm3, %v1130_v52 }
 0x103   : > { %5553 = vmatpush3.bf16.xpose.msra.mxu0 %v6151_v37  ;;  %5554 = vmatprep.mubr.msk.bf16.mxu0 %vm7120_vm2, %v5985_v1 }
 0x104   : > { %5564 = vmatprep.subr.bf16.mxu0 %v5985_v1 }
 0x10a   : > { %5555 = vmatmul.mubr.msk.bf16.vlgmr.msra.gmra.mxu0 %vm7118_vm3, %v1243_v55 }
 0x10b   : > { %5565 = vmatpush3.bf16.xpose.msra.mxu0 %v6151_v37  ;;  %5566 = vmatprep.mubr.msk.bf16.mxu0 %vm7120_vm2, %v5985_v1 }
 0x10c   : > { %5576 = vmatprep.subr.bf16.mxu0 %v5985_v1 }
 0x112   : > { %5567 = vmatmul.mubr.msk.bf16.vlgmr.msra.gmra.mxu0 %vm7118_vm3, %v1356_v58 }
 0x113   : > { %5577 = vmatpush3.bf16.xpose.msra.mxu0 %v6151_v37  ;;  %5578 = vmatprep.mubr.msk.bf16.mxu0 %vm7120_vm2, %v5985_v1 }
 0x114   : > { %5588 = vmatprep.subr.bf16.mxu0 %v5985_v1 }
 0x11a   : > { %5579 = vmatmul.mubr.msk.bf16.vlgmr.msra.gmra.mxu0 %vm7118_vm3, %v1469_v61 }
 0x11b   : > { %5589 = vmatpush3.bf16.xpose.msra.mxu0 %v6151_v37  ;;  %5590 = vmatprep.mubr.msk.bf16.mxu0 %vm7120_vm2, %v5985_v1 }
 0x11c   : > { %5600 = vmatprep.subr.bf16.mxu0 %v5985_v1 }
 0x122   : > { %5591 = vmatmul.mubr.msk.bf16.vlgmr.msra.gmra.mxu0 %vm7118_vm3, %v1582_v0 }
 0x123   : > { %5601 = vmatpush3.bf16.xpose.msra.mxu0 %v6151_v37  ;;  %5602 = vmatprep.mubr.msk.bf16.mxu0 %vm7120_vm2, %v5985_v1  ;;  %v1639_v37 = vsel %vm6253_vm10, %v644_v11, 0.0 }
 0x124   : > { %5612 = vmatprep.subr.bf16.mxu0 %v5985_v1  ;;  %v1641_v40 = vpack.c.bf16 %v1639_v37, %v1639_v37 }
 0x126   : > { %v6330_v48 = vsel %vm808_vm9, %v1641_v40, 0 }
 0x12a   : > { %5603 = vmatmul.mubr.msk.bf16.vlgmr.msra.gmra.mxu0 %vm7118_vm3, %v1695_v4  ;;  %vm658_vm3 = vcmp.lt.s32.totalorder %v6135_v24, 4 }
 0x12b   : > { %5620 = vmatprep.mubr.msk.bf16.mxu0 %vm7120_vm2, %v5985_v1  ;;  %vm665_vm2 = vcmp.lt.s32.totalorder %v6135_v24, 8  ;;  %vm659_vm5 = vmand %vm654_vm6, %vm658_vm3  ;;  %vm7147_vm3 = vcmask 1040384  }
 0x12c   : > { %vm666_vm9 = vmand %vm664_vm1, %vm665_vm2  ;;  %vm7146_vm1 = vmmov 0  }
 0x12d   : > { %vm667_vm10 = vmor %vm659_vm5, %vm666_vm9 }
 0x12e   : > { %v6347_v55 = vsel %vm667_vm10, 0.0, %v5987_v54  ;;  %vm7150_vm5 = vmmov %vm7147_vm3 }
 0x1b2   : > { %v716_v51 = vpop.f32.mrf.mxu1  ;;  %v942_v52 = vpop.f32.mrf.mxu0 }
 0x1b3   : > { %v948_v57 = vmul.f32 0.4472136, %v942_v52  ;;  %v722_v8 = vmul.f32 0.4472136, %v716_v51 }
 0x1b4   : > { %v5496_v58 = vpop.f32.mrf.mxu1  ;;  %v5520_v60 = vpop.f32.mrf.mxu0 }
 0x1b5   : > { %v6350_v61 = vadd.f32 %v948_v57, %v6347_v55  ;;  %v6365_v25 = vadd.f32 %v722_v8, %v6347_v55 }
 0x1b6   : > { %v719_v63 = vpop.f32.mrf.mxu1  ;;  %v945_v0 = vpop.f32.mrf.mxu0 }
 0x1b7   : > { %v950_v3 = vsel %vm724_vm4, %v6350_v61, -inf  ;;  %v725_v33 = vsel %vm724_vm4, %v6365_v25, -inf }
 0x1b8   : > { %v5497_v4 = vpop.f32.mrf.mxu1  ;;  %951 = vmax.xlane.f32.xlu1 %v950_v3  ;;  %v5521_v5 = vpop.f32.mrf.mxu0 }
 0x1ba   : > { %v783_v6 = vpop.f32.mrf.mxu1  ;;  %v1055_v7 = vpop.f32.mrf.mxu0 }
 0x1bb   : > { %v789_v10 = vmul.f32 0.4472136, %v783_v6  ;;  %v1061_v11 = vmul.f32 0.4472136, %v1055_v7 }
 0x1bc   : > { %v5502_v12 = vpop.f32.mrf.mxu1  ;;  %v5532_v13 = vpop.f32.mrf.mxu0 }
 0x1bd   : > { %v6355_v14 = vadd.f32 %v789_v10, %v6347_v55  ;;  %v6358_v15 = vadd.f32 %v1061_v11, %v6347_v55 }
 0x1be   : > { %v786_v16 = vpop.f32.mrf.mxu1  ;;  %v1058_v17 = vpop.f32.mrf.mxu0 }
 0x1bf   : > { %v791_v18 = vsel %vm724_vm4, %v6355_v14, -inf  ;;  %v1063_v19 = vsel %vm724_vm4, %v6358_v15, -inf }
 0x1c0   : > { %792 = vmax.xlane.f32.xlu0 %v791_v18  ;;  %v5503_v26 = vpop.f32.mrf.mxu1  ;;  %1064 = vmax.xlane.f32.xlu1 %v1063_v19  ;;  %v5533_v27 = vpop.f32.mrf.mxu0 }
 0x1c2   : > { %v1168_v28 = vpop.f32.mrf.mxu0 }
 0x1c3   : > { %v1174_v32 = vmul.f32 0.4472136, %v1168_v28 }
 0x1c4   : > { %726 = vmax.xlane.f32.xlu0 %v725_v33  ;;  %v5544_v35 = vpop.f32.mrf.mxu0 }
 0x1c5   : > { %v6370_v36 = vadd.f32 %v1174_v32, %v6347_v55 }
 0x1c6   : > { %v1171_v37 = vpop.f32.mrf.mxu0 }
 0x1c7   : > { %v1176_v39 = vsel %vm724_vm4, %v6370_v36, -inf }
 0x1c8   : > { %1177 = vmax.xlane.f32.xlu0 %v1176_v39  ;;  %v5545_v40 = vpop.f32.mrf.mxu0 }
 0x1ca   : > { %v1281_v41 = vpop.f32.mrf.mxu0 }
 0x1cb   : > { %v1287_v46 = vmul.f32 0.4472136, %v1281_v41 }
 0x1cc   : > { %v5556_v51 = vpop.f32.mrf.mxu0 }
 0x1cd   : > { %v1288_v52 = vadd.f32 %v1287_v46, %v6347_v55 }
 0x1ce   : > { %v1284_v57 = vpop.f32.mrf.mxu0 }
 0x1cf   : > { %v1289_v58 = vsel %vm724_vm4, %v1288_v52, -inf }
 0x1d0   : > { %1290 = vmax.xlane.f32.xlu1 %v1289_v58  ;;  %v5557_v60 = vpop.f32.mrf.mxu0 }
 0x1d2   : > { %v1394_v63 = vpop.f32.mrf.mxu0 }
 0x1d3   : > { %v1400_v0 = vmul.f32 0.4472136, %v1394_v63 }
 0x1d4   : > { %v5568_v3 = vpop.f32.mrf.mxu0 }
 0x1d5   : > { %v6377_v4 = vadd.f32 %v1400_v0, %v6347_v55 }
 0x1d6   : > { %v1397_v5 = vpop.f32.mrf.mxu0 }
 0x1d7   : > { %v1402_v6 = vsel %vm724_vm4, %v6377_v4, -inf }
 0x1d8   : > { %1403 = vmax.xlane.f32.xlu0 %v1402_v6  ;;  %v5569_v7 = vpop.f32.mrf.mxu0 }
 0x1da   : > { %v1507_v8 = vpop.f32.mrf.mxu0 }
 0x1db   : > { %v1513_v10 = vmul.f32 0.4472136, %v1507_v8 }
 0x1dc   : > { %v5580_v11 = vpop.f32.mrf.mxu0 }
 0x1dd   : > { %v6382_v12 = vadd.f32 %v1513_v10, %v6347_v55 }
 0x1de   : > { %v1510_v13 = vpop.f32.mrf.mxu0 }
 0x1df   : > { %v1515_v16 = vsel %vm724_vm4, %v6382_v12, -inf }
 0x1e0   : > { %1516 = vmax.xlane.f32.xlu1 %v1515_v16  ;;  %v5581_v17 = vpop.f32.mrf.mxu0 }
 0x1e2   : > { %v1620_v18 = vpop.f32.mrf.mxu0 }
 0x1e3   : > { %v1626_v19 = vmul.f32 0.4472136, %v1620_v18 }
 0x1e4   : > { %v5592_v26 = vpop.f32.mrf.mxu0 }
 0x1e5   : > { %v6387_v27 = vadd.f32 %v1626_v19, %v6347_v55 }
 0x1e6   : > { %v1623_v28 = vpop.f32.mrf.mxu0 }
 0x1e7   : > { %v1628_v32 = vsel %vm724_vm4, %v6387_v27, -inf }
 0x1e8   : > { %1629 = vmax.xlane.f32.xlu0 %v1628_v32  ;;  %v5593_v33 = vpop.f32.mrf.mxu0 }
 0x1ea   : > { %v1733_v35 = vpop.f32.mrf.mxu0 }
 0x1eb   : > { %v1739_v37 = vmul.f32 0.4472136, %v1733_v35 }
 0x1ec   : > { %v5604_v39 = vpop.f32.mrf.mxu0 }
 0x1ed   : > { %v6392_v40 = vadd.f32 %v1739_v37, %v6347_v55 }
 0x1ee   : > { %v1736_v41 = vpop.f32.mrf.mxu0 }
 0x1ef   : > { %v1741_v46 = vsel %vm724_vm4, %v6392_v40, -inf }
 0x1f0   : > { %1742 = vmax.xlane.f32.xlu1 %v1741_v46  ;;  %v5605_v51 = vpop.f32.mrf.mxu0 }
 0x241   : > { %v952_v57 = vpop.xlane.xlu1 %951 }
 0x242   : > { %v953_v58 = vsub.f32 %v6350_v61, %v952_v57 }
 0x244   : > { %v954_v3 = vmul.f32 1.442695, %v953_v58 }
 0x249   : > { %v793_v60 = vpop.xlane.xlu0 %792  ;;  %v1065_v63 = vpop.xlane.xlu1 %1064 }
 0x24a   : > { %v794_v0 = vsub.f32 %v6355_v14, %v793_v60  ;;  %v1066_v6 = vsub.f32 %v6358_v15, %v1065_v63 }
 0x24c   : > { %v795_v5 = vmul.f32 1.442695, %v794_v0  ;;  %v1067_v8 = vmul.f32 1.442695, %v1066_v6 }
 0x24d   : > { %v727_v7 = vpop.xlane.xlu0 %726 }
 0x24e   : > { %5884 = vpow2.f32 %v795_v5  ;;  %v728_v55 = vsub.f32 %v6365_v25, %v727_v7 }
 0x24f   : > { %5886 = vpow2.f32 %v954_v3 }
 0x250   : > { %v729_v10 = vmul.f32 1.442695, %v728_v55 }
 0x251   : > { %v1178_v11 = vpop.xlane.xlu0 %1177 }
 0x252   : > { %5888 = vpow2.f32 %v729_v10  ;;  %v1179_v13 = vsub.f32 %v6370_v36, %v1178_v11 }
 0x253   : > { %5890 = vpow2.f32 %v1067_v8 }
 0x254   : > { %v1180_v61 = vmul.f32 1.442695, %v1179_v13 }
 0x256   : > { %5892 = vpow2.f32 %v1180_v61 }
 0x259   : > { %v1291_v16 = vpop.xlane.xlu1 %1290 }
 0x25a   : > { %v1292_v14 = vsub.f32 %v1288_v52, %v1291_v16 }
 0x25b   : > { %v5885_v17 = vpop.eup %5884 }
 0x25c   : > { %v1293_v18 = vmul.f32 1.442695, %v1292_v14  ;;  %v797_v15 = vsel %vm724_vm4, %v5885_v17, 0.0  ;;  %v6402_v19 = vpop.eup %5886 }
 0x25d   : > { %798 = vadd.xlane.f32.xlu0 %v797_v15  ;;  %v956_v26 = vsel %vm724_vm4, %v6402_v19, 0.0 }
 0x25e   : > { %5894 = vpow2.f32 %v1293_v18 }
 0x25f   : > { %v5889_v25 = vpop.eup %5888 }
 0x260   : > { %v731_v28 = vsel %vm724_vm4, %v5889_v25, 0.0  ;;  %v6407_v36 = vpop.eup %5890 }
 0x261   : > { %v1404_v32 = vpop.xlane.xlu0 %1403  ;;  %957 = vadd.xlane.f32.xlu0 %v956_v26  ;;  %732 = vadd.xlane.f32.xlu1 %v731_v28  ;;  %v1069_v39 = vsel %vm724_vm4, %v6407_v36, 0.0 }
 0x262   : > { %v1405_v52 = vsub.f32 %v6377_v4, %v1404_v32 }
 0x263   : > { %v6410_v33 = vpop.eup %5892 }
 0x264   : > { %v1406_v35 = vmul.f32 1.442695, %v1405_v52  ;;  %v1182_v37 = vsel %vm724_vm4, %v6410_v33, 0.0 }
 0x265   : > { %1183 = vadd.xlane.f32.xlu0 %v1182_v37  ;;  %1070 = vadd.xlane.f32.xlu1 %v1069_v39 }
 0x266   : > { %5896 = vpow2.f32 %v1406_v35 }
 0x269   : > { %v1517_v41 = vpop.xlane.xlu1 %1516 }
 0x26a   : > { %v1518_v46 = vsub.f32 %v6382_v12, %v1517_v41 }
 0x26b   : > { %v6417_v51 = vpop.eup %5894 }
 0x26c   : > { %v1519_v57 = vmul.f32 1.442695, %v1518_v46  ;;  %v1295_v4 = vsel %vm724_vm4, %v6417_v51, 0.0 }
 0x26d   : > { %1296 = vadd.xlane.f32.xlu1 %v1295_v4 }
 0x26e   : > { %5898 = vpow2.f32 %v1519_v57 }
 0x271   : > { %v1630_v58 = vpop.xlane.xlu0 %1629 }
 0x272   : > { %v1631_v60 = vsub.f32 %v6387_v27, %v1630_v58 }
 0x273   : > { %v6422_v63 = vpop.eup %5896 }
 0x274   : > { %v1632_v0 = vmul.f32 1.442695, %v1631_v60  ;;  %v1408_v3 = vsel %vm724_vm4, %v6422_v63, 0.0 }
 0x275   : > { %1409 = vadd.xlane.f32.xlu0 %v1408_v3 }
 0x276   : > { %5900 = vpow2.f32 %v1632_v0 }
 0x279   : > { %v1743_v12 = vpop.xlane.xlu1 %1742 }
 0x27a   : > { %v1744_v5 = vsub.f32 %v6392_v40, %v1743_v12 }
 0x27b   : > { %v6427_v6 = vpop.eup %5898 }
 0x27c   : > { %v1745_v7 = vmul.f32 1.442695, %v1744_v5  ;;  %v1521_v55 = vsel %vm724_vm4, %v6427_v6, 0.0 }
 0x27d   : > { %1522 = vadd.xlane.f32.xlu1 %v1521_v55 }
 0x27e   : > { %5902 = vpow2.f32 %v1745_v7  ;;  %v5832_v7 = vld [vmem:[%s6061_s20 + $0x6c] ss:$0 sps:$4 sm:$0x11]  }
 0x27f   : > { %v1832_v55 = vsel %vm7147_vm3, %v5832_v7, 0 }
 0x280   : > { %5613 = vmatpush3.bf16.msra.mxu0 %v1832_v55 }
 0x281   : > { %5614 = vmatprep.subr.bf16.mxu0 %v5985_v1 }
 0x283   : > { %v6431_v27 = vpop.eup %5900 }
 0x284   : > { %v1634_v8 = vsel %vm724_vm4, %v6431_v27, 0.0 }
 0x285   : > { %1635 = vadd.xlane.f32.xlu0 %v1634_v8  ;;  %v5835_v8 = vld [vmem:[%s6061_s20 + $0x54] sm:$0xff]  }
 0x28b   : > { %v6435_v10 = vpop.eup %5902 }
 0x28c   : > { %v1747_v11 = vsel %vm724_vm4, %v6435_v10, 0.0 }
 0x28d   : > { %1748 = vadd.xlane.f32.xlu1 %v1747_v11 }
 0x2e6   : > { %v799_v40 = vpop.xlane.xlu0 %798 }
 0x2e7   : > { %5904 = vrcp.f32 %v799_v40 }
 0x2ea   : > { %v733_v13 = vpop.xlane.xlu1 %732  ;;  %v958_v61 = vpop.xlane.xlu0 %957 }
 0x2eb   : > { %5906 = vrcp.f32 %v733_v13 }
 0x2ec   : > { %5908 = vrcp.f32 %v958_v61 }
 0x2ee   : > { %v1071_v15 = vpop.xlane.xlu1 %1070  ;;  %v1184_v35 = vpop.xlane.xlu0 %1183 }
 0x2ef   : > { %5910 = vrcp.f32 %v1071_v15 }
 0x2f0   : > { %5912 = vrcp.f32 %v1184_v35 }
 0x2f4   : > { %v5905_v16 = vpop.eup %5904 }
 0x2f5   : > { %v801_v14 = vmul.f32 %v5905_v16, %v5885_v17 }
 0x2f6   : > { %v1297_v39 = vpop.xlane.xlu1 %1296 }
 0x2f7   : > { %v803_v18 = vpack.c.bf16 %v801_v14, %v801_v14  ;;  %5914 = vrcp.f32 %v1297_v39 }
 0x2f8   : > { %v5907_v26 = vpop.eup %5906 }
 0x2f9   : > { %5507 = vmatmul.mubr.msk.bf16.vlgmr.msra.gmra.mxu1 %vm724_vm4, %v803_v18  ;;  %v735_v28 = vmul.f32 %v5907_v26, %v5889_v25  ;;  %v5909_v52 = vpop.eup %5908 }
 0x2fa   : > { %5511 = vmatpush3.bf16.msra.mxu1 %v6302_v29  ;;  %5512 = vmatprep.mubr.msk.bf16.mxu1 %vm7146_vm1, %v5985_v1  ;;  %v960_v29 = vmul.f32 %v5909_v52, %v6402_v19 }
 0x2fb   : > { %5522 = vmatprep.subr.bf16.mxu1 %v5985_v1  ;;  %v737_v32 = vpack.c.bf16 %v735_v28, %v735_v28 }
 0x2fc   : > { %v962_v17 = vpack.c.bf16 %v960_v29, %v960_v29  ;;  %v5911_v37 = vpop.eup %5910 }
 0x2fd   : > { %v5913_v41 = vpop.eup %5912 }
 0x2fe   : > { %v1410_v46 = vpop.xlane.xlu0 %1409 }
 0x2ff   : > { %5916 = vrcp.f32 %v1410_v46 }
 0x301   : > { %5513 = vmatmul.mubr.msk.bf16.vlgmr.msra.gmra.mxu1 %vm724_vm4, %v737_v32 }
 0x302   : > { %5523 = vmatpush3.bf16.msra.mxu1 %v6305_v30  ;;  %5524 = vmatprep.mubr.msk.bf16.mxu1 %vm7146_vm1, %v5985_v1  ;;  %v1073_v30 = vmul.f32 %v5911_v37, %v6407_v36 }
 0x303   : > { %5534 = vmatprep.subr.bf16.mxu1 %v5985_v1 }
 0x304   : > { %v1075_v25 = vpack.c.bf16 %v1073_v30, %v1073_v30  ;;  %v5915_v57 = vpop.eup %5914 }
 0x306   : > { %v1523_v4 = vpop.xlane.xlu1 %1522 }
 0x307   : > { %5918 = vrcp.f32 %v1523_v4 }
 0x309   : > { %5525 = vmatmul.mubr.msk.bf16.vlgmr.msra.gmra.mxu1 %vm724_vm4, %v962_v17 }
 0x30a   : > { %5535 = vmatpush3.bf16.msra.mxu1 %v6308_v31  ;;  %5536 = vmatprep.mubr.msk.bf16.mxu1 %vm7146_vm1, %v5985_v1  ;;  %v1186_v31 = vmul.f32 %v5913_v41, %v6410_v33 }
 0x30b   : > { %5546 = vmatprep.subr.bf16.mxu1 %v5985_v1 }
 0x30c   : > { %v1188_v19 = vpack.c.bf16 %v1186_v31, %v1186_v31  ;;  %v5917_v58 = vpop.eup %5916 }
 0x30e   : > { %v1636_v60 = vpop.xlane.xlu0 %1635 }
 0x30f   : > { %5920 = vrcp.f32 %v1636_v60 }
 0x311   : > { %5537 = vmatmul.mubr.msk.bf16.vlgmr.msra.gmra.mxu1 %vm724_vm4, %v1075_v25 }
 0x312   : > { %5547 = vmatpush3.bf16.msra.mxu1 %v6316_v38  ;;  %5548 = vmatprep.mubr.msk.bf16.mxu1 %vm7146_vm1, %v5985_v1  ;;  %v1299_v38 = vmul.f32 %v5915_v57, %v6417_v51 }
 0x313   : > { %5558 = vmatprep.subr.bf16.mxu1 %v5985_v1 }
 0x314   : > { %v1301_v36 = vpack.c.bf16 %v1299_v38, %v1299_v38  ;;  %v5919_v0 = vpop.eup %5918 }
 0x316   : > { %v1749_v3 = vpop.xlane.xlu1 %1748 }
 0x317   : > { %5922 = vrcp.f32 %v1749_v3 }
 0x319   : > { %5549 = vmatmul.mubr.msk.bf16.vlgmr.msra.gmra.mxu1 %vm724_vm4, %v1188_v19 }
 0x31a   : > { %5559 = vmatpush3.bf16.msra.mxu1 %v6321_v42  ;;  %5560 = vmatprep.mubr.msk.bf16.mxu1 %vm7146_vm1, %v5985_v1  ;;  %v1412_v42 = vmul.f32 %v5917_v58, %v6422_v63 }
 0x31b   : > { %5570 = vmatprep.subr.bf16.mxu1 %v5985_v1 }
 0x31c   : > { %v1414_v33 = vpack.c.bf16 %v1412_v42, %v1412_v42  ;;  %v5921_v12 = vpop.eup %5920 }
 0x321   : > { %5561 = vmatmul.mubr.msk.bf16.vlgmr.msra.gmra.mxu1 %vm724_vm4, %v1301_v36 }
 0x322   : > { %5571 = vmatpush3.bf16.msra.mxu1 %v6324_v43  ;;  %5572 = vmatprep.mubr.msk.bf16.mxu1 %vm7146_vm1, %v5985_v1  ;;  %v1525_v43 = vmul.f32 %v5919_v0, %v6427_v6 }
 0x323   : > { %5582 = vmatprep.subr.bf16.mxu1 %v5985_v1 }
 0x324   : > { %v1527_v51 = vpack.c.bf16 %v1525_v43, %v1525_v43  ;;  %v5923_v5 = vpop.eup %5922 }
 0x329   : > { %5573 = vmatmul.mubr.msk.bf16.vlgmr.msra.gmra.mxu1 %vm724_vm4, %v1414_v33 }
 0x32a   : > { %5583 = vmatpush3.bf16.msra.mxu1 %v6327_v47  ;;  %5584 = vmatprep.mubr.msk.bf16.mxu1 %vm7146_vm1, %v5985_v1  ;;  %v1638_v47 = vmul.f32 %v5921_v12, %v6431_v27  ;;  %v5834_v27 = vld [vmem:[%s6061_s20 + $0x5c] sm:$0xff]  }
 0x32b   : > { %5594 = vmatprep.subr.bf16.mxu1 %v5985_v1 }
 0x32c   : > { %v1640_v63 = vpack.c.bf16 %v1638_v47, %v1638_v47 }
 0x331   : > { %5585 = vmatmul.mubr.msk.bf16.vlgmr.msra.gmra.mxu1 %vm724_vm4, %v1527_v51 }
 0x332   : > { %5595 = vmatpush3.bf16.msra.mxu1 %v6330_v48  ;;  %5596 = vmatprep.mubr.msk.bf16.mxu1 %vm7146_vm1, %v5985_v1  ;;  %v1751_v48 = vmul.f32 %v5923_v5, %v6435_v10 }
 0x333   : > { %5606 = vmatprep.subr.bf16.mxu1 %v5985_v1 }
 0x334   : > { %v1753_v6 = vpack.c.bf16 %v1751_v48, %v1751_v48 }
 0x339   : > { %5597 = vmatmul.mubr.msk.bf16.vlgmr.msra.gmra.mxu1 %vm724_vm4, %v1640_v63 }
 0x33a   : > { %5607 = vmatpush3.bf16.msra.mxu1 %v6333_v49  ;;  %5608 = vmatprep.mubr.msk.bf16.mxu1 %vm7146_vm1, %v5985_v1  ;;  %v5833_v49 = vld [vmem:[%s6061_s20 + $0x64] sm:$0xff]  }
 0x33b   : > { %5624 = vmatprep.subr.bf16.mxu1 %v5985_v1  ;;  %5615 = vmatpush3.bf16.msra.mxu0 %v5833_v49 }
 0x33c   : > { %5616 = vmatprep.subr.bf16.mxu0 %v5985_v1 }
 0x33f   : > { %5617 = vmatpush3.bf16.msra.mxu0 %v5834_v27 }
 0x340   : > { %5618 = vmatprep.subr.bf16.mxu0 %v5985_v1 }
 0x341   : > { %5609 = vmatmul.mubr.msk.bf16.vlgmr.msra.gmra.mxu1 %vm724_vm4, %v1753_v6  ;;  %vm7148_vm4 = vcmask 408576  }
 0x342   : > { %5632 = vmatprep.mubr.msk.bf16.mxu1 %vm7146_vm1, %v5985_v1  ;;  %vm7149_vm10 = vmmov %vm7148_vm4 }
 0x343   : > { %5619 = vmatpush3.bf16.msra.mxu0 %v5835_v8  ;;  %vm7151_vm15 = vmmov %vm7148_vm4 }
 0x344   : > { %5636 = vmatprep.subr.bf16.mxu0 %v5985_v1  ;;  %vm7152_vm9 = vmmov %vm7148_vm4 }
 0x3b9   : > { %v846_v10 = vpop.f32.mrf.mxu1 }
 0x3bb   : > { %v5508_v11 = vpop.f32.mrf.mxu1 }
 0x3bd   : > { %v849_v40 = vpop.f32.mrf.mxu1 }
 0x3bf   : > { %v5509_v13 = vpop.f32.mrf.mxu1 }
 0x3c0   : > { %v6508_v13 = vsub.s32 3, %v6124_v20 }
 0x3c1   : > { %v892_v61 = vpop.f32.mrf.mxu1 }
 0x3c2   : > { %v893_v60 = vadd.f32 %v892_v61, %v846_v10  ;;  %v1806_v61 = vrot.slane %v6130_v22, %v6508_v13 }
 0x3c3   : > { %v5514_v16 = vpop.f32.mrf.mxu1 }
 0x3c5   : > { %v895_v14 = vpop.f32.mrf.mxu1 }
 0x3c7   : > { %v5515_v18 = vpop.f32.mrf.mxu1 }
 0x3c9   : > { %v1004_v15 = vpop.f32.mrf.mxu1 }
 0x3ca   : > { %v1010_v33 = vadd.f32 %v1004_v15, %v893_v60  ;;  %v5970_v15 = vld [vmem:[#allocation2] sm:$0xff]  ;;  %v5843_v60 = vld [vmem:[%s6061_s20 + $0x70] sm:$0xff]  }
 0x3cb   : > { %v5526_v26 = vpop.f32.mrf.mxu1 }
 0x3cd   : > { %v1007_v28 = vpop.f32.mrf.mxu1 }
 0x3cf   : > { %v5527_v32 = vpop.f32.mrf.mxu1 }
 0x3d1   : > { %v1117_v52 = vpop.f32.mrf.mxu1 }
 0x3d2   : > { %v1123_v3 = vadd.f32 %v1117_v52, %v1010_v33 }
 0x3d3   : > { %v5538_v35 = vpop.f32.mrf.mxu1 }
 0x3d4   : > { %v5836_v35 = vld [vmem:[%s6061_s20 + $0xa4] ss:$0 sps:$4 sm:$0x11]  }
 0x3d5   : > { %v1120_v29 = vpop.f32.mrf.mxu1 }
 0x3d6   : > { %v2033_v29 = vsel %vm7150_vm5, %v5836_v35, 0  ;;  %vm7155_vm5 = vmmov %vm7152_vm9 }
 0x3d7   : > { %v5539_v17 = vpop.f32.mrf.mxu1 }
 0x3d8   : > { %v5837_v17 = vld [vmem:[%s6061_s20 + $0x9c] sm:$0xff]  }
 0x3d9   : > { %v1230_v37 = vpop.f32.mrf.mxu1 }
 0x3da   : > { %v1236_v51 = vadd.f32 %v1230_v37, %v1123_v3  ;;  %v6542_v3 = vld [vmem:[%s6066_s23 + $0x8] sm:$0x7f] }
 0x3db   : > { %v5550_v39 = vpop.f32.mrf.mxu1 }
 0x3dd   : > { %v1233_v30 = vpop.f32.mrf.mxu1 }
 0x3df   : > { %v5551_v25 = vpop.f32.mrf.mxu1 }
 0x3e1   : > { %v1343_v41 = vpop.f32.mrf.mxu1 }
 0x3e2   : > { %v1349_v47 = vadd.f32 %v1343_v41, %v1236_v51  ;;  %v5838_v41 = vld [vmem:[%s6061_s20 + $0x94] sm:$0xff]  }
 0x3e3   : > { %v5562_v46 = vpop.f32.mrf.mxu1 }
 0x3e4   : > { %v5839_v46 = vld [vmem:[%s6061_s20 + $0x8c] sm:$0xff]  }
 0x3e5   : > { %v1346_v31 = vpop.f32.mrf.mxu1 }
 0x3e6   : > { %v404_v31 = vld [vmem:[%s7108_s1] sm:$0xff] }
 0x3e7   : > { %v5563_v19 = vpop.f32.mrf.mxu1 }
 0x3e8   : > { %v405_v19 = vld [vmem:[%s7108_s1 + $0x8] sm:$0xff] }
 0x3e9   : > { %v1456_v57 = vpop.f32.mrf.mxu1 }
 0x3ea   : > { %v1462_v5 = vadd.f32 %v1456_v57, %v1349_v47  ;;  %v2003_v57 = vpack.c.bf16 %v405_v19, %v404_v31  ;;  %v1897_v47 = vrot.slane %v6542_v3, %v6282_v9 }
 0x3eb   : > { %v5574_v4 = vpop.f32.mrf.mxu1 }
 0x3ec   : > { %v5840_v4 = vld [vmem:[%s6061_s20 + $0x88] ss:$0 sps:$4 sm:$0x11]  }
 0x3ed   : > { %v1459_v38 = vpop.f32.mrf.mxu1 }
 0x3ee   : > { %v1961_v38 = vsel %vm7147_vm3, %v5840_v4, 0 }
 0x3ef   : > { %v5575_v36 = vpop.f32.mrf.mxu1  ;;  %5625 = vmatpush3.bf16.msra.mxu1 %v1961_v38 }
 0x3f0   : > { %5626 = vmatprep.subr.bf16.mxu1 %v5985_v1  ;;  %v5841_v36 = vld [vmem:[%s6061_s20 + $0x80] sm:$0xff]  }
 0x3f1   : > { %v1569_v58 = vpop.f32.mrf.mxu1 }
 0x3f2   : > { %v1575_v6 = vadd.f32 %v1569_v58, %v1462_v5  ;;  %v5842_v58 = vld [vmem:[%s6061_s20 + $0x78] sm:$0xff]   ;;  %v5844_v5 = vld [vmem:[%s6061_s20 + $0xc0] ss:$0 sps:$4 sm:$0x11]  }
 0x3f3   : > { %v5586_v42 = vpop.f32.mrf.mxu1  ;;  %5627 = vmatpush3.bf16.msra.mxu1 %v5841_v36 }
 0x3f4   : > { %5628 = vmatprep.subr.bf16.mxu1 %v5985_v1 }
 0x3f5   : > { %v1572_v0 = vpop.f32.mrf.mxu1 }
 0x3f7   : > { %v5587_v43 = vpop.f32.mrf.mxu1  ;;  %5629 = vmatpush3.bf16.msra.mxu1 %v5842_v58 }
 0x3f8   : > { %5630 = vmatprep.subr.bf16.mxu1 %v5985_v1  ;;  %v1892_v43 = vrot.slane %v6542_v3, %v6127_v21 }
 0x3f9   : > { %v1682_v12 = vpop.f32.mrf.mxu1 }
 0x3fa   : > { %v1688_v55 = vadd.f32 %v1682_v12, %v1575_v6 }
 0x3fb   : > { %v5598_v63 = vpop.f32.mrf.mxu1  ;;  %5631 = vmatpush3.bf16.msra.mxu1 %v5843_v60 }
 0x3fc   : > { %5648 = vmatprep.subr.bf16.mxu1 %v5985_v1 }
 0x3fd   : > { %v1685_v48 = vpop.f32.mrf.mxu1 }
 0x3ff   : > { %v5599_v7 = vpop.f32.mrf.mxu1 }
 0x401   : > { %v1795_v49 = vpop.f32.mrf.mxu1 }
 0x402   : > { %v1801_v27 = vadd.f32 %v1795_v49, %v1688_v55  ;;  %v5845_v55 = vld [vmem:[%s6061_s20 + $0xb8] sm:$0xff]   ;;  %v5846_v49 = vld [vmem:[%s6061_s20 + $0xb0] sm:$0xff]  }
 0x403   : > { %v5610_v8 = vpop.f32.mrf.mxu1 }
 0x404   : > { %v1802_v11 = vpack.c.bf16 %v1801_v27, %v1801_v27  ;;  %v5847_v27 = vld [vmem:[%s6061_s20 + $0xa8] sm:$0xff]   ;;  %v6568_v8 = vsub.s32 5, %v6124_v20 }
 0x405   : > { %v1798_v10 = vpop.f32.mrf.mxu1 }
 0x406   : > { %5621 = vmatmul.mubr.msk.bf16.vlgmr.msra.gmra.mxu0 %vm7148_vm4, %v1802_v11  ;;  %vm7153_vm4 = vmmov %vm7147_vm3  ;;  %v6571_v11 = vld [vmem:[%s6066_s23] sm:$0xff] }
 0x407   : > { %v5611_v40 = vpop.f32.mrf.mxu1  ;;  %5644 = vmatprep.mubr.msk.bf16.mxu0 %vm7146_vm1, %v5985_v1  ;;  %5637 = vmatpush3.bf16.msra.mxu0 %v2033_v29  ;;  %v2102_v7 = vsel %vm7153_vm4, %v5844_v5, 0  ;;  %v2007_v10 = vrot.slane %v6571_v11, %v6568_v8  ;;  %vm7158_vm3 = vmmov %vm7155_vm5 }
 0x408   : > { %5638 = vmatprep.subr.bf16.mxu0 %v5985_v1  ;;  %vm7159_vm4 = vmmov %vm7158_vm3 }
 0x40b   : > { %5639 = vmatpush3.bf16.msra.mxu0 %v5837_v17 }
 0x40c   : > { %5640 = vmatprep.subr.bf16.mxu0 %v5985_v1 }
 0x40f   : > { %5641 = vmatpush3.bf16.msra.mxu0 %v5838_v41 }
 0x410   : > { %5642 = vmatprep.subr.bf16.mxu0 %v5985_v1 }
 0x413   : > { %5643 = vmatpush3.bf16.msra.mxu0 %v5839_v46  ;;  %v6602_v46 = vsub.s32 6, %v6124_v20 }
 0x414   : > { %5660 = vmatprep.subr.bf16.mxu0 %v5985_v1 }
 0x415   : > { %v2079_v31 = vrot.slane %v6571_v11, %v6602_v46 }
 0x416   : > { %5645 = vmatmul.mubr.msk.bf16.vlgmr.msra.gmra.mxu0 %vm7152_vm9, %v2003_v57 }
 0x417   : > { %5662 = vmatprep.mubr.msk.bf16.mxu0 %vm7146_vm1, %v5985_v1 }
 0x4c6   : > { %v1868_v16 = vpop.f32.mrf.mxu0 }
 0x4c7   : > { %v1869_v14 = vadd.f32 %v1868_v16, %v1806_v61 }
 0x4c8   : > { %v5622_v18 = vpop.f32.mrf.mxu0 }
 0x4c9   : > { %v1874_v26 = vadd.f32 %v5970_v15, %v1869_v14 }
 0x4ca   : > { %v1871_v28 = vpop.f32.mrf.mxu0 }
 0x4cb   : > { %v1875_v32 = vsel %vm7149_vm10, %v1874_v26, 0.0  ;;  %vm7154_vm10 = vmmov %vm7152_vm9  ;;  %vm7157_vm9 = vcmp.lt.s32.totalorder %v6135_v24, 5 }
 0x4cc   : > { %1876 = vadd.xlane.f32.xlu0 %v1875_v32  ;;  %v5623_v52 = vpop.f32.mrf.mxu0  ;;  %v6583_v32 = vsub.s32 4, %v6124_v20 }
 0x4ce   : > { %v1935_v52 = vrot.slane %v6571_v11, %v6583_v32 }
 0x4d6   : > { %v2069_v40 = vpop.f32.mrf.mxu0 }
 0x4d7   : > { %v2070_v16 = vadd.f32 %v2069_v40, %v2007_v10 }
 0x4d8   : > { %v5646_v61 = vpop.f32.mrf.mxu0 }
 0x4da   : > { %v2072_v14 = vpop.f32.mrf.mxu0 }
 0x4db   : > { %v2073_v18 = vadd.f32 %v2072_v14, %v2007_v10 }
 0x4dc   : > { %v5647_v15 = vpop.f32.mrf.mxu0 }
 0x555   : > { %v1877_v22 = vpop.xlane.xlu0 %1876 }
 0x556   : > { %v1879_v37 = vmul.f32 0.02, %v1877_v22 }
 0x558   : > { %v1880_v39 = vsub.f32 %v1874_v26, %v1879_v37  ;;  %v2154_v26 = vpack.c.bf16 %v2073_v18, %v2070_v16 }
 0x55a   : > { %v1881_v30 = vmul.f32 %v1880_v39, %v1880_v39 }
 0x55c   : > { %v1882_v25 = vsel %vm7151_vm15, %v1881_v30, 0.0  ;;  %vm7156_vm15 = vmmov %vm7155_vm5 }
 0x55d   : > { %1883 = vadd.xlane.f32.xlu1 %v1882_v25  ;;  %v6576_v28 = vsel %vm7156_vm15, %v2154_v26, 0 }
 0x55e   : > { %5661 = vmatpush3.bf16.xpose.msra.mxu0 %v6576_v28 }
 0x55f   : > { %5672 = vmatprep.subr.bf16.mxu0 %v5985_v1 }
 0x5e6   : > { %v1884_v42 = vpop.xlane.xlu1 %1883 }
 0x5e7   : > { %v1885_v33 = vmul.f32 0.02, %v1884_v42 }
 0x5e9   : > { %v1886_v0 = vadd.f32 1e-05, %v1885_v33 }
 0x5eb   : > { %5924 = vrsqrt.f32 %v1886_v0 }
 0x5f8   : > { %v5925_v51 = vpop.eup %5924 }
 0x5f9   : > { %v1888_v12 = vmul.f32 %v5925_v51, %v1880_v39 }
 0x5fb   : > { %v1893_v63 = vmul.f32 %v1892_v43, %v1888_v12 }
 0x5fd   : > { %v6549_v48 = vadd.f32 %v1897_v47, %v1893_v63 }
 0x5ff   : > { %v1931_v6 = vpack.c.bf16 %v6549_v48, %v6549_v48 }
 0x601   : > { %5633 = vmatmul.mubr.msk.bf16.vlgmr.msra.gmra.mxu1 %vm7154_vm10, %v1931_v6  ;;  %vm5124_vm10 = vmpackc.low %vm6167_vm12, %vm6167_vm12 }
 0x602   : > { %5649 = vmatpush3.bf16.msra.mxu1 %v2102_v7  ;;  %5656 = vmatprep.mubr.msk.bf16.mxu1 %vm7146_vm1, %v5985_v1 }
 0x603   : > { %5650 = vmatprep.subr.bf16.mxu1 %v5985_v1 }
 0x606   : > { %5651 = vmatpush3.bf16.msra.mxu1 %v5845_v55 }
 0x607   : > { %5652 = vmatprep.subr.bf16.mxu1 %v5985_v1 }
 0x60a   : > { %5653 = vmatpush3.bf16.msra.mxu1 %v5846_v49 }
 0x60b   : > { %5654 = vmatprep.subr.bf16.mxu1 %v5985_v1 }
 0x60e   : > { %5655 = vmatpush3.bf16.msra.mxu1 %v5847_v27 }
 0x60f   : > { %5666 = vmatprep.subr.bf16.mxu1 %v5985_v1 }
 0x611   : > { %5657 = vmatmul.mubr.msk.bf16.vlgmr.msra.gmra.mxu1 %vm7155_vm5, %v2003_v57  ;;  %vm7160_vm5 = vmmov %vm7157_vm9 }
 0x612   : > { %5668 = vmatprep.mubr.msk.bf16.mxu1 %vm7146_vm1, %v5985_v1  ;;  %5667 = vmatpush3.bf16.xpose.msra.mxu1 %v6576_v28  ;;  %vm5128_vm15 = vmpackc.low %vm7160_vm5, %vm7160_vm5 }
 0x613   : > { %5678 = vmatprep.subr.bf16.mxu1 %v5985_v1 }
 0x6c1   : > { %v1997_v35 = vpop.f32.mrf.mxu1 }
 0x6c2   : > { %v6587_v29 = vadd.f32 %v1997_v35, %v1935_v52 }
 0x6c3   : > { %v5634_v17 = vpop.f32.mrf.mxu1 }
 0x6c4   : > { %v2152_v22 = vsel %vm7157_vm9, %v6587_v29, 0.0  ;;  %v2219_v37 = vsel %vm6167_vm12, %v6587_v29, 0.0  ;;  %vm2146_vm9 = vcmp.ge.s32.totalorder %v6135_v24, 8  ;;  %v2367_v26 = vsel %vm6146_vm7, %v6587_v29, 0.0 }
 0x6c5   : > { %v2000_v39 = vpop.f32.mrf.mxu1  ;;  %v2153_v30 = vpack.c.bf16 %v2152_v22, %v2152_v22  ;;  %v2220_v25 = vpack.c.bf16 %v2219_v37, %v2219_v37  ;;  %vm2147_vm12 = vmand %vm660_vm14, %vm2146_vm9  ;;  %v2368_v52 = vpack.c.bf16 %v2367_v26, %v2367_v26  ;;  %v2473_v35 = vsel %vm6173_vm13, %v6587_v29, 0.0 }
 0x6c6   : > { %v2474_v17 = vpack.c.bf16 %v2473_v35, %v2473_v35  ;;  %v2579_v22 = vsel %vm6195_vm0, %v6587_v29, 0.0  ;;  %v2685_v39 = vsel %vm6211_vm8, %v6587_v29, 0.0 }
 0x6c7   : > { %v5635_v41 = vpop.f32.mrf.mxu1  ;;  %5663 = vmatmul.mubr.msk.bf16.vlgmr.msra.gmra.mxu0 %vm7158_vm3, %v2153_v30  ;;  %5669 = vmatmul.mubr.msk.bf16.vlgmr.msra.gmra.mxu1 %vm7159_vm4, %v2220_v25  ;;  %vm2148_vm3 = vcmp.lt.s32.totalorder %v6135_v24, 16  ;;  %vm2145_vm4 = vmand %vm654_vm6, %vm665_vm2  ;;  %vm7161_vm2 = vcmask 408576   ;;  %v2580_v37 = vpack.c.bf16 %v2579_v22, %v2579_v22  ;;  %v2686_v30 = vpack.c.bf16 %v2685_v39, %v2685_v39 }
 0x6c8   : > { %5674 = vmatprep.mubr.msk.bf16.mxu0 %vm7146_vm1, %v5985_v1  ;;  %5680 = vmatprep.mubr.msk.bf16.mxu1 %vm7146_vm1, %v5985_v1  ;;  %vm2149_vm5 = vmand %vm2147_vm12, %vm2148_vm3  ;;  %v2791_v25 = vsel %vm6225_vm11, %v6587_v29, 0.0  ;;  %vm7166_vm3 = vnez %v7141_v59 }
 0x6c9   : > { %vm7162_vm6 = vmmov %vm7161_vm2  ;;  %v2792_v41 = vpack.c.bf16 %v2791_v25, %v2791_v25 }
 0x6ca   : > { %vm7163_vm14 = vmmov %vm7161_vm2 }
 0x6cb   : > { %vm7164_vm9 = vmmov %vm7161_vm2 }
 0x6cc   : > { %vm7165_vm12 = vmmov %vm7161_vm2 }
 0x6d1   : > { %v2138_v19 = vpop.f32.mrf.mxu1 }
 0x6d2   : > { %v2139_v4 = vadd.f32 %v2138_v19, %v2079_v31 }
 0x6d3   : > { %v5658_v57 = vpop.f32.mrf.mxu1 }
 0x6d5   : > { %v2141_v38 = vpop.f32.mrf.mxu1 }
 0x6d6   : > { %v2142_v36 = vadd.f32 %v2141_v38, %v2079_v31  ;;  %v2897_v31 = vsel %vm7166_vm3, %v6587_v29, 0.0 }
 0x6d7   : > { %v5659_v58 = vpop.f32.mrf.mxu1  ;;  %v2898_v19 = vpack.c.bf16 %v2897_v31, %v2897_v31 }
 0x6d8   : > { %v6612_v60 = vpack.c.bf16 %v2142_v36, %v2139_v4 }
 0x6da   : > { %5673 = vmatpush3.bf16.msk.msra.mxu0 %vm5124_vm10, %v6612_v60  ;;  %5679 = vmatpush3.bf16.msk.msra.mxu1 %vm5128_vm15, %v6612_v60  ;;  %vm2150_vm10 = vmor %vm2145_vm4, %vm2149_vm5  ;;  %vm2203_vm15 = vcmask 130048   ;;  %vm7168_vm5 = vnez %v7143_v62 }
 0x6db   : > { %5684 = vmatprep.subr.bf16.mxu0 %v5985_v1  ;;  %5690 = vmatprep.subr.bf16.mxu1 %v5985_v1  ;;  %v6627_v33 = vsel %vm2150_vm10, 0.0, %v5987_v54  ;;  %vm7167_vm4 = vmmov %vm7161_vm2  ;;  %v3003_v57 = vsel %vm7168_vm5, %v6587_v29, 0.0 }
 0x6dc   : > { %v3004_v4 = vpack.c.bf16 %v3003_v57, %v3003_v57  ;;  %vm7169_vm10 = vmmov %vm7161_vm2 }
 0x787   : > { %v2195_v44 = vpop.f32.mrf.mxu0  ;;  %v2258_v42 = vpop.f32.mrf.mxu1 }
 0x788   : > { %v2201_v0 = vmul.f32 0.4472136, %v2195_v44  ;;  %v2264_v43 = vmul.f32 0.4472136, %v2258_v42 }
 0x789   : > { %v5664_v51 = vpop.f32.mrf.mxu0  ;;  %v5670_v12 = vpop.f32.mrf.mxu1 }
 0x78a   : > { %v2265_v47 = vadd.f32 %v2264_v43, %v6627_v33  ;;  %v6632_v6 = vadd.f32 %v2201_v0, %v6627_v33 }
 0x78b   : > { %v2198_v63 = vpop.f32.mrf.mxu0  ;;  %v2261_v5 = vpop.f32.mrf.mxu1 }
 0x78c   : > { %v2266_v24 = vsel %vm2203_vm15, %v2265_v47, -inf  ;;  %v2204_v54 = vsel %vm2203_vm15, %v6632_v6, -inf }
 0x78d   : > { %2267 = vmax.xlane.f32.xlu0 %v2266_v24  ;;  %v5665_v7 = vpop.f32.mrf.mxu0  ;;  %v5671_v55 = vpop.f32.mrf.mxu1 }
 0x791   : > { %2205 = vmax.xlane.f32.xlu0 %v2204_v54 }
 0x816   : > { %v2268_v49 = vpop.xlane.xlu0 %2267 }
 0x817   : > { %v2269_v27 = vsub.f32 %v2265_v47, %v2268_v49 }
 0x819   : > { %v2270_v10 = vmul.f32 1.442695, %v2269_v27 }
 0x81a   : > { %v2206_v39 = vpop.xlane.xlu0 %2205 }
 0x81b   : > { %5926 = vpow2.f32 %v2270_v10 }
 0x828   : > { %v5927_v40 = vpop.eup %5926 }
 0x829   : > { %v2272_v61 = vsel %vm2203_vm15, %v5927_v40, 0.0 }
 0x82a   : > { %2273 = vadd.xlane.f32.xlu1 %v2272_v61 }
 0x8b3   : > { %v2274_v16 = vpop.xlane.xlu1 %2273 }
 0x8b4   : > { %5928 = vrcp.f32 %v2274_v16 }
 0x8c1   : > { %v5929_v14 = vpop.eup %5928 }
 0x8c2   : > { %v2276_v18 = vmul.f32 %v5929_v14, %v5927_v40 }
 0x8c4   : > { %v2279_v15 = vpack.c.bf16 %v2276_v18, %v2276_v18 }
 0x8c6   : > { %5675 = vmatmul.mubr.msk.bf16.vlgmr.msra.gmra.mxu0 %vm2203_vm15, %v2279_v15 }
 0x8c7   : > { %5685 = vmatpush3.bf16.xpose.msra.mxu0 %v6576_v28  ;;  %5686 = vmatprep.mubr.msk.bf16.mxu0 %vm7146_vm1, %v5985_v1 }
 0x8c8   : > { %5696 = vmatprep.subr.bf16.mxu0 %v5985_v1 }
 0x8ce   : > { %5687 = vmatmul.mubr.msk.bf16.vlgmr.msra.gmra.mxu0 %vm7161_vm2, %v2368_v52  ;;  %vm7170_vm2 = vnez %v7145_v2 }
 0x8cf   : > { %5697 = vmatpush3.bf16.xpose.msra.mxu0 %v6576_v28  ;;  %5698 = vmatprep.mubr.msk.bf16.mxu0 %vm7146_vm1, %v5985_v1  ;;  %v3109_v38 = vsel %vm7170_vm2, %v6587_v29, 0.0 }
 0x8d0   : > { %5708 = vmatprep.subr.bf16.mxu0 %v5985_v1  ;;  %v3110_v36 = vpack.c.bf16 %v3109_v38, %v3109_v38 }
 0x8d6   : > { %5699 = vmatmul.mubr.msk.bf16.vlgmr.msra.gmra.mxu0 %vm7162_vm6, %v2474_v17  ;;  %vm7171_vm6 = vmmov %vm7167_vm4 }
 0x8d7   : > { %5709 = vmatpush3.bf16.xpose.msra.mxu0 %v6576_v28  ;;  %5710 = vmatprep.mubr.msk.bf16.mxu0 %vm7146_vm1, %v5985_v1 }
 0x8d8   : > { %5720 = vmatprep.subr.bf16.mxu0 %v5985_v1 }
 0x8de   : > { %5711 = vmatmul.mubr.msk.bf16.vlgmr.msra.gmra.mxu0 %vm7163_vm14, %v2580_v37  ;;  %vm5133_vm14 = vmpackc.low %vm6146_vm7, %vm6146_vm7 }
 0x8df   : > { %5721 = vmatpush3.bf16.xpose.msra.mxu0 %v6576_v28  ;;  %5722 = vmatprep.mubr.msk.bf16.mxu0 %vm7146_vm1, %v5985_v1  ;;  %vm5138_vm7 = vmpackc.low %vm6173_vm13, %vm6173_vm13 }
 0x8e0   : > { %5732 = vmatprep.subr.bf16.mxu0 %v5985_v1  ;;  %vm5148_vm13 = vmpackc.low %vm6211_vm8, %vm6211_vm8 }
 0x8e1   : > { %vm5158_vm8 = vmpackc.low %vm7166_vm3, %vm7166_vm3  ;;  %vm7172_vm3 = vcmask 1040384  }
 0x8e6   : > { %5723 = vmatmul.mubr.msk.bf16.vlgmr.msra.gmra.mxu0 %vm7164_vm9, %v2686_v30  ;;  %vm5143_vm9 = vmpackc.low %vm6195_vm0, %vm6195_vm0 }
 0x8e7   : > { %5733 = vmatpush3.bf16.xpose.msra.mxu0 %v6576_v28  ;;  %5734 = vmatprep.mubr.msk.bf16.mxu0 %vm7146_vm1, %v5985_v1  ;;  %vm5153_vm0 = vmpackc.low %vm6225_vm11, %vm6225_vm11 }
 0x8e8   : > { %5744 = vmatprep.subr.bf16.mxu0 %v5985_v1  ;;  %vm5163_vm11 = vmpackc.low %vm7168_vm5, %vm7168_vm5 }
 0x8e9   : > { %vm7176_vm5 = vmmov %vm7172_vm3 }
 0x8ee   : > { %5735 = vmatmul.mubr.msk.bf16.vlgmr.msra.gmra.mxu0 %vm7165_vm12, %v2792_v41  ;;  %v2207_v41 = vsub.f32 %v6632_v6, %v2206_v39  ;;  %vm5168_vm12 = vmpackc.low %vm7170_vm2, %vm7170_vm2 }
 0x8ef   : > { %5745 = vmatpush3.bf16.xpose.msra.mxu0 %v6576_v28  ;;  %5746 = vmatprep.mubr.msk.bf16.mxu0 %vm7146_vm1, %v5985_v1  ;;  %vm7178_vm2 = vmmov %vm7172_vm3 }
 0x8f0   : > { %5756 = vmatprep.subr.bf16.mxu0 %v5985_v1  ;;  %v2208_v38 = vmul.f32 1.442695, %v2207_v41 }
 0x8f2   : > { %5930 = vpow2.f32 %v2208_v38 }
 0x8f6   : > { %5747 = vmatmul.mubr.msk.bf16.vlgmr.msra.gmra.mxu0 %vm7167_vm4, %v2898_v19 }
 0x8f7   : > { %5757 = vmatpush3.bf16.xpose.msra.mxu0 %v6576_v28  ;;  %5758 = vmatprep.mubr.msk.bf16.mxu0 %vm7146_vm1, %v5985_v1 }
 0x8f8   : > { %5768 = vmatprep.subr.bf16.mxu0 %v5985_v1 }
 0x8fe   : > { %5759 = vmatmul.mubr.msk.bf16.vlgmr.msra.gmra.mxu0 %vm7169_vm10, %v3004_v4  ;;  %vm7177_vm10 = vmmov %vm7172_vm3 }
 0x8ff   : > { %5769 = vmatpush3.bf16.xpose.msra.mxu0 %v6576_v28  ;;  %5770 = vmatprep.mubr.msk.bf16.mxu0 %vm7146_vm1, %v5985_v1 }
 0x900   : > { %5780 = vmatprep.subr.bf16.mxu0 %v5985_v1 }
 0x906   : > { %5771 = vmatmul.mubr.msk.bf16.vlgmr.msra.gmra.mxu0 %vm7171_vm6, %v3110_v36  ;;  %vm7179_vm6 = vmmov %vm7178_vm2 }
 0x907   : > { %5788 = vmatprep.mubr.msk.bf16.mxu0 %vm7146_vm1, %v5985_v1 }
 0x986   : > { %v6704_v58 = vpop.f32.mrf.mxu0 }
 0x988   : > { %v5676_v44 = vpop.f32.mrf.mxu0 }
 0x98a   : > { %v2321_v42 = vpop.f32.mrf.mxu0 }
 0x98c   : > { %v5677_v28 = vpop.f32.mrf.mxu0 }
 0x98e   : > { %v2406_v0 = vpop.f32.mrf.mxu0 }
 0x98f   : > { %v2412_v43 = vmul.f32 0.4472136, %v2406_v0 }
 0x990   : > { %v5688_v51 = vpop.f32.mrf.mxu0 }
 0x991   : > { %v6707_v12 = vadd.f32 %v2412_v43, %v6627_v33 }
 0x992   : > { %v2409_v47 = vpop.f32.mrf.mxu0 }
 0x993   : > { %v2414_v29 = vsel %vm2203_vm15, %v6707_v12, -inf }
 0x994   : > { %2415 = vmax.xlane.f32.xlu1 %v2414_v29  ;;  %v5689_v63 = vpop.f32.mrf.mxu0 }
 0x996   : > { %v2512_v5 = vpop.f32.mrf.mxu0 }
 0x997   : > { %v2518_v24 = vmul.f32 0.4472136, %v2512_v5 }
 0x998   : > { %v5700_v7 = vpop.f32.mrf.mxu0 }
 0x999   : > { %v6712_v55 = vadd.f32 %v2518_v24, %v6627_v33 }
 0x99a   : > { %v2515_v54 = vpop.f32.mrf.mxu0 }
 0x99b   : > { %v2520_v49 = vsel %vm2203_vm15, %v6712_v55, -inf }
 0x99c   : > { %2521 = vmax.xlane.f32.xlu0 %v2520_v49  ;;  %v5701_v27 = vpop.f32.mrf.mxu0  ;;  %v6730_v49 = vpop.eup %5930 }
 0x99e   : > { %v2618_v10 = vpop.f32.mrf.mxu0 }
 0x99f   : > { %v2624_v40 = vmul.f32 0.4472136, %v2618_v10 }
 0x9a0   : > { %v5712_v61 = vpop.f32.mrf.mxu0 }
 0x9a1   : > { %v6717_v16 = vadd.f32 %v2624_v40, %v6627_v33  ;;  %v2210_v61 = vsel %vm2203_vm15, %v6730_v49, 0.0 }
 0x9a2   : > { %v2621_v14 = vpop.f32.mrf.mxu0 }
 0x9a3   : > { %v2626_v18 = vsel %vm2203_vm15, %v6717_v16, -inf }
 0x9a4   : > { %2627 = vmax.xlane.f32.xlu1 %v2626_v18  ;;  %v5713_v15 = vpop.f32.mrf.mxu0 }
 0x9a6   : > { %v2724_v26 = vpop.f32.mrf.mxu0 }
 0x9a7   : > { %v2730_v52 = vmul.f32 0.4472136, %v2724_v26 }
 0x9a8   : > { %v5724_v35 = vpop.f32.mrf.mxu0 }
 0x9a9   : > { %v2731_v17 = vadd.f32 %v2730_v52, %v6627_v33 }
 0x9aa   : > { %v2727_v22 = vpop.f32.mrf.mxu0 }
 0x9ab   : > { %v2732_v37 = vsel %vm2203_vm15, %v2731_v17, -inf }
 0x9ac   : > { %2733 = vmax.xlane.f32.xlu0 %v2732_v37  ;;  %v5725_v30 = vpop.f32.mrf.mxu0 }
 0x9ae   : > { %v2830_v25 = vpop.f32.mrf.mxu0 }
 0x9af   : > { %v2836_v31 = vmul.f32 0.4472136, %v2830_v25 }
 0x9b0   : > { %v5736_v19 = vpop.f32.mrf.mxu0 }
 0x9b1   : > { %v2837_v57 = vadd.f32 %v2836_v31, %v6627_v33 }
 0x9b2   : > { %v2833_v4 = vpop.f32.mrf.mxu0 }
 0x9b3   : > { %v2838_v36 = vsel %vm2203_vm15, %v2837_v57, -inf }
 0x9b4   : > { %2839 = vmax.xlane.f32.xlu1 %v2838_v36  ;;  %v5737_v44 = vpop.f32.mrf.mxu0 }
 0x9b6   : > { %v2936_v42 = vpop.f32.mrf.mxu0 }
 0x9b7   : > { %v2942_v28 = vmul.f32 0.4472136, %v2936_v42 }
 0x9b8   : > { %v5748_v0 = vpop.f32.mrf.mxu0 }
 0x9b9   : > { %v2943_v43 = vadd.f32 %v2942_v28, %v6627_v33 }
 0x9ba   : > { %v2939_v51 = vpop.f32.mrf.mxu0 }
 0x9bb   : > { %v2944_v47 = vsel %vm2203_vm15, %v2943_v43, -inf }
 0x9bc   : > { %2945 = vmax.xlane.f32.xlu0 %v2944_v47  ;;  %v5749_v6 = vpop.f32.mrf.mxu0 }
 0x9be   : > { %v3042_v29 = vpop.f32.mrf.mxu0 }
 0x9bf   : > { %v3048_v63 = vmul.f32 0.4472136, %v3042_v29 }
 0x9c0   : > { %v5760_v5 = vpop.f32.mrf.mxu0 }
 0x9c1   : > { %v3049_v24 = vadd.f32 %v3048_v63, %v6627_v33 }
 0x9c2   : > { %v3045_v7 = vpop.f32.mrf.mxu0 }
 0x9c3   : > { %v3050_v54 = vsel %vm2203_vm15, %v3049_v24, -inf }
 0x9c4   : > { %3051 = vmax.xlane.f32.xlu1 %v3050_v54  ;;  %v5761_v27 = vpop.f32.mrf.mxu0 }
 0x9c6   : > { %v3148_v10 = vpop.f32.mrf.mxu0 }
 0x9c7   : > { %v3154_v40 = vmul.f32 0.4472136, %v3148_v10 }
 0x9c8   : > { %2211 = vadd.xlane.f32.xlu1 %v2210_v61  ;;  %v5772_v14 = vpop.f32.mrf.mxu0 }
 0x9c9   : > { %v3155_v18 = vadd.f32 %v3154_v40, %v6627_v33 }
 0x9ca   : > { %v3151_v15 = vpop.f32.mrf.mxu0 }
 0x9cb   : > { %v3156_v26 = vsel %vm2203_vm15, %v3155_v18, -inf }
 0x9cc   : > { %3157 = vmax.xlane.f32.xlu0 %v3156_v26  ;;  %v5773_v52 = vpop.f32.mrf.mxu0 }
 0xa1d   : > { %v2416_v35 = vpop.xlane.xlu1 %2415 }
 0xa1e   : > { %v2417_v22 = vsub.f32 %v6707_v12, %v2416_v35 }
 0xa20   : > { %v2418_v37 = vmul.f32 1.442695, %v2417_v22 }
 0xa22   : > { %5932 = vpow2.f32 %v2418_v37 }
 0xa25   : > { %v2522_v39 = vpop.xlane.xlu0 %2521 }
 0xa26   : > { %v2523_v30 = vsub.f32 %v6712_v55, %v2522_v39 }
 0xa28   : > { %v2524_v25 = vmul.f32 1.442695, %v2523_v30 }
 0xa2a   : > { %5934 = vpow2.f32 %v2524_v25 }
 0xa2d   : > { %v2628_v41 = vpop.xlane.xlu1 %2627 }
 0xa2e   : > { %v2629_v31 = vsub.f32 %v6717_v16, %v2628_v41 }
 0xa2f   : > { %v5933_v19 = vpop.eup %5932 }
 0xa30   : > { %v2630_v33 = vmul.f32 1.442695, %v2629_v31  ;;  %v2420_v4 = vsel %vm2203_vm15, %v5933_v19, 0.0 }
 0xa31   : > { %2421 = vadd.xlane.f32.xlu0 %v2420_v4 }
 0xa32   : > { %5936 = vpow2.f32 %v2630_v33 }
 0xa35   : > { %v2734_v38 = vpop.xlane.xlu0 %2733 }
 0xa36   : > { %v2735_v36 = vsub.f32 %v2731_v17, %v2734_v38 }
 0xa37   : > { %v6740_v44 = vpop.eup %5934 }
 0xa38   : > { %v2736_v12 = vmul.f32 1.442695, %v2735_v36  ;;  %v2526_v42 = vsel %vm2203_vm15, %v6740_v44, 0.0 }
 0xa39   : > { %2527 = vadd.xlane.f32.xlu1 %v2526_v42 }
 0xa3a   : > { %5938 = vpow2.f32 %v2736_v12 }
 0xa3d   : > { %v2840_v55 = vpop.xlane.xlu1 %2839 }
 0xa3e   : > { %v2841_v28 = vsub.f32 %v2837_v57, %v2840_v55 }
 0xa3f   : > { %v6744_v0 = vpop.eup %5936 }
 0xa40   : > { %v2842_v16 = vmul.f32 1.442695, %v2841_v28  ;;  %v2632_v51 = vsel %vm2203_vm15, %v6744_v0, 0.0 }
 0xa41   : > { %2633 = vadd.xlane.f32.xlu0 %v2632_v51 }
 0xa42   : > { %5940 = vpow2.f32 %v2842_v16 }
 0xa45   : > { %v2946_v47 = vpop.xlane.xlu0 %2945 }
 0xa46   : > { %v2947_v17 = vsub.f32 %v2943_v43, %v2946_v47 }
 0xa47   : > { %v6748_v6 = vpop.eup %5938 }
 0xa48   : > { %v2948_v29 = vmul.f32 1.442695, %v2947_v17  ;;  %v2738_v63 = vsel %vm2203_vm15, %v6748_v6, 0.0 }
 0xa49   : > { %2739 = vadd.xlane.f32.xlu1 %v2738_v63 }
 0xa4a   : > { %5942 = vpow2.f32 %v2948_v29 }
 0xa4d   : > { %v3052_v5 = vpop.xlane.xlu1 %3051 }
 0xa4e   : > { %v3053_v57 = vsub.f32 %v3049_v24, %v3052_v5 }
 0xa4f   : > { %v6752_v7 = vpop.eup %5940 }
 0xa50   : > { %v3054_v54 = vmul.f32 1.442695, %v3053_v57  ;;  %v2844_v27 = vsel %vm2203_vm15, %v6752_v7, 0.0 }
 0xa51   : > { %v2212_v10 = vpop.xlane.xlu1 %2211  ;;  %2845 = vadd.xlane.f32.xlu0 %v2844_v27  ;;  %v5848_v27 = vld [vmem:[%s6061_s20 + $0xdc] ss:$0 sps:$4 sm:$0x11]  }
 0xa52   : > { %5944 = vpow2.f32 %v3054_v54 }
 0xa53   : > { %5946 = vrcp.f32 %v2212_v10  ;;  %v3245_v10 = vsel %vm7172_vm3, %v5848_v27, 0  ;;  %vm7188_vm3 = vmmov %vm7178_vm2 }
 0xa54   : > { %5781 = vmatpush3.bf16.msra.mxu0 %v3245_v10 }
 0xa55   : > { %v3158_v43 = vpop.xlane.xlu0 %3157  ;;  %5782 = vmatprep.subr.bf16.mxu0 %v5985_v1 }
 0xa56   : > { %v3159_v40 = vsub.f32 %v3155_v18, %v3158_v43  ;;  %v5850_v43 = vld [vmem:[%s6061_s20 + $0xcc] sm:$0xff]  }
 0xa57   : > { %v6756_v61 = vpop.eup %5942 }
 0xa58   : > { %v3160_v14 = vmul.f32 1.442695, %v3159_v40  ;;  %v2950_v15 = vsel %vm2203_vm15, %v6756_v61, 0.0  ;;  %v5851_v40 = vld [vmem:[%s6061_s20 + $0xc4] sm:$0xff]  }
 0xa59   : > { %2951 = vadd.xlane.f32.xlu1 %v2950_v15 }
 0xa5a   : > { %5948 = vpow2.f32 %v3160_v14 }
 0xa5f   : > { %v6760_v24 = vpop.eup %5944 }
 0xa60   : > { %v5947_v26 = vpop.eup %5946  ;;  %v3056_v52 = vsel %vm2203_vm15, %v6760_v24, 0.0 }
 0xa61   : > { %3057 = vadd.xlane.f32.xlu0 %v3056_v52  ;;  %v2214_v35 = vmul.f32 %v5947_v26, %v6730_v49 }
 0xa63   : > { %v2217_v22 = vpack.c.bf16 %v2214_v35, %v2214_v35 }
 0xa65   : > { %5681 = vmatmul.mubr.msk.bf16.vlgmr.msra.gmra.mxu1 %vm2203_vm15, %v2217_v22 }
 0xa66   : > { %5691 = vmatpush3.bf16.msk.msra.mxu1 %vm5133_vm14, %v6612_v60  ;;  %5692 = vmatprep.mubr.msk.bf16.mxu1 %vm7146_vm1, %v5985_v1  ;;  %vm7180_vm14 = vmmov %vm7178_vm2 }
 0xa67   : > { %v6772_v18 = vpop.eup %5948  ;;  %5702 = vmatprep.subr.bf16.mxu1 %v5985_v1 }
 0xa68   : > { %v3162_v37 = vsel %vm2203_vm15, %v6772_v18, 0.0 }
 0xa69   : > { %3163 = vadd.xlane.f32.xlu1 %v3162_v37 }
 0xaba   : > { %v2422_v49 = vpop.xlane.xlu0 %2421 }
 0xabb   : > { %5950 = vrcp.f32 %v2422_v49 }
 0xac2   : > { %v2528_v34 = vpop.xlane.xlu1 %2527 }
 0xac3   : > { %5952 = vrcp.f32 %v2528_v34 }
 0xac8   : > { %v5951_v39 = vpop.eup %5950 }
 0xac9   : > { %v2424_v30 = vmul.f32 %v5951_v39, %v5933_v19 }
 0xaca   : > { %v2634_v25 = vpop.xlane.xlu0 %2633 }
 0xacb   : > { %5954 = vrcp.f32 %v2634_v25  ;;  %v2427_v41 = vpack.c.bf16 %v2424_v30, %v2424_v30 }
 0xacd   : > { %5693 = vmatmul.mubr.msk.bf16.vlgmr.msra.gmra.mxu1 %vm2203_vm15, %v2427_v41 }
 0xace   : > { %5703 = vmatpush3.bf16.msk.msra.mxu1 %vm5138_vm7, %v6612_v60  ;;  %5704 = vmatprep.mubr.msk.bf16.mxu1 %vm7146_vm1, %v5985_v1  ;;  %vm7181_vm7 = vmmov %vm7178_vm2 }
 0xacf   : > { %5714 = vmatprep.subr.bf16.mxu1 %v5985_v1 }
 0xad0   : > { %v5953_v31 = vpop.eup %5952 }
 0xad1   : > { %v2530_v33 = vmul.f32 %v5953_v31, %v6740_v44 }
 0xad2   : > { %v2740_v19 = vpop.xlane.xlu1 %2739 }
 0xad3   : > { %5956 = vrcp.f32 %v2740_v19  ;;  %v2533_v4 = vpack.c.bf16 %v2530_v33, %v2530_v33 }
 0xad5   : > { %5705 = vmatmul.mubr.msk.bf16.vlgmr.msra.gmra.mxu1 %vm2203_vm15, %v2533_v4 }
 0xad6   : > { %5715 = vmatpush3.bf16.msk.msra.mxu1 %vm5143_vm9, %v6612_v60  ;;  %5716 = vmatprep.mubr.msk.bf16.mxu1 %vm7146_vm1, %v5985_v1  ;;  %vm7182_vm9 = vmmov %vm7178_vm2 }
 0xad7   : > { %5726 = vmatprep.subr.bf16.mxu1 %v5985_v1 }
 0xad8   : > { %v5955_v45 = vpop.eup %5954 }
 0xad9   : > { %v2636_v38 = vmul.f32 %v5955_v45, %v6744_v0 }
 0xada   : > { %v2846_v36 = vpop.xlane.xlu0 %2845 }
 0xadb   : > { %5958 = vrcp.f32 %v2846_v36  ;;  %v2639_v44 = vpack.c.bf16 %v2636_v38, %v2636_v38 }
 0xadd   : > { %5717 = vmatmul.mubr.msk.bf16.vlgmr.msra.gmra.mxu1 %vm2203_vm15, %v2639_v44 }
 0xade   : > { %5727 = vmatpush3.bf16.msk.msra.mxu1 %vm5148_vm13, %v6612_v60  ;;  %5728 = vmatprep.mubr.msk.bf16.mxu1 %vm7146_vm1, %v5985_v1  ;;  %vm7183_vm13 = vmmov %vm7178_vm2 }
 0xadf   : > { %5738 = vmatprep.subr.bf16.mxu1 %v5985_v1 }
 0xae0   : > { %v5957_v50 = vpop.eup %5956 }
 0xae1   : > { %v2742_v12 = vmul.f32 %v5957_v50, %v6748_v6 }
 0xae2   : > { %v2952_v42 = vpop.xlane.xlu1 %2951 }
 0xae3   : > { %5960 = vrcp.f32 %v2952_v42  ;;  %v2745_v55 = vpack.c.bf16 %v2742_v12, %v2742_v12 }
 0xae5   : > { %5729 = vmatmul.mubr.msk.bf16.vlgmr.msra.gmra.mxu1 %vm2203_vm15, %v2745_v55 }
 0xae6   : > { %5739 = vmatpush3.bf16.msk.msra.mxu1 %vm5153_vm0, %v6612_v60  ;;  %5740 = vmatprep.mubr.msk.bf16.mxu1 %vm7146_vm1, %v5985_v1 }
 0xae7   : > { %5750 = vmatprep.subr.bf16.mxu1 %v5985_v1 }
 0xae8   : > { %v5959_v53 = vpop.eup %5958 }
 0xae9   : > { %v2848_v28 = vmul.f32 %v5959_v53, %v6752_v7 }
 0xaea   : > { %v3058_v0 = vpop.xlane.xlu0 %3057 }
 0xaeb   : > { %5962 = vrcp.f32 %v3058_v0  ;;  %v2851_v16 = vpack.c.bf16 %v2848_v28, %v2848_v28 }
 0xaed   : > { %5741 = vmatmul.mubr.msk.bf16.vlgmr.msra.gmra.mxu1 %vm2203_vm15, %v2851_v16 }
 0xaee   : > { %5751 = vmatpush3.bf16.msk.msra.mxu1 %vm5158_vm8, %v6612_v60  ;;  %5752 = vmatprep.mubr.msk.bf16.mxu1 %vm7146_vm1, %v5985_v1 }
 0xaef   : > { %5762 = vmatprep.subr.bf16.mxu1 %v5985_v1 }
 0xaf0   : > { %v5961_v56 = vpop.eup %5960 }
 0xaf1   : > { %v2954_v51 = vmul.f32 %v5961_v56, %v6756_v61 }
 0xaf2   : > { %v3164_v47 = vpop.xlane.xlu1 %3163 }
 0xaf3   : > { %5964 = vrcp.f32 %v3164_v47  ;;  %v2957_v17 = vpack.c.bf16 %v2954_v51, %v2954_v51 }
 0xaf5   : > { %5753 = vmatmul.mubr.msk.bf16.vlgmr.msra.gmra.mxu1 %vm2203_vm15, %v2957_v17 }
 0xaf6   : > { %5763 = vmatpush3.bf16.msk.msra.mxu1 %vm5163_vm11, %v6612_v60  ;;  %5764 = vmatprep.mubr.msk.bf16.mxu1 %vm7146_vm1, %v5985_v1  ;;  %vm7186_vm11 = vmmov %vm7178_vm2 }
 0xaf7   : > { %5774 = vmatprep.subr.bf16.mxu1 %v5985_v1 }
 0xaf8   : > { %v5963_v59 = vpop.eup %5962 }
 0xaf9   : > { %v3060_v6 = vmul.f32 %v5963_v59, %v6760_v24 }
 0xafb   : > { %v3063_v29 = vpack.c.bf16 %v3060_v6, %v3060_v6 }
 0xafd   : > { %5765 = vmatmul.mubr.msk.bf16.vlgmr.msra.gmra.mxu1 %vm2203_vm15, %v3063_v29 }
 0xafe   : > { %5775 = vmatpush3.bf16.msk.msra.mxu1 %vm5168_vm12, %v6612_v60  ;;  %5776 = vmatprep.mubr.msk.bf16.mxu1 %vm7146_vm1, %v5985_v1  ;;  %v5849_v60 = vld [vmem:[%s6061_s20 + $0xd4] sm:$0xff]   ;;  %vm7173_vm1 = vmmov %vm7167_vm4 }
 0xaff   : > { %5783 = vmatpush3.bf16.msra.mxu0 %v5849_v60  ;;  %vm7175_vm4 = vmmov %vm7173_vm1 }
 0xb00   : > { %v5965_v62 = vpop.eup %5964  ;;  %5784 = vmatprep.subr.bf16.mxu0 %v5985_v1  ;;  %vm7184_vm0 = vmmov %vm7173_vm1 }
 0xb01   : > { %v3166_v63 = vmul.f32 %v5965_v62, %v6772_v18  ;;  %vm7185_vm8 = vmmov %vm7184_vm0 }
 0xb02   : > { %vm7187_vm12 = vmmov %vm7178_vm2 }
 0xb03   : > { %v3169_v5 = vpack.c.bf16 %v3166_v63, %v3166_v63  ;;  %5785 = vmatpush3.bf16.msra.mxu0 %v5850_v43  ;;  %v6851_v63 = vsub.s32 7, %v6124_v20 }
 0xb04   : > { %5786 = vmatprep.subr.bf16.mxu0 %v5985_v1 }
 0xb05   : > { %5777 = vmatmul.mubr.msk.bf16.vlgmr.msra.gmra.mxu1 %vm2203_vm15, %v3169_v5  ;;  %v3219_v5 = vrot.slane %v6571_v11, %v6851_v63  ;;  %vm7174_vm15 = vmmov %vm7173_vm1 }
 0xb07   : > { %5787 = vmatpush3.bf16.msra.mxu0 %v5851_v40 }
 0xb25   : > { %v2361_v57 = vpop.f32.mrf.mxu1 }
 0xb26   : > { %v2362_v45 = vadd.f32 %v2361_v57, %v6704_v58 }
 0xb27   : > { %v5682_v2 = vpop.f32.mrf.mxu1 }
 0xb29   : > { %v2364_v7 = vpop.f32.mrf.mxu1 }
 0xb2b   : > { %v5683_v54 = vpop.f32.mrf.mxu1 }
 0xb8d   : > { %v2466_v61 = vpop.f32.mrf.mxu1 }
 0xb8e   : > { %v2472_v36 = vadd.f32 %v2466_v61, %v2362_v45 }
 0xb8f   : > { %v5694_v14 = vpop.f32.mrf.mxu1 }
 0xb90   : > { %v3359_v14 = vld [vmem:[%s6071_s26 + $0x180] sm:$0x11] }
 0xb91   : > { %v2469_v15 = vpop.f32.mrf.mxu1 }
 0xb92   : > { %v5226_v15 = vcombine.high %v3359_v14, %v3359_v14 }
 0xb93   : > { %v5695_v24 = vpop.f32.mrf.mxu1 }
 0xb94   : > { %5241 = vmatprep.subr.msk.bf16.mxu1 %vm7176_vm5, %v5226_v15  ;;  %v3337_v15 = vld [vmem:[%s6071_s26 + $0xd0] sm:$0xff] }
 0xb95   : > { %v2572_v26 = vpop.f32.mrf.mxu1 }
 0xb96   : > { %v2578_v50 = vadd.f32 %v2572_v26, %v2472_v36  ;;  %v5225_v26 = vcombine.low %v3359_v14, %v3359_v14 }
 0xb97   : > { %v5706_v52 = vpop.f32.mrf.mxu1 }
 0xb99   : > { %v2575_v35 = vpop.f32.mrf.mxu1 }
 0xb9a   : > { %v3736_v35 = vsel %vm7178_vm2, %v5225_v26, 0  ;;  %v3338_v26 = vld [vmem:[%s6071_s26 + $0xd8] sm:$0xff] }
 0xb9b   : > { %v5707_v22 = vpop.f32.mrf.mxu1  ;;  %3792 = vmatpush1.bf16.msra.mxu1 %v3736_v35 }
 0xb9d   : > { %v2678_v18 = vpop.f32.mrf.mxu1 }
 0xb9e   : > { %v2684_v42 = vadd.f32 %v2678_v18, %v2578_v50  ;;  %v3343_v18 = vld [vmem:[%s6071_s26 + $0x100] sm:$0xff] }
 0xb9f   : > { %v5718_v37 = vpop.f32.mrf.mxu1  ;;  %v3319_v50 = vld [vmem:[%s6071_s26 + $0x40] sm:$0xff] }
 0xba0   : > { %v3351_v37 = vld [vmem:[%s6071_s26 + $0x140] sm:$0xff] }
 0xba1   : > { %v2681_v49 = vpop.f32.mrf.mxu1 }
 0xba2   : > { %v3344_v49 = vld [vmem:[%s6071_s26 + $0x108] sm:$0xff] }
 0xba3   : > { %v5719_v34 = vpop.f32.mrf.mxu1 }
 0xba4   : > { %v5210_v34 = vcombine.high %v3343_v18, %v3351_v37 }
 0xba5   : > { %v2784_v39 = vpop.f32.mrf.mxu1 }
 0xba6   : > { %v2790_v53 = vadd.f32 %v2784_v39, %v2684_v42  ;;  %v3352_v39 = vld [vmem:[%s6071_s26 + $0x148] sm:$0xff]  ;;  %3793 = vmatprep.subr.bf16.mxu1 %v5210_v34  ;;  %v3314_v34 = vld [vmem:[%s6071_s26 + $0x18] sm:$0xff] }
 0xba7   : > { %v5730_v30 = vpop.f32.mrf.mxu1 }
 0xba8   : > { %v5209_v30 = vcombine.low %v3343_v18, %v3351_v37  ;;  %v3313_v37 = vld [vmem:[%s6071_s26 + $0x10] sm:$0xff] }
 0xba9   : > { %v2787_v25 = vpop.f32.mrf.mxu1 }
 0xbaa   : > { %v5211_v25 = vcombine.low %v3344_v49, %v3352_v39  ;;  %3794 = vmatpush1.bf16.msra.mxu1 %v5209_v30 }
 0xbab   : > { %v5731_v41 = vpop.f32.mrf.mxu1 }
 0xbac   : > { %v5212_v41 = vcombine.high %v3344_v49, %v3352_v39  ;;  %v3321_v49 = vld [vmem:[%s6071_s26 + $0x50] sm:$0xff]  ;;  %v3322_v39 = vld [vmem:[%s6071_s26 + $0x58] sm:$0xff] }
 0xbad   : > { %v2890_v31 = vpop.f32.mrf.mxu1 }
 0xbae   : > { %v2896_v0 = vadd.f32 %v2890_v31, %v2790_v53  ;;  %v3327_v31 = vld [vmem:[%s6071_s26 + $0x80] sm:$0xff] }
 0xbaf   : > { %v5742_v1 = vpop.f32.mrf.mxu1 }
 0xbb0   : > { %v3335_v1 = vld [vmem:[%s6071_s26 + $0xc0] sm:$0xff] }
 0xbb1   : > { %v2893_v33 = vpop.f32.mrf.mxu1  ;;  %v5193_v45 = vcombine.low %v3327_v31, %v3335_v1 }
 0xbb2   : > { %v3328_v33 = vld [vmem:[%s6071_s26 + $0x88] sm:$0xff] }
 0xbb3   : > { %v5743_v19 = vpop.f32.mrf.mxu1 }
 0xbb4   : > { %v5194_v19 = vcombine.high %v3327_v31, %v3335_v1  ;;  %v5184_v31 = vcombine.high %v3314_v34, %v3322_v39  ;;  %v3363_v1 = vld [vmem:[%s6071_s26 + $0x1a0] sm:$0x11] }
 0xbb5   : > { %v2996_v4 = vpop.f32.mrf.mxu1 }
 0xbb6   : > { %v3002_v56 = vadd.f32 %v2996_v4, %v2896_v0  ;;  %v3336_v4 = vld [vmem:[%s6071_s26 + $0xc8] sm:$0xff]  ;;  %3795 = vmatprep.subr.bf16.mxu1 %v5194_v19  ;;  %v5181_v19 = vcombine.low %v3313_v37, %v3321_v49 }
 0xbb7   : > { %v5754_v38 = vpop.f32.mrf.mxu1  ;;  %v5196_v36 = vcombine.high %v3328_v33, %v3336_v4  ;;  %3796 = vmatpush1.bf16.msra.mxu1 %v5193_v45  ;;  %v5234_v45 = vcombine.high %v3363_v1, %v3363_v1 }
 0xbb8   : > { %v5195_v38 = vcombine.low %v3328_v33, %v3336_v4  ;;  %v3364_v33 = vld [vmem:[%s6071_s26 + $0x1a8] sm:$0x11]  ;;  %v5183_v4 = vcombine.low %v3314_v34, %v3322_v39  ;;  %v3333_v39 = vld [vmem:[%s6071_s26 + $0xb0] sm:$0xff] }
 0xbb9   : > { %v2999_v44 = vpop.f32.mrf.mxu1 }
 0xbba   : > { %v3311_v44 = vld [vmem:[%s6071_s26] sm:$0xff] }
 0xbbb   : > { %v5755_v12 = vpop.f32.mrf.mxu1  ;;  %v5178_v42 = vcombine.high %v3311_v44, %v3319_v50  ;;  %v5177_v53 = vcombine.low %v3311_v44, %v3319_v50  ;;  %v5235_v44 = vcombine.low %v3364_v33, %v3364_v33  ;;  %v3347_v50 = vld [vmem:[%s6071_s26 + $0x120] sm:$0xff] }
 0xbbc   : > { %v3312_v12 = vld [vmem:[%s6071_s26 + $0x8] sm:$0xff] }
 0xbbd   : > { %v3102_v55 = vpop.f32.mrf.mxu1  ;;  %3797 = vmatprep.subr.bf16.mxu1 %v5178_v42  ;;  %v3348_v42 = vld [vmem:[%s6071_s26 + $0x128] sm:$0xff] }
 0xbbe   : > { %v3108_v47 = vadd.f32 %v3102_v55, %v3002_v56  ;;  %v3320_v55 = vld [vmem:[%s6071_s26 + $0x48] sm:$0xff]  ;;  %v3362_v56 = vld [vmem:[%s6071_s26 + $0x198] sm:$0x11]  ;;  %3798 = vmatpush1.bf16.msra.mxu1 %v5177_v53 }
 0xbbf   : > { %v5766_v28 = vpop.f32.mrf.mxu1  ;;  %v5180_v0 = vcombine.high %v3312_v12, %v3320_v55 }
 0xbc0   : > { %v5179_v28 = vcombine.low %v3312_v12, %v3320_v55  ;;  %v3355_v12 = vld [vmem:[%s6071_s26 + $0x160] sm:$0xff]  ;;  %v3356_v55 = vld [vmem:[%s6071_s26 + $0x168] sm:$0xff] }
 0xbc1   : > { %v3105_v16 = vpop.f32.mrf.mxu1 }
 0xbc2   : > { %v3361_v16 = vld [vmem:[%s6071_s26 + $0x190] sm:$0x11] }
 0xbc3   : > { %v5767_v51 = vpop.f32.mrf.mxu1 }
 0xbc4   : > { %v5988_v51 = vmov 0  }
 0xbc5   : > { %v3208_v17 = vpop.f32.mrf.mxu1  ;;  %3815 = vmatprep.mubr.bf16.mxu1 %v5988_v51 }
 0xbc6   : > { %v3214_v59 = vadd.f32 %v3208_v17, %v3108_v47  ;;  %v5230_v47 = vcombine.high %v3361_v16, %v3361_v16  ;;  %v5232_v17 = vcombine.high %v3362_v56, %v3362_v56 }
 0xbc7   : > { %v5778_v6 = vpop.f32.mrf.mxu1 }
 0xbc8   : > { %v3215_v29 = vpack.c.bf16 %v3214_v59, %v3214_v59  ;;  %5245 = vmatprep.subr.msk.bf16.mxu1 %vm7180_vm14, %v5230_v47  ;;  %v3339_v47 = vld [vmem:[%s6071_s26 + $0xe0] sm:$0xff]  ;;  %vm7196_vm14 = vmmov %vm7184_vm0 }
 0xbc9   : > { %v3211_v62 = vpop.f32.mrf.mxu1 }
 0xbca   : > { %5789 = vmatmul.mubr.msk.bf16.vlgmr.msra.gmra.mxu0 %vm7173_vm1, %v3215_v29  ;;  %v3304_v62 = vrot.slane %v6542_v3, %v6508_v13  ;;  %vm7189_vm1 = vmmov %vm7178_vm2 }
 0xbcb   : > { %v5779_v58 = vpop.f32.mrf.mxu1  ;;  %3856 = vmatprep.mubr.bf16.mxu0 %v5988_v51  ;;  %vm7192_vm5 = vmmov %vm7189_vm1 }
 0xbcc   : > { %vm7194_vm2 = vmmov %vm7189_vm1 }
 0xc8a   : > { %v3281_v57 = vpop.f32.mrf.mxu0 }
 0xc8b   : > { %v3282_v2 = vadd.f32 %v3281_v57, %v3219_v5  ;;  %v3309_v5 = vrot.slane %v6542_v3, %v6583_v32 }
 0xc8c   : > { %v5790_v7 = vpop.f32.mrf.mxu0 }
 0xc8d   : > { %v3287_v54 = vadd.f32 %v3282_v2, %v6549_v48  ;;  %v3360_v48 = vld [vmem:[%s6071_s26 + $0x188] sm:$0x11]  ;;  %v5229_v2 = vcombine.low %v3361_v16, %v3361_v16  ;;  %v5220_v16 = vcombine.high %v3348_v42, %v3356_v55 }
 0xc8e   : > { %v3284_v27 = vpop.f32.mrf.mxu0  ;;  %v5228_v24 = vcombine.high %v3360_v48, %v3360_v48  ;;  %v5227_v52 = vcombine.low %v3360_v48, %v3360_v48  ;;  %v3329_v48 = vld [vmem:[%s6071_s26 + $0x90] sm:$0xff] }
 0xc8f   : > { %v3288_v10 = vsel %vm7174_vm15, %v3287_v54, 0.0  ;;  %v3345_v27 = vld [vmem:[%s6071_s26 + $0x110] sm:$0xff]  ;;  %v5197_v30 = vcombine.low %v3329_v48, %v3337_v15  ;;  %vm7190_vm15 = vmmov %vm7184_vm0 }
 0xc90   : > { %3289 = vadd.xlane.f32.xlu0 %v3288_v10  ;;  %v5791_v60 = vpop.f32.mrf.mxu0  ;;  %5243 = vmatprep.subr.msk.bf16.mxu0 %vm7177_vm10, %v5228_v24  ;;  %v3742_v22 = vsel %vm7179_vm6, %v5227_v52, 0  ;;  %v3353_v10 = vld [vmem:[%s6071_s26 + $0x150] sm:$0xff]  ;;  %v3330_v24 = vld [vmem:[%s6071_s26 + $0x98] sm:$0xff]  ;;  %vm7193_vm10 = vmmov %vm7189_vm1 }
 0xc91   : > { %3833 = vmatpush1.bf16.msra.mxu0 %v3742_v22  ;;  %v3346_v60 = vld [vmem:[%s6071_s26 + $0x118] sm:$0xff]  ;;  %v5213_v52 = vcombine.low %v3345_v27, %v3353_v10  ;;  %v5198_v22 = vcombine.high %v3329_v48, %v3337_v15  ;;  %v5200_v18 = vcombine.high %v3330_v24, %v3338_v26  ;;  %vm7195_vm6 = vmmov %vm7189_vm1 }
 0xc92   : > { %3834 = vmatprep.subr.bf16.mxu0 %v5212_v41  ;;  %v5182_v41 = vcombine.high %v3313_v37, %v3321_v49 }
 0xc95   : > { %3835 = vmatpush1.bf16.msra.mxu0 %v5211_v25  ;;  %v5199_v25 = vcombine.low %v3330_v24, %v3338_v26  ;;  %v3349_v26 = vld [vmem:[%s6071_s26 + $0x130] sm:$0xff] }
 0xc96   : > { %3836 = vmatprep.subr.bf16.mxu0 %v5196_v36  ;;  %v5233_v36 = vcombine.low %v3363_v1, %v3363_v1 }
 0xc98   : > { %v3760_v53 = vsel %vm7188_vm3, %v5233_v36, 0  ;;  %v3326_v36 = vld [vmem:[%s6071_s26 + $0x78] sm:$0xff] }
 0xc99   : > { %3837 = vmatpush1.bf16.msra.mxu0 %v5195_v38  ;;  %v5236_v38 = vcombine.high %v3364_v33, %v3364_v33 }
 0xc9a   : > { %3838 = vmatprep.subr.bf16.mxu0 %v5180_v0  ;;  %v5218_v0 = vcombine.high %v3347_v50, %v3355_v12 }
 0xc9d   : > { %3839 = vmatpush1.bf16.msra.mxu0 %v5179_v28  ;;  %v3766_v28 = vsel %vm7189_vm1, %v5235_v44, 0 }
 0xc9e   : > { %5247 = vmatprep.subr.msk.bf16.mxu0 %vm7181_vm7, %v5232_v17  ;;  %v3332_v17 = vld [vmem:[%s6071_s26 + $0xa8] sm:$0xff]  ;;  %vm7197_vm7 = vmmov %vm7184_vm0 }
 0xd19   : > { %v3290_v43 = vpop.xlane.xlu0 %3289 }
 0xd1a   : > { %v3291_v40 = vmul.f32 0.02, %v3290_v43  ;;  %v3354_v43 = vld [vmem:[%s6071_s26 + $0x158] sm:$0xff] }
 0xd1b   : > { %v5216_v14 = vcombine.high %v3346_v60, %v3354_v43  ;;  %v5215_v35 = vcombine.low %v3346_v60, %v3354_v43  ;;  %v3365_v43 = vld [vmem:[%s6071_s26 + $0x1b0] sm:$0x11] }
 0xd1c   : > { %v6857_v61 = vsub.f32 %v3287_v54, %v3291_v40  ;;  %v5231_v54 = vcombine.low %v3362_v56, %v3362_v56  ;;  %v3331_v56 = vld [vmem:[%s6071_s26 + $0xa0] sm:$0xff]  ;;  %v5237_v15 = vcombine.low %v3365_v43, %v3365_v43 }
 0xd1e   : > { %v3293_v20 = vmul.f32 %v6857_v61, %v6857_v61  ;;  %v3754_v3 = vsel %vm7183_vm13, %v5231_v54, 0  ;;  %v5201_v54 = vcombine.low %v3331_v56, %v3339_v47  ;;  %vm7199_vm13 = vmmov %vm7184_vm0 }
 0xd20   : > { %v3294_v11 = vsel %vm7175_vm4, %v3293_v20, 0.0  ;;  %v3748_v20 = vsel %vm7182_vm9, %v5229_v2, 0  ;;  %vm7191_vm4 = vmmov %vm7184_vm0  ;;  %v3316_v2 = vld [vmem:[%s6071_s26 + $0x28] sm:$0xff] }
 0xd21   : > { %3295 = vadd.xlane.f32.xlu1 %v3294_v11  ;;  %vm7198_vm9 = vmmov %vm7184_vm0 }
 0xdaa   : > { %v3296_v59 = vpop.xlane.xlu1 %3295 }
 0xdab   : > { %v3297_v6 = vmul.f32 0.02, %v3296_v59  ;;  %v3340_v59 = vld [vmem:[%s6071_s26 + $0xe8] sm:$0xff] }
 0xdad   : > { %v3298_v29 = vadd.f32 1e-05, %v3297_v6  ;;  %v5217_v6 = vcombine.low %v3347_v50, %v3355_v12 }
 0xdaf   : > { %5966 = vrsqrt.f32 %v3298_v29  ;;  %v5219_v29 = vcombine.low %v3348_v42, %v3356_v55  ;;  %v4175_v55 = vld [vmem:[%s6076_s29 + $0x180] sm:$0x11] }
 0xdbc   : > { %v5967_v58 = vpop.eup %5966 }
 0xdbd   : > { %v3300_v57 = vmul.f32 %v5967_v58, %v6857_v61  ;;  %v5214_v61 = vcombine.high %v3345_v27, %v3353_v10  ;;  %v5204_v58 = vcombine.high %v3332_v17, %v3340_v59  ;;  %v5203_v27 = vcombine.low %v3332_v17, %v3340_v59  ;;  %v4160_v17 = vld [vmem:[%s6076_s29 + $0x108] sm:$0xff] }
 0xdbe   : > { %v4168_v59 = vld [vmem:[%s6076_s29 + $0x148] sm:$0xff] }
 0xdbf   : > { %v3305_v7 = vmul.f32 %v3304_v62, %v3300_v57  ;;  %v5202_v62 = vcombine.high %v3331_v56, %v3339_v47  ;;  %v3323_v57 = vld [vmem:[%s6071_s26 + $0x60] sm:$0xff] }
 0xdc0   : > { %v4159_v56 = vld [vmem:[%s6076_s29 + $0x100] sm:$0xff] }
 0xdc1   : > { %v6895_v40 = vadd.f32 %v3309_v5, %v3305_v7  ;;  %v3315_v5 = vld [vmem:[%s6071_s26 + $0x20] sm:$0xff]  ;;  %v3324_v7 = vld [vmem:[%s6071_s26 + $0x68] sm:$0xff] }
 0xdc2   : > { %v5186_v10 = vcombine.high %v3315_v5, %v3323_v57  ;;  %v5188_v60 = vcombine.high %v3316_v2, %v3324_v7  ;;  %v4167_v47 = vld [vmem:[%s6076_s29 + $0x140] sm:$0xff] }
 0xdc3   : > { %v6900_v11 = vpack.c.bf16 %v6895_v40, %v6895_v40 }
 0xdc5   : > { %5242 = vmatmul.mubr.msk.bf16.vlgmr.msra.gmra.mxu1 %vm7184_vm0, %v6900_v11  ;;  %5244 = vmatmul.mubr.msk.bf16.vlgmr.msra.gmra.mxu0 %vm7185_vm8, %v6900_v11  ;;  %vm7200_vm8 = vmmov %vm7184_vm0 }
 0xdc6   : > { %3874 = vmatpush1.bf16.msra.mxu1 %v3748_v20  ;;  %3915 = vmatpush1.bf16.msra.mxu0 %v3754_v3  ;;  %v3366_v20 = vld [vmem:[%s6071_s26 + $0x1b8] sm:$0x11]  ;;  %v5185_v3 = vcombine.low %v3315_v5, %v3323_v57  ;;  %v4143_v5 = vld [vmem:[%s6076_s29 + $0x80] sm:$0xff] }
 0xdc7   : > { %3875 = vmatprep.subr.bf16.mxu1 %v5214_v61  ;;  %3916 = vmatprep.subr.bf16.mxu0 %v5216_v14  ;;  %v5187_v61 = vcombine.low %v3316_v2, %v3324_v7  ;;  %v5238_v14 = vcombine.high %v3365_v43, %v3365_v43  ;;  %v5240_v48 = vcombine.high %v3366_v20, %v3366_v20  ;;  %v4151_v57 = vld [vmem:[%s6076_s29 + $0xc0] sm:$0xff]  ;;  %v4144_v2 = vld [vmem:[%s6076_s29 + $0x88] sm:$0xff] }
 0xdc8   : > { %3897 = vmatprep.mubr.bf16.mxu1 %v5988_v51  ;;  %3938 = vmatprep.mubr.bf16.mxu0 %v5988_v51  ;;  %v5239_v24 = vcombine.low %v3366_v20, %v3366_v20  ;;  %v4152_v7 = vld [vmem:[%s6076_s29 + $0xc8] sm:$0xff]  ;;  %v4127_v20 = vld [vmem:[%s6076_s29] sm:$0xff] }
 0xdc9   : > { %v5275_v43 = vcombine.low %v4144_v2, %v4152_v7 }
 0xdca   : > { %3876 = vmatpush1.bf16.msra.mxu1 %v5213_v52  ;;  %3917 = vmatpush1.bf16.msra.mxu0 %v5215_v35  ;;  %v3357_v52 = vld [vmem:[%s6071_s26 + $0x170] sm:$0xff]  ;;  %v3350_v35 = vld [vmem:[%s6071_s26 + $0x138] sm:$0xff]  ;;  %v3778_v37 = vsel %vm7195_vm6, %v5239_v24, 0 }
 0xdcb   : > { %3877 = vmatprep.subr.bf16.mxu1 %v5198_v22  ;;  %3918 = vmatprep.subr.bf16.mxu0 %v5200_v18  ;;  %v3358_v22 = vld [vmem:[%s6071_s26 + $0x178] sm:$0xff]  ;;  %v3772_v18 = vsel %vm7194_vm2, %v5237_v15, 0  ;;  %v5222_v49 = vcombine.high %v3349_v26, %v3357_v52 }
 0xdcc   : > { %v5224_v34 = vcombine.high %v3350_v35, %v3358_v22  ;;  %v5223_v1 = vcombine.low %v3350_v35, %v3358_v22  ;;  %v4178_v35 = vld [vmem:[%s6076_s29 + $0x198] sm:$0x11] }
 0xdce   : > { %3878 = vmatpush1.bf16.msra.mxu1 %v5197_v30  ;;  %3919 = vmatpush1.bf16.msra.mxu0 %v5199_v25  ;;  %v3341_v30 = vld [vmem:[%s6071_s26 + $0xf0] sm:$0xff]  ;;  %v3334_v25 = vld [vmem:[%s6071_s26 + $0xb8] sm:$0xff] }
 0xdcf   : > { %3879 = vmatprep.subr.bf16.mxu1 %v5182_v41  ;;  %3920 = vmatprep.subr.bf16.mxu0 %v5184_v31  ;;  %v3342_v41 = vld [vmem:[%s6071_s26 + $0xf8] sm:$0xff]  ;;  %v5221_v31 = vcombine.low %v3349_v26, %v3357_v52  ;;  %v5206_v33 = vcombine.high %v3333_v39, %v3341_v30  ;;  %v5205_v44 = vcombine.low %v3333_v39, %v3341_v30  ;;  %v4177_v52 = vld [vmem:[%s6076_s29 + $0x190] sm:$0x11] }
 0xdd0   : > { %v5207_v50 = vcombine.low %v3334_v25, %v3342_v41  ;;  %v5310_v22 = vcombine.high %v4177_v52, %v4177_v52 }
 0xdd2   : > { %3880 = vmatpush1.bf16.msra.mxu1 %v5181_v19  ;;  %3921 = vmatpush1.bf16.msra.mxu0 %v5183_v4  ;;  %v5208_v19 = vcombine.high %v3334_v25, %v3342_v41  ;;  %v3317_v4 = vld [vmem:[%s6071_s26 + $0x30] sm:$0xff] }
 0xdd3   : > { %5249 = vmatprep.subr.msk.bf16.mxu1 %vm7186_vm11, %v5234_v45  ;;  %5251 = vmatprep.subr.msk.bf16.mxu0 %vm7187_vm12, %v5236_v38  ;;  %v3325_v45 = vld [vmem:[%s6071_s26 + $0x70] sm:$0xff]  ;;  %v3318_v38 = vld [vmem:[%s6071_s26 + $0x38] sm:$0xff]  ;;  %vm7201_vm11 = vmmov %vm7184_vm0 }
 0xdd4   : > { %v5190_v12 = vcombine.high %v3317_v4, %v3325_v45  ;;  %v5192_v42 = vcombine.high %v3318_v38, %v3326_v36 }
 0xdd5   : > { %5246 = vmatmul.mubr.msk.bf16.vlgmr.msra.gmra.mxu1 %vm7190_vm15, %v6900_v11  ;;  %5248 = vmatmul.mubr.msk.bf16.vlgmr.msra.gmra.mxu0 %vm7191_vm4, %v6900_v11 }
 0xdd6   : > { %3956 = vmatpush1.bf16.msra.mxu1 %v3760_v53  ;;  %3997 = vmatpush1.bf16.msra.mxu0 %v3766_v28  ;;  %v4176_v53 = vld [vmem:[%s6076_s29 + $0x188] sm:$0x11]  ;;  %v5189_v28 = vcombine.low %v3317_v4, %v3325_v45 }
 0xdd7   : > { %3957 = vmatprep.subr.bf16.mxu1 %v5218_v0  ;;  %3998 = vmatprep.subr.bf16.mxu0 %v5220_v16  ;;  %v5191_v0 = vcombine.low %v3318_v38, %v3326_v36  ;;  %v5308_v16 = vcombine.high %v4176_v53, %v4176_v53 }
 0xdd8   : > { %3979 = vmatprep.mubr.bf16.mxu1 %v5988_v51  ;;  %4020 = vmatprep.mubr.bf16.mxu0 %v5988_v51 }
 0xdda   : > { %3958 = vmatpush1.bf16.msra.mxu1 %v5217_v6  ;;  %3999 = vmatpush1.bf16.msra.mxu0 %v5219_v29  ;;  %v5305_v6 = vcombine.low %v4175_v55, %v4175_v55  ;;  %v5307_v29 = vcombine.low %v4176_v53, %v4176_v53  ;;  %v4169_v53 = vld [vmem:[%s6076_s29 + $0x150] sm:$0xff] }
 0xddb   : > { %3959 = vmatprep.subr.bf16.mxu1 %v5202_v62  ;;  %4000 = vmatprep.subr.bf16.mxu0 %v5204_v58  ;;  %v5290_v62 = vcombine.high %v4159_v56, %v4167_v47  ;;  %v5292_v58 = vcombine.high %v4160_v17, %v4168_v59 }
 0xdde   : > { %3960 = vmatpush1.bf16.msra.mxu1 %v5201_v54  ;;  %4001 = vmatpush1.bf16.msra.mxu0 %v5203_v27  ;;  %v5289_v54 = vcombine.low %v4159_v56, %v4167_v47  ;;  %v5291_v27 = vcombine.low %v4160_v17, %v4168_v59  ;;  %v5309_v17 = vcombine.low %v4177_v52, %v4177_v52  ;;  %v4129_v52 = vld [vmem:[%s6076_s29 + $0x10] sm:$0xff] }
 0xddf   : > { %3961 = vmatprep.subr.bf16.mxu1 %v5186_v10  ;;  %4002 = vmatprep.subr.bf16.mxu0 %v5188_v60  ;;  %v5274_v10 = vcombine.high %v4143_v5, %v4151_v57  ;;  %v5276_v60 = vcombine.high %v4144_v2, %v4152_v7  ;;  %v5311_v59 = vcombine.low %v4178_v35, %v4178_v35  ;;  %v4146_v2 = vld [vmem:[%s6076_s29 + $0x98] sm:$0xff] }
 0xde0   : > { %v4154_v7 = vld [vmem:[%s6076_s29 + $0xd8] sm:$0xff] }
 0xde2   : > { %3962 = vmatpush1.bf16.msra.mxu1 %v5185_v3  ;;  %4003 = vmatpush1.bf16.msra.mxu0 %v5187_v61  ;;  %v4135_v3 = vld [vmem:[%s6076_s29 + $0x40] sm:$0xff]  ;;  %v4128_v61 = vld [vmem:[%s6076_s29 + $0x8] sm:$0xff] }
 0xde3   : > { %5253 = vmatprep.subr.msk.bf16.mxu1 %vm7192_vm5, %v5238_v14  ;;  %5255 = vmatprep.subr.msk.bf16.mxu0 %vm7193_vm10, %v5240_v48  ;;  %v5258_v14 = vcombine.high %v4127_v20, %v4135_v3  ;;  %v4136_v48 = vld [vmem:[%s6076_s29 + $0x48] sm:$0xff]  ;;  %v5257_v24 = vcombine.low %v4127_v20, %v4135_v3  ;;  %v5280_v3 = vcombine.high %v4146_v2, %v4154_v7 }
 0xde4   : > { %v5260_v15 = vcombine.high %v4128_v61, %v4136_v48  ;;  %v5259_v26 = vcombine.low %v4128_v61, %v4136_v48 }
 0xde5   : > { %5250 = vmatmul.mubr.msk.bf16.vlgmr.msra.gmra.mxu1 %vm7196_vm14, %v6900_v11  ;;  %5252 = vmatmul.mubr.msk.bf16.vlgmr.msra.gmra.mxu0 %vm7197_vm7, %v6900_v11 }
 0xde6   : > { %4038 = vmatpush1.bf16.msra.mxu1 %v3772_v18  ;;  %4079 = vmatpush1.bf16.msra.mxu0 %v3778_v37  ;;  %v5312_v18 = vcombine.high %v4178_v35, %v4178_v35  ;;  %v6986_v37 = vld [vmem:[%s6056_s17] sm:$0xff] }
 0xde7   : > { %4039 = vmatprep.subr.bf16.mxu1 %v5222_v49  ;;  %4080 = vmatprep.subr.bf16.mxu0 %v5224_v34  ;;  %v3375_v49 = vrot.slane %v6986_v37, %v6133_v23  ;;  %v3383_v34 = vrot.slane %v6986_v37, %v6282_v9  ;;  %v3379_v39 = vrot.slane %v6986_v37, %v6127_v21 }
 0xde8   : > { %4061 = vmatprep.mubr.bf16.mxu1 %v5988_v51  ;;  %4102 = vmatprep.mubr.bf16.mxu0 %v5988_v51  ;;  %v5306_v51 = vcombine.high %v4175_v55, %v4175_v55  ;;  %v3387_v30 = vrot.slane %v6986_v37, %v6508_v13 }
 0xdea   : > { %4040 = vmatpush1.bf16.msra.mxu1 %v5221_v31  ;;  %4081 = vmatpush1.bf16.msra.mxu0 %v5223_v1 }
 0xdeb   : > { %4041 = vmatprep.subr.bf16.mxu1 %v5206_v33  ;;  %4082 = vmatprep.subr.bf16.mxu0 %v5208_v19 }
 0xdee   : > { %4042 = vmatpush1.bf16.msra.mxu1 %v5205_v44  ;;  %4083 = vmatpush1.bf16.msra.mxu0 %v5207_v50 }
 0xdef   : > { %4043 = vmatprep.subr.bf16.mxu1 %v5190_v12  ;;  %4084 = vmatprep.subr.bf16.mxu0 %v5192_v42  ;;  %v4161_v12 = vld [vmem:[%s6076_s29 + $0x110] sm:$0xff] }
 0xdf2   : > { %4044 = vmatpush1.bf16.msra.mxu1 %v5189_v28  ;;  %4085 = vmatpush1.bf16.msra.mxu0 %v5191_v0  ;;  %v4162_v28 = vld [vmem:[%s6076_s29 + $0x118] sm:$0xff] }
 0xdf3   : > { %4507 = vmatprep.subr.bf16.mxu1 %v5306_v51  ;;  %4547 = vmatprep.subr.bf16.mxu0 %v5308_v16  ;;  %v4170_v0 = vld [vmem:[%s6076_s29 + $0x158] sm:$0xff] }
 0xdf5   : > { %5254 = vmatmul.mubr.msk.bf16.vlgmr.msra.gmra.mxu1 %vm7198_vm9, %v6900_v11  ;;  %5256 = vmatmul.mubr.msk.bf16.vlgmr.msra.gmra.mxu0 %vm7199_vm13, %v6900_v11  ;;  %v5273_v11 = vcombine.low %v4143_v5, %v4151_v57  ;;  %v4145_v5 = vld [vmem:[%s6076_s29 + $0x90] sm:$0xff] }
 0xdf6   : > { %4508 = vmatpush1.bf16.xpose.msra.mxu1 %v5305_v6  ;;  %4548 = vmatpush1.bf16.xpose.msra.mxu0 %v5307_v29  ;;  %v4153_v57 = vld [vmem:[%s6076_s29 + $0xd0] sm:$0xff] }
 0xdf7   : > { %4509 = vmatprep.subr.bf16.mxu1 %v5290_v62  ;;  %4549 = vmatprep.subr.bf16.mxu0 %v5292_v58  ;;  %v5294_v62 = vcombine.high %v4161_v12, %v4169_v53  ;;  %v5296_v58 = vcombine.high %v4162_v28, %v4170_v0  ;;  %v5278_v20 = vcombine.high %v4145_v5, %v4153_v57 }
 0xdfe   : > { %4510 = vmatpush1.bf16.xpose.msra.mxu1 %v5289_v54  ;;  %4550 = vmatpush1.bf16.xpose.msra.mxu0 %v5291_v27  ;;  %v3395_v54 = vrot.slane %v6986_v37, %v6568_v8  ;;  %v3403_v27 = vrot.slane %v6986_v37, %v6851_v63 }
 0xdff   : > { %4511 = vmatprep.subr.bf16.mxu1 %v5274_v10  ;;  %4551 = vmatprep.subr.bf16.mxu0 %v5276_v60  ;;  %v5293_v10 = vcombine.low %v4161_v12, %v4169_v53  ;;  %v5295_v60 = vcombine.low %v4162_v28, %v4170_v0 }
 0xe06   : > { %4512 = vmatpush1.bf16.xpose.msra.mxu1 %v5273_v11  ;;  %4552 = vmatpush1.bf16.xpose.msra.mxu0 %v5275_v43 }
 0xe07   : > { %4513 = vmatprep.subr.bf16.mxu1 %v5258_v14  ;;  %4553 = vmatprep.subr.bf16.mxu0 %v5260_v15 }
 0xe0e   : > { %4514 = vmatpush1.bf16.xpose.msra.mxu1 %v5257_v24  ;;  %4554 = vmatpush1.bf16.xpose.msra.mxu0 %v5259_v26 }
 0xe0f   : > { %4587 = vmatprep.subr.bf16.mxu1 %v5310_v22  ;;  %4627 = vmatprep.subr.bf16.mxu0 %v5312_v18  ;;  %v4137_v18 = vld [vmem:[%s6076_s29 + $0x50] sm:$0xff] }
 0xe85   : > { %v3817_v25 = vpop.f32.mrf.mxu1  ;;  %v3858_v41 = vpop.f32.mrf.mxu0 }
 0xe86   : > { %v3818_v31 = vadd.f32 %v3817_v25, %v3375_v49  ;;  %v3859_v1 = vadd.f32 %v3858_v41, %v3383_v34  ;;  %v4130_v49 = vld [vmem:[%s6076_s29 + $0x18] sm:$0xff] }
 0xe87   : > { %v3819_v33 = vpop.f32.mrf.mxu1  ;;  %v3860_v19 = vpop.f32.mrf.mxu0  ;;  %v4138_v34 = vld [vmem:[%s6076_s29 + $0x58] sm:$0xff] }
 0xe88   : > { %v3820_v4 = vadd.f32 %v3819_v33, %v3379_v39  ;;  %v3861_v45 = vadd.f32 %v3860_v19, %v3387_v30  ;;  %v4111_v38 = vmax.f32 %v3818_v31, 0.0  ;;  %v4113_v36 = vmax.f32 %v3859_v1, 0.0 }
 0xe89   : > { %v3821_v44 = vpop.f32.mrf.mxu1  ;;  %v3862_v50 = vpop.f32.mrf.mxu0  ;;  %v5277_v31 = vcombine.low %v4145_v5, %v4153_v57  ;;  %v5279_v1 = vcombine.low %v4146_v2, %v4154_v7  ;;  %v5262_v33 = vcombine.high %v4129_v52, %v4137_v18  ;;  %v5264_v19 = vcombine.high %v4130_v49, %v4138_v34  ;;  %v4171_v7 = vld [vmem:[%s6076_s29 + $0x160] sm:$0xff] }
 0xe8a   : > { %v4112_v42 = vmax.f32 %v3820_v4, 0.0  ;;  %v4114_v55 = vmax.f32 %v3861_v45, 0.0  ;;  %v4183_v6 = vpack.c.bf16 %v4111_v38, %v4111_v38  ;;  %v4185_v29 = vpack.c.bf16 %v4113_v36, %v4113_v36  ;;  %v4179_v38 = vld [vmem:[%s6076_s29 + $0x1a0] sm:$0x11]  ;;  %v4180_v36 = vld [vmem:[%s6076_s29 + $0x1a8] sm:$0x11] }
 0xe8b   : > { %v3822_v51 = vpop.f32.mrf.mxu1  ;;  %v3863_v16 = vpop.f32.mrf.mxu0  ;;  %v3391_v4 = vrot.slane %v6986_v37, %v6583_v32  ;;  %v3399_v45 = vrot.slane %v6986_v37, %v6602_v46  ;;  %v7019_v44 = vld [vmem:[%s6056_s17 + $0x8] sm:$0xff]  ;;  %v5314_v37 = vcombine.high %v4179_v38, %v4179_v38 }
 0xe8c   : > { %v4184_v56 = vpack.c.bf16 %v4112_v42, %v4112_v42  ;;  %v4186_v47 = vpack.c.bf16 %v4114_v55, %v4114_v55  ;;  %v3411_v50 = vrot.slane %v7019_v44, %v6127_v21  ;;  %v3419_v12 = vrot.slane %v7019_v44, %v6508_v13 }
 0xe8d   : > { %v5261_v42 = vcombine.low %v4129_v52, %v4137_v18  ;;  %v5263_v55 = vcombine.low %v4130_v49, %v4138_v34  ;;  %v5316_v16 = vcombine.high %v4180_v36, %v4180_v36 }
 0xe8e   : > { %4531 = vmatprep.mubr.bf16.mxu1 %v4184_v56  ;;  %4571 = vmatprep.mubr.bf16.mxu0 %v4186_v47 }
 0xe8f   : > { %4532 = vmatmul.mubr.bf16.vlgmr.msra.gmra.mxu1 %v4183_v6  ;;  %4572 = vmatmul.mubr.bf16.vlgmr.msra.gmra.mxu0 %v4185_v29 }
 0xe90   : > { %4588 = vmatpush1.bf16.xpose.msra.mxu1 %v5309_v17  ;;  %4628 = vmatpush1.bf16.xpose.msra.mxu0 %v5311_v59 }
 0xe91   : > { %4589 = vmatprep.subr.bf16.mxu1 %v5294_v62  ;;  %4629 = vmatprep.subr.bf16.mxu0 %v5296_v58  ;;  %v4163_v58 = vld [vmem:[%s6076_s29 + $0x120] sm:$0xff] }
 0xe92   : > { %v5297_v52 = vcombine.low %v4163_v58, %v4171_v7 }
 0xe95   : > { %v3899_v11 = vpop.f32.mrf.mxu1  ;;  %v3940_v43 = vpop.f32.mrf.mxu0 }
 0xe96   : > { %v3900_v53 = vadd.f32 %v3899_v11, %v3391_v4  ;;  %v3941_v28 = vadd.f32 %v3940_v43, %v3399_v45  ;;  %v5315_v43 = vcombine.low %v4180_v36, %v4180_v36  ;;  %v4132_v4 = vld [vmem:[%s6076_s29 + $0x28] sm:$0xff] }
 0xe97   : > { %v3901_v61 = vpop.f32.mrf.mxu1  ;;  %v3942_v14 = vpop.f32.mrf.mxu0  ;;  %v4140_v45 = vld [vmem:[%s6076_s29 + $0x68] sm:$0xff] }
 0xe98   : > { %v3902_v48 = vadd.f32 %v3901_v61, %v3395_v54  ;;  %v3943_v15 = vadd.f32 %v3942_v14, %v3403_v27  ;;  %4590 = vmatpush1.bf16.xpose.msra.mxu1 %v5293_v10  ;;  %4630 = vmatpush1.bf16.xpose.msra.mxu0 %v5295_v60  ;;  %v4115_v13 = vmax.f32 %v3900_v53, 0.0  ;;  %v4117_v59 = vmax.f32 %v3941_v28, 0.0  ;;  %v4164_v54 = vld [vmem:[%s6076_s29 + $0x128] sm:$0xff]  ;;  %v4181_v53 = vld [vmem:[%s6076_s29 + $0x1b0] sm:$0x11] }
 0xe99   : > { %v3903_v24 = vpop.f32.mrf.mxu1  ;;  %v3944_v26 = vpop.f32.mrf.mxu0  ;;  %4591 = vmatprep.subr.bf16.mxu1 %v5278_v20  ;;  %4631 = vmatprep.subr.bf16.mxu0 %v5280_v3  ;;  %v4172_v27 = vld [vmem:[%s6076_s29 + $0x168] sm:$0xff]  ;;  %v5313_v10 = vcombine.low %v4179_v38, %v4179_v38  ;;  %v5298_v3 = vcombine.high %v4163_v58, %v4171_v7  ;;  %v3427_v28 = vrot.slane %v7019_v44, %v6568_v8  ;;  %v4165_v58 = vld [vmem:[%s6076_s29 + $0x130] sm:$0xff]  ;;  %v4174_v7 = vld [vmem:[%s6076_s29 + $0x178] sm:$0xff] }
 0xe9a   : > { %v4116_v35 = vmax.f32 %v3902_v48, 0.0  ;;  %v4118_v22 = vmax.f32 %v3943_v15, 0.0  ;;  %v4187_v60 = vpack.c.bf16 %v4115_v13, %v4115_v13  ;;  %v4189_v11 = vpack.c.bf16 %v4117_v59, %v4117_v59  ;;  %v4147_v48 = vld [vmem:[%s6076_s29 + $0xa0] sm:$0xff]  ;;  %v4148_v24 = vld [vmem:[%s6076_s29 + $0xa8] sm:$0xff] }
 0xe9b   : > { %v3904_v39 = vpop.f32.mrf.mxu1  ;;  %v3945_v30 = vpop.f32.mrf.mxu0  ;;  %v5300_v61 = vcombine.high %v4164_v54, %v4172_v27  ;;  %v4155_v15 = vld [vmem:[%s6076_s29 + $0xe0] sm:$0xff]  ;;  %v4156_v26 = vld [vmem:[%s6076_s29 + $0xe8] sm:$0xff]  ;;  %v5299_v18 = vcombine.low %v4164_v54, %v4172_v27 }
 0xe9c   : > { %v4188_v25 = vpack.c.bf16 %v4116_v35, %v4116_v35  ;;  %v4190_v41 = vpack.c.bf16 %v4118_v22, %v4118_v22  ;;  %v5282_v49 = vcombine.high %v4147_v48, %v4155_v15  ;;  %v5284_v34 = vcombine.high %v4148_v24, %v4156_v26 }
 0xe9d   : > { %v5281_v38 = vcombine.low %v4147_v48, %v4155_v15  ;;  %v5283_v36 = vcombine.low %v4148_v24, %v4156_v26 }
 0xe9e   : > { %4611 = vmatprep.mubr.bf16.mxu1 %v4188_v25  ;;  %4651 = vmatprep.mubr.bf16.mxu0 %v4190_v41 }
 0xea0   : > { %4592 = vmatpush1.bf16.xpose.msra.mxu1 %v5277_v31  ;;  %4632 = vmatpush1.bf16.xpose.msra.mxu0 %v5279_v1  ;;  %v4131_v31 = vld [vmem:[%s6076_s29 + $0x20] sm:$0xff] }
 0xea1   : > { %4593 = vmatprep.subr.bf16.mxu1 %v5262_v33  ;;  %4633 = vmatprep.subr.bf16.mxu0 %v5264_v19  ;;  %v4139_v1 = vld [vmem:[%s6076_s29 + $0x60] sm:$0xff] }
 0xea5   : > { %v7025_v0 = vpop.f32.mrf.mxu1  ;;  %v7027_v51 = vpop.f32.mrf.mxu0 }
 0xea7   : > { %v3983_v56 = vpop.f32.mrf.mxu1  ;;  %v4024_v47 = vpop.f32.mrf.mxu0 }
 0xea8   : > { %v3984_v17 = vadd.f32 %v3983_v56, %v3411_v50  ;;  %v4025_v21 = vadd.f32 %v4024_v47, %v3419_v12  ;;  %4594 = vmatpush1.bf16.xpose.msra.mxu1 %v5261_v42  ;;  %4634 = vmatpush1.bf16.xpose.msra.mxu0 %v5263_v55  ;;  %v5266_v50 = vcombine.high %v4131_v31, %v4139_v1 }
 0xea9   : > { %v3985_v6 = vpop.f32.mrf.mxu1  ;;  %v4026_v29 = vpop.f32.mrf.mxu0  ;;  %4667 = vmatprep.subr.bf16.mxu1 %v5314_v37  ;;  %4707 = vmatprep.subr.bf16.mxu0 %v5316_v16  ;;  %v5268_v12 = vcombine.high %v4132_v4, %v4140_v45  ;;  %v3407_v42 = vrot.slane %v7019_v44, %v6133_v23  ;;  %v3415_v55 = vrot.slane %v7019_v44, %v6282_v9  ;;  %v4182_v37 = vld [vmem:[%s6076_s29 + $0x1b8] sm:$0x11] }
 0xeaa   : > { %v4120_v62 = vmax.f32 %v3984_v17, 0.0  ;;  %v4122_v5 = vmax.f32 %v4025_v21, 0.0  ;;  %v3435_v16 = vrot.slane %v7019_v44, %v6851_v63  ;;  %v5265_v56 = vcombine.low %v4131_v31, %v4139_v1 }
 0xeab   : > { %v3986_v57 = vpop.f32.mrf.mxu1  ;;  %v4027_v2 = vpop.f32.mrf.mxu0  ;;  %v3982_v47 = vadd.f32 %v7025_v0, %v3407_v42  ;;  %v5267_v17 = vcombine.low %v4132_v4, %v4140_v45  ;;  %v5318_v21 = vcombine.high %v4181_v53, %v4181_v53  ;;  %v4023_v13 = vadd.f32 %v7027_v51, %v3415_v55 }
 0xeac   : > { %v4192_v20 = vpack.c.bf16 %v4120_v62, %v4120_v62  ;;  %v4194_v14 = vpack.c.bf16 %v4122_v5, %v4122_v5  ;;  %v5320_v9 = vcombine.high %v4182_v37, %v4182_v37  ;;  %v4173_v5 = vld [vmem:[%s6076_s29 + $0x170] sm:$0xff]  ;;  %v5317_v0 = vcombine.low %v4181_v53, %v4181_v53  ;;  %v4166_v2 = vld [vmem:[%s6076_s29 + $0x138] sm:$0xff] }
 0xead   : > { %v4119_v29 = vmax.f32 %v3982_v47, 0.0  ;;  %v4121_v62 = vmax.f32 %v4023_v13, 0.0  ;;  %v5319_v54 = vcombine.low %v4182_v37, %v4182_v37  ;;  %v5301_v48 = vcombine.low %v4165_v58, %v4173_v5 }
 0xeae   : > { %v5303_v15 = vcombine.low %v4166_v2, %v4174_v7  ;;  %v3423_v31 = vrot.slane %v7019_v44, %v6583_v32  ;;  %v3431_v1 = vrot.slane %v7019_v44, %v6602_v46  ;;  %v5972_v32 = vld [vmem:[%s6066_s23 + $0x8] sm:$0x7f] }
 0xeaf   : > { %4612 = vmatmul.mubr.bf16.vlgmr.msra.gmra.mxu1 %v4187_v60  ;;  %4652 = vmatmul.mubr.bf16.vlgmr.msra.gmra.mxu0 %v4189_v11  ;;  %v4191_v51 = vpack.c.bf16 %v4119_v29, %v4119_v29  ;;  %v4193_v27 = vpack.c.bf16 %v4121_v62, %v4121_v62  ;;  %v5304_v11 = vcombine.high %v4166_v2, %v4174_v7 }
 0xeb0   : > { %4668 = vmatpush1.bf16.xpose.msra.mxu1 %v5313_v10  ;;  %4691 = vmatprep.mubr.bf16.mxu1 %v4192_v20  ;;  %v5302_v10 = vcombine.high %v4165_v58, %v4173_v5  ;;  %v4149_v20 = vld [vmem:[%s6076_s29 + $0xb0] sm:$0xff]  ;;  %v4202_v42 = vrot.slane %v5972_v32, %v6133_v23 }
 0xeb1   : > { %4708 = vmatpush1.bf16.xpose.msra.mxu0 %v5315_v43  ;;  %4731 = vmatprep.mubr.bf16.mxu0 %v4194_v14  ;;  %v4158_v14 = vld [vmem:[%s6076_s29 + $0xf8] sm:$0xff] }
 0xeb2   : > { %4669 = vmatprep.subr.bf16.mxu1 %v5298_v3  ;;  %4709 = vmatprep.subr.bf16.mxu0 %v5300_v61  ;;  %v4157_v3 = vld [vmem:[%s6076_s29 + $0xf0] sm:$0xff]  ;;  %v4150_v61 = vld [vmem:[%s6076_s29 + $0xb8] sm:$0xff] }
 0xeb3   : > { %v5286_v24 = vcombine.high %v4149_v20, %v4157_v3  ;;  %v5288_v26 = vcombine.high %v4150_v61, %v4158_v14 }
 0xeb5   : > { %v7037_v35 = vpop.f32.mrf.mxu1  ;;  %v7039_v22 = vpop.f32.mrf.mxu0 }
 0xeb6   : > { %v4105_v45 = vadd.f32 %v7039_v22, %v3431_v1  ;;  %v4836_v1 = vrot.slane %v5972_v32, %v6568_v8 }
 0xeb7   : > { %v4065_v39 = vpop.f32.mrf.mxu1  ;;  %v4106_v30 = vpop.f32.mrf.mxu0 }
 0xeb8   : > { %4670 = vmatpush1.bf16.xpose.msra.mxu1 %v5297_v52  ;;  %v4066_v59 = vadd.f32 %v4065_v39, %v3427_v28  ;;  %v4107_v6 = vadd.f32 %v4106_v30, %v3435_v16  ;;  %v4133_v52 = vld [vmem:[%s6076_s29 + $0x30] sm:$0xff]  ;;  %v5285_v39 = vcombine.low %v4149_v20, %v4157_v3  ;;  %v5287_v30 = vcombine.low %v4150_v61, %v4158_v14 }
 0xeb9   : > { %4710 = vmatpush1.bf16.xpose.msra.mxu0 %v5299_v18  ;;  %v4067_v25 = vpop.f32.mrf.mxu1  ;;  %v4108_v41 = vpop.f32.mrf.mxu0  ;;  %4671 = vmatprep.subr.bf16.mxu1 %v5282_v49  ;;  %v4141_v18 = vld [vmem:[%s6076_s29 + $0x70] sm:$0xff]  ;;  %v4134_v49 = vld [vmem:[%s6076_s29 + $0x38] sm:$0xff] }
 0xeba   : > { %4711 = vmatprep.subr.bf16.mxu0 %v5284_v34  ;;  %v4124_v63 = vmax.f32 %v4066_v59, 0.0  ;;  %v4126_v57 = vmax.f32 %v4107_v6, 0.0  ;;  %v4142_v34 = vld [vmem:[%s6076_s29 + $0x78] sm:$0xff]  ;;  %v5270_v25 = vcombine.high %v4133_v52, %v4141_v18 }
 0xebb   : > { %v4068_v33 = vpop.f32.mrf.mxu1  ;;  %v4109_v19 = vpop.f32.mrf.mxu0  ;;  %v5272_v41 = vcombine.high %v4134_v49, %v4142_v34  ;;  %v5271_v4 = vcombine.low %v4134_v49, %v4142_v34 }
 0xebc   : > { %v4196_v60 = vpack.c.bf16 %v4124_v63, %v4124_v63  ;;  %v4198_v43 = vpack.c.bf16 %v4126_v57, %v4126_v57  ;;  %v5269_v33 = vcombine.low %v4133_v52, %v4141_v18  ;;  %v4064_v19 = vadd.f32 %v7037_v35, %v3423_v31 }
 0xec0   : > { %4672 = vmatpush1.bf16.xpose.msra.mxu1 %v5281_v38  ;;  %v4123_v38 = vmax.f32 %v4064_v19, 0.0 }
 0xec1   : > { %4712 = vmatpush1.bf16.xpose.msra.mxu0 %v5283_v36  ;;  %4673 = vmatprep.subr.bf16.mxu1 %v5266_v50  ;;  %v4125_v36 = vmax.f32 %v4105_v45, 0.0 }
 0xec2   : > { %4713 = vmatprep.subr.bf16.mxu0 %v5268_v12  ;;  %v4195_v50 = vpack.c.bf16 %v4123_v38, %v4123_v38 }
 0xec3   : > { %v4197_v12 = vpack.c.bf16 %v4125_v36, %v4125_v36 }
 0xec8   : > { %4674 = vmatpush1.bf16.xpose.msra.mxu1 %v5265_v56 }
 0xec9   : > { %4714 = vmatpush1.bf16.xpose.msra.mxu0 %v5267_v17  ;;  %4747 = vmatprep.subr.bf16.mxu1 %v5318_v21 }
 0xeca   : > { %4787 = vmatprep.subr.bf16.mxu0 %v5320_v9 }
 0xecf   : > { %4692 = vmatmul.mubr.bf16.vlgmr.msra.gmra.mxu1 %v4191_v51 }
 0xed0   : > { %4732 = vmatmul.mubr.bf16.vlgmr.msra.gmra.mxu0 %v4193_v27  ;;  %4748 = vmatpush1.bf16.xpose.msra.mxu1 %v5317_v0 }
 0xed1   : > { %4771 = vmatprep.mubr.bf16.mxu1 %v4196_v60  ;;  %4788 = vmatpush1.bf16.xpose.msra.mxu0 %v5319_v54 }
 0xed2   : > { %4811 = vmatprep.mubr.bf16.mxu0 %v4198_v43  ;;  %4749 = vmatprep.subr.bf16.mxu1 %v5302_v10 }
 0xed3   : > { %4789 = vmatprep.subr.bf16.mxu0 %v5304_v11 }
 0xed8   : > { %4750 = vmatpush1.bf16.xpose.msra.mxu1 %v5301_v48 }
 0xed9   : > { %4790 = vmatpush1.bf16.xpose.msra.mxu0 %v5303_v15  ;;  %4751 = vmatprep.subr.bf16.mxu1 %v5286_v24 }
 0xeda   : > { %4791 = vmatprep.subr.bf16.mxu0 %v5288_v26 }
 0xee0   : > { %4752 = vmatpush1.bf16.xpose.msra.mxu1 %v5285_v39 }
 0xee1   : > { %4792 = vmatpush1.bf16.xpose.msra.mxu0 %v5287_v30  ;;  %4753 = vmatprep.subr.bf16.mxu1 %v5270_v25 }
 0xee2   : > { %4793 = vmatprep.subr.bf16.mxu0 %v5272_v41 }
 0xee8   : > { %4754 = vmatpush1.bf16.xpose.msra.mxu1 %v5269_v33 }
 0xee9   : > { %4794 = vmatpush1.bf16.xpose.msra.mxu0 %v5271_v4 }
 0xeef   : > { %4772 = vmatmul.mubr.bf16.vlgmr.msra.gmra.mxu1 %v4195_v50 }
 0xef0   : > { %4812 = vmatmul.mubr.bf16.vlgmr.msra.gmra.mxu0 %v4197_v12 }
 0xf4f   : > { %v4533_v55 = vpop.f32.mrf.mxu1  ;;  %v4573_v44 = vpop.f32.mrf.mxu0 }
 0xf50   : > { %v4534_v53 = vadd.f32 %v4533_v55, %v4202_v42 }
 0xf51   : > { %v4535_v28 = vpop.f32.mrf.mxu1  ;;  %v4575_v37 = vpop.f32.mrf.mxu0 }
 0xf52   : > { %v4574_v35 = vadd.f32 %v4573_v44, %v4534_v53 }
 0xf53   : > { %v4536_v16 = vpop.f32.mrf.mxu1  ;;  %v4576_v56 = vpop.f32.mrf.mxu0 }
 0xf55   : > { %v4537_v22 = vpop.f32.mrf.mxu1  ;;  %v4577_v47 = vpop.f32.mrf.mxu0 }
 0xf6f   : > { %v4613_v17 = vpop.f32.mrf.mxu1  ;;  %v4653_v21 = vpop.f32.mrf.mxu0 }
 0xf70   : > { %v4614_v51 = vadd.f32 %v4613_v17, %v4574_v35 }
 0xf71   : > { %v4615_v13 = vpop.f32.mrf.mxu1  ;;  %v4655_v9 = vpop.f32.mrf.mxu0 }
 0xf72   : > { %v4654_v54 = vadd.f32 %v4653_v21, %v4614_v51 }
 0xf73   : > { %v4616_v59 = vpop.f32.mrf.mxu1  ;;  %v4656_v6 = vpop.f32.mrf.mxu0 }
 0xf75   : > { %v4617_v29 = vpop.f32.mrf.mxu1  ;;  %v4657_v62 = vpop.f32.mrf.mxu0 }
 0xf8f   : > { %v4693_v63 = vpop.f32.mrf.mxu1 }
 0xf90   : > { %v4733_v23 = vpop.f32.mrf.mxu0  ;;  %v4694_v27 = vadd.f32 %v4693_v63, %v4654_v54 }
 0xf91   : > { %v4695_v58 = vpop.f32.mrf.mxu1 }
 0xf92   : > { %v4735_v5 = vpop.f32.mrf.mxu0  ;;  %v4734_v10 = vadd.f32 %v4733_v23, %v4694_v27 }
 0xf93   : > { %v4696_v57 = vpop.f32.mrf.mxu1 }
 0xf94   : > { %v4736_v0 = vpop.f32.mrf.mxu0 }
 0xf95   : > { %v4697_v2 = vpop.f32.mrf.mxu1 }
 0xf96   : > { %v4737_v7 = vpop.f32.mrf.mxu0 }
 0xfaf   : > { %v4773_v60 = vpop.f32.mrf.mxu1 }
 0xfb0   : > { %v4774_v11 = vadd.f32 %v4773_v60, %v4734_v10  ;;  %v4813_v43 = vpop.f32.mrf.mxu0 }
 0xfb1   : > { %v4775_v20 = vpop.f32.mrf.mxu1 }
 0xfb2   : > { %v4814_v3 = vadd.f32 %v4813_v43, %v4774_v11  ;;  %v4815_v61 = vpop.f32.mrf.mxu0 }
 0xfb3   : > { %v4776_v14 = vpop.f32.mrf.mxu1 }
 0xfb4   : > { %v4816_v48 = vpop.f32.mrf.mxu0  ;;  %v4819_v15 = vadd.f32 %v4814_v3, %v6895_v40  ;;  %v4841_v40 = vrot.slane %v5972_v32, %v6602_v46 }
 0xfb5   : > { %v4777_v24 = vpop.f32.mrf.mxu1 }
 0xfb6   : > { %v4817_v26 = vpop.f32.mrf.mxu0  ;;  %v4820_v52 = vsel %vm7184_vm0, %v4819_v15, 0.0 }
 0xfb7   : > { %4821 = vadd.xlane.f32.xlu0 %v4820_v52 }
0x1040   : > { %v4822_v18 = vpop.xlane.xlu0 %4821 }
0x1041   : > { %v4823_v49 = vmul.f32 0.02, %v4822_v18 }
0x1043   : > { %v4824_v34 = vsub.f32 %v4819_v15, %v4823_v49 }
0x1045   : > { %v4825_v39 = vmul.f32 %v4824_v34, %v4824_v34 }
0x1047   : > { %v4826_v30 = vsel %vm7200_vm8, %v4825_v39, 0.0 }
0x1048   : > { %4827 = vadd.xlane.f32.xlu1 %v4826_v30 }
0x10d1   : > { %v4828_v25 = vpop.xlane.xlu1 %4827 }
0x10d2   : > { %v4829_v41 = vmul.f32 0.02, %v4828_v25 }
0x10d4   : > { %v4830_v31 = vadd.f32 1e-05, %v4829_v41 }
0x10d6   : > { %5968 = vrsqrt.f32 %v4830_v31 }
0x10e3   : > { %v5969_v33 = vpop.eup %5968 }
0x10e4   : > { %v4832_v19 = vmul.f32 %v5969_v33, %v4824_v34 }
0x10e6   : > { %v4837_v4 = vmul.f32 %v4836_v1, %v4832_v19  ;;  %4847 = sbr.rel (%p5321_p5) target bundleno = 4547 (0x11c3), region = 64 }
0x10e8   : > { %v4842_v45 = vadd.f32 %v4841_v40, %v4837_v4 }
0x10ea   : > { %4843 = vst.msk [vmem:[#allocation2] sm:$0xff] %vm7201_vm11, %v4842_v45 }
0x10eb   : > { %v5973_v38 = vld [vmem:[%s7114_s7 + $0x18] ss:$0 sps:$4 sm:$0x11]   ;;  %v5989_v36 = vmov 0.0   ;;  %vm7202_vm12 = vcmask 1040384   ;;  %vm5990_vm3 = vmmov 0   ;;  %v4855_v32 = vpack.c.bf16 %v4842_v45, %v4842_v45 }
0x10ec   : > { %5792 = vmatprep.subr.bf16.mxu0 %v5989_v36  ;;  %v4888_v50 = vsel %vm7202_vm12, %v5973_v38, 0  ;;  %5800 = vmatprep.mubr.msk.bf16.mxu0 %vm5990_vm3, %v5989_v36  ;;  %v5974_v8 = vld [vmem:[%s7114_s7 + $0x10] sm:$0xff]   ;;  %v5975_v46 = vld [vmem:[%s7114_s7 + $0x8] sm:$0xff]   ;;  %v5976_v12 = vld [vmem:[%s7114_s7] sm:$0xff]   ;;  %vm7203_vm1 = vcmask 408576  }
0x10ed   : > { %5793 = vmatpush3.bf16.msra.mxu0 %v4888_v50  ;;  %v5322_v42 = vld [vmem:[%s7115_s8] ss:$0 sm:$0xff] }
0x10ee   : > { %5794 = vmatprep.subr.bf16.mxu0 %v5989_v36 }
0x10f1   : > { %5795 = vmatpush3.bf16.msra.mxu0 %v5974_v8 }
0x10f2   : > { %5796 = vmatprep.subr.bf16.mxu0 %v5989_v36 }
0x10f5   : > { %5797 = vmatpush3.bf16.msra.mxu0 %v5975_v46 }
0x10f6   : > { %5798 = vmatprep.subr.bf16.mxu0 %v5989_v36 }
0x10f9   : > { %5799 = vmatpush3.bf16.msra.mxu0 %v5976_v12 }
0x10fc   : > { %5801 = vmatmul.mubr.msk.bf16.vlgmr.msra.gmra.mxu0 %vm7203_vm1, %v4855_v32 }
0x11bc   : > { %v4924_v55 = vpop.f32.mrf.mxu0 }
0x11bd   : > { %v4925_v44 = vadd.f32 %v5322_v42, %v4924_v55 }
0x11be   : > { %v5802_v53 = vpop.f32.mrf.mxu0 }
0x11bf   : > { %4930 = vst [vmem:[%s7116_s9] sm:$0xff] %v4925_v44 }
0x11c0   : > { %v4927_v28 = vpop.f32.mrf.mxu0 }
0x11c2   : > { %v5803_v37 = vpop.f32.mrf.mxu0 }
0x11c3 PF: > { %s19_s30 = sadd.s32 1, %s5983_s30  }
0x11c4   : > { %p16_p6 = scmp.ge.s32.totalorder %s19_s30, 8  }
0x11c6   :  { %18 = sbr.rel (!%p16_p6) target bundleno = 1 (0x1), region = 109 }

</bundles_post_ra>
